<compile_context>
chip_gen: v7x
topology: tpu7x:2x2x1
jax: 0.10.0
libtpu: 0.0.40
codegen_flags: <defaults>
</compile_context>

<pallas_src>
import functools
import math

import numpy as np
import jax
import jax.numpy as jnp
from jax.experimental import pallas as pl
from jax.experimental.pallas import tpu as pltpu


_NEG = -1e9      # finite mask bias: same softmax as -inf for any row with >=1
                 # unmasked key, and no NaN hazard for fully-masked rows.
_LN_EPS = 1e-10  # matches the hand-rolled PyTorch LayerNorm


# ----------------------------------------------------------------------------
# In-kernel building blocks (plain functions on loaded values)
# ----------------------------------------------------------------------------
def _layernorm(y, g, bt, eps=_LN_EPS):
    # torch.var default is unbiased -> divide by (D-1), like the reference module.
    d = y.shape[-1]
    mean = jnp.mean(y, axis=-1, keepdims=True)
    diff = y - mean
    var = jnp.sum(diff * diff, axis=-1, keepdims=True) / (d - 1)
    return g * (diff * jax.lax.rsqrt(var + eps)) + bt


def _mha_ln(xq, xkv, bias, wq, bq, wkv, bkv, wc, bc, g, bt, *, B, Sq, Sk, n_head):
    """LayerNorm(xq + MHA(q=xq, k=v=xkv)).  xq:(B*Sq,D) xkv:(B*Sk,D) bias:(B,Sq,Sk)."""
    D = xq.shape[-1]
    Dh = D // n_head

    # Fused projections over the whole batch*seq slab.
    # (1/sqrt(Dh) is already folded into wq / bq at init.)
    q2 = jnp.dot(xq.astype(wq.dtype), wq, preferred_element_type=jnp.float32) + bq
    kv2 = jnp.dot(xkv.astype(wkv.dtype), wkv, preferred_element_type=jnp.float32) + bkv

    q3 = q2.reshape(B, Sq, D).astype(jnp.bfloat16)
    k3 = kv2[:, :D].reshape(B, Sk, D).astype(jnp.bfloat16)
    v3 = kv2[:, D:].reshape(B, Sk, D).astype(jnp.bfloat16)

    ctx = []
    for h in range(n_head):                                  # static unroll, H small
        sl = slice(h * Dh, (h + 1) * Dh)
        s = jnp.einsum('bqd,bkd->bqk', q3[:, :, sl], k3[:, :, sl],
                       preferred_element_type=jnp.float32) + bias
        m = jnp.max(s, axis=-1, keepdims=True)
        p = jnp.exp(s - m)
        p = p / jnp.sum(p, axis=-1, keepdims=True)           # exact softmax (torch parity)
        ctx.append(jnp.einsum('bqk,bkd->bqd', p.astype(jnp.bfloat16), v3[:, :, sl],
                              preferred_element_type=jnp.float32))
    # Single output-projection matmul on the concatenated per-head contexts.
    ctx2 = jnp.concatenate(ctx, axis=-1).reshape(B * Sq, D)
    y = jnp.dot(ctx2.astype(wc.dtype), wc, preferred_element_type=jnp.float32) + bc + xq
    return _layernorm(y, g, bt)


def _ffn_ln(x, w1, b1, w2, b2, g, bt):
    """LayerNorm(x + fc2(relu(fc1(x)))) on a (B*S, D) slab."""
    h = jnp.dot(x.astype(w1.dtype), w1, preferred_element_type=jnp.float32) + b1
    h = jnp.maximum(h, 0.0)
    f = jnp.dot(h.astype(w2.dtype), w2, preferred_element_type=jnp.float32) + b2
    return _layernorm(f + x, g, bt)


# ----------------------------------------------------------------------------
# Whole-stack kernels (single invocation, everything VMEM-resident)
# ----------------------------------------------------------------------------
def _encoder_stack_kernel(x_ref, bias_ref,
                          wq_ref, bq_ref, wkv_ref, bkv_ref, wc_ref, bc_ref,
                          g1_ref, bt1_ref,
                          w1_ref, b1_ref, w2_ref, b2_ref, g2_ref, bt2_ref,
                          o_ref, *, n_layers, n_head, B, S):
    x = x_ref[...]                               # (B*S, D) f32
    bias = bias_ref[...]                         # (B, S, S) additive mask bias
    for l in range(n_layers):                    # static unroll over the stack
        x = _mha_ln(x, x, bias,
                    wq_ref[l], bq_ref[l], wkv_ref[l], bkv_ref[l],
                    wc_ref[l], bc_ref[l], g1_ref[l], bt1_ref[l],
                    B=B, Sq=S, Sk=S, n_head=n_head)
        x = _ffn_ln(x, w1_ref[l], b1_ref[l], w2_ref[l], b2_ref[l],
                    g2_ref[l], bt2_ref[l])
    o_ref[...] = x


def _decoder_stack_kernel(d_ref, enc_ref, sbias_ref, cbias_ref,
                          swq_ref, sbq_ref, swkv_ref, sbkv_ref, swc_ref, sbc_ref,
                          g1_ref, bt1_ref,
                          cwq_ref, cbq_ref, cwkv_ref, cbkv_ref, cwc_ref, cbc_ref,
                          g2_ref, bt2_ref,
                          w1_ref, b1_ref, w2_ref, b2_ref, g3_ref, bt3_ref,
                          fcw_ref, fcb_ref,
                          o_ref, *, n_layers, n_head, B, St, Ss):
    d = d_ref[...]                               # (B*St, D) f32
    enc = enc_ref[...]                           # (B*Ss, D) f32
    sbias = sbias_ref[...]                       # (B, St, St)
    cbias = cbias_ref[...]                       # (B, St, Ss)
    for l in range(n_layers):                    # static unroll over the stack
        d = _mha_ln(d, d, sbias,
                    swq_ref[l], sbq_ref[l], swkv_ref[l], sbkv_ref[l],
                    swc_ref[l], sbc_ref[l], g1_ref[l], bt1_ref[l],
                    B=B, Sq=St, Sk=St, n_head=n_head)
        d = _mha_ln(d, enc, cbias,
                    cwq_ref[l], cbq_ref[l], cwkv_ref[l], cbkv_ref[l],
                    cwc_ref[l], cbc_ref[l], g2_ref[l], bt2_ref[l],
                    B=B, Sq=St, Sk=Ss, n_head=n_head)
        d = _ffn_ln(d, w1_ref[l], b1_ref[l], w2_ref[l], b2_ref[l],
                    g3_ref[l], bt3_ref[l])
    # Final vocab projection, lane-dense output (V padded to 128 at init).
    fcw = fcw_ref[...]
    o_ref[...] = (jnp.dot(d.astype(fcw.dtype), fcw,
                          preferred_element_type=jnp.float32) + fcb_ref[...])


# ----------------------------------------------------------------------------
# pallas_call wrappers
# ----------------------------------------------------------------------------
def _vmem_spec():
    return pl.BlockSpec(memory_space=pltpu.MemorySpace.VMEM)


def encoder_stack(x, bias, p, *, n_head):
    B, S, D = x.shape
    n_layers = p["wq"].shape[0]
    args = (x.reshape(B * S, D), bias,
            p["wq"], p["bq"], p["wkv"], p["bkv"], p["wc"], p["bc"],
            p["g1"], p["bt1"],
            p["w1"], p["b1"], p["w2"], p["b2"], p["g2"], p["bt2"])
    return pl.pallas_call(
        functools.partial(_encoder_stack_kernel, n_layers=n_layers,
                          n_head=n_head, B=B, S=S),
        out_shape=jax.ShapeDtypeStruct((B * S, D), jnp.float32),
        in_specs=[_vmem_spec() for _ in args],
        out_specs=_vmem_spec(),
    )(*args)                                          # (B*S, D), fed to the decoder


def decoder_stack(d, enc2d, self_bias, cross_bias, p, fc_w, fc_b, *, n_head, v_out):
    B, St, D = d.shape
    Ss = enc2d.shape[0] // B
    n_layers = p["swq"].shape[0]
    Vpad = fc_w.shape[1]
    args = (d.reshape(B * St, D), enc2d, self_bias, cross_bias,
            p["swq"], p["sbq"], p["swkv"], p["sbkv"], p["swc"], p["sbc"],
            p["g1"], p["bt1"],
            p["cwq"], p["cbq"], p["cwkv"], p["cbkv"], p["cwc"], p["cbc"],
            p["g2"], p["bt2"],
            p["w1"], p["b1"], p["w2"], p["b2"], p["g3"], p["bt3"],
            fc_w, fc_b)
    out = pl.pallas_call(
        functools.partial(_decoder_stack_kernel, n_layers=n_layers,
                          n_head=n_head, B=B, St=St, Ss=Ss),
        out_shape=jax.ShapeDtypeStruct((B * St, Vpad), jnp.float32),
        in_specs=[_vmem_spec() for _ in args],
        out_specs=_vmem_spec(),
    )(*args)
    return out.reshape(B, St, Vpad)[:, :, :v_out]     # drop lane padding


# ----------------------------------------------------------------------------
# Plain-JAX glue: embeddings, positional encoding, mask biases
# ----------------------------------------------------------------------------
def _position_encoding(max_len, d_model):
    pos = np.arange(max_len, dtype=np.float32)[:, None]
    two_i = np.arange(0, d_model, 2, dtype=np.float32)
    enc = np.zeros((max_len, d_model), dtype=np.float32)
    enc[:, 0::2] = np.sin(pos / 10000 ** (two_i / d_model))
    enc[:, 1::2] = np.cos(pos / 10000 ** (two_i / d_model))
    return jnp.asarray(enc)


def _embed(emb_table, pos_enc, tokens):
    # token gather + positional encoding; dropout = identity (eval mode)
    return jnp.take(emb_table, tokens, axis=0) + pos_enc[: tokens.shape[1], :]


def _pad_keep(q_tok, k_tok, pad_q, pad_k):
    return (q_tok != pad_q)[:, :, None] & (k_tok != pad_k)[:, None, :]


def _to_bias(keep):
    return jnp.where(keep, 0.0, _NEG).astype(jnp.float32)


# ----------------------------------------------------------------------------
# Full Transformer forward
# ----------------------------------------------------------------------------
def transformer_forward(params, cfg, src, tgt):
    H = cfg["n_head"]
    src_bias = _to_bias(_pad_keep(src, src, cfg["src_pad_idx"], cfg["src_pad_idx"]))
    causal = jnp.tril(jnp.ones((tgt.shape[1], tgt.shape[1]), dtype=bool))
    tgt_bias = _to_bias(_pad_keep(tgt, tgt, cfg["tgt_pad_idx"], cfg["tgt_pad_idx"])
                        & causal[None])
    cross_bias = _to_bias(_pad_keep(tgt, src, cfg["tgt_pad_idx"], cfg["src_pad_idx"]))

    x = _embed(params["enc_emb"], params["pos_enc"], src)          # (B, Ss, D)
    enc2d = encoder_stack(x, src_bias, params["enc"], n_head=H)    # kernel 1

    d = _embed(params["dec_emb"], params["pos_enc"], tgt)          # (B, St, D)
    return decoder_stack(d, enc2d, tgt_bias, cross_bias, params["dec"],
                         params["fc_w"], params["fc_b"],
                         n_head=H, v_out=cfg["dec_voc_size"])      # kernel 2


# ----------------------------------------------------------------------------
# Deterministic parameter init (pre-transposed, fused-KV, scale-folded,
# bf16 matmul weights, per-layer weights stacked on a leading L axis)
# ----------------------------------------------------------------------------
def _init_linear(key, out_f, in_f):
    kw, kb = jax.random.split(key)
    bound = 1.0 / math.sqrt(in_f)
    w = jax.random.uniform(kw, (out_f, in_f), jnp.float32, -bound, bound)
    b = jax.random.uniform(kb, (out_f,), jnp.float32, -bound, bound)
    return w, b


def _init_mha(key, d_model, n_head):
    d_head = d_model // n_head
    scale = 1.0 / math.sqrt(d_head)
    ks = jax.random.split(key, 4)
    wq, bq = _init_linear(ks[0], d_model, d_model)
    wk, bk = _init_linear(ks[1], d_model, d_model)
    wv, bv = _init_linear(ks[2], d_model, d_model)
    wc, bc = _init_linear(ks[3], d_model, d_model)
    return dict(
        wq=(wq.T * scale).astype(jnp.bfloat16),          # scale folded into Q
        bq=(bq * scale).reshape(1, d_model),
        wkv=jnp.concatenate([wk.T, wv.T], axis=1).astype(jnp.bfloat16),   # (D, 2D)
        bkv=jnp.concatenate([bk, bv]).reshape(1, 2 * d_model),
        wc=wc.T.astype(jnp.bfloat16),
        bc=bc.reshape(1, d_model),
    )


def _init_ffn(key, d_model, d_ffn):
    k1, k2 = jax.random.split(key)
    w1, b1 = _init_linear(k1, d_ffn, d_model)
    w2, b2 = _init_linear(k2, d_model, d_ffn)
    return dict(w1=w1.T.astype(jnp.bfloat16), b1=b1.reshape(1, d_ffn),
                w2=w2.T.astype(jnp.bfloat16), b2=b2.reshape(1, d_model))


def _init_enc_layer(key, d_model, d_ffn, n_head):
    k1, k2 = jax.random.split(key)
    one = jnp.ones((1, d_model), jnp.float32)
    zero = jnp.zeros((1, d_model), jnp.float32)
    return dict(**_init_mha(k1, d_model, n_head), **_init_ffn(k2, d_model, d_ffn),
                g1=one, bt1=zero, g2=one, bt2=zero)


def _init_dec_layer(key, d_model, d_ffn, n_head):
    k1, k2, k3 = jax.random.split(key, 3)
    sa = {('s' + k): v for k, v in _init_mha(k1, d_model, n_head).items()}
    ca = {('c' + k): v for k, v in _init_mha(k2, d_model, n_head).items()}
    one = jnp.ones((1, d_model), jnp.float32)
    zero = jnp.zeros((1, d_model), jnp.float32)
    return dict(**sa, **ca, **_init_ffn(k3, d_model, d_ffn),
                g1=one, bt1=zero, g2=one, bt2=zero, g3=one, bt3=zero)


def _stack_layers(layers):
    return jax.tree_util.tree_map(lambda *xs: jnp.stack(xs, axis=0), *layers)


def init_params(key, cfg):
    D, F, H, L = cfg["d_model"], cfg["ffn_hidden"], cfg["n_head"], cfg["n_layers"]
    keys = jax.random.split(key, 6)
    enc_emb = jax.random.normal(keys[0], (cfg["enc_voc_size"], D), jnp.float32)
    enc_emb = enc_emb.at[1].set(0.0)                     # padding_idx = 1
    dec_emb = jax.random.normal(keys[1], (cfg["dec_voc_size"], D), jnp.float32)
    dec_emb = dec_emb.at[1].set(0.0)

    enc = _stack_layers([_init_enc_layer(k, D, F, H)
                         for k in jax.random.split(keys[2], L)])
    dec = _stack_layers([_init_dec_layer(k, D, F, H)
                         for k in jax.random.split(keys[3], L)])

    V = cfg["dec_voc_size"]
    Vpad = ((V + 127) // 128) * 128                      # lane-dense final store
    fc_w, fc_b = _init_linear(keys[4], V, D)
    fc_w_pad = jnp.zeros((D, Vpad), jnp.float32).at[:, :V].set(fc_w.T)
    fc_b_pad = jnp.zeros((1, Vpad), jnp.float32).at[0, :V].set(fc_b)

    return dict(enc_emb=enc_emb, dec_emb=dec_emb,
                pos_enc=_position_encoding(cfg["max_len"], D),
                enc=enc, dec=dec,
                fc_w=fc_w_pad.astype(jnp.bfloat16), fc_b=fc_b_pad)


# ----------------------------------------------------------------------------
if __name__ == "__main__":
    cfg = dict(
        src_pad_idx=1, tgt_pad_idx=1,
        enc_voc_size=50, dec_voc_size=60,
        max_len=32, d_model=32, n_head=4,
        ffn_hidden=64, n_layers=2, drop_prob=0.1,   # dropout identity at inference
    )
    # seq lens multiples of 8 -> B*S fills whole sublane tiles
    B, SRC_LEN, TGT_LEN = 2, 16, 8

    key = jax.random.PRNGKey(0)
    k_params, k_src, k_tgt = jax.random.split(key, 3)
    params = init_params(k_params, cfg)

    # tokens in [2, vocab): no fully-masked rows, mirrors real (non-all-pad) batches
    src = jax.random.randint(k_src, (B, SRC_LEN), 2, cfg["enc_voc_size"], jnp.int32)
    tgt = jax.random.randint(k_tgt, (B, TGT_LEN), 2, cfg["dec_voc_size"], jnp.int32)

    fwd = jax.jit(lambda p, s, t: transformer_forward(p, cfg, s, t))
    out = fwd(params, src, tgt)
    jax.block_until_ready(out)
    assert out.shape == (B, TGT_LEN, cfg["dec_voc_size"]), out.shape
    assert bool(jnp.all(jnp.isfinite(out)))
    print("KERNEL_OK")
</pallas_src>

<mosaic_0001>
module attributes {stable_mosaic.version = 11 : i64} {
  func.func @_encoder_stack_kernel(%arg0: memref<32x32xf32, #tpu.memory_space<vmem>>, %arg1: memref<2x16x16xf32, #tpu.memory_space<vmem>>, %arg2: memref<2x32x32xbf16, #tpu.memory_space<vmem>>, %arg3: memref<2x1x32xf32, #tpu.memory_space<vmem>>, %arg4: memref<2x32x64xbf16, #tpu.memory_space<vmem>>, %arg5: memref<2x1x64xf32, #tpu.memory_space<vmem>>, %arg6: memref<2x32x32xbf16, #tpu.memory_space<vmem>>, %arg7: memref<2x1x32xf32, #tpu.memory_space<vmem>>, %arg8: memref<2x1x32xf32, #tpu.memory_space<vmem>>, %arg9: memref<2x1x32xf32, #tpu.memory_space<vmem>>, %arg10: memref<2x32x64xbf16, #tpu.memory_space<vmem>>, %arg11: memref<2x1x64xf32, #tpu.memory_space<vmem>>, %arg12: memref<2x64x32xbf16, #tpu.memory_space<vmem>>, %arg13: memref<2x1x32xf32, #tpu.memory_space<vmem>>, %arg14: memref<2x1x32xf32, #tpu.memory_space<vmem>>, %arg15: memref<2x1x32xf32, #tpu.memory_space<vmem>>, %arg16: memref<32x32xf32, #tpu.memory_space<vmem>>) attributes {dimension_semantics = [], scalar_prefetch = 0 : i64, scratch_operands = 0 : i64, tpu.core_type = #tpu.core_type<tc>} {
    %c0 = arith.constant 0 : index
    %c0_0 = arith.constant 0 : index
    %0 = vector.load %arg0[%c0, %c0_0] : memref<32x32xf32, #tpu.memory_space<vmem>>, vector<32x32xf32>
    %c0_1 = arith.constant 0 : index
    %c0_2 = arith.constant 0 : index
    %c0_3 = arith.constant 0 : index
    %1 = vector.load %arg1[%c0_1, %c0_2, %c0_3] : memref<2x16x16xf32, #tpu.memory_space<vmem>>, vector<2x16x16xf32>
    %c0_4 = arith.constant 0 : index
    %c0_5 = arith.constant 0 : index
    %c0_6 = arith.constant 0 : index
    %2 = vector.load %arg2[%c0_4, %c0_5, %c0_6] : memref<2x32x32xbf16, #tpu.memory_space<vmem>>, vector<1x32x32xbf16>
    %3 = vector.shape_cast %2 : vector<1x32x32xbf16> to vector<32x32xbf16>
    %c0_7 = arith.constant 0 : index
    %c0_8 = arith.constant 0 : index
    %c0_9 = arith.constant 0 : index
    %4 = vector.load %arg3[%c0_7, %c0_8, %c0_9] : memref<2x1x32xf32, #tpu.memory_space<vmem>>, vector<1x1x32xf32>
    %5 = vector.shape_cast %4 : vector<1x1x32xf32> to vector<1x32xf32>
    %c0_10 = arith.constant 0 : index
    %c0_11 = arith.constant 0 : index
    %c0_12 = arith.constant 0 : index
    %6 = vector.load %arg4[%c0_10, %c0_11, %c0_12] : memref<2x32x64xbf16, #tpu.memory_space<vmem>>, vector<1x32x64xbf16>
    %7 = vector.shape_cast %6 : vector<1x32x64xbf16> to vector<32x64xbf16>
    %c0_13 = arith.constant 0 : index
    %c0_14 = arith.constant 0 : index
    %c0_15 = arith.constant 0 : index
    %8 = vector.load %arg5[%c0_13, %c0_14, %c0_15] : memref<2x1x64xf32, #tpu.memory_space<vmem>>, vector<1x1x64xf32>
    %9 = vector.shape_cast %8 : vector<1x1x64xf32> to vector<1x64xf32>
    %c0_16 = arith.constant 0 : index
    %c0_17 = arith.constant 0 : index
    %c0_18 = arith.constant 0 : index
    %10 = vector.load %arg6[%c0_16, %c0_17, %c0_18] : memref<2x32x32xbf16, #tpu.memory_space<vmem>>, vector<1x32x32xbf16>
    %11 = vector.shape_cast %10 : vector<1x32x32xbf16> to vector<32x32xbf16>
    %c0_19 = arith.constant 0 : index
    %c0_20 = arith.constant 0 : index
    %c0_21 = arith.constant 0 : index
    %12 = vector.load %arg7[%c0_19, %c0_20, %c0_21] : memref<2x1x32xf32, #tpu.memory_space<vmem>>, vector<1x1x32xf32>
    %13 = vector.shape_cast %12 : vector<1x1x32xf32> to vector<1x32xf32>
    %c0_22 = arith.constant 0 : index
    %c0_23 = arith.constant 0 : index
    %c0_24 = arith.constant 0 : index
    %14 = vector.load %arg8[%c0_22, %c0_23, %c0_24] : memref<2x1x32xf32, #tpu.memory_space<vmem>>, vector<1x1x32xf32>
    %15 = vector.shape_cast %14 : vector<1x1x32xf32> to vector<1x32xf32>
    %c0_25 = arith.constant 0 : index
    %c0_26 = arith.constant 0 : index
    %c0_27 = arith.constant 0 : index
    %16 = vector.load %arg9[%c0_25, %c0_26, %c0_27] : memref<2x1x32xf32, #tpu.memory_space<vmem>>, vector<1x1x32xf32>
    %17 = vector.shape_cast %16 : vector<1x1x32xf32> to vector<1x32xf32>
    %18 = arith.truncf %0 : vector<32x32xf32> to vector<32x32xbf16>
    %cst = arith.constant dense<0.000000e+00> : vector<32x32xf32>
    %19 = tpu.matmul %18, %3, %cst {dimension_numbers = #tpu.dot_dimension_numbers<[1], [0], [0], [1], [0, 0, 1, 1], [], []>} : vector<32x32xbf16>, vector<32x32xbf16>, vector<32x32xf32> -> vector<32x32xf32>
    %20 = vector.broadcast %5 : vector<1x32xf32> to vector<32x32xf32>
    %21 = arith.addf %19, %20 : vector<32x32xf32>
    %22 = arith.truncf %0 : vector<32x32xf32> to vector<32x32xbf16>
    %cst_28 = arith.constant dense<0.000000e+00> : vector<32x64xf32>
    %23 = tpu.matmul %22, %7, %cst_28 {dimension_numbers = #tpu.dot_dimension_numbers<[1], [0], [0], [1], [0, 0, 1, 1], [], []>} : vector<32x32xbf16>, vector<32x64xbf16>, vector<32x64xf32> -> vector<32x64xf32>
    %24 = vector.broadcast %9 : vector<1x64xf32> to vector<32x64xf32>
    %25 = arith.addf %23, %24 : vector<32x64xf32>
    %26 = vector.shape_cast %21 : vector<32x32xf32> to vector<2x16x32xf32>
    %27 = arith.truncf %26 : vector<2x16x32xf32> to vector<2x16x32xbf16>
    %28 = vector.extract_strided_slice %25 {offsets = [0, 0], sizes = [32, 32], strides = [1, 1]} : vector<32x64xf32> to vector<32x32xf32>
    %29 = vector.shape_cast %28 : vector<32x32xf32> to vector<2x16x32xf32>
    %30 = arith.truncf %29 : vector<2x16x32xf32> to vector<2x16x32xbf16>
    %31 = vector.extract_strided_slice %25 {offsets = [0, 32], sizes = [32, 32], strides = [1, 1]} : vector<32x64xf32> to vector<32x32xf32>
    %32 = vector.shape_cast %31 : vector<32x32xf32> to vector<2x16x32xf32>
    %33 = arith.truncf %32 : vector<2x16x32xf32> to vector<2x16x32xbf16>
    %34 = vector.extract_strided_slice %27 {offsets = [0, 0, 0], sizes = [2, 16, 8], strides = [1, 1, 1]} : vector<2x16x32xbf16> to vector<2x16x8xbf16>
    %35 = vector.extract_strided_slice %30 {offsets = [0, 0, 0], sizes = [2, 16, 8], strides = [1, 1, 1]} : vector<2x16x32xbf16> to vector<2x16x8xbf16>
    "tpu.trace_start"() <{level = 10 : i32, message = "bqd,bkd->bqk"}> : () -> ()
    %cst_29 = arith.constant dense<0.000000e+00> : vector<2x16x16xf32>
    %36 = tpu.matmul %34, %35, %cst_29 {dimension_numbers = #tpu.dot_dimension_numbers<[2], [2], [1], [1], [0, 0, 0, 1, 1, 1], [0], [0]>} : vector<2x16x8xbf16>, vector<2x16x8xbf16>, vector<2x16x16xf32> -> vector<2x16x16xf32>
    "tpu.trace_stop"() : () -> ()
    %37 = arith.addf %36, %1 : vector<2x16x16xf32>
    %cst_30 = arith.constant dense<0xFF800000> : vector<2x16xf32>
    %38 = vector.multi_reduction <maximumf>, %37, %cst_30 [2] : vector<2x16x16xf32> to vector<2x16xf32>
    %39 = vector.shape_cast %38 : vector<2x16xf32> to vector<2x16x1xf32>
    %40 = vector.broadcast %39 : vector<2x16x1xf32> to vector<2x16x16xf32>
    %41 = arith.subf %37, %40 : vector<2x16x16xf32>
    %42 = math.exp %41 : vector<2x16x16xf32>
    %cst_31 = arith.constant dense<0.000000e+00> : vector<2x16xf32>
    %43 = vector.multi_reduction <add>, %42, %cst_31 [2] : vector<2x16x16xf32> to vector<2x16xf32>
    %44 = vector.shape_cast %43 : vector<2x16xf32> to vector<2x16x1xf32>
    %45 = vector.broadcast %44 : vector<2x16x1xf32> to vector<2x16x16xf32>
    %46 = arith.divf %42, %45 : vector<2x16x16xf32>
    %47 = arith.truncf %46 : vector<2x16x16xf32> to vector<2x16x16xbf16>
    %48 = vector.extract_strided_slice %33 {offsets = [0, 0, 0], sizes = [2, 16, 8], strides = [1, 1, 1]} : vector<2x16x32xbf16> to vector<2x16x8xbf16>
    "tpu.trace_start"() <{level = 10 : i32, message = "bqk,bkd->bqd"}> : () -> ()
    %cst_32 = arith.constant dense<0.000000e+00> : vector<2x16x8xf32>
    %49 = tpu.matmul %47, %48, %cst_32 {dimension_numbers = #tpu.dot_dimension_numbers<[2], [1], [1], [2], [0, 0, 0, 1, 1, 2], [0], [0]>} : vector<2x16x16xbf16>, vector<2x16x8xbf16>, vector<2x16x8xf32> -> vector<2x16x8xf32>
    "tpu.trace_stop"() : () -> ()
    %50 = vector.extract_strided_slice %27 {offsets = [0, 0, 8], sizes = [2, 16, 8], strides = [1, 1, 1]} : vector<2x16x32xbf16> to vector<2x16x8xbf16>
    %51 = vector.extract_strided_slice %30 {offsets = [0, 0, 8], sizes = [2, 16, 8], strides = [1, 1, 1]} : vector<2x16x32xbf16> to vector<2x16x8xbf16>
    "tpu.trace_start"() <{level = 10 : i32, message = "bqd,bkd->bqk"}> : () -> ()
    %cst_33 = arith.constant dense<0.000000e+00> : vector<2x16x16xf32>
    %52 = tpu.matmul %50, %51, %cst_33 {dimension_numbers = #tpu.dot_dimension_numbers<[2], [2], [1], [1], [0, 0, 0, 1, 1, 1], [0], [0]>} : vector<2x16x8xbf16>, vector<2x16x8xbf16>, vector<2x16x16xf32> -> vector<2x16x16xf32>
    "tpu.trace_stop"() : () -> ()
    %53 = arith.addf %52, %1 : vector<2x16x16xf32>
    %cst_34 = arith.constant dense<0xFF800000> : vector<2x16xf32>
    %54 = vector.multi_reduction <maximumf>, %53, %cst_34 [2] : vector<2x16x16xf32> to vector<2x16xf32>
    %55 = vector.shape_cast %54 : vector<2x16xf32> to vector<2x16x1xf32>
    %56 = vector.broadcast %55 : vector<2x16x1xf32> to vector<2x16x16xf32>
    %57 = arith.subf %53, %56 : vector<2x16x16xf32>
    %58 = math.exp %57 : vector<2x16x16xf32>
    %cst_35 = arith.constant dense<0.000000e+00> : vector<2x16xf32>
    %59 = vector.multi_reduction <add>, %58, %cst_35 [2] : vector<2x16x16xf32> to vector<2x16xf32>
    %60 = vector.shape_cast %59 : vector<2x16xf32> to vector<2x16x1xf32>
    %61 = vector.broadcast %60 : vector<2x16x1xf32> to vector<2x16x16xf32>
    %62 = arith.divf %58, %61 : vector<2x16x16xf32>
    %63 = arith.truncf %62 : vector<2x16x16xf32> to vector<2x16x16xbf16>
    %64 = vector.extract_strided_slice %33 {offsets = [0, 0, 8], sizes = [2, 16, 8], strides = [1, 1, 1]} : vector<2x16x32xbf16> to vector<2x16x8xbf16>
    "tpu.trace_start"() <{level = 10 : i32, message = "bqk,bkd->bqd"}> : () -> ()
    %cst_36 = arith.constant dense<0.000000e+00> : vector<2x16x8xf32>
    %65 = tpu.matmul %63, %64, %cst_36 {dimension_numbers = #tpu.dot_dimension_numbers<[2], [1], [1], [2], [0, 0, 0, 1, 1, 2], [0], [0]>} : vector<2x16x16xbf16>, vector<2x16x8xbf16>, vector<2x16x8xf32> -> vector<2x16x8xf32>
    "tpu.trace_stop"() : () -> ()
    %66 = vector.extract_strided_slice %27 {offsets = [0, 0, 16], sizes = [2, 16, 8], strides = [1, 1, 1]} : vector<2x16x32xbf16> to vector<2x16x8xbf16>
    %67 = vector.extract_strided_slice %30 {offsets = [0, 0, 16], sizes = [2, 16, 8], strides = [1, 1, 1]} : vector<2x16x32xbf16> to vector<2x16x8xbf16>
    "tpu.trace_start"() <{level = 10 : i32, message = "bqd,bkd->bqk"}> : () -> ()
    %cst_37 = arith.constant dense<0.000000e+00> : vector<2x16x16xf32>
    %68 = tpu.matmul %66, %67, %cst_37 {dimension_numbers = #tpu.dot_dimension_numbers<[2], [2], [1], [1], [0, 0, 0, 1, 1, 1], [0], [0]>} : vector<2x16x8xbf16>, vector<2x16x8xbf16>, vector<2x16x16xf32> -> vector<2x16x16xf32>
    "tpu.trace_stop"() : () -> ()
    %69 = arith.addf %68, %1 : vector<2x16x16xf32>
    %cst_38 = arith.constant dense<0xFF800000> : vector<2x16xf32>
    %70 = vector.multi_reduction <maximumf>, %69, %cst_38 [2] : vector<2x16x16xf32> to vector<2x16xf32>
    %71 = vector.shape_cast %70 : vector<2x16xf32> to vector<2x16x1xf32>
    %72 = vector.broadcast %71 : vector<2x16x1xf32> to vector<2x16x16xf32>
    %73 = arith.subf %69, %72 : vector<2x16x16xf32>
    %74 = math.exp %73 : vector<2x16x16xf32>
    %cst_39 = arith.constant dense<0.000000e+00> : vector<2x16xf32>
    %75 = vector.multi_reduction <add>, %74, %cst_39 [2] : vector<2x16x16xf32> to vector<2x16xf32>
    %76 = vector.shape_cast %75 : vector<2x16xf32> to vector<2x16x1xf32>
    %77 = vector.broadcast %76 : vector<2x16x1xf32> to vector<2x16x16xf32>
    %78 = arith.divf %74, %77 : vector<2x16x16xf32>
    %79 = arith.truncf %78 : vector<2x16x16xf32> to vector<2x16x16xbf16>
    %80 = vector.extract_strided_slice %33 {offsets = [0, 0, 16], sizes = [2, 16, 8], strides = [1, 1, 1]} : vector<2x16x32xbf16> to vector<2x16x8xbf16>
    "tpu.trace_start"() <{level = 10 : i32, message = "bqk,bkd->bqd"}> : () -> ()
    %cst_40 = arith.constant dense<0.000000e+00> : vector<2x16x8xf32>
    %81 = tpu.matmul %79, %80, %cst_40 {dimension_numbers = #tpu.dot_dimension_numbers<[2], [1], [1], [2], [0, 0, 0, 1, 1, 2], [0], [0]>} : vector<2x16x16xbf16>, vector<2x16x8xbf16>, vector<2x16x8xf32> -> vector<2x16x8xf32>
    "tpu.trace_stop"() : () -> ()
    %82 = vector.extract_strided_slice %27 {offsets = [0, 0, 24], sizes = [2, 16, 8], strides = [1, 1, 1]} : vector<2x16x32xbf16> to vector<2x16x8xbf16>
    %83 = vector.extract_strided_slice %30 {offsets = [0, 0, 24], sizes = [2, 16, 8], strides = [1, 1, 1]} : vector<2x16x32xbf16> to vector<2x16x8xbf16>
    "tpu.trace_start"() <{level = 10 : i32, message = "bqd,bkd->bqk"}> : () -> ()
    %cst_41 = arith.constant dense<0.000000e+00> : vector<2x16x16xf32>
    %84 = tpu.matmul %82, %83, %cst_41 {dimension_numbers = #tpu.dot_dimension_numbers<[2], [2], [1], [1], [0, 0, 0, 1, 1, 1], [0], [0]>} : vector<2x16x8xbf16>, vector<2x16x8xbf16>, vector<2x16x16xf32> -> vector<2x16x16xf32>
    "tpu.trace_stop"() : () -> ()
    %85 = arith.addf %84, %1 : vector<2x16x16xf32>
    %cst_42 = arith.constant dense<0xFF800000> : vector<2x16xf32>
    %86 = vector.multi_reduction <maximumf>, %85, %cst_42 [2] : vector<2x16x16xf32> to vector<2x16xf32>
    %87 = vector.shape_cast %86 : vector<2x16xf32> to vector<2x16x1xf32>
    %88 = vector.broadcast %87 : vector<2x16x1xf32> to vector<2x16x16xf32>
    %89 = arith.subf %85, %88 : vector<2x16x16xf32>
    %90 = math.exp %89 : vector<2x16x16xf32>
    %cst_43 = arith.constant dense<0.000000e+00> : vector<2x16xf32>
    %91 = vector.multi_reduction <add>, %90, %cst_43 [2] : vector<2x16x16xf32> to vector<2x16xf32>
    %92 = vector.shape_cast %91 : vector<2x16xf32> to vector<2x16x1xf32>
    %93 = vector.broadcast %92 : vector<2x16x1xf32> to vector<2x16x16xf32>
    %94 = arith.divf %90, %93 : vector<2x16x16xf32>
    %95 = arith.truncf %94 : vector<2x16x16xf32> to vector<2x16x16xbf16>
    %96 = vector.extract_strided_slice %33 {offsets = [0, 0, 24], sizes = [2, 16, 8], strides = [1, 1, 1]} : vector<2x16x32xbf16> to vector<2x16x8xbf16>
    "tpu.trace_start"() <{level = 10 : i32, message = "bqk,bkd->bqd"}> : () -> ()
    %cst_44 = arith.constant dense<0.000000e+00> : vector<2x16x8xf32>
    %97 = tpu.matmul %95, %96, %cst_44 {dimension_numbers = #tpu.dot_dimension_numbers<[2], [1], [1], [2], [0, 0, 0, 1, 1, 2], [0], [0]>} : vector<2x16x16xbf16>, vector<2x16x8xbf16>, vector<2x16x8xf32> -> vector<2x16x8xf32>
    "tpu.trace_stop"() : () -> ()
    %98 = tpu.concatenate %49, %65, %81, %97 in 2 : vector<2x16x8xf32>, vector<2x16x8xf32>, vector<2x16x8xf32>, vector<2x16x8xf32> -> vector<2x16x32xf32>
    %99 = vector.shape_cast %98 : vector<2x16x32xf32> to vector<32x32xf32>
    %100 = arith.truncf %99 : vector<32x32xf32> to vector<32x32xbf16>
    %cst_45 = arith.constant dense<0.000000e+00> : vector<32x32xf32>
    %101 = tpu.matmul %100, %11, %cst_45 {dimension_numbers = #tpu.dot_dimension_numbers<[1], [0], [0], [1], [0, 0, 1, 1], [], []>} : vector<32x32xbf16>, vector<32x32xbf16>, vector<32x32xf32> -> vector<32x32xf32>
    %102 = vector.broadcast %13 : vector<1x32xf32> to vector<32x32xf32>
    %103 = arith.addf %101, %102 : vector<32x32xf32>
    %104 = arith.addf %103, %0 : vector<32x32xf32>
    %cst_46 = arith.constant dense<0.000000e+00> : vector<32xf32>
    %105 = vector.multi_reduction <add>, %104, %cst_46 [1] : vector<32x32xf32> to vector<32xf32>
    %106 = vector.shape_cast %105 : vector<32xf32> to vector<32x1xf32>
    %cst_47 = arith.constant 3.200000e+01 : f32
    %107 = vector.broadcast %cst_47 : f32 to vector<32x1xf32>
    %108 = arith.divf %106, %107 : vector<32x1xf32>
    %109 = vector.broadcast %108 : vector<32x1xf32> to vector<32x32xf32>
    %110 = arith.subf %104, %109 : vector<32x32xf32>
    %111 = arith.mulf %110, %110 : vector<32x32xf32>
    %cst_48 = arith.constant dense<0.000000e+00> : vector<32xf32>
    %112 = vector.multi_reduction <add>, %111, %cst_48 [1] : vector<32x32xf32> to vector<32xf32>
    %113 = vector.shape_cast %112 : vector<32xf32> to vector<32x1xf32>
    %cst_49 = arith.constant 3.100000e+01 : f32
    %114 = vector.broadcast %cst_49 : f32 to vector<32x1xf32>
    %115 = arith.divf %113, %114 : vector<32x1xf32>
    %cst_50 = arith.constant 1.000000e-10 : f32
    %116 = vector.broadcast %cst_50 : f32 to vector<32x1xf32>
    %117 = arith.addf %115, %116 : vector<32x1xf32>
    %118 = math.rsqrt %117 : vector<32x1xf32>
    %119 = vector.broadcast %118 : vector<32x1xf32> to vector<32x32xf32>
    %120 = arith.mulf %110, %119 : vector<32x32xf32>
    %121 = vector.broadcast %15 : vector<1x32xf32> to vector<32x32xf32>
    %122 = arith.mulf %121, %120 : vector<32x32xf32>
    %123 = vector.broadcast %17 : vector<1x32xf32> to vector<32x32xf32>
    %124 = arith.addf %122, %123 : vector<32x32xf32>
    %c0_51 = arith.constant 0 : index
    %c0_52 = arith.constant 0 : index
    %c0_53 = arith.constant 0 : index
    %125 = vector.load %arg10[%c0_51, %c0_52, %c0_53] : memref<2x32x64xbf16, #tpu.memory_space<vmem>>, vector<1x32x64xbf16>
    %126 = vector.shape_cast %125 : vector<1x32x64xbf16> to vector<32x64xbf16>
    %c0_54 = arith.constant 0 : index
    %c0_55 = arith.constant 0 : index
    %c0_56 = arith.constant 0 : index
    %127 = vector.load %arg11[%c0_54, %c0_55, %c0_56] : memref<2x1x64xf32, #tpu.memory_space<vmem>>, vector<1x1x64xf32>
    %128 = vector.shape_cast %127 : vector<1x1x64xf32> to vector<1x64xf32>
    %c0_57 = arith.constant 0 : index
    %c0_58 = arith.constant 0 : index
    %c0_59 = arith.constant 0 : index
    %129 = vector.load %arg12[%c0_57, %c0_58, %c0_59] : memref<2x64x32xbf16, #tpu.memory_space<vmem>>, vector<1x64x32xbf16>
    %130 = vector.shape_cast %129 : vector<1x64x32xbf16> to vector<64x32xbf16>
    %c0_60 = arith.constant 0 : index
    %c0_61 = arith.constant 0 : index
    %c0_62 = arith.constant 0 : index
    %131 = vector.load %arg13[%c0_60, %c0_61, %c0_62] : memref<2x1x32xf32, #tpu.memory_space<vmem>>, vector<1x1x32xf32>
    %132 = vector.shape_cast %131 : vector<1x1x32xf32> to vector<1x32xf32>
    %c0_63 = arith.constant 0 : index
    %c0_64 = arith.constant 0 : index
    %c0_65 = arith.constant 0 : index
    %133 = vector.load %arg14[%c0_63, %c0_64, %c0_65] : memref<2x1x32xf32, #tpu.memory_space<vmem>>, vector<1x1x32xf32>
    %134 = vector.shape_cast %133 : vector<1x1x32xf32> to vector<1x32xf32>
    %c0_66 = arith.constant 0 : index
    %c0_67 = arith.constant 0 : index
    %c0_68 = arith.constant 0 : index
    %135 = vector.load %arg15[%c0_66, %c0_67, %c0_68] : memref<2x1x32xf32, #tpu.memory_space<vmem>>, vector<1x1x32xf32>
    %136 = vector.shape_cast %135 : vector<1x1x32xf32> to vector<1x32xf32>
    %137 = arith.truncf %124 : vector<32x32xf32> to vector<32x32xbf16>
    %cst_69 = arith.constant dense<0.000000e+00> : vector<32x64xf32>
    %138 = tpu.matmul %137, %126, %cst_69 {dimension_numbers = #tpu.dot_dimension_numbers<[1], [0], [0], [1], [0, 0, 1, 1], [], []>} : vector<32x32xbf16>, vector<32x64xbf16>, vector<32x64xf32> -> vector<32x64xf32>
    %139 = vector.broadcast %128 : vector<1x64xf32> to vector<32x64xf32>
    %140 = arith.addf %138, %139 : vector<32x64xf32>
    %cst_70 = arith.constant 0.000000e+00 : f32
    %141 = vector.broadcast %cst_70 : f32 to vector<32x64xf32>
    %142 = arith.maximumf %140, %141 : vector<32x64xf32>
    %143 = arith.truncf %142 : vector<32x64xf32> to vector<32x64xbf16>
    %cst_71 = arith.constant dense<0.000000e+00> : vector<32x32xf32>
    %144 = tpu.matmul %143, %130, %cst_71 {dimension_numbers = #tpu.dot_dimension_numbers<[1], [0], [0], [1], [0, 0, 1, 1], [], []>} : vector<32x64xbf16>, vector<64x32xbf16>, vector<32x32xf32> -> vector<32x32xf32>
    %145 = vector.broadcast %132 : vector<1x32xf32> to vector<32x32xf32>
    %146 = arith.addf %144, %145 : vector<32x32xf32>
    %147 = arith.addf %146, %124 : vector<32x32xf32>
    %cst_72 = arith.constant dense<0.000000e+00> : vector<32xf32>
    %148 = vector.multi_reduction <add>, %147, %cst_72 [1] : vector<32x32xf32> to vector<32xf32>
    %149 = vector.shape_cast %148 : vector<32xf32> to vector<32x1xf32>
    %cst_73 = arith.constant 3.200000e+01 : f32
    %150 = vector.broadcast %cst_73 : f32 to vector<32x1xf32>
    %151 = arith.divf %149, %150 : vector<32x1xf32>
    %152 = vector.broadcast %151 : vector<32x1xf32> to vector<32x32xf32>
    %153 = arith.subf %147, %152 : vector<32x32xf32>
    %154 = arith.mulf %153, %153 : vector<32x32xf32>
    %cst_74 = arith.constant dense<0.000000e+00> : vector<32xf32>
    %155 = vector.multi_reduction <add>, %154, %cst_74 [1] : vector<32x32xf32> to vector<32xf32>
    %156 = vector.shape_cast %155 : vector<32xf32> to vector<32x1xf32>
    %cst_75 = arith.constant 3.100000e+01 : f32
    %157 = vector.broadcast %cst_75 : f32 to vector<32x1xf32>
    %158 = arith.divf %156, %157 : vector<32x1xf32>
    %cst_76 = arith.constant 1.000000e-10 : f32
    %159 = vector.broadcast %cst_76 : f32 to vector<32x1xf32>
    %160 = arith.addf %158, %159 : vector<32x1xf32>
    %161 = math.rsqrt %160 : vector<32x1xf32>
    %162 = vector.broadcast %161 : vector<32x1xf32> to vector<32x32xf32>
    %163 = arith.mulf %153, %162 : vector<32x32xf32>
    %164 = vector.broadcast %134 : vector<1x32xf32> to vector<32x32xf32>
    %165 = arith.mulf %164, %163 : vector<32x32xf32>
    %166 = vector.broadcast %136 : vector<1x32xf32> to vector<32x32xf32>
    %167 = arith.addf %165, %166 : vector<32x32xf32>
    %c1 = arith.constant 1 : index
    %c0_77 = arith.constant 0 : index
    %c0_78 = arith.constant 0 : index
    %168 = vector.load %arg2[%c1, %c0_77, %c0_78] : memref<2x32x32xbf16, #tpu.memory_space<vmem>>, vector<1x32x32xbf16>
    %169 = vector.shape_cast %168 : vector<1x32x32xbf16> to vector<32x32xbf16>
    %c1_79 = arith.constant 1 : index
    %c0_80 = arith.constant 0 : index
    %c0_81 = arith.constant 0 : index
    %170 = vector.load %arg3[%c1_79, %c0_80, %c0_81] : memref<2x1x32xf32, #tpu.memory_space<vmem>>, vector<1x1x32xf32>
    %171 = vector.shape_cast %170 : vector<1x1x32xf32> to vector<1x32xf32>
    %c1_82 = arith.constant 1 : index
    %c0_83 = arith.constant 0 : index
    %c0_84 = arith.constant 0 : index
    %172 = vector.load %arg4[%c1_82, %c0_83, %c0_84] : memref<2x32x64xbf16, #tpu.memory_space<vmem>>, vector<1x32x64xbf16>
    %173 = vector.shape_cast %172 : vector<1x32x64xbf16> to vector<32x64xbf16>
    %c1_85 = arith.constant 1 : index
    %c0_86 = arith.constant 0 : index
    %c0_87 = arith.constant 0 : index
    %174 = vector.load %arg5[%c1_85, %c0_86, %c0_87] : memref<2x1x64xf32, #tpu.memory_space<vmem>>, vector<1x1x64xf32>
    %175 = vector.shape_cast %174 : vector<1x1x64xf32> to vector<1x64xf32>
    %c1_88 = arith.constant 1 : index
    %c0_89 = arith.constant 0 : index
    %c0_90 = arith.constant 0 : index
    %176 = vector.load %arg6[%c1_88, %c0_89, %c0_90] : memref<2x32x32xbf16, #tpu.memory_space<vmem>>, vector<1x32x32xbf16>
    %177 = vector.shape_cast %176 : vector<1x32x32xbf16> to vector<32x32xbf16>
    %c1_91 = arith.constant 1 : index
    %c0_92 = arith.constant 0 : index
    %c0_93 = arith.constant 0 : index
    %178 = vector.load %arg7[%c1_91, %c0_92, %c0_93] : memref<2x1x32xf32, #tpu.memory_space<vmem>>, vector<1x1x32xf32>
    %179 = vector.shape_cast %178 : vector<1x1x32xf32> to vector<1x32xf32>
    %c1_94 = arith.constant 1 : index
    %c0_95 = arith.constant 0 : index
    %c0_96 = arith.constant 0 : index
    %180 = vector.load %arg8[%c1_94, %c0_95, %c0_96] : memref<2x1x32xf32, #tpu.memory_space<vmem>>, vector<1x1x32xf32>
    %181 = vector.shape_cast %180 : vector<1x1x32xf32> to vector<1x32xf32>
    %c1_97 = arith.constant 1 : index
    %c0_98 = arith.constant 0 : index
    %c0_99 = arith.constant 0 : index
    %182 = vector.load %arg9[%c1_97, %c0_98, %c0_99] : memref<2x1x32xf32, #tpu.memory_space<vmem>>, vector<1x1x32xf32>
    %183 = vector.shape_cast %182 : vector<1x1x32xf32> to vector<1x32xf32>
    %184 = arith.truncf %167 : vector<32x32xf32> to vector<32x32xbf16>
    %cst_100 = arith.constant dense<0.000000e+00> : vector<32x32xf32>
    %185 = tpu.matmul %184, %169, %cst_100 {dimension_numbers = #tpu.dot_dimension_numbers<[1], [0], [0], [1], [0, 0, 1, 1], [], []>} : vector<32x32xbf16>, vector<32x32xbf16>, vector<32x32xf32> -> vector<32x32xf32>
    %186 = vector.broadcast %171 : vector<1x32xf32> to vector<32x32xf32>
    %187 = arith.addf %185, %186 : vector<32x32xf32>
    %188 = arith.truncf %167 : vector<32x32xf32> to vector<32x32xbf16>
    %cst_101 = arith.constant dense<0.000000e+00> : vector<32x64xf32>
    %189 = tpu.matmul %188, %173, %cst_101 {dimension_numbers = #tpu.dot_dimension_numbers<[1], [0], [0], [1], [0, 0, 1, 1], [], []>} : vector<32x32xbf16>, vector<32x64xbf16>, vector<32x64xf32> -> vector<32x64xf32>
    %190 = vector.broadcast %175 : vector<1x64xf32> to vector<32x64xf32>
    %191 = arith.addf %189, %190 : vector<32x64xf32>
    %192 = vector.shape_cast %187 : vector<32x32xf32> to vector<2x16x32xf32>
    %193 = arith.truncf %192 : vector<2x16x32xf32> to vector<2x16x32xbf16>
    %194 = vector.extract_strided_slice %191 {offsets = [0, 0], sizes = [32, 32], strides = [1, 1]} : vector<32x64xf32> to vector<32x32xf32>
    %195 = vector.shape_cast %194 : vector<32x32xf32> to vector<2x16x32xf32>
    %196 = arith.truncf %195 : vector<2x16x32xf32> to vector<2x16x32xbf16>
    %197 = vector.extract_strided_slice %191 {offsets = [0, 32], sizes = [32, 32], strides = [1, 1]} : vector<32x64xf32> to vector<32x32xf32>
    %198 = vector.shape_cast %197 : vector<32x32xf32> to vector<2x16x32xf32>
    %199 = arith.truncf %198 : vector<2x16x32xf32> to vector<2x16x32xbf16>
    %200 = vector.extract_strided_slice %193 {offsets = [0, 0, 0], sizes = [2, 16, 8], strides = [1, 1, 1]} : vector<2x16x32xbf16> to vector<2x16x8xbf16>
    %201 = vector.extract_strided_slice %196 {offsets = [0, 0, 0], sizes = [2, 16, 8], strides = [1, 1, 1]} : vector<2x16x32xbf16> to vector<2x16x8xbf16>
    "tpu.trace_start"() <{level = 10 : i32, message = "bqd,bkd->bqk"}> : () -> ()
    %cst_102 = arith.constant dense<0.000000e+00> : vector<2x16x16xf32>
    %202 = tpu.matmul %200, %201, %cst_102 {dimension_numbers = #tpu.dot_dimension_numbers<[2], [2], [1], [1], [0, 0, 0, 1, 1, 1], [0], [0]>} : vector<2x16x8xbf16>, vector<2x16x8xbf16>, vector<2x16x16xf32> -> vector<2x16x16xf32>
    "tpu.trace_stop"() : () -> ()
    %203 = arith.addf %202, %1 : vector<2x16x16xf32>
    %cst_103 = arith.constant dense<0xFF800000> : vector<2x16xf32>
    %204 = vector.multi_reduction <maximumf>, %203, %cst_103 [2] : vector<2x16x16xf32> to vector<2x16xf32>
    %205 = vector.shape_cast %204 : vector<2x16xf32> to vector<2x16x1xf32>
    %206 = vector.broadcast %205 : vector<2x16x1xf32> to vector<2x16x16xf32>
    %207 = arith.subf %203, %206 : vector<2x16x16xf32>
    %208 = math.exp %207 : vector<2x16x16xf32>
    %cst_104 = arith.constant dense<0.000000e+00> : vector<2x16xf32>
    %209 = vector.multi_reduction <add>, %208, %cst_104 [2] : vector<2x16x16xf32> to vector<2x16xf32>
    %210 = vector.shape_cast %209 : vector<2x16xf32> to vector<2x16x1xf32>
    %211 = vector.broadcast %210 : vector<2x16x1xf32> to vector<2x16x16xf32>
    %212 = arith.divf %208, %211 : vector<2x16x16xf32>
    %213 = arith.truncf %212 : vector<2x16x16xf32> to vector<2x16x16xbf16>
    %214 = vector.extract_strided_slice %199 {offsets = [0, 0, 0], sizes = [2, 16, 8], strides = [1, 1, 1]} : vector<2x16x32xbf16> to vector<2x16x8xbf16>
    "tpu.trace_start"() <{level = 10 : i32, message = "bqk,bkd->bqd"}> : () -> ()
    %cst_105 = arith.constant dense<0.000000e+00> : vector<2x16x8xf32>
    %215 = tpu.matmul %213, %214, %cst_105 {dimension_numbers = #tpu.dot_dimension_numbers<[2], [1], [1], [2], [0, 0, 0, 1, 1, 2], [0], [0]>} : vector<2x16x16xbf16>, vector<2x16x8xbf16>, vector<2x16x8xf32> -> vector<2x16x8xf32>
    "tpu.trace_stop"() : () -> ()
    %216 = vector.extract_strided_slice %193 {offsets = [0, 0, 8], sizes = [2, 16, 8], strides = [1, 1, 1]} : vector<2x16x32xbf16> to vector<2x16x8xbf16>
    %217 = vector.extract_strided_slice %196 {offsets = [0, 0, 8], sizes = [2, 16, 8], strides = [1, 1, 1]} : vector<2x16x32xbf16> to vector<2x16x8xbf16>
    "tpu.trace_start"() <{level = 10 : i32, message = "bqd,bkd->bqk"}> : () -> ()
    %cst_106 = arith.constant dense<0.000000e+00> : vector<2x16x16xf32>
    %218 = tpu.matmul %216, %217, %cst_106 {dimension_numbers = #tpu.dot_dimension_numbers<[2], [2], [1], [1], [0, 0, 0, 1, 1, 1], [0], [0]>} : vector<2x16x8xbf16>, vector<2x16x8xbf16>, vector<2x16x16xf32> -> vector<2x16x16xf32>
    "tpu.trace_stop"() : () -> ()
    %219 = arith.addf %218, %1 : vector<2x16x16xf32>
    %cst_107 = arith.constant dense<0xFF800000> : vector<2x16xf32>
    %220 = vector.multi_reduction <maximumf>, %219, %cst_107 [2] : vector<2x16x16xf32> to vector<2x16xf32>
    %221 = vector.shape_cast %220 : vector<2x16xf32> to vector<2x16x1xf32>
    %222 = vector.broadcast %221 : vector<2x16x1xf32> to vector<2x16x16xf32>
    %223 = arith.subf %219, %222 : vector<2x16x16xf32>
    %224 = math.exp %223 : vector<2x16x16xf32>
    %cst_108 = arith.constant dense<0.000000e+00> : vector<2x16xf32>
    %225 = vector.multi_reduction <add>, %224, %cst_108 [2] : vector<2x16x16xf32> to vector<2x16xf32>
    %226 = vector.shape_cast %225 : vector<2x16xf32> to vector<2x16x1xf32>
    %227 = vector.broadcast %226 : vector<2x16x1xf32> to vector<2x16x16xf32>
    %228 = arith.divf %224, %227 : vector<2x16x16xf32>
    %229 = arith.truncf %228 : vector<2x16x16xf32> to vector<2x16x16xbf16>
    %230 = vector.extract_strided_slice %199 {offsets = [0, 0, 8], sizes = [2, 16, 8], strides = [1, 1, 1]} : vector<2x16x32xbf16> to vector<2x16x8xbf16>
    "tpu.trace_start"() <{level = 10 : i32, message = "bqk,bkd->bqd"}> : () -> ()
    %cst_109 = arith.constant dense<0.000000e+00> : vector<2x16x8xf32>
    %231 = tpu.matmul %229, %230, %cst_109 {dimension_numbers = #tpu.dot_dimension_numbers<[2], [1], [1], [2], [0, 0, 0, 1, 1, 2], [0], [0]>} : vector<2x16x16xbf16>, vector<2x16x8xbf16>, vector<2x16x8xf32> -> vector<2x16x8xf32>
    "tpu.trace_stop"() : () -> ()
    %232 = vector.extract_strided_slice %193 {offsets = [0, 0, 16], sizes = [2, 16, 8], strides = [1, 1, 1]} : vector<2x16x32xbf16> to vector<2x16x8xbf16>
    %233 = vector.extract_strided_slice %196 {offsets = [0, 0, 16], sizes = [2, 16, 8], strides = [1, 1, 1]} : vector<2x16x32xbf16> to vector<2x16x8xbf16>
    "tpu.trace_start"() <{level = 10 : i32, message = "bqd,bkd->bqk"}> : () -> ()
    %cst_110 = arith.constant dense<0.000000e+00> : vector<2x16x16xf32>
    %234 = tpu.matmul %232, %233, %cst_110 {dimension_numbers = #tpu.dot_dimension_numbers<[2], [2], [1], [1], [0, 0, 0, 1, 1, 1], [0], [0]>} : vector<2x16x8xbf16>, vector<2x16x8xbf16>, vector<2x16x16xf32> -> vector<2x16x16xf32>
    "tpu.trace_stop"() : () -> ()
    %235 = arith.addf %234, %1 : vector<2x16x16xf32>
    %cst_111 = arith.constant dense<0xFF800000> : vector<2x16xf32>
    %236 = vector.multi_reduction <maximumf>, %235, %cst_111 [2] : vector<2x16x16xf32> to vector<2x16xf32>
    %237 = vector.shape_cast %236 : vector<2x16xf32> to vector<2x16x1xf32>
    %238 = vector.broadcast %237 : vector<2x16x1xf32> to vector<2x16x16xf32>
    %239 = arith.subf %235, %238 : vector<2x16x16xf32>
    %240 = math.exp %239 : vector<2x16x16xf32>
    %cst_112 = arith.constant dense<0.000000e+00> : vector<2x16xf32>
    %241 = vector.multi_reduction <add>, %240, %cst_112 [2] : vector<2x16x16xf32> to vector<2x16xf32>
    %242 = vector.shape_cast %241 : vector<2x16xf32> to vector<2x16x1xf32>
    %243 = vector.broadcast %242 : vector<2x16x1xf32> to vector<2x16x16xf32>
    %244 = arith.divf %240, %243 : vector<2x16x16xf32>
    %245 = arith.truncf %244 : vector<2x16x16xf32> to vector<2x16x16xbf16>
    %246 = vector.extract_strided_slice %199 {offsets = [0, 0, 16], sizes = [2, 16, 8], strides = [1, 1, 1]} : vector<2x16x32xbf16> to vector<2x16x8xbf16>
    "tpu.trace_start"() <{level = 10 : i32, message = "bqk,bkd->bqd"}> : () -> ()
    %cst_113 = arith.constant dense<0.000000e+00> : vector<2x16x8xf32>
    %247 = tpu.matmul %245, %246, %cst_113 {dimension_numbers = #tpu.dot_dimension_numbers<[2], [1], [1], [2], [0, 0, 0, 1, 1, 2], [0], [0]>} : vector<2x16x16xbf16>, vector<2x16x8xbf16>, vector<2x16x8xf32> -> vector<2x16x8xf32>
    "tpu.trace_stop"() : () -> ()
    %248 = vector.extract_strided_slice %193 {offsets = [0, 0, 24], sizes = [2, 16, 8], strides = [1, 1, 1]} : vector<2x16x32xbf16> to vector<2x16x8xbf16>
    %249 = vector.extract_strided_slice %196 {offsets = [0, 0, 24], sizes = [2, 16, 8], strides = [1, 1, 1]} : vector<2x16x32xbf16> to vector<2x16x8xbf16>
    "tpu.trace_start"() <{level = 10 : i32, message = "bqd,bkd->bqk"}> : () -> ()
    %cst_114 = arith.constant dense<0.000000e+00> : vector<2x16x16xf32>
    %250 = tpu.matmul %248, %249, %cst_114 {dimension_numbers = #tpu.dot_dimension_numbers<[2], [2], [1], [1], [0, 0, 0, 1, 1, 1], [0], [0]>} : vector<2x16x8xbf16>, vector<2x16x8xbf16>, vector<2x16x16xf32> -> vector<2x16x16xf32>
    "tpu.trace_stop"() : () -> ()
    %251 = arith.addf %250, %1 : vector<2x16x16xf32>
    %cst_115 = arith.constant dense<0xFF800000> : vector<2x16xf32>
    %252 = vector.multi_reduction <maximumf>, %251, %cst_115 [2] : vector<2x16x16xf32> to vector<2x16xf32>
    %253 = vector.shape_cast %252 : vector<2x16xf32> to vector<2x16x1xf32>
    %254 = vector.broadcast %253 : vector<2x16x1xf32> to vector<2x16x16xf32>
    %255 = arith.subf %251, %254 : vector<2x16x16xf32>
    %256 = math.exp %255 : vector<2x16x16xf32>
    %cst_116 = arith.constant dense<0.000000e+00> : vector<2x16xf32>
    %257 = vector.multi_reduction <add>, %256, %cst_116 [2] : vector<2x16x16xf32> to vector<2x16xf32>
    %258 = vector.shape_cast %257 : vector<2x16xf32> to vector<2x16x1xf32>
    %259 = vector.broadcast %258 : vector<2x16x1xf32> to vector<2x16x16xf32>
    %260 = arith.divf %256, %259 : vector<2x16x16xf32>
    %261 = arith.truncf %260 : vector<2x16x16xf32> to vector<2x16x16xbf16>
    %262 = vector.extract_strided_slice %199 {offsets = [0, 0, 24], sizes = [2, 16, 8], strides = [1, 1, 1]} : vector<2x16x32xbf16> to vector<2x16x8xbf16>
    "tpu.trace_start"() <{level = 10 : i32, message = "bqk,bkd->bqd"}> : () -> ()
    %cst_117 = arith.constant dense<0.000000e+00> : vector<2x16x8xf32>
    %263 = tpu.matmul %261, %262, %cst_117 {dimension_numbers = #tpu.dot_dimension_numbers<[2], [1], [1], [2], [0, 0, 0, 1, 1, 2], [0], [0]>} : vector<2x16x16xbf16>, vector<2x16x8xbf16>, vector<2x16x8xf32> -> vector<2x16x8xf32>
    "tpu.trace_stop"() : () -> ()
    %264 = tpu.concatenate %215, %231, %247, %263 in 2 : vector<2x16x8xf32>, vector<2x16x8xf32>, vector<2x16x8xf32>, vector<2x16x8xf32> -> vector<2x16x32xf32>
    %265 = vector.shape_cast %264 : vector<2x16x32xf32> to vector<32x32xf32>
    %266 = arith.truncf %265 : vector<32x32xf32> to vector<32x32xbf16>
    %cst_118 = arith.constant dense<0.000000e+00> : vector<32x32xf32>
    %267 = tpu.matmul %266, %177, %cst_118 {dimension_numbers = #tpu.dot_dimension_numbers<[1], [0], [0], [1], [0, 0, 1, 1], [], []>} : vector<32x32xbf16>, vector<32x32xbf16>, vector<32x32xf32> -> vector<32x32xf32>
    %268 = vector.broadcast %179 : vector<1x32xf32> to vector<32x32xf32>
    %269 = arith.addf %267, %268 : vector<32x32xf32>
    %270 = arith.addf %269, %167 : vector<32x32xf32>
    %cst_119 = arith.constant dense<0.000000e+00> : vector<32xf32>
    %271 = vector.multi_reduction <add>, %270, %cst_119 [1] : vector<32x32xf32> to vector<32xf32>
    %272 = vector.shape_cast %271 : vector<32xf32> to vector<32x1xf32>
    %cst_120 = arith.constant 3.200000e+01 : f32
    %273 = vector.broadcast %cst_120 : f32 to vector<32x1xf32>
    %274 = arith.divf %272, %273 : vector<32x1xf32>
    %275 = vector.broadcast %274 : vector<32x1xf32> to vector<32x32xf32>
    %276 = arith.subf %270, %275 : vector<32x32xf32>
    %277 = arith.mulf %276, %276 : vector<32x32xf32>
    %cst_121 = arith.constant dense<0.000000e+00> : vector<32xf32>
    %278 = vector.multi_reduction <add>, %277, %cst_121 [1] : vector<32x32xf32> to vector<32xf32>
    %279 = vector.shape_cast %278 : vector<32xf32> to vector<32x1xf32>
    %cst_122 = arith.constant 3.100000e+01 : f32
    %280 = vector.broadcast %cst_122 : f32 to vector<32x1xf32>
    %281 = arith.divf %279, %280 : vector<32x1xf32>
    %cst_123 = arith.constant 1.000000e-10 : f32
    %282 = vector.broadcast %cst_123 : f32 to vector<32x1xf32>
    %283 = arith.addf %281, %282 : vector<32x1xf32>
    %284 = math.rsqrt %283 : vector<32x1xf32>
    %285 = vector.broadcast %284 : vector<32x1xf32> to vector<32x32xf32>
    %286 = arith.mulf %276, %285 : vector<32x32xf32>
    %287 = vector.broadcast %181 : vector<1x32xf32> to vector<32x32xf32>
    %288 = arith.mulf %287, %286 : vector<32x32xf32>
    %289 = vector.broadcast %183 : vector<1x32xf32> to vector<32x32xf32>
    %290 = arith.addf %288, %289 : vector<32x32xf32>
    %c1_124 = arith.constant 1 : index
    %c0_125 = arith.constant 0 : index
    %c0_126 = arith.constant 0 : index
    %291 = vector.load %arg10[%c1_124, %c0_125, %c0_126] : memref<2x32x64xbf16, #tpu.memory_space<vmem>>, vector<1x32x64xbf16>
    %292 = vector.shape_cast %291 : vector<1x32x64xbf16> to vector<32x64xbf16>
    %c1_127 = arith.constant 1 : index
    %c0_128 = arith.constant 0 : index
    %c0_129 = arith.constant 0 : index
    %293 = vector.load %arg11[%c1_127, %c0_128, %c0_129] : memref<2x1x64xf32, #tpu.memory_space<vmem>>, vector<1x1x64xf32>
    %294 = vector.shape_cast %293 : vector<1x1x64xf32> to vector<1x64xf32>
    %c1_130 = arith.constant 1 : index
    %c0_131 = arith.constant 0 : index
    %c0_132 = arith.constant 0 : index
    %295 = vector.load %arg12[%c1_130, %c0_131, %c0_132] : memref<2x64x32xbf16, #tpu.memory_space<vmem>>, vector<1x64x32xbf16>
    %296 = vector.shape_cast %295 : vector<1x64x32xbf16> to vector<64x32xbf16>
    %c1_133 = arith.constant 1 : index
    %c0_134 = arith.constant 0 : index
    %c0_135 = arith.constant 0 : index
    %297 = vector.load %arg13[%c1_133, %c0_134, %c0_135] : memref<2x1x32xf32, #tpu.memory_space<vmem>>, vector<1x1x32xf32>
    %298 = vector.shape_cast %297 : vector<1x1x32xf32> to vector<1x32xf32>
    %c1_136 = arith.constant 1 : index
    %c0_137 = arith.constant 0 : index
    %c0_138 = arith.constant 0 : index
    %299 = vector.load %arg14[%c1_136, %c0_137, %c0_138] : memref<2x1x32xf32, #tpu.memory_space<vmem>>, vector<1x1x32xf32>
    %300 = vector.shape_cast %299 : vector<1x1x32xf32> to vector<1x32xf32>
    %c1_139 = arith.constant 1 : index
    %c0_140 = arith.constant 0 : index
    %c0_141 = arith.constant 0 : index
    %301 = vector.load %arg15[%c1_139, %c0_140, %c0_141] : memref<2x1x32xf32, #tpu.memory_space<vmem>>, vector<1x1x32xf32>
    %302 = vector.shape_cast %301 : vector<1x1x32xf32> to vector<1x32xf32>
    %303 = arith.truncf %290 : vector<32x32xf32> to vector<32x32xbf16>
    %cst_142 = arith.constant dense<0.000000e+00> : vector<32x64xf32>
    %304 = tpu.matmul %303, %292, %cst_142 {dimension_numbers = #tpu.dot_dimension_numbers<[1], [0], [0], [1], [0, 0, 1, 1], [], []>} : vector<32x32xbf16>, vector<32x64xbf16>, vector<32x64xf32> -> vector<32x64xf32>
    %305 = vector.broadcast %294 : vector<1x64xf32> to vector<32x64xf32>
    %306 = arith.addf %304, %305 : vector<32x64xf32>
    %cst_143 = arith.constant 0.000000e+00 : f32
    %307 = vector.broadcast %cst_143 : f32 to vector<32x64xf32>
    %308 = arith.maximumf %306, %307 : vector<32x64xf32>
    %309 = arith.truncf %308 : vector<32x64xf32> to vector<32x64xbf16>
    %cst_144 = arith.constant dense<0.000000e+00> : vector<32x32xf32>
    %310 = tpu.matmul %309, %296, %cst_144 {dimension_numbers = #tpu.dot_dimension_numbers<[1], [0], [0], [1], [0, 0, 1, 1], [], []>} : vector<32x64xbf16>, vector<64x32xbf16>, vector<32x32xf32> -> vector<32x32xf32>
    %311 = vector.broadcast %298 : vector<1x32xf32> to vector<32x32xf32>
    %312 = arith.addf %310, %311 : vector<32x32xf32>
    %313 = arith.addf %312, %290 : vector<32x32xf32>
    %cst_145 = arith.constant dense<0.000000e+00> : vector<32xf32>
    %314 = vector.multi_reduction <add>, %313, %cst_145 [1] : vector<32x32xf32> to vector<32xf32>
    %315 = vector.shape_cast %314 : vector<32xf32> to vector<32x1xf32>
    %cst_146 = arith.constant 3.200000e+01 : f32
    %316 = vector.broadcast %cst_146 : f32 to vector<32x1xf32>
    %317 = arith.divf %315, %316 : vector<32x1xf32>
    %318 = vector.broadcast %317 : vector<32x1xf32> to vector<32x32xf32>
    %319 = arith.subf %313, %318 : vector<32x32xf32>
    %320 = arith.mulf %319, %319 : vector<32x32xf32>
    %cst_147 = arith.constant dense<0.000000e+00> : vector<32xf32>
    %321 = vector.multi_reduction <add>, %320, %cst_147 [1] : vector<32x32xf32> to vector<32xf32>
    %322 = vector.shape_cast %321 : vector<32xf32> to vector<32x1xf32>
    %cst_148 = arith.constant 3.100000e+01 : f32
    %323 = vector.broadcast %cst_148 : f32 to vector<32x1xf32>
    %324 = arith.divf %322, %323 : vector<32x1xf32>
    %cst_149 = arith.constant 1.000000e-10 : f32
    %325 = vector.broadcast %cst_149 : f32 to vector<32x1xf32>
    %326 = arith.addf %324, %325 : vector<32x1xf32>
    %327 = math.rsqrt %326 : vector<32x1xf32>
    %328 = vector.broadcast %327 : vector<32x1xf32> to vector<32x32xf32>
    %329 = arith.mulf %319, %328 : vector<32x32xf32>
    %330 = vector.broadcast %300 : vector<1x32xf32> to vector<32x32xf32>
    %331 = arith.mulf %330, %329 : vector<32x32xf32>
    %332 = vector.broadcast %302 : vector<1x32xf32> to vector<32x32xf32>
    %333 = arith.addf %331, %332 : vector<32x32xf32>
    %c0_150 = arith.constant 0 : index
    %c0_151 = arith.constant 0 : index
    %334 = vector.load %arg16[%c0_150, %c0_151] : memref<32x32xf32, #tpu.memory_space<vmem>>, vector<32x32xf32>
    tpu.vector_store %arg16[%c0_150, %c0_151], %333 {strides = array<i32>} : memref<32x32xf32, #tpu.memory_space<vmem>>, vector<32x32xf32>,
    return
  }
}

module attributes {stable_mosaic.version = 11 : i64} {
  func.func @_decoder_stack_kernel(%arg0: memref<16x32xf32, #tpu.memory_space<vmem>>, %arg1: memref<32x32xf32, #tpu.memory_space<vmem>>, %arg2: memref<2x8x8xf32, #tpu.memory_space<vmem>>, %arg3: memref<2x8x16xf32, #tpu.memory_space<vmem>>, %arg4: memref<2x32x32xbf16, #tpu.memory_space<vmem>>, %arg5: memref<2x1x32xf32, #tpu.memory_space<vmem>>, %arg6: memref<2x32x64xbf16, #tpu.memory_space<vmem>>, %arg7: memref<2x1x64xf32, #tpu.memory_space<vmem>>, %arg8: memref<2x32x32xbf16, #tpu.memory_space<vmem>>, %arg9: memref<2x1x32xf32, #tpu.memory_space<vmem>>, %arg10: memref<2x1x32xf32, #tpu.memory_space<vmem>>, %arg11: memref<2x1x32xf32, #tpu.memory_space<vmem>>, %arg12: memref<2x32x32xbf16, #tpu.memory_space<vmem>>, %arg13: memref<2x1x32xf32, #tpu.memory_space<vmem>>, %arg14: memref<2x32x64xbf16, #tpu.memory_space<vmem>>, %arg15: memref<2x1x64xf32, #tpu.memory_space<vmem>>, %arg16: memref<2x32x32xbf16, #tpu.memory_space<vmem>>, %arg17: memref<2x1x32xf32, #tpu.memory_space<vmem>>, %arg18: memref<2x1x32xf32, #tpu.memory_space<vmem>>, %arg19: memref<2x1x32xf32, #tpu.memory_space<vmem>>, %arg20: memref<2x32x64xbf16, #tpu.memory_space<vmem>>, %arg21: memref<2x1x64xf32, #tpu.memory_space<vmem>>, %arg22: memref<2x64x32xbf16, #tpu.memory_space<vmem>>, %arg23: memref<2x1x32xf32, #tpu.memory_space<vmem>>, %arg24: memref<2x1x32xf32, #tpu.memory_space<vmem>>, %arg25: memref<2x1x32xf32, #tpu.memory_space<vmem>>, %arg26: memref<32x128xbf16, #tpu.memory_space<vmem>>, %arg27: memref<1x128xf32, #tpu.memory_space<vmem>>, %arg28: memref<16x128xf32, #tpu.memory_space<vmem>>) attributes {dimension_semantics = [], scalar_prefetch = 0 : i64, scratch_operands = 0 : i64, tpu.core_type = #tpu.core_type<tc>} {
    %c0 = arith.constant 0 : index
    %c0_0 = arith.constant 0 : index
    %0 = vector.load %arg0[%c0, %c0_0] : memref<16x32xf32, #tpu.memory_space<vmem>>, vector<16x32xf32>
    %c0_1 = arith.constant 0 : index
    %c0_2 = arith.constant 0 : index
    %1 = vector.load %arg1[%c0_1, %c0_2] : memref<32x32xf32, #tpu.memory_space<vmem>>, vector<32x32xf32>
    %c0_3 = arith.constant 0 : index
    %c0_4 = arith.constant 0 : index
    %c0_5 = arith.constant 0 : index
    %2 = vector.load %arg2[%c0_3, %c0_4, %c0_5] : memref<2x8x8xf32, #tpu.memory_space<vmem>>, vector<2x8x8xf32>
    %c0_6 = arith.constant 0 : index
    %c0_7 = arith.constant 0 : index
    %c0_8 = arith.constant 0 : index
    %3 = vector.load %arg3[%c0_6, %c0_7, %c0_8] : memref<2x8x16xf32, #tpu.memory_space<vmem>>, vector<2x8x16xf32>
    %c0_9 = arith.constant 0 : index
    %c0_10 = arith.constant 0 : index
    %c0_11 = arith.constant 0 : index
    %4 = vector.load %arg4[%c0_9, %c0_10, %c0_11] : memref<2x32x32xbf16, #tpu.memory_space<vmem>>, vector<1x32x32xbf16>
    %5 = vector.shape_cast %4 : vector<1x32x32xbf16> to vector<32x32xbf16>
    %c0_12 = arith.constant 0 : index
    %c0_13 = arith.constant 0 : index
    %c0_14 = arith.constant 0 : index
    %6 = vector.load %arg5[%c0_12, %c0_13, %c0_14] : memref<2x1x32xf32, #tpu.memory_space<vmem>>, vector<1x1x32xf32>
    %7 = vector.shape_cast %6 : vector<1x1x32xf32> to vector<1x32xf32>
    %c0_15 = arith.constant 0 : index
    %c0_16 = arith.constant 0 : index
    %c0_17 = arith.constant 0 : index
    %8 = vector.load %arg6[%c0_15, %c0_16, %c0_17] : memref<2x32x64xbf16, #tpu.memory_space<vmem>>, vector<1x32x64xbf16>
    %9 = vector.shape_cast %8 : vector<1x32x64xbf16> to vector<32x64xbf16>
    %c0_18 = arith.constant 0 : index
    %c0_19 = arith.constant 0 : index
    %c0_20 = arith.constant 0 : index
    %10 = vector.load %arg7[%c0_18, %c0_19, %c0_20] : memref<2x1x64xf32, #tpu.memory_space<vmem>>, vector<1x1x64xf32>
    %11 = vector.shape_cast %10 : vector<1x1x64xf32> to vector<1x64xf32>
    %c0_21 = arith.constant 0 : index
    %c0_22 = arith.constant 0 : index
    %c0_23 = arith.constant 0 : index
    %12 = vector.load %arg8[%c0_21, %c0_22, %c0_23] : memref<2x32x32xbf16, #tpu.memory_space<vmem>>, vector<1x32x32xbf16>
    %13 = vector.shape_cast %12 : vector<1x32x32xbf16> to vector<32x32xbf16>
    %c0_24 = arith.constant 0 : index
    %c0_25 = arith.constant 0 : index
    %c0_26 = arith.constant 0 : index
    %14 = vector.load %arg9[%c0_24, %c0_25, %c0_26] : memref<2x1x32xf32, #tpu.memory_space<vmem>>, vector<1x1x32xf32>
    %15 = vector.shape_cast %14 : vector<1x1x32xf32> to vector<1x32xf32>
    %c0_27 = arith.constant 0 : index
    %c0_28 = arith.constant 0 : index
    %c0_29 = arith.constant 0 : index
    %16 = vector.load %arg10[%c0_27, %c0_28, %c0_29] : memref<2x1x32xf32, #tpu.memory_space<vmem>>, vector<1x1x32xf32>
    %17 = vector.shape_cast %16 : vector<1x1x32xf32> to vector<1x32xf32>
    %c0_30 = arith.constant 0 : index
    %c0_31 = arith.constant 0 : index
    %c0_32 = arith.constant 0 : index
    %18 = vector.load %arg11[%c0_30, %c0_31, %c0_32] : memref<2x1x32xf32, #tpu.memory_space<vmem>>, vector<1x1x32xf32>
    %19 = vector.shape_cast %18 : vector<1x1x32xf32> to vector<1x32xf32>
    %20 = arith.truncf %0 : vector<16x32xf32> to vector<16x32xbf16>
    %cst = arith.constant dense<0.000000e+00> : vector<16x32xf32>
    %21 = tpu.matmul %20, %5, %cst {dimension_numbers = #tpu.dot_dimension_numbers<[1], [0], [0], [1], [0, 0, 1, 1], [], []>} : vector<16x32xbf16>, vector<32x32xbf16>, vector<16x32xf32> -> vector<16x32xf32>
    %22 = vector.broadcast %7 : vector<1x32xf32> to vector<16x32xf32>
    %23 = arith.addf %21, %22 : vector<16x32xf32>
    %24 = arith.truncf %0 : vector<16x32xf32> to vector<16x32xbf16>
    %cst_33 = arith.constant dense<0.000000e+00> : vector<16x64xf32>
    %25 = tpu.matmul %24, %9, %cst_33 {dimension_numbers = #tpu.dot_dimension_numbers<[1], [0], [0], [1], [0, 0, 1, 1], [], []>} : vector<16x32xbf16>, vector<32x64xbf16>, vector<16x64xf32> -> vector<16x64xf32>
    %26 = vector.broadcast %11 : vector<1x64xf32> to vector<16x64xf32>
    %27 = arith.addf %25, %26 : vector<16x64xf32>
    %28 = vector.shape_cast %23 : vector<16x32xf32> to vector<2x8x32xf32>
    %29 = arith.truncf %28 : vector<2x8x32xf32> to vector<2x8x32xbf16>
    %30 = vector.extract_strided_slice %27 {offsets = [0, 0], sizes = [16, 32], strides = [1, 1]} : vector<16x64xf32> to vector<16x32xf32>
    %31 = vector.shape_cast %30 : vector<16x32xf32> to vector<2x8x32xf32>
    %32 = arith.truncf %31 : vector<2x8x32xf32> to vector<2x8x32xbf16>
    %33 = vector.extract_strided_slice %27 {offsets = [0, 32], sizes = [16, 32], strides = [1, 1]} : vector<16x64xf32> to vector<16x32xf32>
    %34 = vector.shape_cast %33 : vector<16x32xf32> to vector<2x8x32xf32>
    %35 = arith.truncf %34 : vector<2x8x32xf32> to vector<2x8x32xbf16>
    %36 = vector.extract_strided_slice %29 {offsets = [0, 0, 0], sizes = [2, 8, 8], strides = [1, 1, 1]} : vector<2x8x32xbf16> to vector<2x8x8xbf16>
    %37 = vector.extract_strided_slice %32 {offsets = [0, 0, 0], sizes = [2, 8, 8], strides = [1, 1, 1]} : vector<2x8x32xbf16> to vector<2x8x8xbf16>
    "tpu.trace_start"() <{level = 10 : i32, message = "bqd,bkd->bqk"}> : () -> ()
    %cst_34 = arith.constant dense<0.000000e+00> : vector<2x8x8xf32>
    %38 = tpu.matmul %36, %37, %cst_34 {dimension_numbers = #tpu.dot_dimension_numbers<[2], [2], [1], [1], [0, 0, 0, 1, 1, 1], [0], [0]>} : vector<2x8x8xbf16>, vector<2x8x8xbf16>, vector<2x8x8xf32> -> vector<2x8x8xf32>
    "tpu.trace_stop"() : () -> ()
    %39 = arith.addf %38, %2 : vector<2x8x8xf32>
    %cst_35 = arith.constant dense<0xFF800000> : vector<2x8xf32>
    %40 = vector.multi_reduction <maximumf>, %39, %cst_35 [2] : vector<2x8x8xf32> to vector<2x8xf32>
    %41 = vector.shape_cast %40 : vector<2x8xf32> to vector<2x8x1xf32>
    %42 = vector.broadcast %41 : vector<2x8x1xf32> to vector<2x8x8xf32>
    %43 = arith.subf %39, %42 : vector<2x8x8xf32>
    %44 = math.exp %43 : vector<2x8x8xf32>
    %cst_36 = arith.constant dense<0.000000e+00> : vector<2x8xf32>
    %45 = vector.multi_reduction <add>, %44, %cst_36 [2] : vector<2x8x8xf32> to vector<2x8xf32>
    %46 = vector.shape_cast %45 : vector<2x8xf32> to vector<2x8x1xf32>
    %47 = vector.broadcast %46 : vector<2x8x1xf32> to vector<2x8x8xf32>
    %48 = arith.divf %44, %47 : vector<2x8x8xf32>
    %49 = arith.truncf %48 : vector<2x8x8xf32> to vector<2x8x8xbf16>
    %50 = vector.extract_strided_slice %35 {offsets = [0, 0, 0], sizes = [2, 8, 8], strides = [1, 1, 1]} : vector<2x8x32xbf16> to vector<2x8x8xbf16>
    "tpu.trace_start"() <{level = 10 : i32, message = "bqk,bkd->bqd"}> : () -> ()
    %cst_37 = arith.constant dense<0.000000e+00> : vector<2x8x8xf32>
    %51 = tpu.matmul %49, %50, %cst_37 {dimension_numbers = #tpu.dot_dimension_numbers<[2], [1], [1], [2], [0, 0, 0, 1, 1, 2], [0], [0]>} : vector<2x8x8xbf16>, vector<2x8x8xbf16>, vector<2x8x8xf32> -> vector<2x8x8xf32>
    "tpu.trace_stop"() : () -> ()
    %52 = vector.extract_strided_slice %29 {offsets = [0, 0, 8], sizes = [2, 8, 8], strides = [1, 1, 1]} : vector<2x8x32xbf16> to vector<2x8x8xbf16>
    %53 = vector.extract_strided_slice %32 {offsets = [0, 0, 8], sizes = [2, 8, 8], strides = [1, 1, 1]} : vector<2x8x32xbf16> to vector<2x8x8xbf16>
    "tpu.trace_start"() <{level = 10 : i32, message = "bqd,bkd->bqk"}> : () -> ()
    %cst_38 = arith.constant dense<0.000000e+00> : vector<2x8x8xf32>
    %54 = tpu.matmul %52, %53, %cst_38 {dimension_numbers = #tpu.dot_dimension_numbers<[2], [2], [1], [1], [0, 0, 0, 1, 1, 1], [0], [0]>} : vector<2x8x8xbf16>, vector<2x8x8xbf16>, vector<2x8x8xf32> -> vector<2x8x8xf32>
    "tpu.trace_stop"() : () -> ()
    %55 = arith.addf %54, %2 : vector<2x8x8xf32>
    %cst_39 = arith.constant dense<0xFF800000> : vector<2x8xf32>
    %56 = vector.multi_reduction <maximumf>, %55, %cst_39 [2] : vector<2x8x8xf32> to vector<2x8xf32>
    %57 = vector.shape_cast %56 : vector<2x8xf32> to vector<2x8x1xf32>
    %58 = vector.broadcast %57 : vector<2x8x1xf32> to vector<2x8x8xf32>
    %59 = arith.subf %55, %58 : vector<2x8x8xf32>
    %60 = math.exp %59 : vector<2x8x8xf32>
    %cst_40 = arith.constant dense<0.000000e+00> : vector<2x8xf32>
    %61 = vector.multi_reduction <add>, %60, %cst_40 [2] : vector<2x8x8xf32> to vector<2x8xf32>
    %62 = vector.shape_cast %61 : vector<2x8xf32> to vector<2x8x1xf32>
    %63 = vector.broadcast %62 : vector<2x8x1xf32> to vector<2x8x8xf32>
    %64 = arith.divf %60, %63 : vector<2x8x8xf32>
    %65 = arith.truncf %64 : vector<2x8x8xf32> to vector<2x8x8xbf16>
    %66 = vector.extract_strided_slice %35 {offsets = [0, 0, 8], sizes = [2, 8, 8], strides = [1, 1, 1]} : vector<2x8x32xbf16> to vector<2x8x8xbf16>
    "tpu.trace_start"() <{level = 10 : i32, message = "bqk,bkd->bqd"}> : () -> ()
    %cst_41 = arith.constant dense<0.000000e+00> : vector<2x8x8xf32>
    %67 = tpu.matmul %65, %66, %cst_41 {dimension_numbers = #tpu.dot_dimension_numbers<[2], [1], [1], [2], [0, 0, 0, 1, 1, 2], [0], [0]>} : vector<2x8x8xbf16>, vector<2x8x8xbf16>, vector<2x8x8xf32> -> vector<2x8x8xf32>
    "tpu.trace_stop"() : () -> ()
    %68 = vector.extract_strided_slice %29 {offsets = [0, 0, 16], sizes = [2, 8, 8], strides = [1, 1, 1]} : vector<2x8x32xbf16> to vector<2x8x8xbf16>
    %69 = vector.extract_strided_slice %32 {offsets = [0, 0, 16], sizes = [2, 8, 8], strides = [1, 1, 1]} : vector<2x8x32xbf16> to vector<2x8x8xbf16>
    "tpu.trace_start"() <{level = 10 : i32, message = "bqd,bkd->bqk"}> : () -> ()
    %cst_42 = arith.constant dense<0.000000e+00> : vector<2x8x8xf32>
    %70 = tpu.matmul %68, %69, %cst_42 {dimension_numbers = #tpu.dot_dimension_numbers<[2], [2], [1], [1], [0, 0, 0, 1, 1, 1], [0], [0]>} : vector<2x8x8xbf16>, vector<2x8x8xbf16>, vector<2x8x8xf32> -> vector<2x8x8xf32>
    "tpu.trace_stop"() : () -> ()
    %71 = arith.addf %70, %2 : vector<2x8x8xf32>
    %cst_43 = arith.constant dense<0xFF800000> : vector<2x8xf32>
    %72 = vector.multi_reduction <maximumf>, %71, %cst_43 [2] : vector<2x8x8xf32> to vector<2x8xf32>
    %73 = vector.shape_cast %72 : vector<2x8xf32> to vector<2x8x1xf32>
    %74 = vector.broadcast %73 : vector<2x8x1xf32> to vector<2x8x8xf32>
    %75 = arith.subf %71, %74 : vector<2x8x8xf32>
    %76 = math.exp %75 : vector<2x8x8xf32>
    %cst_44 = arith.constant dense<0.000000e+00> : vector<2x8xf32>
    %77 = vector.multi_reduction <add>, %76, %cst_44 [2] : vector<2x8x8xf32> to vector<2x8xf32>
    %78 = vector.shape_cast %77 : vector<2x8xf32> to vector<2x8x1xf32>
    %79 = vector.broadcast %78 : vector<2x8x1xf32> to vector<2x8x8xf32>
    %80 = arith.divf %76, %79 : vector<2x8x8xf32>
    %81 = arith.truncf %80 : vector<2x8x8xf32> to vector<2x8x8xbf16>
    %82 = vector.extract_strided_slice %35 {offsets = [0, 0, 16], sizes = [2, 8, 8], strides = [1, 1, 1]} : vector<2x8x32xbf16> to vector<2x8x8xbf16>
    "tpu.trace_start"() <{level = 10 : i32, message = "bqk,bkd->bqd"}> : () -> ()
    %cst_45 = arith.constant dense<0.000000e+00> : vector<2x8x8xf32>
    %83 = tpu.matmul %81, %82, %cst_45 {dimension_numbers = #tpu.dot_dimension_numbers<[2], [1], [1], [2], [0, 0, 0, 1, 1, 2], [0], [0]>} : vector<2x8x8xbf16>, vector<2x8x8xbf16>, vector<2x8x8xf32> -> vector<2x8x8xf32>
    "tpu.trace_stop"() : () -> ()
    %84 = vector.extract_strided_slice %29 {offsets = [0, 0, 24], sizes = [2, 8, 8], strides = [1, 1, 1]} : vector<2x8x32xbf16> to vector<2x8x8xbf16>
    %85 = vector.extract_strided_slice %32 {offsets = [0, 0, 24], sizes = [2, 8, 8], strides = [1, 1, 1]} : vector<2x8x32xbf16> to vector<2x8x8xbf16>
    "tpu.trace_start"() <{level = 10 : i32, message = "bqd,bkd->bqk"}> : () -> ()
    %cst_46 = arith.constant dense<0.000000e+00> : vector<2x8x8xf32>
    %86 = tpu.matmul %84, %85, %cst_46 {dimension_numbers = #tpu.dot_dimension_numbers<[2], [2], [1], [1], [0, 0, 0, 1, 1, 1], [0], [0]>} : vector<2x8x8xbf16>, vector<2x8x8xbf16>, vector<2x8x8xf32> -> vector<2x8x8xf32>
    "tpu.trace_stop"() : () -> ()
    %87 = arith.addf %86, %2 : vector<2x8x8xf32>
    %cst_47 = arith.constant dense<0xFF800000> : vector<2x8xf32>
    %88 = vector.multi_reduction <maximumf>, %87, %cst_47 [2] : vector<2x8x8xf32> to vector<2x8xf32>
    %89 = vector.shape_cast %88 : vector<2x8xf32> to vector<2x8x1xf32>
    %90 = vector.broadcast %89 : vector<2x8x1xf32> to vector<2x8x8xf32>
    %91 = arith.subf %87, %90 : vector<2x8x8xf32>
    %92 = math.exp %91 : vector<2x8x8xf32>
    %cst_48 = arith.constant dense<0.000000e+00> : vector<2x8xf32>
    %93 = vector.multi_reduction <add>, %92, %cst_48 [2] : vector<2x8x8xf32> to vector<2x8xf32>
    %94 = vector.shape_cast %93 : vector<2x8xf32> to vector<2x8x1xf32>
    %95 = vector.broadcast %94 : vector<2x8x1xf32> to vector<2x8x8xf32>
    %96 = arith.divf %92, %95 : vector<2x8x8xf32>
    %97 = arith.truncf %96 : vector<2x8x8xf32> to vector<2x8x8xbf16>
    %98 = vector.extract_strided_slice %35 {offsets = [0, 0, 24], sizes = [2, 8, 8], strides = [1, 1, 1]} : vector<2x8x32xbf16> to vector<2x8x8xbf16>
    "tpu.trace_start"() <{level = 10 : i32, message = "bqk,bkd->bqd"}> : () -> ()
    %cst_49 = arith.constant dense<0.000000e+00> : vector<2x8x8xf32>
    %99 = tpu.matmul %97, %98, %cst_49 {dimension_numbers = #tpu.dot_dimension_numbers<[2], [1], [1], [2], [0, 0, 0, 1, 1, 2], [0], [0]>} : vector<2x8x8xbf16>, vector<2x8x8xbf16>, vector<2x8x8xf32> -> vector<2x8x8xf32>
    "tpu.trace_stop"() : () -> ()
    %100 = tpu.concatenate %51, %67, %83, %99 in 2 : vector<2x8x8xf32>, vector<2x8x8xf32>, vector<2x8x8xf32>, vector<2x8x8xf32> -> vector<2x8x32xf32>
    %101 = vector.shape_cast %100 : vector<2x8x32xf32> to vector<16x32xf32>
    %102 = arith.truncf %101 : vector<16x32xf32> to vector<16x32xbf16>
    %cst_50 = arith.constant dense<0.000000e+00> : vector<16x32xf32>
    %103 = tpu.matmul %102, %13, %cst_50 {dimension_numbers = #tpu.dot_dimension_numbers<[1], [0], [0], [1], [0, 0, 1, 1], [], []>} : vector<16x32xbf16>, vector<32x32xbf16>, vector<16x32xf32> -> vector<16x32xf32>
    %104 = vector.broadcast %15 : vector<1x32xf32> to vector<16x32xf32>
    %105 = arith.addf %103, %104 : vector<16x32xf32>
    %106 = arith.addf %105, %0 : vector<16x32xf32>
    %cst_51 = arith.constant dense<0.000000e+00> : vector<16xf32>
    %107 = vector.multi_reduction <add>, %106, %cst_51 [1] : vector<16x32xf32> to vector<16xf32>
    %108 = vector.shape_cast %107 : vector<16xf32> to vector<16x1xf32>
    %cst_52 = arith.constant 3.200000e+01 : f32
    %109 = vector.broadcast %cst_52 : f32 to vector<16x1xf32>
    %110 = arith.divf %108, %109 : vector<16x1xf32>
    %111 = vector.broadcast %110 : vector<16x1xf32> to vector<16x32xf32>
    %112 = arith.subf %106, %111 : vector<16x32xf32>
    %113 = arith.mulf %112, %112 : vector<16x32xf32>
    %cst_53 = arith.constant dense<0.000000e+00> : vector<16xf32>
    %114 = vector.multi_reduction <add>, %113, %cst_53 [1] : vector<16x32xf32> to vector<16xf32>
    %115 = vector.shape_cast %114 : vector<16xf32> to vector<16x1xf32>
    %cst_54 = arith.constant 3.100000e+01 : f32
    %116 = vector.broadcast %cst_54 : f32 to vector<16x1xf32>
    %117 = arith.divf %115, %116 : vector<16x1xf32>
    %cst_55 = arith.constant 1.000000e-10 : f32
    %118 = vector.broadcast %cst_55 : f32 to vector<16x1xf32>
    %119 = arith.addf %117, %118 : vector<16x1xf32>
    %120 = math.rsqrt %119 : vector<16x1xf32>
    %121 = vector.broadcast %120 : vector<16x1xf32> to vector<16x32xf32>
    %122 = arith.mulf %112, %121 : vector<16x32xf32>
    %123 = vector.broadcast %17 : vector<1x32xf32> to vector<16x32xf32>
    %124 = arith.mulf %123, %122 : vector<16x32xf32>
    %125 = vector.broadcast %19 : vector<1x32xf32> to vector<16x32xf32>
    %126 = arith.addf %124, %125 : vector<16x32xf32>
    %c0_56 = arith.constant 0 : index
    %c0_57 = arith.constant 0 : index
    %c0_58 = arith.constant 0 : index
    %127 = vector.load %arg12[%c0_56, %c0_57, %c0_58] : memref<2x32x32xbf16, #tpu.memory_space<vmem>>, vector<1x32x32xbf16>
    %128 = vector.shape_cast %127 : vector<1x32x32xbf16> to vector<32x32xbf16>
    %c0_59 = arith.constant 0 : index
    %c0_60 = arith.constant 0 : index
    %c0_61 = arith.constant 0 : index
    %129 = vector.load %arg13[%c0_59, %c0_60, %c0_61] : memref<2x1x32xf32, #tpu.memory_space<vmem>>, vector<1x1x32xf32>
    %130 = vector.shape_cast %129 : vector<1x1x32xf32> to vector<1x32xf32>
    %c0_62 = arith.constant 0 : index
    %c0_63 = arith.constant 0 : index
    %c0_64 = arith.constant 0 : index
    %131 = vector.load %arg14[%c0_62, %c0_63, %c0_64] : memref<2x32x64xbf16, #tpu.memory_space<vmem>>, vector<1x32x64xbf16>
    %132 = vector.shape_cast %131 : vector<1x32x64xbf16> to vector<32x64xbf16>
    %c0_65 = arith.constant 0 : index
    %c0_66 = arith.constant 0 : index
    %c0_67 = arith.constant 0 : index
    %133 = vector.load %arg15[%c0_65, %c0_66, %c0_67] : memref<2x1x64xf32, #tpu.memory_space<vmem>>, vector<1x1x64xf32>
    %134 = vector.shape_cast %133 : vector<1x1x64xf32> to vector<1x64xf32>
    %c0_68 = arith.constant 0 : index
    %c0_69 = arith.constant 0 : index
    %c0_70 = arith.constant 0 : index
    %135 = vector.load %arg16[%c0_68, %c0_69, %c0_70] : memref<2x32x32xbf16, #tpu.memory_space<vmem>>, vector<1x32x32xbf16>
    %136 = vector.shape_cast %135 : vector<1x32x32xbf16> to vector<32x32xbf16>
    %c0_71 = arith.constant 0 : index
    %c0_72 = arith.constant 0 : index
    %c0_73 = arith.constant 0 : index
    %137 = vector.load %arg17[%c0_71, %c0_72, %c0_73] : memref<2x1x32xf32, #tpu.memory_space<vmem>>, vector<1x1x32xf32>
    %138 = vector.shape_cast %137 : vector<1x1x32xf32> to vector<1x32xf32>
    %c0_74 = arith.constant 0 : index
    %c0_75 = arith.constant 0 : index
    %c0_76 = arith.constant 0 : index
    %139 = vector.load %arg18[%c0_74, %c0_75, %c0_76] : memref<2x1x32xf32, #tpu.memory_space<vmem>>, vector<1x1x32xf32>
    %140 = vector.shape_cast %139 : vector<1x1x32xf32> to vector<1x32xf32>
    %c0_77 = arith.constant 0 : index
    %c0_78 = arith.constant 0 : index
    %c0_79 = arith.constant 0 : index
    %141 = vector.load %arg19[%c0_77, %c0_78, %c0_79] : memref<2x1x32xf32, #tpu.memory_space<vmem>>, vector<1x1x32xf32>
    %142 = vector.shape_cast %141 : vector<1x1x32xf32> to vector<1x32xf32>
    %143 = arith.truncf %126 : vector<16x32xf32> to vector<16x32xbf16>
    %cst_80 = arith.constant dense<0.000000e+00> : vector<16x32xf32>
    %144 = tpu.matmul %143, %128, %cst_80 {dimension_numbers = #tpu.dot_dimension_numbers<[1], [0], [0], [1], [0, 0, 1, 1], [], []>} : vector<16x32xbf16>, vector<32x32xbf16>, vector<16x32xf32> -> vector<16x32xf32>
    %145 = vector.broadcast %130 : vector<1x32xf32> to vector<16x32xf32>
    %146 = arith.addf %144, %145 : vector<16x32xf32>
    %147 = arith.truncf %1 : vector<32x32xf32> to vector<32x32xbf16>
    %cst_81 = arith.constant dense<0.000000e+00> : vector<32x64xf32>
    %148 = tpu.matmul %147, %132, %cst_81 {dimension_numbers = #tpu.dot_dimension_numbers<[1], [0], [0], [1], [0, 0, 1, 1], [], []>} : vector<32x32xbf16>, vector<32x64xbf16>, vector<32x64xf32> -> vector<32x64xf32>
    %149 = vector.broadcast %134 : vector<1x64xf32> to vector<32x64xf32>
    %150 = arith.addf %148, %149 : vector<32x64xf32>
    %151 = vector.shape_cast %146 : vector<16x32xf32> to vector<2x8x32xf32>
    %152 = arith.truncf %151 : vector<2x8x32xf32> to vector<2x8x32xbf16>
    %153 = vector.extract_strided_slice %150 {offsets = [0, 0], sizes = [32, 32], strides = [1, 1]} : vector<32x64xf32> to vector<32x32xf32>
    %154 = vector.shape_cast %153 : vector<32x32xf32> to vector<2x16x32xf32>
    %155 = arith.truncf %154 : vector<2x16x32xf32> to vector<2x16x32xbf16>
    %156 = vector.extract_strided_slice %150 {offsets = [0, 32], sizes = [32, 32], strides = [1, 1]} : vector<32x64xf32> to vector<32x32xf32>
    %157 = vector.shape_cast %156 : vector<32x32xf32> to vector<2x16x32xf32>
    %158 = arith.truncf %157 : vector<2x16x32xf32> to vector<2x16x32xbf16>
    %159 = vector.extract_strided_slice %152 {offsets = [0, 0, 0], sizes = [2, 8, 8], strides = [1, 1, 1]} : vector<2x8x32xbf16> to vector<2x8x8xbf16>
    %160 = vector.extract_strided_slice %155 {offsets = [0, 0, 0], sizes = [2, 16, 8], strides = [1, 1, 1]} : vector<2x16x32xbf16> to vector<2x16x8xbf16>
    "tpu.trace_start"() <{level = 10 : i32, message = "bqd,bkd->bqk"}> : () -> ()
    %cst_82 = arith.constant dense<0.000000e+00> : vector<2x8x16xf32>
    %161 = tpu.matmul %159, %160, %cst_82 {dimension_numbers = #tpu.dot_dimension_numbers<[2], [2], [1], [1], [0, 0, 0, 1, 1, 1], [0], [0]>} : vector<2x8x8xbf16>, vector<2x16x8xbf16>, vector<2x8x16xf32> -> vector<2x8x16xf32>
    "tpu.trace_stop"() : () -> ()
    %162 = arith.addf %161, %3 : vector<2x8x16xf32>
    %cst_83 = arith.constant dense<0xFF800000> : vector<2x8xf32>
    %163 = vector.multi_reduction <maximumf>, %162, %cst_83 [2] : vector<2x8x16xf32> to vector<2x8xf32>
    %164 = vector.shape_cast %163 : vector<2x8xf32> to vector<2x8x1xf32>
    %165 = vector.broadcast %164 : vector<2x8x1xf32> to vector<2x8x16xf32>
    %166 = arith.subf %162, %165 : vector<2x8x16xf32>
    %167 = math.exp %166 : vector<2x8x16xf32>
    %cst_84 = arith.constant dense<0.000000e+00> : vector<2x8xf32>
    %168 = vector.multi_reduction <add>, %167, %cst_84 [2] : vector<2x8x16xf32> to vector<2x8xf32>
    %169 = vector.shape_cast %168 : vector<2x8xf32> to vector<2x8x1xf32>
    %170 = vector.broadcast %169 : vector<2x8x1xf32> to vector<2x8x16xf32>
    %171 = arith.divf %167, %170 : vector<2x8x16xf32>
    %172 = arith.truncf %171 : vector<2x8x16xf32> to vector<2x8x16xbf16>
    %173 = vector.extract_strided_slice %158 {offsets = [0, 0, 0], sizes = [2, 16, 8], strides = [1, 1, 1]} : vector<2x16x32xbf16> to vector<2x16x8xbf16>
    "tpu.trace_start"() <{level = 10 : i32, message = "bqk,bkd->bqd"}> : () -> ()
    %cst_85 = arith.constant dense<0.000000e+00> : vector<2x8x8xf32>
    %174 = tpu.matmul %172, %173, %cst_85 {dimension_numbers = #tpu.dot_dimension_numbers<[2], [1], [1], [2], [0, 0, 0, 1, 1, 2], [0], [0]>} : vector<2x8x16xbf16>, vector<2x16x8xbf16>, vector<2x8x8xf32> -> vector<2x8x8xf32>
    "tpu.trace_stop"() : () -> ()
    %175 = vector.extract_strided_slice %152 {offsets = [0, 0, 8], sizes = [2, 8, 8], strides = [1, 1, 1]} : vector<2x8x32xbf16> to vector<2x8x8xbf16>
    %176 = vector.extract_strided_slice %155 {offsets = [0, 0, 8], sizes = [2, 16, 8], strides = [1, 1, 1]} : vector<2x16x32xbf16> to vector<2x16x8xbf16>
    "tpu.trace_start"() <{level = 10 : i32, message = "bqd,bkd->bqk"}> : () -> ()
    %cst_86 = arith.constant dense<0.000000e+00> : vector<2x8x16xf32>
    %177 = tpu.matmul %175, %176, %cst_86 {dimension_numbers = #tpu.dot_dimension_numbers<[2], [2], [1], [1], [0, 0, 0, 1, 1, 1], [0], [0]>} : vector<2x8x8xbf16>, vector<2x16x8xbf16>, vector<2x8x16xf32> -> vector<2x8x16xf32>
    "tpu.trace_stop"() : () -> ()
    %178 = arith.addf %177, %3 : vector<2x8x16xf32>
    %cst_87 = arith.constant dense<0xFF800000> : vector<2x8xf32>
    %179 = vector.multi_reduction <maximumf>, %178, %cst_87 [2] : vector<2x8x16xf32> to vector<2x8xf32>
    %180 = vector.shape_cast %179 : vector<2x8xf32> to vector<2x8x1xf32>
    %181 = vector.broadcast %180 : vector<2x8x1xf32> to vector<2x8x16xf32>
    %182 = arith.subf %178, %181 : vector<2x8x16xf32>
    %183 = math.exp %182 : vector<2x8x16xf32>
    %cst_88 = arith.constant dense<0.000000e+00> : vector<2x8xf32>
    %184 = vector.multi_reduction <add>, %183, %cst_88 [2] : vector<2x8x16xf32> to vector<2x8xf32>
    %185 = vector.shape_cast %184 : vector<2x8xf32> to vector<2x8x1xf32>
    %186 = vector.broadcast %185 : vector<2x8x1xf32> to vector<2x8x16xf32>
    %187 = arith.divf %183, %186 : vector<2x8x16xf32>
    %188 = arith.truncf %187 : vector<2x8x16xf32> to vector<2x8x16xbf16>
    %189 = vector.extract_strided_slice %158 {offsets = [0, 0, 8], sizes = [2, 16, 8], strides = [1, 1, 1]} : vector<2x16x32xbf16> to vector<2x16x8xbf16>
    "tpu.trace_start"() <{level = 10 : i32, message = "bqk,bkd->bqd"}> : () -> ()
    %cst_89 = arith.constant dense<0.000000e+00> : vector<2x8x8xf32>
    %190 = tpu.matmul %188, %189, %cst_89 {dimension_numbers = #tpu.dot_dimension_numbers<[2], [1], [1], [2], [0, 0, 0, 1, 1, 2], [0], [0]>} : vector<2x8x16xbf16>, vector<2x16x8xbf16>, vector<2x8x8xf32> -> vector<2x8x8xf32>
    "tpu.trace_stop"() : () -> ()
    %191 = vector.extract_strided_slice %152 {offsets = [0, 0, 16], sizes = [2, 8, 8], strides = [1, 1, 1]} : vector<2x8x32xbf16> to vector<2x8x8xbf16>
    %192 = vector.extract_strided_slice %155 {offsets = [0, 0, 16], sizes = [2, 16, 8], strides = [1, 1, 1]} : vector<2x16x32xbf16> to vector<2x16x8xbf16>
    "tpu.trace_start"() <{level = 10 : i32, message = "bqd,bkd->bqk"}> : () -> ()
    %cst_90 = arith.constant dense<0.000000e+00> : vector<2x8x16xf32>
    %193 = tpu.matmul %191, %192, %cst_90 {dimension_numbers = #tpu.dot_dimension_numbers<[2], [2], [1], [1], [0, 0, 0, 1, 1, 1], [0], [0]>} : vector<2x8x8xbf16>, vector<2x16x8xbf16>, vector<2x8x16xf32> -> vector<2x8x16xf32>
    "tpu.trace_stop"() : () -> ()
    %194 = arith.addf %193, %3 : vector<2x8x16xf32>
    %cst_91 = arith.constant dense<0xFF800000> : vector<2x8xf32>
    %195 = vector.multi_reduction <maximumf>, %194, %cst_91 [2] : vector<2x8x16xf32> to vector<2x8xf32>
    %196 = vector.shape_cast %195 : vector<2x8xf32> to vector<2x8x1xf32>
    %197 = vector.broadcast %196 : vector<2x8x1xf32> to vector<2x8x16xf32>
    %198 = arith.subf %194, %197 : vector<2x8x16xf32>
    %199 = math.exp %198 : vector<2x8x16xf32>
    %cst_92 = arith.constant dense<0.000000e+00> : vector<2x8xf32>
    %200 = vector.multi_reduction <add>, %199, %cst_92 [2] : vector<2x8x16xf32> to vector<2x8xf32>
    %201 = vector.shape_cast %200 : vector<2x8xf32> to vector<2x8x1xf32>
    %202 = vector.broadcast %201 : vector<2x8x1xf32> to vector<2x8x16xf32>
    %203 = arith.divf %199, %202 : vector<2x8x16xf32>
    %204 = arith.truncf %203 : vector<2x8x16xf32> to vector<2x8x16xbf16>
    %205 = vector.extract_strided_slice %158 {offsets = [0, 0, 16], sizes = [2, 16, 8], strides = [1, 1, 1]} : vector<2x16x32xbf16> to vector<2x16x8xbf16>
    "tpu.trace_start"() <{level = 10 : i32, message = "bqk,bkd->bqd"}> : () -> ()
    %cst_93 = arith.constant dense<0.000000e+00> : vector<2x8x8xf32>
    %206 = tpu.matmul %204, %205, %cst_93 {dimension_numbers = #tpu.dot_dimension_numbers<[2], [1], [1], [2], [0, 0, 0, 1, 1, 2], [0], [0]>} : vector<2x8x16xbf16>, vector<2x16x8xbf16>, vector<2x8x8xf32> -> vector<2x8x8xf32>
    "tpu.trace_stop"() : () -> ()
    %207 = vector.extract_strided_slice %152 {offsets = [0, 0, 24], sizes = [2, 8, 8], strides = [1, 1, 1]} : vector<2x8x32xbf16> to vector<2x8x8xbf16>
    %208 = vector.extract_strided_slice %155 {offsets = [0, 0, 24], sizes = [2, 16, 8], strides = [1, 1, 1]} : vector<2x16x32xbf16> to vector<2x16x8xbf16>
    "tpu.trace_start"() <{level = 10 : i32, message = "bqd,bkd->bqk"}> : () -> ()
    %cst_94 = arith.constant dense<0.000000e+00> : vector<2x8x16xf32>
    %209 = tpu.matmul %207, %208, %cst_94 {dimension_numbers = #tpu.dot_dimension_numbers<[2], [2], [1], [1], [0, 0, 0, 1, 1, 1], [0], [0]>} : vector<2x8x8xbf16>, vector<2x16x8xbf16>, vector<2x8x16xf32> -> vector<2x8x16xf32>
    "tpu.trace_stop"() : () -> ()
    %210 = arith.addf %209, %3 : vector<2x8x16xf32>
    %cst_95 = arith.constant dense<0xFF800000> : vector<2x8xf32>
    %211 = vector.multi_reduction <maximumf>, %210, %cst_95 [2] : vector<2x8x16xf32> to vector<2x8xf32>
    %212 = vector.shape_cast %211 : vector<2x8xf32> to vector<2x8x1xf32>
    %213 = vector.broadcast %212 : vector<2x8x1xf32> to vector<2x8x16xf32>
    %214 = arith.subf %210, %213 : vector<2x8x16xf32>
    %215 = math.exp %214 : vector<2x8x16xf32>
    %cst_96 = arith.constant dense<0.000000e+00> : vector<2x8xf32>
    %216 = vector.multi_reduction <add>, %215, %cst_96 [2] : vector<2x8x16xf32> to vector<2x8xf32>
    %217 = vector.shape_cast %216 : vector<2x8xf32> to vector<2x8x1xf32>
    %218 = vector.broadcast %217 : vector<2x8x1xf32> to vector<2x8x16xf32>
    %219 = arith.divf %215, %218 : vector<2x8x16xf32>
    %220 = arith.truncf %219 : vector<2x8x16xf32> to vector<2x8x16xbf16>
    %221 = vector.extract_strided_slice %158 {offsets = [0, 0, 24], sizes = [2, 16, 8], strides = [1, 1, 1]} : vector<2x16x32xbf16> to vector<2x16x8xbf16>
    "tpu.trace_start"() <{level = 10 : i32, message = "bqk,bkd->bqd"}> : () -> ()
    %cst_97 = arith.constant dense<0.000000e+00> : vector<2x8x8xf32>
    %222 = tpu.matmul %220, %221, %cst_97 {dimension_numbers = #tpu.dot_dimension_numbers<[2], [1], [1], [2], [0, 0, 0, 1, 1, 2], [0], [0]>} : vector<2x8x16xbf16>, vector<2x16x8xbf16>, vector<2x8x8xf32> -> vector<2x8x8xf32>
    "tpu.trace_stop"() : () -> ()
    %223 = tpu.concatenate %174, %190, %206, %222 in 2 : vector<2x8x8xf32>, vector<2x8x8xf32>, vector<2x8x8xf32>, vector<2x8x8xf32> -> vector<2x8x32xf32>
    %224 = vector.shape_cast %223 : vector<2x8x32xf32> to vector<16x32xf32>
    %225 = arith.truncf %224 : vector<16x32xf32> to vector<16x32xbf16>
    %cst_98 = arith.constant dense<0.000000e+00> : vector<16x32xf32>
    %226 = tpu.matmul %225, %136, %cst_98 {dimension_numbers = #tpu.dot_dimension_numbers<[1], [0], [0], [1], [0, 0, 1, 1], [], []>} : vector<16x32xbf16>, vector<32x32xbf16>, vector<16x32xf32> -> vector<16x32xf32>
    %227 = vector.broadcast %138 : vector<1x32xf32> to vector<16x32xf32>
    %228 = arith.addf %226, %227 : vector<16x32xf32>
    %229 = arith.addf %228, %126 : vector<16x32xf32>
    %cst_99 = arith.constant dense<0.000000e+00> : vector<16xf32>
    %230 = vector.multi_reduction <add>, %229, %cst_99 [1] : vector<16x32xf32> to vector<16xf32>
    %231 = vector.shape_cast %230 : vector<16xf32> to vector<16x1xf32>
    %cst_100 = arith.constant 3.200000e+01 : f32
    %232 = vector.broadcast %cst_100 : f32 to vector<16x1xf32>
    %233 = arith.divf %231, %232 : vector<16x1xf32>
    %234 = vector.broadcast %233 : vector<16x1xf32> to vector<16x32xf32>
    %235 = arith.subf %229, %234 : vector<16x32xf32>
    %236 = arith.mulf %235, %235 : vector<16x32xf32>
    %cst_101 = arith.constant dense<0.000000e+00> : vector<16xf32>
    %237 = vector.multi_reduction <add>, %236, %cst_101 [1] : vector<16x32xf32> to vector<16xf32>
    %238 = vector.shape_cast %237 : vector<16xf32> to vector<16x1xf32>
    %cst_102 = arith.constant 3.100000e+01 : f32
    %239 = vector.broadcast %cst_102 : f32 to vector<16x1xf32>
    %240 = arith.divf %238, %239 : vector<16x1xf32>
    %cst_103 = arith.constant 1.000000e-10 : f32
    %241 = vector.broadcast %cst_103 : f32 to vector<16x1xf32>
    %242 = arith.addf %240, %241 : vector<16x1xf32>
    %243 = math.rsqrt %242 : vector<16x1xf32>
    %244 = vector.broadcast %243 : vector<16x1xf32> to vector<16x32xf32>
    %245 = arith.mulf %235, %244 : vector<16x32xf32>
    %246 = vector.broadcast %140 : vector<1x32xf32> to vector<16x32xf32>
    %247 = arith.mulf %246, %245 : vector<16x32xf32>
    %248 = vector.broadcast %142 : vector<1x32xf32> to vector<16x32xf32>
    %249 = arith.addf %247, %248 : vector<16x32xf32>
    %c0_104 = arith.constant 0 : index
    %c0_105 = arith.constant 0 : index
    %c0_106 = arith.constant 0 : index
    %250 = vector.load %arg20[%c0_104, %c0_105, %c0_106] : memref<2x32x64xbf16, #tpu.memory_space<vmem>>, vector<1x32x64xbf16>
    %251 = vector.shape_cast %250 : vector<1x32x64xbf16> to vector<32x64xbf16>
    %c0_107 = arith.constant 0 : index
    %c0_108 = arith.constant 0 : index
    %c0_109 = arith.constant 0 : index
    %252 = vector.load %arg21[%c0_107, %c0_108, %c0_109] : memref<2x1x64xf32, #tpu.memory_space<vmem>>, vector<1x1x64xf32>
    %253 = vector.shape_cast %252 : vector<1x1x64xf32> to vector<1x64xf32>
    %c0_110 = arith.constant 0 : index
    %c0_111 = arith.constant 0 : index
    %c0_112 = arith.constant 0 : index
    %254 = vector.load %arg22[%c0_110, %c0_111, %c0_112] : memref<2x64x32xbf16, #tpu.memory_space<vmem>>, vector<1x64x32xbf16>
    %255 = vector.shape_cast %254 : vector<1x64x32xbf16> to vector<64x32xbf16>
    %c0_113 = arith.constant 0 : index
    %c0_114 = arith.constant 0 : index
    %c0_115 = arith.constant 0 : index
    %256 = vector.load %arg23[%c0_113, %c0_114, %c0_115] : memref<2x1x32xf32, #tpu.memory_space<vmem>>, vector<1x1x32xf32>
    %257 = vector.shape_cast %256 : vector<1x1x32xf32> to vector<1x32xf32>
    %c0_116 = arith.constant 0 : index
    %c0_117 = arith.constant 0 : index
    %c0_118 = arith.constant 0 : index
    %258 = vector.load %arg24[%c0_116, %c0_117, %c0_118] : memref<2x1x32xf32, #tpu.memory_space<vmem>>, vector<1x1x32xf32>
    %259 = vector.shape_cast %258 : vector<1x1x32xf32> to vector<1x32xf32>
    %c0_119 = arith.constant 0 : index
    %c0_120 = arith.constant 0 : index
    %c0_121 = arith.constant 0 : index
    %260 = vector.load %arg25[%c0_119, %c0_120, %c0_121] : memref<2x1x32xf32, #tpu.memory_space<vmem>>, vector<1x1x32xf32>
    %261 = vector.shape_cast %260 : vector<1x1x32xf32> to vector<1x32xf32>
    %262 = arith.truncf %249 : vector<16x32xf32> to vector<16x32xbf16>
    %cst_122 = arith.constant dense<0.000000e+00> : vector<16x64xf32>
    %263 = tpu.matmul %262, %251, %cst_122 {dimension_numbers = #tpu.dot_dimension_numbers<[1], [0], [0], [1], [0, 0, 1, 1], [], []>} : vector<16x32xbf16>, vector<32x64xbf16>, vector<16x64xf32> -> vector<16x64xf32>
    %264 = vector.broadcast %253 : vector<1x64xf32> to vector<16x64xf32>
    %265 = arith.addf %263, %264 : vector<16x64xf32>
    %cst_123 = arith.constant 0.000000e+00 : f32
    %266 = vector.broadcast %cst_123 : f32 to vector<16x64xf32>
    %267 = arith.maximumf %265, %266 : vector<16x64xf32>
    %268 = arith.truncf %267 : vector<16x64xf32> to vector<16x64xbf16>
    %cst_124 = arith.constant dense<0.000000e+00> : vector<16x32xf32>
    %269 = tpu.matmul %268, %255, %cst_124 {dimension_numbers = #tpu.dot_dimension_numbers<[1], [0], [0], [1], [0, 0, 1, 1], [], []>} : vector<16x64xbf16>, vector<64x32xbf16>, vector<16x32xf32> -> vector<16x32xf32>
    %270 = vector.broadcast %257 : vector<1x32xf32> to vector<16x32xf32>
    %271 = arith.addf %269, %270 : vector<16x32xf32>
    %272 = arith.addf %271, %249 : vector<16x32xf32>
    %cst_125 = arith.constant dense<0.000000e+00> : vector<16xf32>
    %273 = vector.multi_reduction <add>, %272, %cst_125 [1] : vector<16x32xf32> to vector<16xf32>
    %274 = vector.shape_cast %273 : vector<16xf32> to vector<16x1xf32>
    %cst_126 = arith.constant 3.200000e+01 : f32
    %275 = vector.broadcast %cst_126 : f32 to vector<16x1xf32>
    %276 = arith.divf %274, %275 : vector<16x1xf32>
    %277 = vector.broadcast %276 : vector<16x1xf32> to vector<16x32xf32>
    %278 = arith.subf %272, %277 : vector<16x32xf32>
    %279 = arith.mulf %278, %278 : vector<16x32xf32>
    %cst_127 = arith.constant dense<0.000000e+00> : vector<16xf32>
    %280 = vector.multi_reduction <add>, %279, %cst_127 [1] : vector<16x32xf32> to vector<16xf32>
    %281 = vector.shape_cast %280 : vector<16xf32> to vector<16x1xf32>
    %cst_128 = arith.constant 3.100000e+01 : f32
    %282 = vector.broadcast %cst_128 : f32 to vector<16x1xf32>
    %283 = arith.divf %281, %282 : vector<16x1xf32>
    %cst_129 = arith.constant 1.000000e-10 : f32
    %284 = vector.broadcast %cst_129 : f32 to vector<16x1xf32>
    %285 = arith.addf %283, %284 : vector<16x1xf32>
    %286 = math.rsqrt %285 : vector<16x1xf32>
    %287 = vector.broadcast %286 : vector<16x1xf32> to vector<16x32xf32>
    %288 = arith.mulf %278, %287 : vector<16x32xf32>
    %289 = vector.broadcast %259 : vector<1x32xf32> to vector<16x32xf32>
    %290 = arith.mulf %289, %288 : vector<16x32xf32>
    %291 = vector.broadcast %261 : vector<1x32xf32> to vector<16x32xf32>
    %292 = arith.addf %290, %291 : vector<16x32xf32>
    %c1 = arith.constant 1 : index
    %c0_130 = arith.constant 0 : index
    %c0_131 = arith.constant 0 : index
    %293 = vector.load %arg4[%c1, %c0_130, %c0_131] : memref<2x32x32xbf16, #tpu.memory_space<vmem>>, vector<1x32x32xbf16>
    %294 = vector.shape_cast %293 : vector<1x32x32xbf16> to vector<32x32xbf16>
    %c1_132 = arith.constant 1 : index
    %c0_133 = arith.constant 0 : index
    %c0_134 = arith.constant 0 : index
    %295 = vector.load %arg5[%c1_132, %c0_133, %c0_134] : memref<2x1x32xf32, #tpu.memory_space<vmem>>, vector<1x1x32xf32>
    %296 = vector.shape_cast %295 : vector<1x1x32xf32> to vector<1x32xf32>
    %c1_135 = arith.constant 1 : index
    %c0_136 = arith.constant 0 : index
    %c0_137 = arith.constant 0 : index
    %297 = vector.load %arg6[%c1_135, %c0_136, %c0_137] : memref<2x32x64xbf16, #tpu.memory_space<vmem>>, vector<1x32x64xbf16>
    %298 = vector.shape_cast %297 : vector<1x32x64xbf16> to vector<32x64xbf16>
    %c1_138 = arith.constant 1 : index
    %c0_139 = arith.constant 0 : index
    %c0_140 = arith.constant 0 : index
    %299 = vector.load %arg7[%c1_138, %c0_139, %c0_140] : memref<2x1x64xf32, #tpu.memory_space<vmem>>, vector<1x1x64xf32>
    %300 = vector.shape_cast %299 : vector<1x1x64xf32> to vector<1x64xf32>
    %c1_141 = arith.constant 1 : index
    %c0_142 = arith.constant 0 : index
    %c0_143 = arith.constant 0 : index
    %301 = vector.load %arg8[%c1_141, %c0_142, %c0_143] : memref<2x32x32xbf16, #tpu.memory_space<vmem>>, vector<1x32x32xbf16>
    %302 = vector.shape_cast %301 : vector<1x32x32xbf16> to vector<32x32xbf16>
    %c1_144 = arith.constant 1 : index
    %c0_145 = arith.constant 0 : index
    %c0_146 = arith.constant 0 : index
    %303 = vector.load %arg9[%c1_144, %c0_145, %c0_146] : memref<2x1x32xf32, #tpu.memory_space<vmem>>, vector<1x1x32xf32>
    %304 = vector.shape_cast %303 : vector<1x1x32xf32> to vector<1x32xf32>
    %c1_147 = arith.constant 1 : index
    %c0_148 = arith.constant 0 : index
    %c0_149 = arith.constant 0 : index
    %305 = vector.load %arg10[%c1_147, %c0_148, %c0_149] : memref<2x1x32xf32, #tpu.memory_space<vmem>>, vector<1x1x32xf32>
    %306 = vector.shape_cast %305 : vector<1x1x32xf32> to vector<1x32xf32>
    %c1_150 = arith.constant 1 : index
    %c0_151 = arith.constant 0 : index
    %c0_152 = arith.constant 0 : index
    %307 = vector.load %arg11[%c1_150, %c0_151, %c0_152] : memref<2x1x32xf32, #tpu.memory_space<vmem>>, vector<1x1x32xf32>
    %308 = vector.shape_cast %307 : vector<1x1x32xf32> to vector<1x32xf32>
    %309 = arith.truncf %292 : vector<16x32xf32> to vector<16x32xbf16>
    %cst_153 = arith.constant dense<0.000000e+00> : vector<16x32xf32>
    %310 = tpu.matmul %309, %294, %cst_153 {dimension_numbers = #tpu.dot_dimension_numbers<[1], [0], [0], [1], [0, 0, 1, 1], [], []>} : vector<16x32xbf16>, vector<32x32xbf16>, vector<16x32xf32> -> vector<16x32xf32>
    %311 = vector.broadcast %296 : vector<1x32xf32> to vector<16x32xf32>
    %312 = arith.addf %310, %311 : vector<16x32xf32>
    %313 = arith.truncf %292 : vector<16x32xf32> to vector<16x32xbf16>
    %cst_154 = arith.constant dense<0.000000e+00> : vector<16x64xf32>
    %314 = tpu.matmul %313, %298, %cst_154 {dimension_numbers = #tpu.dot_dimension_numbers<[1], [0], [0], [1], [0, 0, 1, 1], [], []>} : vector<16x32xbf16>, vector<32x64xbf16>, vector<16x64xf32> -> vector<16x64xf32>
    %315 = vector.broadcast %300 : vector<1x64xf32> to vector<16x64xf32>
    %316 = arith.addf %314, %315 : vector<16x64xf32>
    %317 = vector.shape_cast %312 : vector<16x32xf32> to vector<2x8x32xf32>
    %318 = arith.truncf %317 : vector<2x8x32xf32> to vector<2x8x32xbf16>
    %319 = vector.extract_strided_slice %316 {offsets = [0, 0], sizes = [16, 32], strides = [1, 1]} : vector<16x64xf32> to vector<16x32xf32>
    %320 = vector.shape_cast %319 : vector<16x32xf32> to vector<2x8x32xf32>
    %321 = arith.truncf %320 : vector<2x8x32xf32> to vector<2x8x32xbf16>
    %322 = vector.extract_strided_slice %316 {offsets = [0, 32], sizes = [16, 32], strides = [1, 1]} : vector<16x64xf32> to vector<16x32xf32>
    %323 = vector.shape_cast %322 : vector<16x32xf32> to vector<2x8x32xf32>
    %324 = arith.truncf %323 : vector<2x8x32xf32> to vector<2x8x32xbf16>
    %325 = vector.extract_strided_slice %318 {offsets = [0, 0, 0], sizes = [2, 8, 8], strides = [1, 1, 1]} : vector<2x8x32xbf16> to vector<2x8x8xbf16>
    %326 = vector.extract_strided_slice %321 {offsets = [0, 0, 0], sizes = [2, 8, 8], strides = [1, 1, 1]} : vector<2x8x32xbf16> to vector<2x8x8xbf16>
    "tpu.trace_start"() <{level = 10 : i32, message = "bqd,bkd->bqk"}> : () -> ()
    %cst_155 = arith.constant dense<0.000000e+00> : vector<2x8x8xf32>
    %327 = tpu.matmul %325, %326, %cst_155 {dimension_numbers = #tpu.dot_dimension_numbers<[2], [2], [1], [1], [0, 0, 0, 1, 1, 1], [0], [0]>} : vector<2x8x8xbf16>, vector<2x8x8xbf16>, vector<2x8x8xf32> -> vector<2x8x8xf32>
    "tpu.trace_stop"() : () -> ()
    %328 = arith.addf %327, %2 : vector<2x8x8xf32>
    %cst_156 = arith.constant dense<0xFF800000> : vector<2x8xf32>
    %329 = vector.multi_reduction <maximumf>, %328, %cst_156 [2] : vector<2x8x8xf32> to vector<2x8xf32>
    %330 = vector.shape_cast %329 : vector<2x8xf32> to vector<2x8x1xf32>
    %331 = vector.broadcast %330 : vector<2x8x1xf32> to vector<2x8x8xf32>
    %332 = arith.subf %328, %331 : vector<2x8x8xf32>
    %333 = math.exp %332 : vector<2x8x8xf32>
    %cst_157 = arith.constant dense<0.000000e+00> : vector<2x8xf32>
    %334 = vector.multi_reduction <add>, %333, %cst_157 [2] : vector<2x8x8xf32> to vector<2x8xf32>
    %335 = vector.shape_cast %334 : vector<2x8xf32> to vector<2x8x1xf32>
    %336 = vector.broadcast %335 : vector<2x8x1xf32> to vector<2x8x8xf32>
    %337 = arith.divf %333, %336 : vector<2x8x8xf32>
    %338 = arith.truncf %337 : vector<2x8x8xf32> to vector<2x8x8xbf16>
    %339 = vector.extract_strided_slice %324 {offsets = [0, 0, 0], sizes = [2, 8, 8], strides = [1, 1, 1]} : vector<2x8x32xbf16> to vector<2x8x8xbf16>
    "tpu.trace_start"() <{level = 10 : i32, message = "bqk,bkd->bqd"}> : () -> ()
    %cst_158 = arith.constant dense<0.000000e+00> : vector<2x8x8xf32>
    %340 = tpu.matmul %338, %339, %cst_158 {dimension_numbers = #tpu.dot_dimension_numbers<[2], [1], [1], [2], [0, 0, 0, 1, 1, 2], [0], [0]>} : vector<2x8x8xbf16>, vector<2x8x8xbf16>, vector<2x8x8xf32> -> vector<2x8x8xf32>
    "tpu.trace_stop"() : () -> ()
    %341 = vector.extract_strided_slice %318 {offsets = [0, 0, 8], sizes = [2, 8, 8], strides = [1, 1, 1]} : vector<2x8x32xbf16> to vector<2x8x8xbf16>
    %342 = vector.extract_strided_slice %321 {offsets = [0, 0, 8], sizes = [2, 8, 8], strides = [1, 1, 1]} : vector<2x8x32xbf16> to vector<2x8x8xbf16>
    "tpu.trace_start"() <{level = 10 : i32, message = "bqd,bkd->bqk"}> : () -> ()
    %cst_159 = arith.constant dense<0.000000e+00> : vector<2x8x8xf32>
    %343 = tpu.matmul %341, %342, %cst_159 {dimension_numbers = #tpu.dot_dimension_numbers<[2], [2], [1], [1], [0, 0, 0, 1, 1, 1], [0], [0]>} : vector<2x8x8xbf16>, vector<2x8x8xbf16>, vector<2x8x8xf32> -> vector<2x8x8xf32>
    "tpu.trace_stop"() : () -> ()
    %344 = arith.addf %343, %2 : vector<2x8x8xf32>
    %cst_160 = arith.constant dense<0xFF800000> : vector<2x8xf32>
    %345 = vector.multi_reduction <maximumf>, %344, %cst_160 [2] : vector<2x8x8xf32> to vector<2x8xf32>
    %346 = vector.shape_cast %345 : vector<2x8xf32> to vector<2x8x1xf32>
    %347 = vector.broadcast %346 : vector<2x8x1xf32> to vector<2x8x8xf32>
    %348 = arith.subf %344, %347 : vector<2x8x8xf32>
    %349 = math.exp %348 : vector<2x8x8xf32>
    %cst_161 = arith.constant dense<0.000000e+00> : vector<2x8xf32>
    %350 = vector.multi_reduction <add>, %349, %cst_161 [2] : vector<2x8x8xf32> to vector<2x8xf32>
    %351 = vector.shape_cast %350 : vector<2x8xf32> to vector<2x8x1xf32>
    %352 = vector.broadcast %351 : vector<2x8x1xf32> to vector<2x8x8xf32>
    %353 = arith.divf %349, %352 : vector<2x8x8xf32>
    %354 = arith.truncf %353 : vector<2x8x8xf32> to vector<2x8x8xbf16>
    %355 = vector.extract_strided_slice %324 {offsets = [0, 0, 8], sizes = [2, 8, 8], strides = [1, 1, 1]} : vector<2x8x32xbf16> to vector<2x8x8xbf16>
    "tpu.trace_start"() <{level = 10 : i32, message = "bqk,bkd->bqd"}> : () -> ()
    %cst_162 = arith.constant dense<0.000000e+00> : vector<2x8x8xf32>
    %356 = tpu.matmul %354, %355, %cst_162 {dimension_numbers = #tpu.dot_dimension_numbers<[2], [1], [1], [2], [0, 0, 0, 1, 1, 2], [0], [0]>} : vector<2x8x8xbf16>, vector<2x8x8xbf16>, vector<2x8x8xf32> -> vector<2x8x8xf32>
    "tpu.trace_stop"() : () -> ()
    %357 = vector.extract_strided_slice %318 {offsets = [0, 0, 16], sizes = [2, 8, 8], strides = [1, 1, 1]} : vector<2x8x32xbf16> to vector<2x8x8xbf16>
    %358 = vector.extract_strided_slice %321 {offsets = [0, 0, 16], sizes = [2, 8, 8], strides = [1, 1, 1]} : vector<2x8x32xbf16> to vector<2x8x8xbf16>
    "tpu.trace_start"() <{level = 10 : i32, message = "bqd,bkd->bqk"}> : () -> ()
    %cst_163 = arith.constant dense<0.000000e+00> : vector<2x8x8xf32>
    %359 = tpu.matmul %357, %358, %cst_163 {dimension_numbers = #tpu.dot_dimension_numbers<[2], [2], [1], [1], [0, 0, 0, 1, 1, 1], [0], [0]>} : vector<2x8x8xbf16>, vector<2x8x8xbf16>, vector<2x8x8xf32> -> vector<2x8x8xf32>
    "tpu.trace_stop"() : () -> ()
    %360 = arith.addf %359, %2 : vector<2x8x8xf32>
    %cst_164 = arith.constant dense<0xFF800000> : vector<2x8xf32>
    %361 = vector.multi_reduction <maximumf>, %360, %cst_164 [2] : vector<2x8x8xf32> to vector<2x8xf32>
    %362 = vector.shape_cast %361 : vector<2x8xf32> to vector<2x8x1xf32>
    %363 = vector.broadcast %362 : vector<2x8x1xf32> to vector<2x8x8xf32>
    %364 = arith.subf %360, %363 : vector<2x8x8xf32>
    %365 = math.exp %364 : vector<2x8x8xf32>
    %cst_165 = arith.constant dense<0.000000e+00> : vector<2x8xf32>
    %366 = vector.multi_reduction <add>, %365, %cst_165 [2] : vector<2x8x8xf32> to vector<2x8xf32>
    %367 = vector.shape_cast %366 : vector<2x8xf32> to vector<2x8x1xf32>
    %368 = vector.broadcast %367 : vector<2x8x1xf32> to vector<2x8x8xf32>
    %369 = arith.divf %365, %368 : vector<2x8x8xf32>
    %370 = arith.truncf %369 : vector<2x8x8xf32> to vector<2x8x8xbf16>
    %371 = vector.extract_strided_slice %324 {offsets = [0, 0, 16], sizes = [2, 8, 8], strides = [1, 1, 1]} : vector<2x8x32xbf16> to vector<2x8x8xbf16>
    "tpu.trace_start"() <{level = 10 : i32, message = "bqk,bkd->bqd"}> : () -> ()
    %cst_166 = arith.constant dense<0.000000e+00> : vector<2x8x8xf32>
    %372 = tpu.matmul %370, %371, %cst_166 {dimension_numbers = #tpu.dot_dimension_numbers<[2], [1], [1], [2], [0, 0, 0, 1, 1, 2], [0], [0]>} : vector<2x8x8xbf16>, vector<2x8x8xbf16>, vector<2x8x8xf32> -> vector<2x8x8xf32>
    "tpu.trace_stop"() : () -> ()
    %373 = vector.extract_strided_slice %318 {offsets = [0, 0, 24], sizes = [2, 8, 8], strides = [1, 1, 1]} : vector<2x8x32xbf16> to vector<2x8x8xbf16>
    %374 = vector.extract_strided_slice %321 {offsets = [0, 0, 24], sizes = [2, 8, 8], strides = [1, 1, 1]} : vector<2x8x32xbf16> to vector<2x8x8xbf16>
    "tpu.trace_start"() <{level = 10 : i32, message = "bqd,bkd->bqk"}> : () -> ()
    %cst_167 = arith.constant dense<0.000000e+00> : vector<2x8x8xf32>
    %375 = tpu.matmul %373, %374, %cst_167 {dimension_numbers = #tpu.dot_dimension_numbers<[2], [2], [1], [1], [0, 0, 0, 1, 1, 1], [0], [0]>} : vector<2x8x8xbf16>, vector<2x8x8xbf16>, vector<2x8x8xf32> -> vector<2x8x8xf32>
    "tpu.trace_stop"() : () -> ()
    %376 = arith.addf %375, %2 : vector<2x8x8xf32>
    %cst_168 = arith.constant dense<0xFF800000> : vector<2x8xf32>
    %377 = vector.multi_reduction <maximumf>, %376, %cst_168 [2] : vector<2x8x8xf32> to vector<2x8xf32>
    %378 = vector.shape_cast %377 : vector<2x8xf32> to vector<2x8x1xf32>
    %379 = vector.broadcast %378 : vector<2x8x1xf32> to vector<2x8x8xf32>
    %380 = arith.subf %376, %379 : vector<2x8x8xf32>
    %381 = math.exp %380 : vector<2x8x8xf32>
    %cst_169 = arith.constant dense<0.000000e+00> : vector<2x8xf32>
    %382 = vector.multi_reduction <add>, %381, %cst_169 [2] : vector<2x8x8xf32> to vector<2x8xf32>
    %383 = vector.shape_cast %382 : vector<2x8xf32> to vector<2x8x1xf32>
    %384 = vector.broadcast %383 : vector<2x8x1xf32> to vector<2x8x8xf32>
    %385 = arith.divf %381, %384 : vector<2x8x8xf32>
    %386 = arith.truncf %385 : vector<2x8x8xf32> to vector<2x8x8xbf16>
    %387 = vector.extract_strided_slice %324 {offsets = [0, 0, 24], sizes = [2, 8, 8], strides = [1, 1, 1]} : vector<2x8x32xbf16> to vector<2x8x8xbf16>
    "tpu.trace_start"() <{level = 10 : i32, message = "bqk,bkd->bqd"}> : () -> ()
    %cst_170 = arith.constant dense<0.000000e+00> : vector<2x8x8xf32>
    %388 = tpu.matmul %386, %387, %cst_170 {dimension_numbers = #tpu.dot_dimension_numbers<[2], [1], [1], [2], [0, 0, 0, 1, 1, 2], [0], [0]>} : vector<2x8x8xbf16>, vector<2x8x8xbf16>, vector<2x8x8xf32> -> vector<2x8x8xf32>
    "tpu.trace_stop"() : () -> ()
    %389 = tpu.concatenate %340, %356, %372, %388 in 2 : vector<2x8x8xf32>, vector<2x8x8xf32>, vector<2x8x8xf32>, vector<2x8x8xf32> -> vector<2x8x32xf32>
    %390 = vector.shape_cast %389 : vector<2x8x32xf32> to vector<16x32xf32>
    %391 = arith.truncf %390 : vector<16x32xf32> to vector<16x32xbf16>
    %cst_171 = arith.constant dense<0.000000e+00> : vector<16x32xf32>
    %392 = tpu.matmul %391, %302, %cst_171 {dimension_numbers = #tpu.dot_dimension_numbers<[1], [0], [0], [1], [0, 0, 1, 1], [], []>} : vector<16x32xbf16>, vector<32x32xbf16>, vector<16x32xf32> -> vector<16x32xf32>
    %393 = vector.broadcast %304 : vector<1x32xf32> to vector<16x32xf32>
    %394 = arith.addf %392, %393 : vector<16x32xf32>
    %395 = arith.addf %394, %292 : vector<16x32xf32>
    %cst_172 = arith.constant dense<0.000000e+00> : vector<16xf32>
    %396 = vector.multi_reduction <add>, %395, %cst_172 [1] : vector<16x32xf32> to vector<16xf32>
    %397 = vector.shape_cast %396 : vector<16xf32> to vector<16x1xf32>
    %cst_173 = arith.constant 3.200000e+01 : f32
    %398 = vector.broadcast %cst_173 : f32 to vector<16x1xf32>
    %399 = arith.divf %397, %398 : vector<16x1xf32>
    %400 = vector.broadcast %399 : vector<16x1xf32> to vector<16x32xf32>
    %401 = arith.subf %395, %400 : vector<16x32xf32>
    %402 = arith.mulf %401, %401 : vector<16x32xf32>
    %cst_174 = arith.constant dense<0.000000e+00> : vector<16xf32>
    %403 = vector.multi_reduction <add>, %402, %cst_174 [1] : vector<16x32xf32> to vector<16xf32>
    %404 = vector.shape_cast %403 : vector<16xf32> to vector<16x1xf32>
    %cst_175 = arith.constant 3.100000e+01 : f32
    %405 = vector.broadcast %cst_175 : f32 to vector<16x1xf32>
    %406 = arith.divf %404, %405 : vector<16x1xf32>
    %cst_176 = arith.constant 1.000000e-10 : f32
    %407 = vector.broadcast %cst_176 : f32 to vector<16x1xf32>
    %408 = arith.addf %406, %407 : vector<16x1xf32>
    %409 = math.rsqrt %408 : vector<16x1xf32>
    %410 = vector.broadcast %409 : vector<16x1xf32> to vector<16x32xf32>
    %411 = arith.mulf %401, %410 : vector<16x32xf32>
    %412 = vector.broadcast %306 : vector<1x32xf32> to vector<16x32xf32>
    %413 = arith.mulf %412, %411 : vector<16x32xf32>
    %414 = vector.broadcast %308 : vector<1x32xf32> to vector<16x32xf32>
    %415 = arith.addf %413, %414 : vector<16x32xf32>
    %c1_177 = arith.constant 1 : index
    %c0_178 = arith.constant 0 : index
    %c0_179 = arith.constant 0 : index
    %416 = vector.load %arg12[%c1_177, %c0_178, %c0_179] : memref<2x32x32xbf16, #tpu.memory_space<vmem>>, vector<1x32x32xbf16>
    %417 = vector.shape_cast %416 : vector<1x32x32xbf16> to vector<32x32xbf16>
    %c1_180 = arith.constant 1 : index
    %c0_181 = arith.constant 0 : index
    %c0_182 = arith.constant 0 : index
    %418 = vector.load %arg13[%c1_180, %c0_181, %c0_182] : memref<2x1x32xf32, #tpu.memory_space<vmem>>, vector<1x1x32xf32>
    %419 = vector.shape_cast %418 : vector<1x1x32xf32> to vector<1x32xf32>
    %c1_183 = arith.constant 1 : index
    %c0_184 = arith.constant 0 : index
    %c0_185 = arith.constant 0 : index
    %420 = vector.load %arg14[%c1_183, %c0_184, %c0_185] : memref<2x32x64xbf16, #tpu.memory_space<vmem>>, vector<1x32x64xbf16>
    %421 = vector.shape_cast %420 : vector<1x32x64xbf16> to vector<32x64xbf16>
    %c1_186 = arith.constant 1 : index
    %c0_187 = arith.constant 0 : index
    %c0_188 = arith.constant 0 : index
    %422 = vector.load %arg15[%c1_186, %c0_187, %c0_188] : memref<2x1x64xf32, #tpu.memory_space<vmem>>, vector<1x1x64xf32>
    %423 = vector.shape_cast %422 : vector<1x1x64xf32> to vector<1x64xf32>
    %c1_189 = arith.constant 1 : index
    %c0_190 = arith.constant 0 : index
    %c0_191 = arith.constant 0 : index
    %424 = vector.load %arg16[%c1_189, %c0_190, %c0_191] : memref<2x32x32xbf16, #tpu.memory_space<vmem>>, vector<1x32x32xbf16>
    %425 = vector.shape_cast %424 : vector<1x32x32xbf16> to vector<32x32xbf16>
    %c1_192 = arith.constant 1 : index
    %c0_193 = arith.constant 0 : index
    %c0_194 = arith.constant 0 : index
    %426 = vector.load %arg17[%c1_192, %c0_193, %c0_194] : memref<2x1x32xf32, #tpu.memory_space<vmem>>, vector<1x1x32xf32>
    %427 = vector.shape_cast %426 : vector<1x1x32xf32> to vector<1x32xf32>
    %c1_195 = arith.constant 1 : index
    %c0_196 = arith.constant 0 : index
    %c0_197 = arith.constant 0 : index
    %428 = vector.load %arg18[%c1_195, %c0_196, %c0_197] : memref<2x1x32xf32, #tpu.memory_space<vmem>>, vector<1x1x32xf32>
    %429 = vector.shape_cast %428 : vector<1x1x32xf32> to vector<1x32xf32>
    %c1_198 = arith.constant 1 : index
    %c0_199 = arith.constant 0 : index
    %c0_200 = arith.constant 0 : index
    %430 = vector.load %arg19[%c1_198, %c0_199, %c0_200] : memref<2x1x32xf32, #tpu.memory_space<vmem>>, vector<1x1x32xf32>
    %431 = vector.shape_cast %430 : vector<1x1x32xf32> to vector<1x32xf32>
    %432 = arith.truncf %415 : vector<16x32xf32> to vector<16x32xbf16>
    %cst_201 = arith.constant dense<0.000000e+00> : vector<16x32xf32>
    %433 = tpu.matmul %432, %417, %cst_201 {dimension_numbers = #tpu.dot_dimension_numbers<[1], [0], [0], [1], [0, 0, 1, 1], [], []>} : vector<16x32xbf16>, vector<32x32xbf16>, vector<16x32xf32> -> vector<16x32xf32>
    %434 = vector.broadcast %419 : vector<1x32xf32> to vector<16x32xf32>
    %435 = arith.addf %433, %434 : vector<16x32xf32>
    %436 = arith.truncf %1 : vector<32x32xf32> to vector<32x32xbf16>
    %cst_202 = arith.constant dense<0.000000e+00> : vector<32x64xf32>
    %437 = tpu.matmul %436, %421, %cst_202 {dimension_numbers = #tpu.dot_dimension_numbers<[1], [0], [0], [1], [0, 0, 1, 1], [], []>} : vector<32x32xbf16>, vector<32x64xbf16>, vector<32x64xf32> -> vector<32x64xf32>
    %438 = vector.broadcast %423 : vector<1x64xf32> to vector<32x64xf32>
    %439 = arith.addf %437, %438 : vector<32x64xf32>
    %440 = vector.shape_cast %435 : vector<16x32xf32> to vector<2x8x32xf32>
    %441 = arith.truncf %440 : vector<2x8x32xf32> to vector<2x8x32xbf16>
    %442 = vector.extract_strided_slice %439 {offsets = [0, 0], sizes = [32, 32], strides = [1, 1]} : vector<32x64xf32> to vector<32x32xf32>
    %443 = vector.shape_cast %442 : vector<32x32xf32> to vector<2x16x32xf32>
    %444 = arith.truncf %443 : vector<2x16x32xf32> to vector<2x16x32xbf16>
    %445 = vector.extract_strided_slice %439 {offsets = [0, 32], sizes = [32, 32], strides = [1, 1]} : vector<32x64xf32> to vector<32x32xf32>
    %446 = vector.shape_cast %445 : vector<32x32xf32> to vector<2x16x32xf32>
    %447 = arith.truncf %446 : vector<2x16x32xf32> to vector<2x16x32xbf16>
    %448 = vector.extract_strided_slice %441 {offsets = [0, 0, 0], sizes = [2, 8, 8], strides = [1, 1, 1]} : vector<2x8x32xbf16> to vector<2x8x8xbf16>
    %449 = vector.extract_strided_slice %444 {offsets = [0, 0, 0], sizes = [2, 16, 8], strides = [1, 1, 1]} : vector<2x16x32xbf16> to vector<2x16x8xbf16>
    "tpu.trace_start"() <{level = 10 : i32, message = "bqd,bkd->bqk"}> : () -> ()
    %cst_203 = arith.constant dense<0.000000e+00> : vector<2x8x16xf32>
    %450 = tpu.matmul %448, %449, %cst_203 {dimension_numbers = #tpu.dot_dimension_numbers<[2], [2], [1], [1], [0, 0, 0, 1, 1, 1], [0], [0]>} : vector<2x8x8xbf16>, vector<2x16x8xbf16>, vector<2x8x16xf32> -> vector<2x8x16xf32>
    "tpu.trace_stop"() : () -> ()
    %451 = arith.addf %450, %3 : vector<2x8x16xf32>
    %cst_204 = arith.constant dense<0xFF800000> : vector<2x8xf32>
    %452 = vector.multi_reduction <maximumf>, %451, %cst_204 [2] : vector<2x8x16xf32> to vector<2x8xf32>
    %453 = vector.shape_cast %452 : vector<2x8xf32> to vector<2x8x1xf32>
    %454 = vector.broadcast %453 : vector<2x8x1xf32> to vector<2x8x16xf32>
    %455 = arith.subf %451, %454 : vector<2x8x16xf32>
    %456 = math.exp %455 : vector<2x8x16xf32>
    %cst_205 = arith.constant dense<0.000000e+00> : vector<2x8xf32>
    %457 = vector.multi_reduction <add>, %456, %cst_205 [2] : vector<2x8x16xf32> to vector<2x8xf32>
    %458 = vector.shape_cast %457 : vector<2x8xf32> to vector<2x8x1xf32>
    %459 = vector.broadcast %458 : vector<2x8x1xf32> to vector<2x8x16xf32>
    %460 = arith.divf %456, %459 : vector<2x8x16xf32>
    %461 = arith.truncf %460 : vector<2x8x16xf32> to vector<2x8x16xbf16>
    %462 = vector.extract_strided_slice %447 {offsets = [0, 0, 0], sizes = [2, 16, 8], strides = [1, 1, 1]} : vector<2x16x32xbf16> to vector<2x16x8xbf16>
    "tpu.trace_start"() <{level = 10 : i32, message = "bqk,bkd->bqd"}> : () -> ()
    %cst_206 = arith.constant dense<0.000000e+00> : vector<2x8x8xf32>
    %463 = tpu.matmul %461, %462, %cst_206 {dimension_numbers = #tpu.dot_dimension_numbers<[2], [1], [1], [2], [0, 0, 0, 1, 1, 2], [0], [0]>} : vector<2x8x16xbf16>, vector<2x16x8xbf16>, vector<2x8x8xf32> -> vector<2x8x8xf32>
    "tpu.trace_stop"() : () -> ()
    %464 = vector.extract_strided_slice %441 {offsets = [0, 0, 8], sizes = [2, 8, 8], strides = [1, 1, 1]} : vector<2x8x32xbf16> to vector<2x8x8xbf16>
    %465 = vector.extract_strided_slice %444 {offsets = [0, 0, 8], sizes = [2, 16, 8], strides = [1, 1, 1]} : vector<2x16x32xbf16> to vector<2x16x8xbf16>
    "tpu.trace_start"() <{level = 10 : i32, message = "bqd,bkd->bqk"}> : () -> ()
    %cst_207 = arith.constant dense<0.000000e+00> : vector<2x8x16xf32>
    %466 = tpu.matmul %464, %465, %cst_207 {dimension_numbers = #tpu.dot_dimension_numbers<[2], [2], [1], [1], [0, 0, 0, 1, 1, 1], [0], [0]>} : vector<2x8x8xbf16>, vector<2x16x8xbf16>, vector<2x8x16xf32> -> vector<2x8x16xf32>
    "tpu.trace_stop"() : () -> ()
    %467 = arith.addf %466, %3 : vector<2x8x16xf32>
    %cst_208 = arith.constant dense<0xFF800000> : vector<2x8xf32>
    %468 = vector.multi_reduction <maximumf>, %467, %cst_208 [2] : vector<2x8x16xf32> to vector<2x8xf32>
    %469 = vector.shape_cast %468 : vector<2x8xf32> to vector<2x8x1xf32>
    %470 = vector.broadcast %469 : vector<2x8x1xf32> to vector<2x8x16xf32>
    %471 = arith.subf %467, %470 : vector<2x8x16xf32>
    %472 = math.exp %471 : vector<2x8x16xf32>
    %cst_209 = arith.constant dense<0.000000e+00> : vector<2x8xf32>
    %473 = vector.multi_reduction <add>, %472, %cst_209 [2] : vector<2x8x16xf32> to vector<2x8xf32>
    %474 = vector.shape_cast %473 : vector<2x8xf32> to vector<2x8x1xf32>
    %475 = vector.broadcast %474 : vector<2x8x1xf32> to vector<2x8x16xf32>
    %476 = arith.divf %472, %475 : vector<2x8x16xf32>
    %477 = arith.truncf %476 : vector<2x8x16xf32> to vector<2x8x16xbf16>
    %478 = vector.extract_strided_slice %447 {offsets = [0, 0, 8], sizes = [2, 16, 8], strides = [1, 1, 1]} : vector<2x16x32xbf16> to vector<2x16x8xbf16>
    "tpu.trace_start"() <{level = 10 : i32, message = "bqk,bkd->bqd"}> : () -> ()
    %cst_210 = arith.constant dense<0.000000e+00> : vector<2x8x8xf32>
    %479 = tpu.matmul %477, %478, %cst_210 {dimension_numbers = #tpu.dot_dimension_numbers<[2], [1], [1], [2], [0, 0, 0, 1, 1, 2], [0], [0]>} : vector<2x8x16xbf16>, vector<2x16x8xbf16>, vector<2x8x8xf32> -> vector<2x8x8xf32>
    "tpu.trace_stop"() : () -> ()
    %480 = vector.extract_strided_slice %441 {offsets = [0, 0, 16], sizes = [2, 8, 8], strides = [1, 1, 1]} : vector<2x8x32xbf16> to vector<2x8x8xbf16>
    %481 = vector.extract_strided_slice %444 {offsets = [0, 0, 16], sizes = [2, 16, 8], strides = [1, 1, 1]} : vector<2x16x32xbf16> to vector<2x16x8xbf16>
    "tpu.trace_start"() <{level = 10 : i32, message = "bqd,bkd->bqk"}> : () -> ()
    %cst_211 = arith.constant dense<0.000000e+00> : vector<2x8x16xf32>
    %482 = tpu.matmul %480, %481, %cst_211 {dimension_numbers = #tpu.dot_dimension_numbers<[2], [2], [1], [1], [0, 0, 0, 1, 1, 1], [0], [0]>} : vector<2x8x8xbf16>, vector<2x16x8xbf16>, vector<2x8x16xf32> -> vector<2x8x16xf32>
    "tpu.trace_stop"() : () -> ()
    %483 = arith.addf %482, %3 : vector<2x8x16xf32>
    %cst_212 = arith.constant dense<0xFF800000> : vector<2x8xf32>
    %484 = vector.multi_reduction <maximumf>, %483, %cst_212 [2] : vector<2x8x16xf32> to vector<2x8xf32>
    %485 = vector.shape_cast %484 : vector<2x8xf32> to vector<2x8x1xf32>
    %486 = vector.broadcast %485 : vector<2x8x1xf32> to vector<2x8x16xf32>
    %487 = arith.subf %483, %486 : vector<2x8x16xf32>
    %488 = math.exp %487 : vector<2x8x16xf32>
    %cst_213 = arith.constant dense<0.000000e+00> : vector<2x8xf32>
    %489 = vector.multi_reduction <add>, %488, %cst_213 [2] : vector<2x8x16xf32> to vector<2x8xf32>
    %490 = vector.shape_cast %489 : vector<2x8xf32> to vector<2x8x1xf32>
    %491 = vector.broadcast %490 : vector<2x8x1xf32> to vector<2x8x16xf32>
    %492 = arith.divf %488, %491 : vector<2x8x16xf32>
    %493 = arith.truncf %492 : vector<2x8x16xf32> to vector<2x8x16xbf16>
    %494 = vector.extract_strided_slice %447 {offsets = [0, 0, 16], sizes = [2, 16, 8], strides = [1, 1, 1]} : vector<2x16x32xbf16> to vector<2x16x8xbf16>
    "tpu.trace_start"() <{level = 10 : i32, message = "bqk,bkd->bqd"}> : () -> ()
    %cst_214 = arith.constant dense<0.000000e+00> : vector<2x8x8xf32>
    %495 = tpu.matmul %493, %494, %cst_214 {dimension_numbers = #tpu.dot_dimension_numbers<[2], [1], [1], [2], [0, 0, 0, 1, 1, 2], [0], [0]>} : vector<2x8x16xbf16>, vector<2x16x8xbf16>, vector<2x8x8xf32> -> vector<2x8x8xf32>
    "tpu.trace_stop"() : () -> ()
    %496 = vector.extract_strided_slice %441 {offsets = [0, 0, 24], sizes = [2, 8, 8], strides = [1, 1, 1]} : vector<2x8x32xbf16> to vector<2x8x8xbf16>
    %497 = vector.extract_strided_slice %444 {offsets = [0, 0, 24], sizes = [2, 16, 8], strides = [1, 1, 1]} : vector<2x16x32xbf16> to vector<2x16x8xbf16>
    "tpu.trace_start"() <{level = 10 : i32, message = "bqd,bkd->bqk"}> : () -> ()
    %cst_215 = arith.constant dense<0.000000e+00> : vector<2x8x16xf32>
    %498 = tpu.matmul %496, %497, %cst_215 {dimension_numbers = #tpu.dot_dimension_numbers<[2], [2], [1], [1], [0, 0, 0, 1, 1, 1], [0], [0]>} : vector<2x8x8xbf16>, vector<2x16x8xbf16>, vector<2x8x16xf32> -> vector<2x8x16xf32>
    "tpu.trace_stop"() : () -> ()
    %499 = arith.addf %498, %3 : vector<2x8x16xf32>
    %cst_216 = arith.constant dense<0xFF800000> : vector<2x8xf32>
    %500 = vector.multi_reduction <maximumf>, %499, %cst_216 [2] : vector<2x8x16xf32> to vector<2x8xf32>
    %501 = vector.shape_cast %500 : vector<2x8xf32> to vector<2x8x1xf32>
    %502 = vector.broadcast %501 : vector<2x8x1xf32> to vector<2x8x16xf32>
    %503 = arith.subf %499, %502 : vector<2x8x16xf32>
    %504 = math.exp %503 : vector<2x8x16xf32>
    %cst_217 = arith.constant dense<0.000000e+00> : vector<2x8xf32>
    %505 = vector.multi_reduction <add>, %504, %cst_217 [2] : vector<2x8x16xf32> to vector<2x8xf32>
    %506 = vector.shape_cast %505 : vector<2x8xf32> to vector<2x8x1xf32>
    %507 = vector.broadcast %506 : vector<2x8x1xf32> to vector<2x8x16xf32>
    %508 = arith.divf %504, %507 : vector<2x8x16xf32>
    %509 = arith.truncf %508 : vector<2x8x16xf32> to vector<2x8x16xbf16>
    %510 = vector.extract_strided_slice %447 {offsets = [0, 0, 24], sizes = [2, 16, 8], strides = [1, 1, 1]} : vector<2x16x32xbf16> to vector<2x16x8xbf16>
    "tpu.trace_start"() <{level = 10 : i32, message = "bqk,bkd->bqd"}> : () -> ()
    %cst_218 = arith.constant dense<0.000000e+00> : vector<2x8x8xf32>
    %511 = tpu.matmul %509, %510, %cst_218 {dimension_numbers = #tpu.dot_dimension_numbers<[2], [1], [1], [2], [0, 0, 0, 1, 1, 2], [0], [0]>} : vector<2x8x16xbf16>, vector<2x16x8xbf16>, vector<2x8x8xf32> -> vector<2x8x8xf32>
    "tpu.trace_stop"() : () -> ()
    %512 = tpu.concatenate %463, %479, %495, %511 in 2 : vector<2x8x8xf32>, vector<2x8x8xf32>, vector<2x8x8xf32>, vector<2x8x8xf32> -> vector<2x8x32xf32>
    %513 = vector.shape_cast %512 : vector<2x8x32xf32> to vector<16x32xf32>
    %514 = arith.truncf %513 : vector<16x32xf32> to vector<16x32xbf16>
    %cst_219 = arith.constant dense<0.000000e+00> : vector<16x32xf32>
    %515 = tpu.matmul %514, %425, %cst_219 {dimension_numbers = #tpu.dot_dimension_numbers<[1], [0], [0], [1], [0, 0, 1, 1], [], []>} : vector<16x32xbf16>, vector<32x32xbf16>, vector<16x32xf32> -> vector<16x32xf32>
    %516 = vector.broadcast %427 : vector<1x32xf32> to vector<16x32xf32>
    %517 = arith.addf %515, %516 : vector<16x32xf32>
    %518 = arith.addf %517, %415 : vector<16x32xf32>
    %cst_220 = arith.constant dense<0.000000e+00> : vector<16xf32>
    %519 = vector.multi_reduction <add>, %518, %cst_220 [1] : vector<16x32xf32> to vector<16xf32>
    %520 = vector.shape_cast %519 : vector<16xf32> to vector<16x1xf32>
    %cst_221 = arith.constant 3.200000e+01 : f32
    %521 = vector.broadcast %cst_221 : f32 to vector<16x1xf32>
    %522 = arith.divf %520, %521 : vector<16x1xf32>
    %523 = vector.broadcast %522 : vector<16x1xf32> to vector<16x32xf32>
    %524 = arith.subf %518, %523 : vector<16x32xf32>
    %525 = arith.mulf %524, %524 : vector<16x32xf32>
    %cst_222 = arith.constant dense<0.000000e+00> : vector<16xf32>
    %526 = vector.multi_reduction <add>, %525, %cst_222 [1] : vector<16x32xf32> to vector<16xf32>
    %527 = vector.shape_cast %526 : vector<16xf32> to vector<16x1xf32>
    %cst_223 = arith.constant 3.100000e+01 : f32
    %528 = vector.broadcast %cst_223 : f32 to vector<16x1xf32>
    %529 = arith.divf %527, %528 : vector<16x1xf32>
    %cst_224 = arith.constant 1.000000e-10 : f32
    %530 = vector.broadcast %cst_224 : f32 to vector<16x1xf32>
    %531 = arith.addf %529, %530 : vector<16x1xf32>
    %532 = math.rsqrt %531 : vector<16x1xf32>
    %533 = vector.broadcast %532 : vector<16x1xf32> to vector<16x32xf32>
    %534 = arith.mulf %524, %533 : vector<16x32xf32>
    %535 = vector.broadcast %429 : vector<1x32xf32> to vector<16x32xf32>
    %536 = arith.mulf %535, %534 : vector<16x32xf32>
    %537 = vector.broadcast %431 : vector<1x32xf32> to vector<16x32xf32>
    %538 = arith.addf %536, %537 : vector<16x32xf32>
    %c1_225 = arith.constant 1 : index
    %c0_226 = arith.constant 0 : index
    %c0_227 = arith.constant 0 : index
    %539 = vector.load %arg20[%c1_225, %c0_226, %c0_227] : memref<2x32x64xbf16, #tpu.memory_space<vmem>>, vector<1x32x64xbf16>
    %540 = vector.shape_cast %539 : vector<1x32x64xbf16> to vector<32x64xbf16>
    %c1_228 = arith.constant 1 : index
    %c0_229 = arith.constant 0 : index
    %c0_230 = arith.constant 0 : index
    %541 = vector.load %arg21[%c1_228, %c0_229, %c0_230] : memref<2x1x64xf32, #tpu.memory_space<vmem>>, vector<1x1x64xf32>
    %542 = vector.shape_cast %541 : vector<1x1x64xf32> to vector<1x64xf32>
    %c1_231 = arith.constant 1 : index
    %c0_232 = arith.constant 0 : index
    %c0_233 = arith.constant 0 : index
    %543 = vector.load %arg22[%c1_231, %c0_232, %c0_233] : memref<2x64x32xbf16, #tpu.memory_space<vmem>>, vector<1x64x32xbf16>
    %544 = vector.shape_cast %543 : vector<1x64x32xbf16> to vector<64x32xbf16>
    %c1_234 = arith.constant 1 : index
    %c0_235 = arith.constant 0 : index
    %c0_236 = arith.constant 0 : index
    %545 = vector.load %arg23[%c1_234, %c0_235, %c0_236] : memref<2x1x32xf32, #tpu.memory_space<vmem>>, vector<1x1x32xf32>
    %546 = vector.shape_cast %545 : vector<1x1x32xf32> to vector<1x32xf32>
    %c1_237 = arith.constant 1 : index
    %c0_238 = arith.constant 0 : index
    %c0_239 = arith.constant 0 : index
    %547 = vector.load %arg24[%c1_237, %c0_238, %c0_239] : memref<2x1x32xf32, #tpu.memory_space<vmem>>, vector<1x1x32xf32>
    %548 = vector.shape_cast %547 : vector<1x1x32xf32> to vector<1x32xf32>
    %c1_240 = arith.constant 1 : index
    %c0_241 = arith.constant 0 : index
    %c0_242 = arith.constant 0 : index
    %549 = vector.load %arg25[%c1_240, %c0_241, %c0_242] : memref<2x1x32xf32, #tpu.memory_space<vmem>>, vector<1x1x32xf32>
    %550 = vector.shape_cast %549 : vector<1x1x32xf32> to vector<1x32xf32>
    %551 = arith.truncf %538 : vector<16x32xf32> to vector<16x32xbf16>
    %cst_243 = arith.constant dense<0.000000e+00> : vector<16x64xf32>
    %552 = tpu.matmul %551, %540, %cst_243 {dimension_numbers = #tpu.dot_dimension_numbers<[1], [0], [0], [1], [0, 0, 1, 1], [], []>} : vector<16x32xbf16>, vector<32x64xbf16>, vector<16x64xf32> -> vector<16x64xf32>
    %553 = vector.broadcast %542 : vector<1x64xf32> to vector<16x64xf32>
    %554 = arith.addf %552, %553 : vector<16x64xf32>
    %cst_244 = arith.constant 0.000000e+00 : f32
    %555 = vector.broadcast %cst_244 : f32 to vector<16x64xf32>
    %556 = arith.maximumf %554, %555 : vector<16x64xf32>
    %557 = arith.truncf %556 : vector<16x64xf32> to vector<16x64xbf16>
    %cst_245 = arith.constant dense<0.000000e+00> : vector<16x32xf32>
    %558 = tpu.matmul %557, %544, %cst_245 {dimension_numbers = #tpu.dot_dimension_numbers<[1], [0], [0], [1], [0, 0, 1, 1], [], []>} : vector<16x64xbf16>, vector<64x32xbf16>, vector<16x32xf32> -> vector<16x32xf32>
    %559 = vector.broadcast %546 : vector<1x32xf32> to vector<16x32xf32>
    %560 = arith.addf %558, %559 : vector<16x32xf32>
    %561 = arith.addf %560, %538 : vector<16x32xf32>
    %cst_246 = arith.constant dense<0.000000e+00> : vector<16xf32>
    %562 = vector.multi_reduction <add>, %561, %cst_246 [1] : vector<16x32xf32> to vector<16xf32>
    %563 = vector.shape_cast %562 : vector<16xf32> to vector<16x1xf32>
    %cst_247 = arith.constant 3.200000e+01 : f32
    %564 = vector.broadcast %cst_247 : f32 to vector<16x1xf32>
    %565 = arith.divf %563, %564 : vector<16x1xf32>
    %566 = vector.broadcast %565 : vector<16x1xf32> to vector<16x32xf32>
    %567 = arith.subf %561, %566 : vector<16x32xf32>
    %568 = arith.mulf %567, %567 : vector<16x32xf32>
    %cst_248 = arith.constant dense<0.000000e+00> : vector<16xf32>
    %569 = vector.multi_reduction <add>, %568, %cst_248 [1] : vector<16x32xf32> to vector<16xf32>
    %570 = vector.shape_cast %569 : vector<16xf32> to vector<16x1xf32>
    %cst_249 = arith.constant 3.100000e+01 : f32
    %571 = vector.broadcast %cst_249 : f32 to vector<16x1xf32>
    %572 = arith.divf %570, %571 : vector<16x1xf32>
    %cst_250 = arith.constant 1.000000e-10 : f32
    %573 = vector.broadcast %cst_250 : f32 to vector<16x1xf32>
    %574 = arith.addf %572, %573 : vector<16x1xf32>
    %575 = math.rsqrt %574 : vector<16x1xf32>
    %576 = vector.broadcast %575 : vector<16x1xf32> to vector<16x32xf32>
    %577 = arith.mulf %567, %576 : vector<16x32xf32>
    %578 = vector.broadcast %548 : vector<1x32xf32> to vector<16x32xf32>
    %579 = arith.mulf %578, %577 : vector<16x32xf32>
    %580 = vector.broadcast %550 : vector<1x32xf32> to vector<16x32xf32>
    %581 = arith.addf %579, %580 : vector<16x32xf32>
    %c0_251 = arith.constant 0 : index
    %c0_252 = arith.constant 0 : index
    %582 = vector.load %arg26[%c0_251, %c0_252] : memref<32x128xbf16, #tpu.memory_space<vmem>>, vector<32x128xbf16>
    %583 = arith.truncf %581 : vector<16x32xf32> to vector<16x32xbf16>
    %cst_253 = arith.constant dense<0.000000e+00> : vector<16x128xf32>
    %584 = tpu.matmul %583, %582, %cst_253 {dimension_numbers = #tpu.dot_dimension_numbers<[1], [0], [0], [1], [0, 0, 1, 1], [], []>} : vector<16x32xbf16>, vector<32x128xbf16>, vector<16x128xf32> -> vector<16x128xf32>
    %c0_254 = arith.constant 0 : index
    %c0_255 = arith.constant 0 : index
    %585 = vector.load %arg27[%c0_254, %c0_255] : memref<1x128xf32, #tpu.memory_space<vmem>>, vector<1x128xf32>
    %586 = vector.broadcast %585 : vector<1x128xf32> to vector<16x128xf32>
    %587 = arith.addf %584, %586 : vector<16x128xf32>
    %c0_256 = arith.constant 0 : index
    %c0_257 = arith.constant 0 : index
    %588 = vector.load %arg28[%c0_256, %c0_257] : memref<16x128xf32, #tpu.memory_space<vmem>>, vector<16x128xf32>
    tpu.vector_store %arg28[%c0_256, %c0_257], %587 {strides = array<i32>} : memref<16x128xf32, #tpu.memory_space<vmem>>, vector<16x128xf32>,
    return
  }
}

</mosaic_0001>

<bundles_post_ra>
// kernel: _lambda_.2
= control target key start
LH: loop header
LB: loop body
LE: loop exit
PB: predicated region body
PF: predicated region fallthrough
CT: control target
= control target key end

     0   :  { %vm99_vm0 = vcmask 261120   ;;  %v4062_v10 = vmov 0.0   ;;  %vm4063_vm1 = vmmov 0   ;;  %vm226_vm2 = vcmask 64512   ;;  %s4064_s21 = smov 96   ;;  %s4065_s22 = smov 120   ;;  %s4882_s2 = inlined_call_operand.vmem [shape: bf16[2,32,32], index: 2, kind: input, shape index: {}]   ;;  %s4883_s0 = inlined_call_operand.vmem [shape: f32[32,32], index: 0, kind: input, shape index: {}]   ;;  %s4884_s4 = inlined_call_operand.vmem [shape: bf16[2,32,64], index: 4, kind: input, shape index: {}]   ;;  %s4885_s3 = inlined_call_operand.vmem [shape: f32[2,1,32], index: 3, kind: input, shape index: {}]   ;;  %s4886_s5 = inlined_call_operand.vmem [shape: f32[2,1,64], index: 5, kind: input, shape index: {}]   ;;  %s4887_s1 = inlined_call_operand.vmem [shape: f32[2,16,16], index: 1, kind: input, shape index: {}]   ;;  %s4888_s6 = inlined_call_operand.vmem [shape: bf16[2,32,32], index: 6, kind: input, shape index: {}]   ;;  %s4889_s7 = inlined_call_operand.vmem [shape: f32[2,1,32], index: 7, kind: input, shape index: {}]   ;;  %s4890_s10 = inlined_call_operand.vmem [shape: bf16[2,32,64], index: 10, kind: input, shape index: {}]   ;;  %s4891_s12 = inlined_call_operand.vmem [shape: bf16[2,64,32], index: 12, kind: input, shape index: {}]   ;;  %s4892_s8 = inlined_call_operand.vmem [shape: f32[2,1,32], index: 8, kind: input, shape index: {}]   ;;  %s4893_s9 = inlined_call_operand.vmem [shape: f32[2,1,32], index: 9, kind: input, shape index: {}]   ;;  %s4894_s11 = inlined_call_operand.vmem [shape: f32[2,1,64], index: 11, kind: input, shape index: {}]   ;;  %s4895_s13 = inlined_call_operand.vmem [shape: f32[2,1,32], index: 13, kind: input, shape index: {}]   ;;  %s4896_s14 = inlined_call_operand.vmem [shape: f32[2,1,32], index: 14, kind: input, shape index: {}]   ;;  %s4897_s15 = inlined_call_operand.vmem [shape: f32[2,1,32], index: 15, kind: input, shape index: {}]   ;;  %s4898_s16 = inlined_call_operand.vmem [shape: f32[32,32], index: 16, kind: output, shape index: {}]  }
   0x1   :  { %4906 = sst [smem:[#allocation2_spill]] %s4882_s2  ;;  %v54_v2 = vld [vmem:[%s4883_s0] sm:$0xff]  ;;  %v55_v3 = vld [vmem:[%s4883_s0 + $0x8] sm:$0xff]  ;;  %v56_v4 = vld [vmem:[%s4883_s0 + $0x10] sm:$0xff]  ;;  %3534 = vmatprep.subr.bf16.mxu0 %v4062_v10  ;;  %3536 = vmatprep.mubr.msk.bf16.mxu0 %vm4063_vm1, %v4062_v10  ;;  %vm321_vm3 = vcmask 130048   ;;  %s4066_s24 = smov 88  }
   0x2   :  { %s4907_s23 = sld [smem:[#allocation2_spill]]  ;;  %v79_v5 = vpack.c.bf16 %v55_v3, %v54_v2  ;;  %v57_v6 = vld [vmem:[%s4883_s0 + $0x18] sm:$0xff]  ;;  %v3872_v7 = vld [vmem:[%s4884_s4] sm:$0xff]   ;;  %v3873_v9 = vld [vmem:[%s4884_s4 + $0x8] sm:$0xff]   ;;  %s4067_s25 = smov 112   ;;  %vm1248_vm4 = vcmask 195584  }
   0x3   :  { %v80_v8 = vpack.c.bf16 %v57_v6, %v56_v4  ;;  %v3283_v12 = vld [vmem:[%s4885_s3] ss:$0 sm:$0xff]  ;;  %v4224_v35 = vld [vmem:[%s4887_s1 + $0x10] sm:$0xff]  ;;  %v4234_v38 = vld [vmem:[%s4887_s1 + $0x18] sm:$0xff]  ;;  %s4068_s26 = smov 80   ;;  %s4069_s27 = smov 104  }
   0x4   :  { %3522 = vmatprep.mubr.msk.bf16.mxu1 %vm99_vm0, %v79_v5  ;;  %v3288_v23 = vld [vmem:[%s4886_s5] ss:$0 sm:$0xff]  ;;  %v4240_v42 = vld [vmem:[%s4887_s1 + $0x8] sm:$0xff]  ;;  %s4070_s28 = smov 72   ;;  %s4904_s29 = smov 8   ;;  %vm1533_vm5 = vcmask 523264  }
   0x5   :  { %v4229_v36 = vld [vmem:[%s4887_s1] sm:$0xff]  ;;  %s4902_s30 = smov 16   ;;  %s4900_s20 = smov 24  }
   0x8   :  { %v3870_v0 = vld [vmem:[%s4907_s23] sm:$0xff]   ;;  %v3871_v1 = vld [vmem:[%s4907_s23 + $0x8] sm:$0xff]  }
   0x9   :  { %3518 = vmatprep.subr.bf16.mxu1 %v3870_v0 }
   0xa   :  { %3519 = vmatpush3.bf16.msra.mxu1 %v3870_v0 }
   0xb   :  { %3520 = vmatprep.subr.bf16.mxu1 %v3871_v1 }
   0xe   :  { %3521 = vmatpush3.bf16.msra.mxu1 %v3871_v1 }
   0xf   :  { %3526 = vmatprep.subr.bf16.mxu1 %v3872_v7 }
  0x11   :  { %3523 = vmatmul.mubr.msk.bf16.vlgmr.msra.gmra.mrb[0].mxu1 %vm99_vm0, %v80_v8 }
  0x12   :  { %3527 = vmatpush3.bf16.msra.mxu1 %v3872_v7  ;;  %3530 = vmatprep.mubr.msk.bf16.mxu1 %vm99_vm0, %v79_v5 }
  0x13   :  { %3528 = vmatprep.subr.bf16.mxu1 %v3873_v9 }
  0x16   :  { %3529 = vmatpush3.bf16.msra.mxu1 %v3873_v9 }
  0x17   :  { %3540 = vmatprep.subr.bf16.mxu1 %v4062_v10 }
  0x19   :  { %3531 = vmatmul.mubr.msk.bf16.vlgmr.msra.gmra.mrb[4].mxu1 %vm99_vm0, %v80_v8 }
  0x1a   :  { %3542 = vmatprep.mubr.msk.bf16.mxu1 %vm4063_vm1, %v4062_v10 }
  0xe4   :  { %v3524_v11 = vpop.f32.mrb[0].mxu1 }
  0xe5   :  { %v140_v13 = vpop.f32.mrb[1].mxu1  ;;  %v149_v15 = vadd.f32 %v3524_v11, %v3283_v12 }
  0xe6   :  { %v3525_v14 = vpop.f32.mrb[2].mxu1  ;;  %v141_v18 = vadd.f32 %v3283_v12, %v140_v13 }
  0xe7   :  { %v152_v16 = vadd.f32 %v3525_v14, %v3283_v12  ;;  %v143_v17 = vpop.f32.mrb[3].mxu1 }
  0xe8   :  { %v144_v19 = vadd.f32 %v3283_v12, %v143_v17 }
  0xe9   :  { %v4196_v20 = vpack.c.bf16 %v152_v16, %v149_v15 }
  0xea   :  { %v4198_v21 = vpack.c.bf16 %v144_v19, %v141_v18 }
  0xec   :  { %v3532_v22 = vpop.f32.mrb[4].mxu1 }
  0xed   :  { %v207_v24 = vpop.f32.mrb[5].mxu1  ;;  %v216_v26 = vadd.f32 %v3532_v22, %v3288_v23 }
  0xee   :  { %v3533_v25 = vpop.f32.mrb[6].mxu1  ;;  %v208_v29 = vadd.f32 %v3288_v23, %v207_v24 }
  0xef   :  { %v219_v27 = vadd.f32 %v3533_v25, %v3288_v23  ;;  %v210_v28 = vpop.f32.mrb[7].mxu1 }
  0xf0   :  { %v211_v30 = vadd.f32 %v3288_v23, %v210_v28 }
  0xf1   :  { %v4203_v31 = vpack.c.bf16 %v219_v27, %v216_v26 }
  0xf2   :  { %v4205_v32 = vpack.c.bf16 %v211_v30, %v208_v29 }
  0xf3   :  { %v278_v33 = vsel %vm226_vm2, %v4203_v31, 0 }
  0xf4   :  { %3541 = vmatpush3.bf16.xpose.msra.mxu1 %v278_v33  ;;  %v231_v34 = vsel %vm226_vm2, %v4205_v32, 0 }
  0xf5   :  { %3535 = vmatpush3.bf16.xpose.msra.mxu0 %v231_v34  ;;  %3552 = vmatprep.subr.bf16.mxu1 %v4062_v10 }
  0xf6   :  { %3546 = vmatprep.subr.bf16.mxu0 %v4062_v10 }
  0xfb   :  { %3543 = vmatmul.mubr.msk.bf16.vlgmr.msra.gmra.mrb[8].mxu1 %vm226_vm2, %v4196_v20 }
  0xfc   :  { %3537 = vmatmul.mubr.msk.bf16.vlgmr.msra.gmra.mrb[0].mxu0 %vm226_vm2, %v4198_v21  ;;  %3554 = vmatprep.mubr.msk.bf16.mxu1 %vm4063_vm1, %v4062_v10 }
  0xfd   :  { %3548 = vmatprep.mubr.msk.bf16.mxu0 %vm4063_vm1, %v4062_v10 }
 0x1ce   :  { %v314_v37 = vpop.f32.mrb[8].mxu1 }
 0x1cf   :  { %v315_v39 = vadd.f32 %v314_v37, %v4224_v35  ;;  %v267_v40 = vpop.f32.mrb[0].mxu0  ;;  %v3544_v41 = vpop.f32.mrb[9].mxu1 }
 0x1d0   :  { %v268_v43 = vadd.f32 %v267_v40, %v4229_v36  ;;  %v3538_v44 = vpop.f32.mrb[1].mxu0  ;;  %v317_v45 = vpop.f32.mrb[10].mxu1 }
 0x1d1   :  { %v318_v46 = vadd.f32 %v317_v45, %v4234_v38  ;;  %v270_v47 = vpop.f32.mrb[2].mxu0  ;;  %v3545_v48 = vpop.f32.mrb[11].mxu1  ;;  %v328_v49 = vsel %vm321_vm3, %v315_v39, -inf }
 0x1d2   :  { %v271_v50 = vadd.f32 %v270_v47, %v4240_v42  ;;  %329 = vmax.xlane.f32.xlu1 %v328_v49  ;;  %v3539_v51 = vpop.f32.mrb[3].mxu0  ;;  %v322_v52 = vsel %vm321_vm3, %v268_v43, -inf }
 0x1d3   :  { %323 = vmax.xlane.f32.xlu0 %v322_v52  ;;  %v331_v53 = vsel %vm321_vm3, %v318_v46, -inf }
 0x1d4   :  { %v325_v54 = vsel %vm321_vm3, %v271_v50, -inf }
 0x1d6   :  { %332 = vmax.xlane.f32.xlu1 %v331_v53 }
 0x1d7   :  { %326 = vmax.xlane.f32.xlu0 %v325_v54 }
 0x1e7   :  { %417 = vrot.lane.b32.xlu1 %v4203_v31, %s4064_s21 }
 0x1eb   :  { %467 = vrot.lane.b32.xlu1 %v4205_v32, %s4065_s22 }
 0x25f   :  { %v330_v55 = vpop.xlane.xlu1 %329 }
 0x260   :  { %v336_v56 = vsub.f32 %v315_v39, %v330_v55  ;;  %v324_v57 = vpop.xlane.xlu0 %323 }
 0x261   :  { %v334_v58 = vsub.f32 %v268_v43, %v324_v57 }
 0x262   :  { %v342_v59 = vmul.f32 1.442695, %v336_v56 }
 0x263   :  { %v338_v60 = vmul.f32 1.442695, %v334_v58  ;;  %v333_v61 = vpop.xlane.xlu1 %332 }
 0x264   :  { %3894 = vpow2.f32 %v342_v59  ;;  %v337_v62 = vsub.f32 %v318_v46, %v333_v61  ;;  %v327_v63 = vpop.xlane.xlu0 %326 }
 0x265   :  { %v335_v0 = vsub.f32 %v271_v50, %v327_v63  ;;  %3896 = vpow2.f32 %v338_v60 }
 0x266   :  { %v344_v1 = vmul.f32 1.442695, %v337_v62 }
 0x267   :  { %v340_v2 = vmul.f32 1.442695, %v335_v0  ;;  %v418_v3 = vpop.permute.xlu1 %417 }
 0x268   :  { %3898 = vpow2.f32 %v344_v1  ;;  %3553 = vmatpush3.bf16.msra.mxu1 %v418_v3 }
 0x269   :  { %3564 = vmatprep.subr.bf16.mxu1 %v4062_v10  ;;  %3900 = vpow2.f32 %v340_v2 }
 0x26b   :  { %v468_v13 = vpop.permute.xlu1 %467 }
 0x26c   :  { %v473_v37 = vsel %vm226_vm2, %v468_v13, 0 }
 0x26e   :  { %v3895_v4 = vpop.eup %3894 }
 0x26f   :  { %v352_v5 = vsel %vm321_vm3, %v3895_v4, 0.0  ;;  %v3897_v6 = vpop.eup %3896 }
 0x270   :  { %353 = vadd.xlane.f32.xlu0 %v352_v5  ;;  %v346_v9 = vsel %vm321_vm3, %v3897_v6, 0.0 }
 0x272   :  { %v3899_v7 = vpop.eup %3898 }
 0x273   :  { %v355_v8 = vsel %vm321_vm3, %v3899_v7, 0.0  ;;  %v3901_v11 = vpop.eup %3900 }
 0x274   :  { %356 = vadd.xlane.f32.xlu1 %v355_v8  ;;  %347 = vadd.xlane.f32.xlu0 %v346_v9  ;;  %v349_v12 = vsel %vm321_vm3, %v3901_v11, 0.0 }
 0x278   :  { %350 = vadd.xlane.f32.xlu1 %v349_v12 }
 0x289   :  { %519 = vrot.lane.b32.xlu1 %v4203_v31, %s4065_s22 }
 0x28a   :  { %369 = vrot.lane.b32.xlu0 %v4205_v32, %s4064_s21 }
 0x28d   :  { %517 = vrot.lane.b32.xlu1 %v4196_v20, %s4065_s22 }
 0x28e   :  { %465 = vrot.lane.b32.xlu0 %v4198_v21, %s4065_s22 }
 0x2fd   :  { %v354_v14 = vpop.xlane.xlu0 %353 }
 0x2fe   :  { %3902 = vrcp.f32 %v354_v14 }
 0x301   :  { %v357_v15 = vpop.xlane.xlu1 %356  ;;  %v348_v16 = vpop.xlane.xlu0 %347 }
 0x302   :  { %3904 = vrcp.f32 %v357_v15 }
 0x303   :  { %3906 = vrcp.f32 %v348_v16 }
 0x305   :  { %v351_v17 = vpop.xlane.xlu1 %350  ;;  %v370_v18 = vpop.permute.xlu0 %369 }
 0x306   :  { %3908 = vrcp.f32 %v351_v17  ;;  %3547 = vmatpush3.bf16.msra.mxu0 %v370_v18 }
 0x307   :  { %3558 = vmatprep.subr.bf16.mxu0 %v4062_v10 }
 0x308   :  { %v3903_v19 = vpop.eup %3902 }
 0x309   :  { %v363_v23 = vmul.f32 %v3903_v19, %v3895_v4  ;;  %v520_v26 = vpop.permute.xlu1 %519  ;;  %v466_v40 = vpop.permute.xlu0 %465 }
 0x30a   :  { %v525_v33 = vsel %vm226_vm2, %v520_v26, 0 }
 0x30c   :  { %v3905_v22 = vpop.eup %3904 }
 0x30d   :  { %v365_v24 = vmul.f32 %v3905_v22, %v3899_v7  ;;  %v3907_v25 = vpop.eup %3906  ;;  %v518_v39 = vpop.permute.xlu1 %517 }
 0x30e   :  { %v359_v29 = vmul.f32 %v3907_v25, %v3897_v6 }
 0x30f   :  { %v367_v27 = vpack.c.bf16 %v365_v24, %v363_v23 }
 0x310   :  { %v3909_v28 = vpop.eup %3908 }
 0x311   :  { %v361_v30 = vmul.f32 %v3909_v28, %v3901_v11  ;;  %3555 = vmatmul.mubr.msk.bf16.vlgmr.msra.gmra.mrb[12].mxu1 %vm321_vm3, %v367_v27 }
 0x312   :  { %3565 = vmatpush3.bf16.xpose.msra.mxu1 %v525_v33  ;;  %3566 = vmatprep.mubr.msk.bf16.mxu1 %vm4063_vm1, %v4062_v10 }
 0x313   :  { %v366_v34 = vpack.c.bf16 %v361_v30, %v359_v29  ;;  %3576 = vmatprep.subr.bf16.mxu1 %v4062_v10 }
 0x315   :  { %3549 = vmatmul.mubr.msk.bf16.vlgmr.msra.gmra.mrb[4].mxu0 %vm321_vm3, %v366_v34 }
 0x316   :  { %3559 = vmatpush3.bf16.xpose.msra.mxu0 %v473_v37  ;;  %3560 = vmatprep.mubr.msk.bf16.mxu0 %vm4063_vm1, %v4062_v10 }
 0x317   :  { %3570 = vmatprep.subr.bf16.mxu0 %v4062_v10 }
 0x319   :  { %3567 = vmatmul.mubr.msk.bf16.vlgmr.msra.gmra.mrb[16].mxu1 %vm226_vm2, %v518_v39 }
 0x31a   :  { %3578 = vmatprep.mubr.msk.bf16.mxu1 %vm4063_vm1, %v4062_v10 }
 0x31d   :  { %3561 = vmatmul.mubr.msk.bf16.vlgmr.msra.gmra.mrb[8].mxu0 %vm226_vm2, %v466_v40 }
 0x31e   :  { %3572 = vmatprep.mubr.msk.bf16.mxu0 %vm4063_vm1, %v4062_v10 }
 0x3e4   :  { %v4283_v41 = vpop.f32.mrb[12].mxu1 }
 0x3e5   :  { %v3556_v43 = vpop.f32.mrb[13].mxu1 }
 0x3e6   :  { %v4285_v44 = vpop.f32.mrb[14].mxu1 }
 0x3e7   :  { %v3557_v45 = vpop.f32.mrb[15].mxu1 }
 0x3e8   :  { %v4287_v46 = vpop.f32.mrb[4].mxu0 }
 0x3e9   :  { %v3550_v47 = vpop.f32.mrb[5].mxu0 }
 0x3ea   :  { %v4289_v48 = vpop.f32.mrb[6].mxu0 }
 0x3eb   :  { %v3551_v49 = vpop.f32.mrb[7].mxu0 }
 0x3ec   :  { %v561_v50 = vpop.f32.mrb[16].mxu1 }
 0x3ed   :  { %v3568_v51 = vpop.f32.mrb[17].mxu1  ;;  %v562_v58 = vadd.f32 %v561_v50, %v4224_v35 }
 0x3ee   :  { %v564_v52 = vpop.f32.mrb[18].mxu1 }
 0x3ef   :  { %v3569_v53 = vpop.f32.mrb[19].mxu1  ;;  %v565_v63 = vadd.f32 %v564_v52, %v4234_v38  ;;  %v574_v0 = vsel %vm321_vm3, %v562_v58, -inf }
 0x3f0   :  { %v509_v54 = vpop.f32.mrb[8].mxu0 }
 0x3f1   :  { %v510_v55 = vadd.f32 %v509_v54, %v4229_v36  ;;  %v3562_v56 = vpop.f32.mrb[9].mxu0  ;;  %v577_v1 = vsel %vm321_vm3, %v565_v63, -inf }
 0x3f2   :  { %v512_v57 = vpop.f32.mrb[10].mxu0 }
 0x3f3   :  { %v513_v59 = vadd.f32 %v512_v57, %v4240_v42  ;;  %v3563_v60 = vpop.f32.mrb[11].mxu0  ;;  %v568_v61 = vsel %vm321_vm3, %v510_v55, -inf }
 0x3f4   :  { %569 = vmax.xlane.f32.xlu0 %v568_v61 }
 0x3f5   :  { %v571_v62 = vsel %vm321_vm3, %v513_v59, -inf }
 0x3f6   :  { %572 = vmax.xlane.f32.xlu1 %v571_v62 }
 0x3f8   :  { %575 = vmax.xlane.f32.xlu0 %v574_v0 }
 0x3fc   :  { %578 = vmax.xlane.f32.xlu0 %v577_v1 }
 0x407   :  { %661 = vrot.lane.b32.xlu1 %v4203_v31, %s4066_s24 }
 0x40b   :  { %710 = vrot.lane.b32.xlu1 %v4205_v32, %s4067_s25 }
 0x481   :  { %v570_v2 = vpop.xlane.xlu0 %569 }
 0x482   :  { %v580_v4 = vsub.f32 %v510_v55, %v570_v2 }
 0x483   :  { %v573_v3 = vpop.xlane.xlu1 %572 }
 0x484   :  { %v584_v8 = vmul.f32 1.442695, %v580_v4  ;;  %v581_v9 = vsub.f32 %v513_v59, %v573_v3 }
 0x485   :  { %v576_v5 = vpop.xlane.xlu0 %575 }
 0x486   :  { %v582_v6 = vsub.f32 %v562_v58, %v576_v5  ;;  %v586_v14 = vmul.f32 1.442695, %v581_v9 }
 0x487   :  { %v662_v7 = vpop.permute.xlu1 %661 }
 0x488   :  { %v588_v11 = vmul.f32 1.442695, %v582_v6  ;;  %3577 = vmatpush3.bf16.msra.mxu1 %v662_v7 }
 0x489   :  { %v579_v12 = vpop.xlane.xlu0 %578  ;;  %3588 = vmatprep.subr.bf16.mxu1 %v4062_v10 }
 0x48a   :  { %3910 = vpow2.f32 %v588_v11  ;;  %v583_v13 = vsub.f32 %v565_v63, %v579_v12 }
 0x48b   :  { %3912 = vpow2.f32 %v584_v8  ;;  %v711_v26 = vpop.permute.xlu1 %710 }
 0x48c   :  { %v590_v15 = vmul.f32 1.442695, %v583_v13  ;;  %v716_v54 = vsel %vm226_vm2, %v711_v26, 0 }
 0x48e   :  { %3914 = vpow2.f32 %v590_v15 }
 0x48f   :  { %3916 = vpow2.f32 %v586_v14 }
 0x494   :  { %v3911_v16 = vpop.eup %3910 }
 0x495   :  { %v598_v17 = vsel %vm321_vm3, %v3911_v16, 0.0  ;;  %v3913_v18 = vpop.eup %3912 }
 0x496   :  { %599 = vadd.xlane.f32.xlu0 %v598_v17  ;;  %v592_v22 = vsel %vm321_vm3, %v3913_v18, 0.0 }
 0x498   :  { %v3915_v19 = vpop.eup %3914 }
 0x499   :  { %v601_v23 = vsel %vm321_vm3, %v3915_v19, 0.0  ;;  %v3917_v24 = vpop.eup %3916 }
 0x49a   :  { %593 = vadd.xlane.f32.xlu0 %v592_v22  ;;  %602 = vadd.xlane.f32.xlu1 %v601_v23  ;;  %v595_v25 = vsel %vm321_vm3, %v3917_v24, 0.0 }
 0x49e   :  { %596 = vadd.xlane.f32.xlu1 %v595_v25 }
 0x4af   :  { %761 = vrot.lane.b32.xlu1 %v4203_v31, %s4067_s25 }
 0x4b0   :  { %614 = vrot.lane.b32.xlu0 %v4205_v32, %s4066_s24 }
 0x4b3   :  { %759 = vrot.lane.b32.xlu1 %v4196_v20, %s4067_s25 }
 0x4b4   :  { %708 = vrot.lane.b32.xlu0 %v4198_v21, %s4067_s25 }
 0x523   :  { %v600_v27 = vpop.xlane.xlu0 %599 }
 0x524   :  { %3918 = vrcp.f32 %v600_v27 }
 0x527   :  { %v594_v28 = vpop.xlane.xlu0 %593  ;;  %v603_v29 = vpop.xlane.xlu1 %602 }
 0x528   :  { %3920 = vrcp.f32 %v603_v29 }
 0x529   :  { %3922 = vrcp.f32 %v594_v28 }
 0x52b   :  { %v615_v30 = vpop.permute.xlu0 %614  ;;  %v597_v33 = vpop.xlane.xlu1 %596 }
 0x52c   :  { %3924 = vrcp.f32 %v597_v33  ;;  %3571 = vmatpush3.bf16.msra.mxu0 %v615_v30 }
 0x52d   :  { %3582 = vmatprep.subr.bf16.mxu0 %v4062_v10 }
 0x52e   :  { %v3919_v34 = vpop.eup %3918 }
 0x52f   :  { %v609_v40 = vmul.f32 %v3919_v34, %v3911_v16  ;;  %v762_v45 = vpop.permute.xlu1 %761  ;;  %v709_v56 = vpop.permute.xlu0 %708 }
 0x530   :  { %v767_v52 = vsel %vm226_vm2, %v762_v45, 0 }
 0x532   :  { %v3921_v37 = vpop.eup %3920 }
 0x533   :  { %v3923_v39 = vpop.eup %3922  ;;  %v611_v43 = vmul.f32 %v3921_v37, %v3915_v19  ;;  %v760_v55 = vpop.permute.xlu1 %759 }
 0x534   :  { %v605_v50 = vmul.f32 %v3923_v39, %v3913_v18 }
 0x535   :  { %v613_v49 = vpack.c.bf16 %v611_v43, %v609_v40 }
 0x536   :  { %v3925_v47 = vpop.eup %3924 }
 0x537   :  { %v607_v51 = vmul.f32 %v3925_v47, %v3917_v24  ;;  %3579 = vmatmul.mubr.msk.bf16.vlgmr.msra.gmra.mrb[20].mxu1 %vm321_vm3, %v613_v49 }
 0x538   :  { %3589 = vmatpush3.bf16.xpose.msra.mxu1 %v767_v52  ;;  %3590 = vmatprep.mubr.msk.bf16.mxu1 %vm4063_vm1, %v4062_v10 }
 0x539   :  { %v612_v53 = vpack.c.bf16 %v607_v51, %v605_v50  ;;  %3600 = vmatprep.subr.bf16.mxu1 %v4062_v10 }
 0x53b   :  { %3573 = vmatmul.mubr.msk.bf16.vlgmr.msra.gmra.mrb[12].mxu0 %vm321_vm3, %v612_v53 }
 0x53c   :  { %3583 = vmatpush3.bf16.xpose.msra.mxu0 %v716_v54  ;;  %3584 = vmatprep.mubr.msk.bf16.mxu0 %vm4063_vm1, %v4062_v10 }
 0x53d   :  { %3594 = vmatprep.subr.bf16.mxu0 %v4062_v10 }
 0x53f   :  { %3591 = vmatmul.mubr.msk.bf16.vlgmr.msra.gmra.mrb[24].mxu1 %vm226_vm2, %v760_v55 }
 0x540   :  { %3602 = vmatprep.mubr.msk.bf16.mxu1 %vm4063_vm1, %v4062_v10 }
 0x543   :  { %3585 = vmatmul.mubr.msk.bf16.vlgmr.msra.gmra.mrb[16].mxu0 %vm226_vm2, %v709_v56 }
 0x544   :  { %3596 = vmatprep.mubr.msk.bf16.mxu0 %vm4063_vm1, %v4062_v10 }
 0x60a   :  { %v4333_v57 = vpop.f32.mrb[20].mxu1 }
 0x60b   :  { %v3580_v58 = vpop.f32.mrb[21].mxu1 }
 0x60c   :  { %v4335_v59 = vpop.f32.mrb[22].mxu1 }
 0x60d   :  { %v3815_v60 = vpack.i.bf16 %v4335_v59, %v4333_v57  ;;  %v3581_v61 = vpop.f32.mrb[23].mxu1 }
 0x60e   :  { %v4339_v62 = vpop.f32.mrb[12].mxu0 }
 0x60f   :  { %v3574_v63 = vpop.f32.mrb[13].mxu0 }
 0x610   :  { %v4341_v0 = vpop.f32.mrb[14].mxu0 }
 0x611   :  { %v3810_v1 = vpack.i.bf16 %v4341_v0, %v4339_v62  ;;  %v3575_v2 = vpop.f32.mrb[15].mxu0 }
 0x612   :  { %v803_v3 = vpop.f32.mrb[24].mxu1 }
 0x613   :  { %v3592_v4 = vpop.f32.mrb[25].mxu1  ;;  %v804_v12 = vadd.f32 %v803_v3, %v4224_v35 }
 0x614   :  { %v806_v5 = vpop.f32.mrb[26].mxu1 }
 0x615   :  { %v3593_v6 = vpop.f32.mrb[27].mxu1  ;;  %v807_v17 = vadd.f32 %v806_v5, %v4234_v38  ;;  %v816_v18 = vsel %vm321_vm3, %v804_v12, -inf }
 0x616   :  { %v752_v7 = vpop.f32.mrb[16].mxu0 }
 0x617   :  { %v753_v8 = vadd.f32 %v752_v7, %v4229_v36  ;;  %v3586_v9 = vpop.f32.mrb[17].mxu0  ;;  %v819_v19 = vsel %vm321_vm3, %v807_v17, -inf }
 0x618   :  { %v755_v11 = vpop.f32.mrb[18].mxu0 }
 0x619   :  { %v756_v13 = vadd.f32 %v755_v11, %v4240_v42  ;;  %v3587_v14 = vpop.f32.mrb[19].mxu0  ;;  %v810_v15 = vsel %vm321_vm3, %v753_v8, -inf }
 0x61a   :  { %811 = vmax.xlane.f32.xlu0 %v810_v15 }
 0x61b   :  { %v813_v16 = vsel %vm321_vm3, %v756_v13, -inf }
 0x61c   :  { %814 = vmax.xlane.f32.xlu1 %v813_v16 }
 0x61e   :  { %817 = vmax.xlane.f32.xlu0 %v816_v18 }
 0x622   :  { %820 = vmax.xlane.f32.xlu0 %v819_v19 }
 0x62d   :  { %903 = vrot.lane.b32.xlu1 %v4203_v31, %s4068_s26 }
 0x631   :  { %952 = vrot.lane.b32.xlu1 %v4205_v32, %s4069_s27 }
 0x6a7   :  { %v812_v22 = vpop.xlane.xlu0 %811 }
 0x6a8   :  { %v822_v24 = vsub.f32 %v753_v8, %v812_v22 }
 0x6a9   :  { %v815_v23 = vpop.xlane.xlu1 %814 }
 0x6aa   :  { %v826_v28 = vmul.f32 1.442695, %v822_v24  ;;  %v823_v29 = vsub.f32 %v756_v13, %v815_v23 }
 0x6ab   :  { %v818_v25 = vpop.xlane.xlu0 %817 }
 0x6ac   :  { %v824_v26 = vsub.f32 %v804_v12, %v818_v25  ;;  %v828_v37 = vmul.f32 1.442695, %v823_v29 }
 0x6ad   :  { %v904_v27 = vpop.permute.xlu1 %903 }
 0x6ae   :  { %v830_v30 = vmul.f32 1.442695, %v824_v26  ;;  %3601 = vmatpush3.bf16.msra.mxu1 %v904_v27 }
 0x6af   :  { %v821_v33 = vpop.xlane.xlu0 %820  ;;  %3612 = vmatprep.subr.bf16.mxu1 %v4062_v10 }
 0x6b0   :  { %3926 = vpow2.f32 %v830_v30  ;;  %v825_v34 = vsub.f32 %v807_v17, %v821_v33 }
 0x6b1   :  { %3928 = vpow2.f32 %v826_v28  ;;  %v953_v53 = vpop.permute.xlu1 %952 }
 0x6b2   :  { %v832_v39 = vmul.f32 1.442695, %v825_v34  ;;  %v958_v12 = vsel %vm226_vm2, %v953_v53, 0 }
 0x6b4   :  { %3930 = vpow2.f32 %v832_v39 }
 0x6b5   :  { %3932 = vpow2.f32 %v828_v37 }
 0x6ba   :  { %v3927_v40 = vpop.eup %3926 }
 0x6bb   :  { %v840_v43 = vsel %vm321_vm3, %v3927_v40, 0.0  ;;  %v3929_v45 = vpop.eup %3928 }
 0x6bc   :  { %841 = vadd.xlane.f32.xlu0 %v840_v43  ;;  %v834_v49 = vsel %vm321_vm3, %v3929_v45, 0.0 }
 0x6be   :  { %v3931_v47 = vpop.eup %3930 }
 0x6bf   :  { %v843_v50 = vsel %vm321_vm3, %v3931_v47, 0.0  ;;  %v3933_v51 = vpop.eup %3932 }
 0x6c0   :  { %835 = vadd.xlane.f32.xlu0 %v834_v49  ;;  %844 = vadd.xlane.f32.xlu1 %v843_v50  ;;  %v837_v52 = vsel %vm321_vm3, %v3933_v51, 0.0 }
 0x6c4   :  { %838 = vadd.xlane.f32.xlu1 %v837_v52 }
 0x6d5   :  { %1003 = vrot.lane.b32.xlu1 %v4203_v31, %s4069_s27 }
 0x6d6   :  { %856 = vrot.lane.b32.xlu0 %v4205_v32, %s4068_s26 }
 0x6d9   :  { %1001 = vrot.lane.b32.xlu1 %v4196_v20, %s4069_s27 }
 0x6da   :  { %950 = vrot.lane.b32.xlu0 %v4198_v21, %s4069_s27 }
 0x749   :  { %v842_v54 = vpop.xlane.xlu0 %841 }
 0x74a   :  { %3934 = vrcp.f32 %v842_v54 }
 0x74d   :  { %v836_v55 = vpop.xlane.xlu0 %835  ;;  %v845_v56 = vpop.xlane.xlu1 %844 }
 0x74e   :  { %3936 = vrcp.f32 %v845_v56 }
 0x74f   :  { %3938 = vrcp.f32 %v836_v55 }
 0x751   :  { %v857_v58 = vpop.permute.xlu0 %856  ;;  %v839_v61 = vpop.xlane.xlu1 %838 }
 0x752   :  { %3940 = vrcp.f32 %v839_v61  ;;  %3595 = vmatpush3.bf16.msra.mxu0 %v857_v58 }
 0x753   :  { %3606 = vmatprep.subr.bf16.mxu0 %v4062_v10 }
 0x754   :  { %v3935_v63 = vpop.eup %3934 }
 0x755   :  { %v851_v20 = vmul.f32 %v3935_v63, %v3927_v40  ;;  %v1004_v5 = vpop.permute.xlu1 %1003  ;;  %v951_v14 = vpop.permute.xlu0 %950 }
 0x756   :  { %v1009_v9 = vsel %vm226_vm2, %v1004_v5, 0 }
 0x758   :  { %v3937_v2 = vpop.eup %3936 }
 0x759   :  { %v3939_v3 = vpop.eup %3938  ;;  %v853_v4 = vmul.f32 %v3937_v2, %v3931_v47  ;;  %v1002_v13 = vpop.permute.xlu1 %1001 }
 0x75a   :  { %v847_v7 = vmul.f32 %v3939_v3, %v3929_v45 }
 0x75b   :  { %v855_v6 = vpack.c.bf16 %v853_v4, %v851_v20 }
 0x75c   :  { %v3941_v21 = vpop.eup %3940 }
 0x75d   :  { %v849_v8 = vmul.f32 %v3941_v21, %v3933_v51  ;;  %3603 = vmatmul.mubr.msk.bf16.vlgmr.msra.gmra.mrb[28].mxu1 %vm321_vm3, %v855_v6 }
 0x75e   :  { %3613 = vmatpush3.bf16.xpose.msra.mxu1 %v1009_v9  ;;  %3614 = vmatprep.mubr.msk.bf16.mxu1 %vm4063_vm1, %v4062_v10 }
 0x75f   :  { %v854_v11 = vpack.c.bf16 %v849_v8, %v847_v7  ;;  %3624 = vmatprep.subr.bf16.mxu1 %v4062_v10 }
 0x761   :  { %3597 = vmatmul.mubr.msk.bf16.vlgmr.msra.gmra.mrb[20].mxu0 %vm321_vm3, %v854_v11 }
 0x762   :  { %3607 = vmatpush3.bf16.xpose.msra.mxu0 %v958_v12  ;;  %3608 = vmatprep.mubr.msk.bf16.mxu0 %vm4063_vm1, %v4062_v10 }
 0x763   :  { %3618 = vmatprep.subr.bf16.mxu0 %v4062_v10 }
 0x765   :  { %3615 = vmatmul.mubr.msk.bf16.vlgmr.msra.gmra.mrb[32].mxu1 %vm226_vm2, %v1002_v13 }
 0x766   :  { %3626 = vmatprep.mubr.msk.bf16.mxu1 %vm4063_vm1, %v4062_v10 }
 0x769   :  { %3609 = vmatmul.mubr.msk.bf16.vlgmr.msra.gmra.mrb[24].mxu0 %vm226_vm2, %v951_v14 }
 0x76a   :  { %3620 = vmatprep.mubr.msk.bf16.mxu0 %vm4063_vm1, %v4062_v10 }
 0x830   :  { %v4387_v15 = vpop.f32.mrb[28].mxu1 }
 0x831   :  { %v3604_v16 = vpop.f32.mrb[29].mxu1 }
 0x832   :  { %v4389_v17 = vpop.f32.mrb[30].mxu1 }
 0x833   :  { %v3825_v18 = vpack.i.bf16 %v4389_v17, %v4387_v15  ;;  %v3605_v19 = vpop.f32.mrb[31].mxu1 }
 0x834   :  { %v896_v22 = vpop.f32.mrb[20].mxu0  ;;  %v3875_v19 = vld [vmem:[%s4888_s6 + $0x8] sm:$0xff]  }
 0x835   :  { %v3598_v23 = vpop.f32.mrb[21].mxu0 }
 0x836   :  { %v899_v24 = vpop.f32.mrb[22].mxu0 }
 0x837   :  { %v3820_v25 = vpack.i.bf16 %v899_v24, %v896_v22  ;;  %v3599_v26 = vpop.f32.mrb[23].mxu0 }
 0x838   :  { %v1045_v27 = vpop.f32.mrb[32].mxu1 }
 0x839   :  { %v3616_v28 = vpop.f32.mrb[33].mxu1  ;;  %v1046_v40 = vadd.f32 %v1045_v27, %v4224_v35 }
 0x83a   :  { %v1048_v29 = vpop.f32.mrb[34].mxu1 }
 0x83b   :  { %v3617_v30 = vpop.f32.mrb[35].mxu1  ;;  %v1049_v50 = vadd.f32 %v1048_v29, %v4234_v38  ;;  %v1058_v51 = vsel %vm321_vm3, %v1046_v40, -inf }
 0x83c   :  { %v994_v33 = vpop.f32.mrb[24].mxu0 }
 0x83d   :  { %v995_v34 = vadd.f32 %v994_v33, %v4229_v36  ;;  %v3610_v37 = vpop.f32.mrb[25].mxu0  ;;  %v1061_v36 = vsel %vm321_vm3, %v1049_v50, -inf }
 0x83e   :  { %v997_v39 = vpop.f32.mrb[26].mxu0 }
 0x83f   :  { %v998_v43 = vadd.f32 %v997_v39, %v4240_v42  ;;  %v3611_v45 = vpop.f32.mrb[27].mxu0  ;;  %v1052_v47 = vsel %vm321_vm3, %v995_v34, -inf }
 0x840   :  { %1053 = vmax.xlane.f32.xlu0 %v1052_v47 }
 0x841   :  { %v1055_v49 = vsel %vm321_vm3, %v998_v43, -inf }
 0x842   :  { %1056 = vmax.xlane.f32.xlu1 %v1055_v49 }
 0x844   :  { %1059 = vmax.xlane.f32.xlu0 %v1058_v51 }
 0x848   :  { %1062 = vmax.xlane.f32.xlu0 %v1061_v36 }
 0x8cd   :  { %v1054_v52 = vpop.xlane.xlu0 %1053 }
 0x8ce   :  { %v1064_v53 = vsub.f32 %v995_v34, %v1054_v52 }
 0x8cf   :  { %v1057_v35 = vpop.xlane.xlu1 %1056 }
 0x8d0   :  { %v1068_v55 = vmul.f32 1.442695, %v1064_v53  ;;  %v1065_v56 = vsub.f32 %v998_v43, %v1057_v35 }
 0x8d1   :  { %v1060_v54 = vpop.xlane.xlu0 %1059 }
 0x8d2   :  { %v1066_v42 = vsub.f32 %v1046_v40, %v1060_v54  ;;  %v1070_v2 = vmul.f32 1.442695, %v1065_v56 }
 0x8d4   :  { %v1072_v58 = vmul.f32 1.442695, %v1066_v42 }
 0x8d5   :  { %v1063_v61 = vpop.xlane.xlu0 %1062 }
 0x8d6   :  { %3942 = vpow2.f32 %v1072_v58  ;;  %v1067_v63 = vsub.f32 %v1049_v50, %v1063_v61 }
 0x8d7   :  { %3944 = vpow2.f32 %v1068_v55 }
 0x8d8   :  { %v1074_v38 = vmul.f32 1.442695, %v1067_v63 }
 0x8da   :  { %3946 = vpow2.f32 %v1074_v38 }
 0x8db   :  { %3948 = vpow2.f32 %v1070_v2 }
 0x8e0   :  { %v3943_v3 = vpop.eup %3942 }
 0x8e1   :  { %v1082_v20 = vsel %vm321_vm3, %v3943_v3, 0.0  ;;  %v3945_v4 = vpop.eup %3944 }
 0x8e2   :  { %1083 = vadd.xlane.f32.xlu0 %v1082_v20  ;;  %v1076_v21 = vsel %vm321_vm3, %v3945_v4, 0.0 }
 0x8e4   :  { %v3947_v5 = vpop.eup %3946 }
 0x8e5   :  { %v1085_v6 = vsel %vm321_vm3, %v3947_v5, 0.0  ;;  %v3949_v7 = vpop.eup %3948 }
 0x8e6   :  { %1077 = vadd.xlane.f32.xlu0 %v1076_v21  ;;  %1086 = vadd.xlane.f32.xlu1 %v1085_v6  ;;  %v1079_v8 = vsel %vm321_vm3, %v3949_v7, 0.0  ;;  %v3309_v6 = vld [vmem:[%s4889_s7] ss:$0 sm:$0xff] }
 0x8ea   :  { %1080 = vadd.xlane.f32.xlu1 %v1079_v8 }
 0x8fb   :  { %1145 = vrot.lane.b32.xlu1 %v4203_v31, %s4070_s28 }
 0x8fc   :  { %1098 = vrot.lane.b32.xlu0 %v4205_v32, %s4070_s28 }
 0x8ff   :  { %3811 = vrot.lane.b32.xlu1 %v3810_v1, %s4904_s29 }
 0x900   :  { %3821 = vrot.lane.b32.xlu0 %v3820_v25, %s4902_s30 }
 0x903   :  { %3816 = vrot.lane.b32.xlu1 %v3815_v60, %s4904_s29 }
 0x907   :  { %3826 = vrot.lane.b32.xlu1 %v3825_v18, %s4902_s30  ;;  %v3874_v18 = vld [vmem:[%s4888_s6] sm:$0xff]  }
 0x96f   :  { %v1084_v31 = vpop.xlane.xlu0 %1083 }
 0x970   :  { %3950 = vrcp.f32 %v1084_v31 }
 0x973   :  { %v1078_v9 = vpop.xlane.xlu0 %1077  ;;  %v1087_v32 = vpop.xlane.xlu1 %1086 }
 0x974   :  { %3952 = vrcp.f32 %v1087_v32 }
 0x975   :  { %3954 = vrcp.f32 %v1078_v9 }
 0x977   :  { %v1099_v11 = vpop.permute.xlu0 %1098  ;;  %v1081_v12 = vpop.xlane.xlu1 %1080 }
 0x978   :  { %3956 = vrcp.f32 %v1081_v12  ;;  %3619 = vmatpush3.bf16.msra.mxu0 %v1099_v11 }
 0x979   :  { %3630 = vmatprep.subr.bf16.mxu0 %v3874_v18 }
 0x97a   :  { %v3951_v0 = vpop.eup %3950 }
 0x97b   :  { %v1146_v62 = vpop.permute.xlu1 %1145  ;;  %v1093_v14 = vmul.f32 %v3951_v0, %v3943_v3  ;;  %v3822_v51 = vpop.permute.xlu0 %3821 }
 0x97c   :  { %3625 = vmatpush3.bf16.msra.mxu1 %v1146_v62  ;;  %v3824_v61 = vunpack.i.h.bf16 %v3822_v51  ;;  %v3823_v63 = vunpack.i.l.bf16 %v3822_v51  ;;  %v4054_v62 = vld [vmem:[%s4883_s0] sm:$0xff] }
 0x97e   :  { %v3953_v1 = vpop.eup %3952 }
 0x97f   :  { %v3955_v13 = vpop.eup %3954  ;;  %v1095_v57 = vmul.f32 %v3953_v1, %v3947_v5  ;;  %v3812_v34 = vpop.permute.xlu1 %3811 }
 0x980   :  { %v1089_v15 = vmul.f32 %v3955_v13, %v3945_v4  ;;  %v3814_v45 = vunpack.i.h.bf16 %v3812_v34  ;;  %v3813_v47 = vunpack.i.l.bf16 %v3812_v34 }
 0x981   :  { %v1097_v60 = vpack.c.bf16 %v1095_v57, %v1093_v14  ;;  %v4055_v14 = vld [vmem:[%s4883_s0 + $0x8] sm:$0xff] }
 0x982   :  { %v3957_v59 = vpop.eup %3956  ;;  %v1241_v42 = vsel %vm226_vm2, %v4289_v48, %v3814_v45  ;;  %v1240_v55 = vsel %vm226_vm2, %v4287_v46, %v3813_v47 }
 0x983   :  { %v1091_v16 = vmul.f32 %v3957_v59, %v3949_v7  ;;  %3627 = vmatmul.mubr.msk.bf16.vlgmr.msra.gmra.mrb[36].mxu1 %vm321_vm3, %v1097_v60  ;;  %v3817_v37 = vpop.permute.xlu1 %3816  ;;  %v1244_v4 = vsel %vm321_vm3, %v1240_v55, %v3823_v63  ;;  %v1245_v48 = vsel %vm321_vm3, %v1241_v42, %v3824_v61  ;;  %v4056_v59 = vld [vmem:[%s4883_s0 + $0x10] sm:$0xff] }
 0x984   :  { %v3819_v40 = vunpack.i.h.bf16 %v3817_v37  ;;  %v3818_v43 = vunpack.i.l.bf16 %v3817_v37 }
 0x985   :  { %v1096_v17 = vpack.c.bf16 %v1091_v16, %v1089_v15 }
 0x986   :  { %v1243_v52 = vsel %vm226_vm2, %v4285_v44, %v3819_v40  ;;  %v1242_v53 = vsel %vm226_vm2, %v4283_v41, %v3818_v43 }
 0x987   :  { %3621 = vmatmul.mubr.msk.bf16.vlgmr.msra.gmra.mrb[28].mxu0 %vm321_vm3, %v1096_v17  ;;  %v3827_v39 = vpop.permute.xlu1 %3826  ;;  %v4057_v17 = vld [vmem:[%s4883_s0 + $0x18] sm:$0xff] }
 0x988   :  { %3631 = vmatpush3.bf16.msra.mxu0 %v3874_v18  ;;  %v3829_v49 = vunpack.i.h.bf16 %v3827_v39  ;;  %v3828_v50 = vunpack.i.l.bf16 %v3827_v39 }
 0x989   :  { %3632 = vmatprep.subr.bf16.mxu0 %v3875_v19 }
 0x98a   :  { %v1246_v56 = vsel %vm321_vm3, %v1242_v53, %v3828_v50  ;;  %v1247_v58 = vsel %vm321_vm3, %v1243_v52, %v3829_v49  ;;  %v3877_v52 = vld [vmem:[%s4890_s10 + $0x8] sm:$0xff]   ;;  %v3878_v53 = vld [vmem:[%s4891_s12] sm:$0xff]  }
 0x98c   :  { %3633 = vmatpush3.bf16.msra.mxu0 %v3875_v19 }
 0x98d   :  { %3646 = vmatprep.subr.bf16.mxu0 %v3878_v53 }
 0xa56   :  { %v1185_v22 = vpop.f32.mrb[36].mxu1 }
 0xa57   :  { %v3628_v23 = vpop.f32.mrb[37].mxu1 }
 0xa58   :  { %v1188_v24 = vpop.f32.mrb[38].mxu1 }
 0xa59   :  { %v3835_v25 = vpack.i.bf16 %v1188_v24, %v1185_v22  ;;  %v3629_v26 = vpop.f32.mrb[39].mxu1 }
 0xa5a   :  { %v1138_v27 = vpop.f32.mrb[28].mxu0 }
 0xa5b   :  { %v3622_v28 = vpop.f32.mrb[29].mxu0  ;;  %3836 = vrot.lane.b32.xlu1 %v3835_v25, %s4900_s20 }
 0xa5c   :  { %v1141_v29 = vpop.f32.mrb[30].mxu0 }
 0xa5d   :  { %v3830_v30 = vpack.i.bf16 %v1141_v29, %v1138_v27  ;;  %v3623_v33 = vpop.f32.mrb[31].mxu0 }
 0xa5f   :  { %3831 = vrot.lane.b32.xlu0 %v3830_v30, %s4900_s20 }
 0xacd   :  { %v3837_v36 = vpop.permute.xlu1 %3836 }
 0xace   :  { %v3839_v35 = vunpack.i.h.bf16 %v3837_v36  ;;  %v3838_v54 = vunpack.i.l.bf16 %v3837_v36  ;;  %v3876_v36 = vld [vmem:[%s4890_s10] sm:$0xff]  }
 0xacf   :  { %3638 = vmatprep.subr.bf16.mxu1 %v3876_v36 }
 0xad0   :  { %v1251_v2 = vsel %vm1248_vm4, %v1246_v56, %v3838_v54  ;;  %v1252_v44 = vsel %vm1248_vm4, %v1247_v58, %v3839_v35  ;;  %3639 = vmatpush3.bf16.msra.mxu1 %v3876_v36  ;;  %v3879_v35 = vld [vmem:[%s4891_s12 + $0x8] sm:$0xff]  }
 0xad1   :  { %v3832_v38 = vpop.permute.xlu0 %3831  ;;  %v1254_v41 = vpack.c.bf16 %v1252_v44, %v1251_v2  ;;  %3640 = vmatprep.subr.bf16.mxu1 %v3877_v52 }
 0xad2   :  { %v3834_v3 = vunpack.i.h.bf16 %v3832_v38  ;;  %v3833_v20 = vunpack.i.l.bf16 %v3832_v38 }
 0xad4   :  { %v1250_v46 = vsel %vm1248_vm4, %v1245_v48, %v3834_v3  ;;  %v1249_v5 = vsel %vm1248_vm4, %v1244_v4, %v3833_v20  ;;  %3641 = vmatpush3.bf16.msra.mxu1 %v3877_v52  ;;  %v3314_v4 = vld [vmem:[%s4892_s8] ss:$0 sm:$0xff] }
 0xad5   :  { %v1253_v21 = vpack.c.bf16 %v1250_v46, %v1249_v5 }
 0xad7   :  { %3634 = vmatprep.mubr.msk.bf16.mxu0 %vm99_vm0, %v1253_v21 }
 0xad8   :  { %3635 = vmatmul.mubr.msk.bf16.vlgmr.msra.gmra.mrb[32].mxu0 %vm99_vm0, %v1254_v41 }
 0xad9   :  { %3647 = vmatpush3.bf16.msra.mxu0 %v3878_v53 }
 0xada   :  { %3648 = vmatprep.subr.bf16.mxu0 %v3879_v35 }
 0xadd   :  { %3649 = vmatpush3.bf16.msra.mxu0 %v3879_v35 }
 0xbab   :  { %v3636_v7 = vpop.f32.mrb[32].mxu0 }
 0xbac   :  { %v1313_v8 = vpop.f32.mrb[33].mxu0  ;;  %v1322_v31 = vadd.f32 %v3636_v7, %v3309_v6  ;;  %v3315_v7 = vld [vmem:[%s4893_s9] ss:$0 sm:$0xff] }
 0xbad   :  { %v1314_v9 = vadd.f32 %v3309_v6, %v1313_v8  ;;  %v3637_v32 = vpop.f32.mrb[34].mxu0 }
 0xbae   :  { %v1316_v11 = vpop.f32.mrb[35].mxu0  ;;  %v1325_v1 = vadd.f32 %v3637_v32, %v3309_v6  ;;  %v1330_v60 = vadd.f32 %v4056_v59, %v1322_v31  ;;  %v3880_v59 = vld [vmem:[%s4891_s12 + $0x10] sm:$0xff]  }
 0xbaf   :  { %v1317_v12 = vadd.f32 %v3309_v6, %v1316_v11  ;;  %v1328_v0 = vadd.f32 %v4054_v62, %v1314_v9  ;;  %3650 = vmatprep.subr.bf16.mxu0 %v3880_v59 }
 0xbb0   :  { %v1338_v16 = vsel %vm99_vm0, %v1330_v60, 0.0  ;;  %v1331_v18 = vadd.f32 %v4057_v17, %v1325_v1  ;;  %3651 = vmatpush3.bf16.msra.mxu0 %v3880_v59 }
 0xbb1   :  { %v1332_v13 = vsel %vm99_vm0, %v1328_v0, 0.0  ;;  %v1329_v57 = vadd.f32 %v4055_v14, %v1317_v12 }
 0xbb2   :  { %1333 = vadd.xlane.f32.xlu0 %v1332_v13  ;;  %v1341_v19 = vsel %vm99_vm0, %v1331_v18, 0.0 }
 0xbb3   :  { %v1335_v15 = vsel %vm99_vm0, %v1329_v57, 0.0 }
 0xbb4   :  { %1336 = vadd.xlane.f32.xlu1 %v1335_v15  ;;  %v3316_v15 = vld [vmem:[%s4894_s11] ss:$0 sm:$0xff] }
 0xbb6   :  { %1339 = vadd.xlane.f32.xlu0 %v1338_v16 }
 0xbba   :  { %1342 = vadd.xlane.f32.xlu0 %v1341_v19 }
 0xc3f   :  { %v1334_v22 = vpop.xlane.xlu0 %1333 }
 0xc40   :  { %v1345_v23 = vmul.f32 0.03125, %v1334_v22 }
 0xc41   :  { %v1337_v24 = vpop.xlane.xlu1 %1336 }
 0xc42   :  { %v1349_v25 = vsub.f32 %v1328_v0, %v1345_v23  ;;  %v1346_v26 = vmul.f32 0.03125, %v1337_v24 }
 0xc43   :  { %v1340_v27 = vpop.xlane.xlu0 %1339 }
 0xc44   :  { %v1350_v28 = vsub.f32 %v1329_v57, %v1346_v26  ;;  %v1347_v29 = vmul.f32 0.03125, %v1340_v27  ;;  %v1353_v30 = vmul.f32 %v1349_v25, %v1349_v25 }
 0xc46   :  { %v1351_v33 = vsub.f32 %v1330_v60, %v1347_v29  ;;  %v1357_v34 = vsel %vm99_vm0, %v1353_v30, 0.0  ;;  %v1354_v37 = vmul.f32 %v1350_v28, %v1350_v28  ;;  %v3881_v60 = vld [vmem:[%s4891_s12 + $0x18] sm:$0xff]  }
 0xc47   :  { %1358 = vadd.xlane.f32.xlu0 %v1357_v34  ;;  %v1343_v39 = vpop.xlane.xlu0 %1342  ;;  %3652 = vmatprep.subr.bf16.mxu0 %v3881_v60  ;;  %v3321_v34 = vld [vmem:[%s4895_s13] ss:$0 sm:$0xff] }
 0xc48   :  { %v1348_v40 = vmul.f32 0.03125, %v1343_v39  ;;  %v1360_v43 = vsel %vm99_vm0, %v1354_v37, 0.0  ;;  %v1355_v45 = vmul.f32 %v1351_v33, %v1351_v33  ;;  %3653 = vmatpush3.bf16.msra.mxu0 %v3881_v60 }
 0xc49   :  { %1361 = vadd.xlane.f32.xlu1 %v1360_v43  ;;  %3674 = vmatprep.subr.bf16.mxu0 %v4062_v10 }
 0xc4a   :  { %v1352_v47 = vsub.f32 %v1331_v18, %v1348_v40  ;;  %v1363_v49 = vsel %vm99_vm0, %v1355_v45, 0.0 }
 0xc4b   :  { %1364 = vadd.xlane.f32.xlu0 %v1363_v49 }
 0xc4c   :  { %v1356_v50 = vmul.f32 %v1352_v47, %v1352_v47 }
 0xc4e   :  { %v1366_v51 = vsel %vm99_vm0, %v1356_v50, 0.0 }
 0xc4f   :  { %1367 = vadd.xlane.f32.xlu1 %v1366_v51 }
 0xcd4   :  { %v1359_v54 = vpop.xlane.xlu0 %1358 }
 0xcd5   :  { %v1370_v42 = vmul.f32 0.032258064, %v1359_v54 }
 0xcd6   :  { %v1362_v55 = vpop.xlane.xlu1 %1361 }
 0xcd7   :  { %v1374_v56 = vadd.f32 1e-10, %v1370_v42  ;;  %v1371_v58 = vmul.f32 0.032258064, %v1362_v55 }
 0xcd8   :  { %v1365_v61 = vpop.xlane.xlu0 %1364 }
 0xcd9   :  { %3958 = vrsqrt.f32 %v1374_v56  ;;  %v1375_v63 = vadd.f32 1e-10, %v1371_v58  ;;  %v1372_v2 = vmul.f32 0.032258064, %v1365_v61 }
 0xcdb   :  { %3960 = vrsqrt.f32 %v1375_v63  ;;  %v1376_v44 = vadd.f32 1e-10, %v1372_v2 }
 0xcdc   :  { %v1368_v38 = vpop.xlane.xlu1 %1367 }
 0xcdd   :  { %3962 = vrsqrt.f32 %v1376_v44  ;;  %v1373_v41 = vmul.f32 0.032258064, %v1368_v38 }
 0xcdf   :  { %v1377_v3 = vadd.f32 1e-10, %v1373_v41 }
 0xce1   :  { %3964 = vrsqrt.f32 %v1377_v3 }
 0xce3   :  { %v3959_v20 = vpop.eup %3958 }
 0xce4   :  { %v1382_v48 = vmul.f32 %v3959_v20, %v1349_v25 }
 0xce5   :  { %v3961_v46 = vpop.eup %3960 }
 0xce6   :  { %v1383_v5 = vmul.f32 %v3961_v46, %v1350_v28  ;;  %v1392_v21 = vmul.f32 %v3314_v4, %v1382_v48 }
 0xce7   :  { %v3963_v6 = vpop.eup %3962 }
 0xce8   :  { %v1384_v8 = vmul.f32 %v3963_v6, %v1351_v33  ;;  %v1393_v31 = vmul.f32 %v3314_v4, %v1383_v5  ;;  %v1402_v9 = vadd.f32 %v3315_v7, %v1392_v21 }
 0xcea   :  { %v1403_v32 = vadd.f32 %v3315_v7, %v1393_v31  ;;  %v1394_v12 = vmul.f32 %v3314_v4, %v1384_v8 }
 0xceb   :  { %v3965_v11 = vpop.eup %3964 }
 0xcec   :  { %v1385_v62 = vmul.f32 %v3965_v11, %v1352_v47  ;;  %v1422_v0 = vpack.c.bf16 %v1403_v32, %v1402_v9  ;;  %v1404_v13 = vadd.f32 %v3315_v7, %v1394_v12  ;;  %v3883_v11 = vld [vmem:[%s4907_s23 + $0x18] sm:$0xff]   ;;  %v3884_v12 = vld [vmem:[%s4884_s4 + $0x10] sm:$0xff]  }
 0xcee   :  { %v1395_v1 = vmul.f32 %v3314_v4, %v1385_v62  ;;  %3642 = vmatprep.mubr.msk.bf16.mxu1 %vm99_vm0, %v1422_v0 }
 0xcf0   :  { %v1405_v14 = vadd.f32 %v3315_v7, %v1395_v1 }
 0xcf2   :  { %v1423_v57 = vpack.c.bf16 %v1405_v14, %v1404_v13 }
 0xcf4   :  { %3643 = vmatmul.mubr.msk.bf16.vlgmr.msra.gmra.mrb[40].mxu1 %vm99_vm0, %v1423_v57 }
 0xdc7   :  { %v3644_v16 = vpop.f32.mrb[40].mxu1 }
 0xdc8   :  { %v1491_v17 = vadd.f32 %v3644_v16, %v3316_v15  ;;  %v1482_v18 = vpop.f32.mrb[41].mxu1 }
 0xdc9   :  { %v1483_v19 = vadd.f32 %v3316_v15, %v1482_v18  ;;  %v3645_v22 = vpop.f32.mrb[42].mxu1 }
 0xdca   :  { %v1494_v23 = vadd.f32 %v3645_v22, %v3316_v15  ;;  %v1485_v24 = vpop.f32.mrb[43].mxu1  ;;  %v1499_v26 = vmax.f32 %v1491_v17, 0.0  ;;  %v3328_v22 = vld [vmem:[%s4896_s14] ss:$0 sm:$0xff] }
 0xdcb   :  { %v1486_v25 = vadd.f32 %v3316_v15, %v1485_v24  ;;  %v1497_v28 = vmax.f32 %v1483_v19, 0.0 }
 0xdcc   :  { %v1500_v27 = vmax.f32 %v1494_v23, 0.0 }
 0xdcd   :  { %v1498_v29 = vmax.f32 %v1486_v25, 0.0 }
 0xdce   :  { %v1502_v30 = vpack.c.bf16 %v1500_v27, %v1499_v26 }
 0xdcf   :  { %v1501_v33 = vpack.c.bf16 %v1498_v29, %v1497_v28  ;;  %v3329_v28 = vld [vmem:[%s4897_s15] ss:$0 sm:$0xff] }
 0xdd1   :  { %3654 = vmatprep.mubr.msk.bf16.mxu0 %vm1533_vm5, %v1501_v33 }
 0xdd2   :  { %3655 = vmatmul.mubr.msk.bf16.vlgmr.msra.gmra.mrb[36].mxu0 %vm1533_vm5, %v1502_v30 }
 0xdd3   :  { %3676 = vmatprep.mubr.msk.bf16.mxu0 %vm4063_vm1, %v4062_v10 }
 0xea5   :  { %v3656_v37 = vpop.f32.mrb[36].mxu0 }
 0xea6   :  { %v1574_v39 = vpop.f32.mrb[37].mxu0  ;;  %v1583_v40 = vadd.f32 %v3656_v37, %v3321_v34 }
 0xea7   :  { %v1575_v43 = vadd.f32 %v3321_v34, %v1574_v39  ;;  %v3657_v45 = vpop.f32.mrb[38].mxu0 }
 0xea8   :  { %v1577_v47 = vpop.f32.mrb[39].mxu0  ;;  %v1586_v49 = vadd.f32 %v3657_v45, %v3321_v34  ;;  %v1591_v53 = vadd.f32 %v1583_v40, %v1404_v13 }
 0xea9   :  { %v1578_v50 = vadd.f32 %v3321_v34, %v1577_v47  ;;  %v1589_v51 = vadd.f32 %v1575_v43, %v1402_v9 }
 0xeaa   :  { %v1592_v54 = vadd.f32 %v1586_v49, %v1405_v14  ;;  %v1599_v42 = vsel %vm99_vm0, %v1591_v53, 0.0 }
 0xeab   :  { %v1593_v36 = vsel %vm99_vm0, %v1589_v51, 0.0  ;;  %v1590_v52 = vadd.f32 %v1578_v50, %v1403_v32  ;;  %v3882_v32 = vld [vmem:[%s4907_s23 + $0x10] sm:$0xff]  }
 0xeac   :  { %1594 = vadd.xlane.f32.xlu0 %v1593_v36  ;;  %v1602_v55 = vsel %vm99_vm0, %v1592_v54, 0.0  ;;  %3658 = vmatprep.subr.bf16.mxu1 %v3882_v32 }
 0xead   :  { %v1596_v35 = vsel %vm99_vm0, %v1590_v52, 0.0  ;;  %3659 = vmatpush3.bf16.msra.mxu1 %v3882_v32  ;;  %v4583_v32 = vld [vmem:[%s4887_s1] sm:$0xff] }
 0xeae   :  { %1597 = vadd.xlane.f32.xlu1 %v1596_v35  ;;  %3660 = vmatprep.subr.bf16.mxu1 %v3883_v11 }
 0xeb0   :  { %1600 = vadd.xlane.f32.xlu0 %v1599_v42 }
 0xeb1   :  { %3661 = vmatpush3.bf16.msra.mxu1 %v3883_v11 }
 0xeb2   :  { %1603 = vadd.xlane.f32.xlu1 %v1602_v55  ;;  %3666 = vmatprep.subr.bf16.mxu1 %v3884_v12 }
 0xf39   :  { %v1595_v56 = vpop.xlane.xlu0 %1594 }
 0xf3a   :  { %v1605_v58 = vmul.f32 0.03125, %v1595_v56 }
 0xf3b   :  { %v1598_v61 = vpop.xlane.xlu1 %1597 }
 0xf3c   :  { %v1609_v63 = vsub.f32 %v1589_v51, %v1605_v58  ;;  %v1606_v2 = vmul.f32 0.03125, %v1598_v61  ;;  %v3885_v51 = vld [vmem:[%s4884_s4 + $0x18] sm:$0xff]  }
 0xf3d   :  { %v1601_v44 = vpop.xlane.xlu0 %1600 }
 0xf3e   :  { %v1610_v38 = vsub.f32 %v1590_v52, %v1606_v2  ;;  %v1607_v41 = vmul.f32 0.03125, %v1601_v44  ;;  %v1613_v3 = vmul.f32 %v1609_v63, %v1609_v63  ;;  %v3347_v52 = vld [vmem:[%s4885_s3 + $0x1] ss:$0 sm:$0xff] }
 0xf3f   :  { %v1604_v20 = vpop.xlane.xlu1 %1603  ;;  %v3352_v44 = vld [vmem:[%s4886_s5 + $0x1] ss:$0 sm:$0xff] }
 0xf40   :  { %v1611_v4 = vsub.f32 %v1591_v53, %v1607_v41  ;;  %v1608_v48 = vmul.f32 0.03125, %v1604_v20  ;;  %v1617_v46 = vsel %vm99_vm0, %v1613_v3, 0.0  ;;  %v1614_v5 = vmul.f32 %v1610_v38, %v1610_v38 }
 0xf41   :  { %1618 = vadd.xlane.f32.xlu0 %v1617_v46 }
 0xf42   :  { %v1612_v21 = vsub.f32 %v1592_v54, %v1608_v48  ;;  %v1620_v6 = vsel %vm99_vm0, %v1614_v5, 0.0  ;;  %v1615_v7 = vmul.f32 %v1611_v4, %v1611_v4 }
 0xf43   :  { %1621 = vadd.xlane.f32.xlu1 %v1620_v6 }
 0xf44   :  { %v1623_v8 = vsel %vm99_vm0, %v1615_v7, 0.0  ;;  %v1616_v31 = vmul.f32 %v1612_v21, %v1612_v21 }
 0xf45   :  { %1624 = vadd.xlane.f32.xlu0 %v1623_v8 }
 0xf46   :  { %v1626_v9 = vsel %vm99_vm0, %v1616_v31, 0.0 }
 0xf47   :  { %1627 = vadd.xlane.f32.xlu1 %v1626_v9 }
 0xfce   :  { %v1619_v62 = vpop.xlane.xlu0 %1618 }
 0xfcf   :  { %v1629_v0 = vmul.f32 0.032258064, %v1619_v62 }
 0xfd0   :  { %v1622_v1 = vpop.xlane.xlu1 %1621 }
 0xfd1   :  { %v1633_v13 = vadd.f32 1e-10, %v1629_v0  ;;  %v1630_v14 = vmul.f32 0.032258064, %v1622_v1 }
 0xfd2   :  { %v1625_v57 = vpop.xlane.xlu0 %1624 }
 0xfd3   :  { %3966 = vrsqrt.f32 %v1633_v13  ;;  %v1634_v59 = vadd.f32 1e-10, %v1630_v14  ;;  %v1631_v60 = vmul.f32 0.032258064, %v1625_v57  ;;  %v4589_v13 = vld [vmem:[%s4887_s1 + $0x10] sm:$0xff]  ;;  %v4595_v57 = vld [vmem:[%s4887_s1 + $0x8] sm:$0xff] }
 0xfd4   :  { %v1628_v15 = vpop.xlane.xlu1 %1627 }
 0xfd5   :  { %3968 = vrsqrt.f32 %v1634_v59  ;;  %v1635_v16 = vadd.f32 1e-10, %v1631_v60  ;;  %v1632_v17 = vmul.f32 0.032258064, %v1628_v15 }
 0xfd7   :  { %3970 = vrsqrt.f32 %v1635_v16  ;;  %v1636_v18 = vadd.f32 1e-10, %v1632_v17  ;;  %v4602_v16 = vld [vmem:[%s4887_s1 + $0x18] sm:$0xff]  ;;  %s4908_s1 = smov 8  }
 0xfd9   :  { %3972 = vrsqrt.f32 %v1636_v18 }
 0xfdd   :  { %v3967_v19 = vpop.eup %3966 }
 0xfde   :  { %v1641_v23 = vmul.f32 %v3967_v19, %v1609_v63 }
 0xfdf   :  { %v3969_v24 = vpop.eup %3968 }
 0xfe0   :  { %v1642_v25 = vmul.f32 %v3969_v24, %v1610_v38  ;;  %v1651_v26 = vmul.f32 %v3328_v22, %v1641_v23 }
 0xfe1   :  { %v3971_v27 = vpop.eup %3970 }
 0xfe2   :  { %v1643_v29 = vmul.f32 %v3971_v27, %v1611_v4  ;;  %v1652_v30 = vmul.f32 %v3328_v22, %v1642_v25  ;;  %v4530_v39 = vadd.f32 %v3329_v28, %v1651_v26 }
 0xfe3   :  { %v3973_v33 = vpop.eup %3972 }
 0xfe4   :  { %v1653_v34 = vmul.f32 %v3328_v22, %v1643_v29  ;;  %v1644_v37 = vmul.f32 %v3973_v33, %v1612_v21  ;;  %v4532_v40 = vadd.f32 %v3329_v28, %v1652_v30 }
 0xfe6   :  { %v1654_v43 = vmul.f32 %v3328_v22, %v1644_v37  ;;  %v1690_v45 = vpack.c.bf16 %v4532_v40, %v4530_v39  ;;  %v4537_v47 = vadd.f32 %v3329_v28, %v1653_v34 }
 0xfe8   :  { %3662 = vmatprep.mubr.msk.bf16.mxu1 %vm99_vm0, %v1690_v45  ;;  %v4539_v49 = vadd.f32 %v3329_v28, %v1654_v43 }
 0xfea   :  { %v1691_v50 = vpack.c.bf16 %v4539_v49, %v4537_v47 }
 0xfec   :  { %3663 = vmatmul.mubr.msk.bf16.vlgmr.msra.gmra.mrb[44].mxu1 %vm99_vm0, %v1691_v50 }
 0xfed   :  { %3667 = vmatpush3.bf16.msra.mxu1 %v3884_v12  ;;  %3670 = vmatprep.mubr.msk.bf16.mxu1 %vm99_vm0, %v1690_v45 }
 0xfee   :  { %3668 = vmatprep.subr.bf16.mxu1 %v3885_v51 }
 0xff1   :  { %3669 = vmatpush3.bf16.msra.mxu1 %v3885_v51 }
 0xff2   :  { %3680 = vmatprep.subr.bf16.mxu1 %v4062_v10 }
 0xff4   :  { %3671 = vmatmul.mubr.msk.bf16.vlgmr.msra.gmra.mrb[48].mxu1 %vm99_vm0, %v1691_v50 }
 0xff5   :  { %3682 = vmatprep.mubr.msk.bf16.mxu1 %vm4063_vm1, %v4062_v10 }
0x10bf   :  { %v3664_v36 = vpop.f32.mrb[44].mxu1 }
0x10c0   :  { %v1750_v53 = vpop.f32.mrb[45].mxu1  ;;  %v1759_v54 = vadd.f32 %v3664_v36, %v3347_v52 }
0x10c1   :  { %v3665_v35 = vpop.f32.mrb[46].mxu1  ;;  %v1751_v56 = vadd.f32 %v3347_v52, %v1750_v53 }
0x10c2   :  { %v1762_v42 = vadd.f32 %v3665_v35, %v3347_v52  ;;  %v1753_v55 = vpop.f32.mrb[47].mxu1 }
0x10c3   :  { %v1754_v58 = vadd.f32 %v3347_v52, %v1753_v55 }
0x10c4   :  { %v4555_v61 = vpack.c.bf16 %v1762_v42, %v1759_v54 }
0x10c5   :  { %v4557_v63 = vpack.c.bf16 %v1754_v58, %v1751_v56 }
0x10c7   :  { %v3672_v2 = vpop.f32.mrb[48].mxu1 }
0x10c8   :  { %v1817_v38 = vpop.f32.mrb[49].mxu1  ;;  %v1826_v3 = vadd.f32 %v3672_v2, %v3352_v44 }
0x10c9   :  { %v3673_v41 = vpop.f32.mrb[50].mxu1  ;;  %v1818_v48 = vadd.f32 %v3352_v44, %v1817_v38 }
0x10ca   :  { %v1829_v20 = vadd.f32 %v3673_v41, %v3352_v44  ;;  %v1820_v4 = vpop.f32.mrb[51].mxu1 }
0x10cb   :  { %v1821_v46 = vadd.f32 %v3352_v44, %v1820_v4 }
0x10cc   :  { %v4562_v5 = vpack.c.bf16 %v1829_v20, %v1826_v3 }
0x10cd   :  { %v4564_v21 = vpack.c.bf16 %v1821_v46, %v1818_v48 }
0x10ce   :  { %v1887_v6 = vsel %vm226_vm2, %v4562_v5, 0 }
0x10cf   :  { %3681 = vmatpush3.bf16.xpose.msra.mxu1 %v1887_v6  ;;  %v1840_v7 = vsel %vm226_vm2, %v4564_v21, 0 }
0x10d0   :  { %3675 = vmatpush3.bf16.xpose.msra.mxu0 %v1840_v7  ;;  %3692 = vmatprep.subr.bf16.mxu1 %v4062_v10 }
0x10d1   :  { %3686 = vmatprep.subr.bf16.mxu0 %v4062_v10 }
0x10d6   :  { %3683 = vmatmul.mubr.msk.bf16.vlgmr.msra.gmra.mrb[52].mxu1 %vm226_vm2, %v4555_v61 }
0x10d7   :  { %3677 = vmatmul.mubr.msk.bf16.vlgmr.msra.gmra.mrb[40].mxu0 %vm226_vm2, %v4557_v63  ;;  %3694 = vmatprep.mubr.msk.bf16.mxu1 %vm4063_vm1, %v4062_v10 }
0x10d8   :  { %3688 = vmatprep.mubr.msk.bf16.mxu0 %vm4063_vm1, %v4062_v10 }
0x11a9   :  { %v1923_v8 = vpop.f32.mrb[52].mxu1 }
0x11aa   :  { %v1876_v31 = vpop.f32.mrb[40].mxu0  ;;  %v3684_v9 = vpop.f32.mrb[53].mxu1  ;;  %v1924_v14 = vadd.f32 %v4589_v13, %v1923_v8 }
0x11ab   :  { %v1877_v11 = vadd.f32 %v4583_v32, %v1876_v31  ;;  %v3678_v12 = vpop.f32.mrb[41].mxu0  ;;  %v1926_v62 = vpop.f32.mrb[54].mxu1 }
0x11ac   :  { %v1879_v0 = vpop.f32.mrb[42].mxu0  ;;  %v3685_v1 = vpop.f32.mrb[55].mxu1  ;;  %v1927_v17 = vadd.f32 %v4602_v16, %v1926_v62  ;;  %v1936_v19 = vsel %vm321_vm3, %v1924_v14, -inf }
0x11ad   :  { %v1880_v59 = vadd.f32 %v4595_v57, %v1879_v0  ;;  %v3679_v60 = vpop.f32.mrb[43].mxu0  ;;  %v1930_v15 = vsel %vm321_vm3, %v1877_v11, -inf }
0x11ae   :  { %1931 = vmax.xlane.f32.xlu0 %v1930_v15  ;;  %v1939_v22 = vsel %vm321_vm3, %v1927_v17, -inf }
0x11af   :  { %v1933_v18 = vsel %vm321_vm3, %v1880_v59, -inf }
0x11b0   :  { %1934 = vmax.xlane.f32.xlu1 %v1933_v18 }
0x11b2   :  { %1937 = vmax.xlane.f32.xlu0 %v1936_v19 }
0x11b4   :  { %1940 = vmax.xlane.f32.xlu1 %v1939_v22 }
0x11c5   :  { %2025 = vrot.lane.b32.xlu1 %v4562_v5, %s4064_s21 }
0x11c9   :  { %2075 = vrot.lane.b32.xlu1 %v4564_v21, %s4065_s22 }
0x123b   :  { %v1932_v23 = vpop.xlane.xlu0 %1931 }
0x123c   :  { %v1942_v24 = vsub.f32 %v1877_v11, %v1932_v23 }
0x123d   :  { %v1935_v25 = vpop.xlane.xlu1 %1934 }
0x123e   :  { %v1943_v27 = vsub.f32 %v1880_v59, %v1935_v25  ;;  %v1946_v29 = vmul.f32 1.442695, %v1942_v24 }
0x123f   :  { %v1938_v26 = vpop.xlane.xlu0 %1937 }
0x1240   :  { %v1944_v28 = vsub.f32 %v1924_v14, %v1938_v26  ;;  %v1948_v37 = vmul.f32 1.442695, %v1943_v27 }
0x1241   :  { %v1941_v30 = vpop.xlane.xlu1 %1940 }
0x1242   :  { %v1950_v33 = vmul.f32 1.442695, %v1944_v28  ;;  %v1945_v34 = vsub.f32 %v1927_v17, %v1941_v30 }
0x1244   :  { %3974 = vpow2.f32 %v1950_v33  ;;  %v1952_v43 = vmul.f32 1.442695, %v1945_v34 }
0x1245   :  { %3976 = vpow2.f32 %v1946_v29  ;;  %v2026_v45 = vpop.permute.xlu1 %2025 }
0x1246   :  { %3978 = vpow2.f32 %v1952_v43  ;;  %3693 = vmatpush3.bf16.msra.mxu1 %v2026_v45 }
0x1247   :  { %3704 = vmatprep.subr.bf16.mxu1 %v4062_v10  ;;  %3980 = vpow2.f32 %v1948_v37 }
0x1249   :  { %v2076_v55 = vpop.permute.xlu1 %2075 }
0x124a   :  { %v2081_v12 = vsel %vm226_vm2, %v2076_v55, 0 }
0x124e   :  { %v3975_v50 = vpop.eup %3974 }
0x124f   :  { %v3977_v51 = vpop.eup %3976  ;;  %v1960_v36 = vsel %vm321_vm3, %v3975_v50, 0.0 }
0x1250   :  { %v3979_v52 = vpop.eup %3978  ;;  %1961 = vadd.xlane.f32.xlu0 %v1960_v36  ;;  %v1954_v54 = vsel %vm321_vm3, %v3977_v51, 0.0 }
0x1251   :  { %v1963_v53 = vsel %vm321_vm3, %v3979_v52, 0.0  ;;  %v3981_v35 = vpop.eup %3980 }
0x1252   :  { %1964 = vadd.xlane.f32.xlu1 %v1963_v53  ;;  %v1957_v42 = vsel %vm321_vm3, %v3981_v35, 0.0 }
0x1254   :  { %1955 = vadd.xlane.f32.xlu0 %v1954_v54 }
0x1256   :  { %1958 = vadd.xlane.f32.xlu1 %v1957_v42 }
0x1267   :  { %2127 = vrot.lane.b32.xlu1 %v4562_v5, %s4065_s22 }
0x126a   :  { %1977 = vrot.lane.b32.xlu0 %v4564_v21, %s4064_s21  ;;  %s4909_s21 = smov 16  }
0x126b   :  { %2125 = vrot.lane.b32.xlu1 %v4555_v61, %s4065_s22 }
0x126e   :  { %2073 = vrot.lane.b32.xlu0 %v4557_v63, %s4065_s22 }
0x12dd   :  { %v1962_v56 = vpop.xlane.xlu0 %1961 }
0x12de   :  { %3982 = vrcp.f32 %v1962_v56 }
0x12df   :  { %v1965_v58 = vpop.xlane.xlu1 %1964 }
0x12e0   :  { %3984 = vrcp.f32 %v1965_v58 }
0x12e1   :  { %v1956_v2 = vpop.xlane.xlu0 %1955 }
0x12e2   :  { %3986 = vrcp.f32 %v1956_v2 }
0x12e3   :  { %v1959_v44 = vpop.xlane.xlu1 %1958 }
0x12e4   :  { %3988 = vrcp.f32 %v1959_v44 }
0x12e5   :  { %v1978_v38 = vpop.permute.xlu0 %1977 }
0x12e6   :  { %3687 = vmatpush3.bf16.msra.mxu0 %v1978_v38 }
0x12e7   :  { %3698 = vmatprep.subr.bf16.mxu0 %v4062_v10  ;;  %v2128_v46 = vpop.permute.xlu1 %2127 }
0x12e8   :  { %v3983_v41 = vpop.eup %3982  ;;  %v2133_v9 = vsel %vm226_vm2, %v2128_v46, 0 }
0x12e9   :  { %v1971_v20 = vmul.f32 %v3983_v41, %v3975_v50  ;;  %v2074_v0 = vpop.permute.xlu0 %2073 }
0x12ea   :  { %v3985_v3 = vpop.eup %3984 }
0x12eb   :  { %v1973_v4 = vmul.f32 %v3985_v3, %v3979_v52  ;;  %v2126_v62 = vpop.permute.xlu1 %2125 }
0x12ec   :  { %v3987_v48 = vpop.eup %3986 }
0x12ed   :  { %v1975_v6 = vpack.c.bf16 %v1973_v4, %v1971_v20  ;;  %v1967_v8 = vmul.f32 %v3987_v48, %v3977_v51 }
0x12ee   :  { %v3989_v7 = vpop.eup %3988 }
0x12ef   :  { %v1969_v31 = vmul.f32 %v3989_v7, %v3981_v35  ;;  %3695 = vmatmul.mubr.msk.bf16.vlgmr.msra.gmra.mrb[56].mxu1 %vm321_vm3, %v1975_v6 }
0x12f0   :  { %3705 = vmatpush3.bf16.xpose.msra.mxu1 %v2133_v9  ;;  %3706 = vmatprep.mubr.msk.bf16.mxu1 %vm4063_vm1, %v4062_v10 }
0x12f1   :  { %v1974_v11 = vpack.c.bf16 %v1969_v31, %v1967_v8  ;;  %3716 = vmatprep.subr.bf16.mxu1 %v4062_v10 }
0x12f3   :  { %3689 = vmatmul.mubr.msk.bf16.vlgmr.msra.gmra.mrb[44].mxu0 %vm321_vm3, %v1974_v11 }
0x12f4   :  { %3699 = vmatpush3.bf16.xpose.msra.mxu0 %v2081_v12  ;;  %3700 = vmatprep.mubr.msk.bf16.mxu0 %vm4063_vm1, %v4062_v10 }
0x12f5   :  { %3710 = vmatprep.subr.bf16.mxu0 %v4062_v10 }
0x12f7   :  { %3707 = vmatmul.mubr.msk.bf16.vlgmr.msra.gmra.mrb[60].mxu1 %vm226_vm2, %v2126_v62 }
0x12f8   :  { %3718 = vmatprep.mubr.msk.bf16.mxu1 %vm4063_vm1, %v4062_v10 }
0x12fb   :  { %3701 = vmatmul.mubr.msk.bf16.vlgmr.msra.gmra.mrb[48].mxu0 %vm226_vm2, %v2074_v0 }
0x12fc   :  { %3712 = vmatprep.mubr.msk.bf16.mxu0 %vm4063_vm1, %v4062_v10 }
0x13c2   :  { %v4642_v1 = vpop.f32.mrb[56].mxu1 }
0x13c3   :  { %v3696_v14 = vpop.f32.mrb[57].mxu1 }
0x13c4   :  { %v4644_v59 = vpop.f32.mrb[58].mxu1 }
0x13c5   :  { %v3697_v60 = vpop.f32.mrb[59].mxu1 }
0x13c6   :  { %v4646_v15 = vpop.f32.mrb[44].mxu0 }
0x13c7   :  { %v3690_v17 = vpop.f32.mrb[45].mxu0 }
0x13c8   :  { %v4648_v18 = vpop.f32.mrb[46].mxu0 }
0x13c9   :  { %v3691_v19 = vpop.f32.mrb[47].mxu0 }
0x13ca   :  { %v2169_v22 = vpop.f32.mrb[60].mxu1 }
0x13cb   :  { %v3708_v23 = vpop.f32.mrb[61].mxu1  ;;  %v2170_v30 = vadd.f32 %v4589_v13, %v2169_v22 }
0x13cc   :  { %v2172_v24 = vpop.f32.mrb[62].mxu1 }
0x13cd   :  { %v3709_v25 = vpop.f32.mrb[63].mxu1  ;;  %v2173_v45 = vadd.f32 %v4602_v16, %v2172_v24  ;;  %v2182_v50 = vsel %vm321_vm3, %v2170_v30, -inf }
0x13ce   :  { %v2117_v26 = vpop.f32.mrb[48].mxu0 }
0x13cf   :  { %v2118_v27 = vadd.f32 %v4583_v32, %v2117_v26  ;;  %v3702_v28 = vpop.f32.mrb[49].mxu0  ;;  %v2185_v51 = vsel %vm321_vm3, %v2173_v45, -inf }
0x13d0   :  { %v2120_v29 = vpop.f32.mrb[50].mxu0 }
0x13d1   :  { %v2121_v33 = vadd.f32 %v4595_v57, %v2120_v29  ;;  %v3703_v34 = vpop.f32.mrb[51].mxu0  ;;  %v2176_v37 = vsel %vm321_vm3, %v2118_v27, -inf }
0x13d2   :  { %2177 = vmax.xlane.f32.xlu0 %v2176_v37 }
0x13d3   :  { %v2179_v43 = vsel %vm321_vm3, %v2121_v33, -inf }
0x13d4   :  { %2180 = vmax.xlane.f32.xlu1 %v2179_v43 }
0x13d6   :  { %2183 = vmax.xlane.f32.xlu0 %v2182_v50 }
0x13da   :  { %2186 = vmax.xlane.f32.xlu0 %v2185_v51 }
0x13e5   :  { %2269 = vrot.lane.b32.xlu1 %v4562_v5, %s4066_s24 }
0x13e9   :  { %2318 = vrot.lane.b32.xlu1 %v4564_v21, %s4067_s25 }
0x145f   :  { %v2178_v36 = vpop.xlane.xlu0 %2177 }
0x1460   :  { %v2188_v53 = vsub.f32 %v2118_v27, %v2178_v36 }
0x1461   :  { %v2181_v52 = vpop.xlane.xlu1 %2180 }
0x1462   :  { %v2192_v55 = vmul.f32 1.442695, %v2188_v53  ;;  %v2189_v56 = vsub.f32 %v2121_v33, %v2181_v52 }
0x1463   :  { %v2184_v35 = vpop.xlane.xlu0 %2183 }
0x1464   :  { %v2190_v54 = vsub.f32 %v2170_v30, %v2184_v35  ;;  %v2194_v38 = vmul.f32 1.442695, %v2189_v56 }
0x1465   :  { %v2270_v42 = vpop.permute.xlu1 %2269 }
0x1466   :  { %v2196_v58 = vmul.f32 1.442695, %v2190_v54  ;;  %3717 = vmatpush3.bf16.msra.mxu1 %v2270_v42 }
0x1467   :  { %v2187_v2 = vpop.xlane.xlu0 %2186  ;;  %3728 = vmatprep.subr.bf16.mxu1 %v4062_v10 }
0x1468   :  { %3990 = vpow2.f32 %v2196_v58  ;;  %v2191_v44 = vsub.f32 %v2173_v45, %v2187_v2 }
0x1469   :  { %3992 = vpow2.f32 %v2192_v55  ;;  %v2319_v31 = vpop.permute.xlu1 %2318 }
0x146a   :  { %v2198_v41 = vmul.f32 1.442695, %v2191_v44  ;;  %v2324_v30 = vsel %vm226_vm2, %v2319_v31, 0 }
0x146c   :  { %3994 = vpow2.f32 %v2198_v41 }
0x146d   :  { %3996 = vpow2.f32 %v2194_v38 }
0x1472   :  { %v3991_v3 = vpop.eup %3990 }
0x1473   :  { %v2206_v20 = vsel %vm321_vm3, %v3991_v3, 0.0  ;;  %v3993_v4 = vpop.eup %3992 }
0x1474   :  { %2207 = vadd.xlane.f32.xlu0 %v2206_v20  ;;  %v2200_v46 = vsel %vm321_vm3, %v3993_v4, 0.0 }
0x1476   :  { %v3995_v48 = vpop.eup %3994 }
0x1477   :  { %v2209_v6 = vsel %vm321_vm3, %v3995_v48, 0.0  ;;  %v3997_v7 = vpop.eup %3996 }
0x1478   :  { %2201 = vadd.xlane.f32.xlu0 %v2200_v46  ;;  %2210 = vadd.xlane.f32.xlu1 %v2209_v6  ;;  %v2203_v8 = vsel %vm321_vm3, %v3997_v7, 0.0 }
0x147c   :  { %2204 = vadd.xlane.f32.xlu1 %v2203_v8 }
0x148d   :  { %2369 = vrot.lane.b32.xlu1 %v4562_v5, %s4067_s25 }
0x148e   :  { %2222 = vrot.lane.b32.xlu0 %v4564_v21, %s4066_s24 }
0x1491   :  { %2367 = vrot.lane.b32.xlu1 %v4555_v61, %s4067_s25 }
0x1492   :  { %2316 = vrot.lane.b32.xlu0 %v4557_v63, %s4067_s25 }
0x1501   :  { %v2208_v9 = vpop.xlane.xlu0 %2207 }
0x1502   :  { %3998 = vrcp.f32 %v2208_v9 }
0x1505   :  { %v2202_v11 = vpop.xlane.xlu0 %2201  ;;  %v2211_v12 = vpop.xlane.xlu1 %2210 }
0x1506   :  { %4000 = vrcp.f32 %v2211_v12 }
0x1507   :  { %4002 = vrcp.f32 %v2202_v11 }
0x1509   :  { %v2223_v62 = vpop.permute.xlu0 %2222  ;;  %v2205_v0 = vpop.xlane.xlu1 %2204 }
0x150a   :  { %4004 = vrcp.f32 %v2205_v0  ;;  %3711 = vmatpush3.bf16.msra.mxu0 %v2223_v62 }
0x150b   :  { %3722 = vmatprep.subr.bf16.mxu0 %v4062_v10 }
0x150c   :  { %v3999_v14 = vpop.eup %3998 }
0x150d   :  { %v2217_v19 = vmul.f32 %v3999_v14, %v3991_v3  ;;  %v2370_v23 = vpop.permute.xlu1 %2369  ;;  %v2317_v34 = vpop.permute.xlu0 %2316 }
0x150e   :  { %v2375_v28 = vsel %vm226_vm2, %v2370_v23, 0 }
0x1510   :  { %v4001_v60 = vpop.eup %4000 }
0x1511   :  { %v4003_v17 = vpop.eup %4002  ;;  %v2219_v22 = vmul.f32 %v4001_v60, %v3995_v48  ;;  %v2368_v33 = vpop.permute.xlu1 %2367 }
0x1512   :  { %v2213_v26 = vmul.f32 %v4003_v17, %v3993_v4 }
0x1513   :  { %v2221_v25 = vpack.c.bf16 %v2219_v22, %v2217_v19 }
0x1514   :  { %v4005_v24 = vpop.eup %4004 }
0x1515   :  { %v2215_v27 = vmul.f32 %v4005_v24, %v3997_v7  ;;  %3719 = vmatmul.mubr.msk.bf16.vlgmr.msra.gmra.mrb[64].mxu1 %vm321_vm3, %v2221_v25 }
0x1516   :  { %3729 = vmatpush3.bf16.xpose.msra.mxu1 %v2375_v28  ;;  %3730 = vmatprep.mubr.msk.bf16.mxu1 %vm4063_vm1, %v4062_v10 }
0x1517   :  { %v2220_v29 = vpack.c.bf16 %v2215_v27, %v2213_v26  ;;  %3740 = vmatprep.subr.bf16.mxu1 %v4062_v10 }
0x1519   :  { %3713 = vmatmul.mubr.msk.bf16.vlgmr.msra.gmra.mrb[52].mxu0 %vm321_vm3, %v2220_v29 }
0x151a   :  { %3723 = vmatpush3.bf16.xpose.msra.mxu0 %v2324_v30  ;;  %3724 = vmatprep.mubr.msk.bf16.mxu0 %vm4063_vm1, %v4062_v10 }
0x151b   :  { %3734 = vmatprep.subr.bf16.mxu0 %v4062_v10 }
0x151d   :  { %3731 = vmatmul.mubr.msk.bf16.vlgmr.msra.gmra.mrb[68].mxu1 %vm226_vm2, %v2368_v33 }
0x151e   :  { %3742 = vmatprep.mubr.msk.bf16.mxu1 %vm4063_vm1, %v4062_v10 }
0x1521   :  { %3725 = vmatmul.mubr.msk.bf16.vlgmr.msra.gmra.mrb[56].mxu0 %vm226_vm2, %v2317_v34 }
0x1522   :  { %3736 = vmatprep.mubr.msk.bf16.mxu0 %vm4063_vm1, %v4062_v10 }
0x15e8   :  { %v4692_v37 = vpop.f32.mrb[64].mxu1 }
0x15e9   :  { %v3720_v43 = vpop.f32.mrb[65].mxu1 }
0x15ea   :  { %v4694_v45 = vpop.f32.mrb[66].mxu1 }
0x15eb   :  { %v3845_v50 = vpack.i.bf16 %v4694_v45, %v4692_v37  ;;  %v3721_v51 = vpop.f32.mrb[67].mxu1 }
0x15ec   :  { %v4698_v36 = vpop.f32.mrb[52].mxu0 }
0x15ed   :  { %v3714_v52 = vpop.f32.mrb[53].mxu0 }
0x15ee   :  { %v4700_v53 = vpop.f32.mrb[54].mxu0 }
0x15ef   :  { %v3840_v35 = vpack.i.bf16 %v4700_v53, %v4698_v36  ;;  %v3715_v54 = vpop.f32.mrb[55].mxu0 }
0x15f0   :  { %v2411_v42 = vpop.f32.mrb[68].mxu1 }
0x15f1   :  { %v3732_v55 = vpop.f32.mrb[69].mxu1  ;;  %v2412_v3 = vadd.f32 %v4589_v13, %v2411_v42 }
0x15f2   :  { %v2414_v56 = vpop.f32.mrb[70].mxu1 }
0x15f3   :  { %v3733_v58 = vpop.f32.mrb[71].mxu1  ;;  %v2415_v6 = vadd.f32 %v4602_v16, %v2414_v56  ;;  %v2424_v7 = vsel %vm321_vm3, %v2412_v3, -inf }
0x15f4   :  { %v2360_v2 = vpop.f32.mrb[56].mxu0 }
0x15f5   :  { %v2361_v44 = vadd.f32 %v4583_v32, %v2360_v2  ;;  %v3726_v38 = vpop.f32.mrb[57].mxu0  ;;  %v2427_v8 = vsel %vm321_vm3, %v2415_v6, -inf }
0x15f6   :  { %v2363_v41 = vpop.f32.mrb[58].mxu0 }
0x15f7   :  { %v2364_v20 = vadd.f32 %v4595_v57, %v2363_v41  ;;  %v3727_v4 = vpop.f32.mrb[59].mxu0  ;;  %v2418_v48 = vsel %vm321_vm3, %v2361_v44, -inf }
0x15f8   :  { %2419 = vmax.xlane.f32.xlu0 %v2418_v48 }
0x15f9   :  { %v2421_v46 = vsel %vm321_vm3, %v2364_v20, -inf }
0x15fa   :  { %2422 = vmax.xlane.f32.xlu1 %v2421_v46 }
0x15fc   :  { %2425 = vmax.xlane.f32.xlu0 %v2424_v7 }
0x1600   :  { %2428 = vmax.xlane.f32.xlu0 %v2427_v8 }
0x160b   :  { %2511 = vrot.lane.b32.xlu1 %v4562_v5, %s4068_s26 }
0x160f   :  { %2560 = vrot.lane.b32.xlu1 %v4564_v21, %s4069_s27 }
0x1685   :  { %v2420_v31 = vpop.xlane.xlu0 %2419 }
0x1686   :  { %v2430_v11 = vsub.f32 %v2361_v44, %v2420_v31 }
0x1687   :  { %v2423_v9 = vpop.xlane.xlu1 %2422 }
0x1688   :  { %v2434_v14 = vmul.f32 1.442695, %v2430_v11  ;;  %v2431_v60 = vsub.f32 %v2364_v20, %v2423_v9 }
0x1689   :  { %v2426_v12 = vpop.xlane.xlu0 %2425 }
0x168a   :  { %v2432_v62 = vsub.f32 %v2412_v3, %v2426_v12  ;;  %v2436_v23 = vmul.f32 1.442695, %v2431_v60 }
0x168b   :  { %v2512_v0 = vpop.permute.xlu1 %2511 }
0x168c   :  { %v2438_v17 = vmul.f32 1.442695, %v2432_v62  ;;  %3741 = vmatpush3.bf16.msra.mxu1 %v2512_v0 }
0x168d   :  { %v2429_v19 = vpop.xlane.xlu0 %2428  ;;  %3752 = vmatprep.subr.bf16.mxu1 %v4062_v10 }
0x168e   :  { %4006 = vpow2.f32 %v2438_v17  ;;  %v2433_v22 = vsub.f32 %v2415_v6, %v2429_v19 }
0x168f   :  { %4008 = vpow2.f32 %v2434_v14  ;;  %v2561_v43 = vpop.permute.xlu1 %2560 }
0x1690   :  { %v2440_v24 = vmul.f32 1.442695, %v2433_v22  ;;  %v2566_v46 = vsel %vm226_vm2, %v2561_v43, 0 }
0x1692   :  { %4010 = vpow2.f32 %v2440_v24 }
0x1693   :  { %4012 = vpow2.f32 %v2436_v23 }
0x1698   :  { %v4007_v25 = vpop.eup %4006 }
0x1699   :  { %v2448_v26 = vsel %vm321_vm3, %v4007_v25, 0.0  ;;  %v4009_v27 = vpop.eup %4008 }
0x169a   :  { %2449 = vadd.xlane.f32.xlu0 %v2448_v26  ;;  %v2442_v29 = vsel %vm321_vm3, %v4009_v27, 0.0 }
0x169c   :  { %v4011_v28 = vpop.eup %4010 }
0x169d   :  { %v2451_v30 = vsel %vm321_vm3, %v4011_v28, 0.0  ;;  %v4013_v33 = vpop.eup %4012 }
0x169e   :  { %2443 = vadd.xlane.f32.xlu0 %v2442_v29  ;;  %2452 = vadd.xlane.f32.xlu1 %v2451_v30  ;;  %v2445_v34 = vsel %vm321_vm3, %v4013_v33, 0.0 }
0x16a2   :  { %2446 = vadd.xlane.f32.xlu1 %v2445_v34 }
0x16b3   :  { %2611 = vrot.lane.b32.xlu1 %v4562_v5, %s4069_s27 }
0x16b4   :  { %2464 = vrot.lane.b32.xlu0 %v4564_v21, %s4068_s26 }
0x16b7   :  { %2609 = vrot.lane.b32.xlu1 %v4555_v61, %s4069_s27 }
0x16b8   :  { %2558 = vrot.lane.b32.xlu0 %v4557_v63, %s4069_s27  ;;  %s4910_s27 = smov 24  }
0x1727   :  { %v2450_v51 = vpop.xlane.xlu0 %2449 }
0x1728   :  { %4014 = vrcp.f32 %v2450_v51 }
0x172b   :  { %v2444_v52 = vpop.xlane.xlu0 %2443  ;;  %v2453_v54 = vpop.xlane.xlu1 %2452 }
0x172c   :  { %4016 = vrcp.f32 %v2453_v54 }
0x172d   :  { %4018 = vrcp.f32 %v2444_v52 }
0x172f   :  { %v2465_v42 = vpop.permute.xlu0 %2464  ;;  %v2447_v55 = vpop.xlane.xlu1 %2446 }
0x1730   :  { %4020 = vrcp.f32 %v2447_v55  ;;  %3735 = vmatpush3.bf16.msra.mxu0 %v2465_v42 }
0x1731   :  { %3746 = vmatprep.subr.bf16.mxu0 %v4062_v10 }
0x1732   :  { %v4015_v56 = vpop.eup %4014 }
0x1733   :  { %v2459_v61 = vmul.f32 %v4015_v56, %v4007_v25  ;;  %v2612_v38 = vpop.permute.xlu1 %2611  ;;  %v2559_v7 = vpop.permute.xlu0 %2558 }
0x1734   :  { %v2617_v4 = vsel %vm226_vm2, %v2612_v38, 0 }
0x1736   :  { %v4017_v58 = vpop.eup %4016 }
0x1737   :  { %v4019_v2 = vpop.eup %4018  ;;  %v2461_v44 = vmul.f32 %v4017_v58, %v4011_v28  ;;  %v2610_v6 = vpop.permute.xlu1 %2609 }
0x1738   :  { %v2455_v3 = vmul.f32 %v4019_v2, %v4009_v27 }
0x1739   :  { %v2463_v41 = vpack.c.bf16 %v2461_v44, %v2459_v61 }
0x173a   :  { %v4021_v63 = vpop.eup %4020 }
0x173b   :  { %v2457_v20 = vmul.f32 %v4021_v63, %v4013_v33  ;;  %3743 = vmatmul.mubr.msk.bf16.vlgmr.msra.gmra.mrb[72].mxu1 %vm321_vm3, %v2463_v41 }
0x173c   :  { %3753 = vmatpush3.bf16.xpose.msra.mxu1 %v2617_v4  ;;  %3754 = vmatprep.mubr.msk.bf16.mxu1 %vm4063_vm1, %v4062_v10 }
0x173d   :  { %v2462_v48 = vpack.c.bf16 %v2457_v20, %v2455_v3  ;;  %3764 = vmatprep.subr.bf16.mxu1 %v4062_v10 }
0x173f   :  { %3737 = vmatmul.mubr.msk.bf16.vlgmr.msra.gmra.mrb[60].mxu0 %vm321_vm3, %v2462_v48 }
0x1740   :  { %3747 = vmatpush3.bf16.xpose.msra.mxu0 %v2566_v46  ;;  %3748 = vmatprep.mubr.msk.bf16.mxu0 %vm4063_vm1, %v4062_v10 }
0x1741   :  { %3758 = vmatprep.subr.bf16.mxu0 %v4062_v10 }
0x1743   :  { %3755 = vmatmul.mubr.msk.bf16.vlgmr.msra.gmra.mrb[76].mxu1 %vm226_vm2, %v2610_v6 }
0x1744   :  { %3766 = vmatprep.mubr.msk.bf16.mxu1 %vm4063_vm1, %v4062_v10 }
0x1747   :  { %3749 = vmatmul.mubr.msk.bf16.vlgmr.msra.gmra.mrb[64].mxu0 %vm226_vm2, %v2559_v7 }
0x1748   :  { %3760 = vmatprep.mubr.msk.bf16.mxu0 %vm4063_vm1, %v4062_v10 }
0x180e   :  { %v4746_v8 = vpop.f32.mrb[72].mxu1 }
0x180f   :  { %v3744_v31 = vpop.f32.mrb[73].mxu1 }
0x1810   :  { %v2554_v9 = vpop.f32.mrb[74].mxu1 }
0x1811   :  { %v3855_v11 = vpack.i.bf16 %v2554_v9, %v4746_v8  ;;  %v3745_v12 = vpop.f32.mrb[75].mxu1 }
0x1812   :  { %v2504_v62 = vpop.f32.mrb[60].mxu0 }
0x1813   :  { %v3738_v0 = vpop.f32.mrb[61].mxu0 }
0x1814   :  { %v2507_v14 = vpop.f32.mrb[62].mxu0  ;;  %v3886_v0 = vld [vmem:[%s4888_s6 + $0x10] sm:$0xff]  }
0x1815   :  { %v3850_v60 = vpack.i.bf16 %v2507_v14, %v2504_v62  ;;  %v3739_v17 = vpop.f32.mrb[63].mxu0  ;;  %v3887_v14 = vld [vmem:[%s4888_s6 + $0x18] sm:$0xff]  }
0x1816   :  { %v2653_v19 = vpop.f32.mrb[76].mxu1 }
0x1817   :  { %v3756_v22 = vpop.f32.mrb[77].mxu1  ;;  %v2654_v28 = vadd.f32 %v4589_v13, %v2653_v19 }
0x1818   :  { %v2656_v23 = vpop.f32.mrb[78].mxu1 }
0x1819   :  { %v3757_v24 = vpop.f32.mrb[79].mxu1  ;;  %v2657_v43 = vadd.f32 %v4602_v16, %v2656_v23  ;;  %v2666_v51 = vsel %vm321_vm3, %v2654_v28, -inf }
0x181a   :  { %v2602_v25 = vpop.f32.mrb[64].mxu0 }
0x181b   :  { %v2603_v26 = vadd.f32 %v4583_v32, %v2602_v25  ;;  %v3750_v10 = vpop.f32.mrb[65].mxu0  ;;  %v2669_v32 = vsel %vm321_vm3, %v2657_v43, -inf }
0x181c   :  { %v2605_v27 = vpop.f32.mrb[66].mxu0 }
0x181d   :  { %v2606_v29 = vadd.f32 %v4595_v57, %v2605_v27  ;;  %v3751_v30 = vpop.f32.mrb[67].mxu0  ;;  %v2660_v33 = vsel %vm321_vm3, %v2603_v26, -inf }
0x181e   :  { %2661 = vmax.xlane.f32.xlu0 %v2660_v33 }
0x181f   :  { %v2663_v34 = vsel %vm321_vm3, %v2606_v29, -inf }
0x1820   :  { %2664 = vmax.xlane.f32.xlu1 %v2663_v34 }
0x1822   :  { %2667 = vmax.xlane.f32.xlu0 %v2666_v51 }
0x1826   :  { %2670 = vmax.xlane.f32.xlu0 %v2669_v32 }
0x18ab   :  { %v2662_v52 = vpop.xlane.xlu0 %2661 }
0x18ac   :  { %v2672_v54 = vsub.f32 %v2603_v26, %v2662_v52 }
0x18ad   :  { %v2665_v13 = vpop.xlane.xlu1 %2664 }
0x18ae   :  { %v2676_v55 = vmul.f32 1.442695, %v2672_v54  ;;  %v2673_v56 = vsub.f32 %v2606_v29, %v2665_v13 }
0x18af   :  { %v2668_v42 = vpop.xlane.xlu0 %2667 }
0x18b0   :  { %v2674_v57 = vsub.f32 %v2654_v28, %v2668_v42  ;;  %v2678_v44 = vmul.f32 1.442695, %v2673_v56 }
0x18b2   :  { %v2680_v58 = vmul.f32 1.442695, %v2674_v57 }
0x18b3   :  { %v2671_v2 = vpop.xlane.xlu0 %2670 }
0x18b4   :  { %4022 = vpow2.f32 %v2680_v58  ;;  %v2675_v61 = vsub.f32 %v2657_v43, %v2671_v2 }
0x18b5   :  { %4024 = vpow2.f32 %v2676_v55 }
0x18b6   :  { %v2682_v16 = vmul.f32 1.442695, %v2675_v61 }
0x18b8   :  { %4026 = vpow2.f32 %v2682_v16 }
0x18b9   :  { %4028 = vpow2.f32 %v2678_v44 }
0x18be   :  { %v4023_v38 = vpop.eup %4022 }
0x18bf   :  { %v2690_v63 = vsel %vm321_vm3, %v4023_v38, 0.0  ;;  %v4025_v41 = vpop.eup %4024 }
0x18c0   :  { %2691 = vadd.xlane.f32.xlu0 %v2690_v63  ;;  %v2684_v20 = vsel %vm321_vm3, %v4025_v41, 0.0 }
0x18c2   :  { %v4027_v3 = vpop.eup %4026 }
0x18c3   :  { %v2693_v4 = vsel %vm321_vm3, %v4027_v3, 0.0  ;;  %v4029_v48 = vpop.eup %4028 }
0x18c4   :  { %2685 = vadd.xlane.f32.xlu0 %v2684_v20  ;;  %2694 = vadd.xlane.f32.xlu1 %v2693_v4  ;;  %v2687_v46 = vsel %vm321_vm3, %v4029_v48, 0.0 }
0x18c8   :  { %2688 = vadd.xlane.f32.xlu1 %v2687_v46 }
0x18d9   :  { %2753 = vrot.lane.b32.xlu1 %v4562_v5, %s4070_s28 }
0x18da   :  { %2706 = vrot.lane.b32.xlu0 %v4564_v21, %s4070_s28 }
0x18dd   :  { %3841 = vrot.lane.b32.xlu1 %v3840_v35, %s4908_s1 }
0x18de   :  { %3851 = vrot.lane.b32.xlu0 %v3850_v60, %s4909_s21 }
0x18e1   :  { %3846 = vrot.lane.b32.xlu1 %v3845_v50, %s4908_s1 }
0x18e5   :  { %3856 = vrot.lane.b32.xlu1 %v3855_v11, %s4909_s21 }
0x194d   :  { %v2692_v6 = vpop.xlane.xlu0 %2691 }
0x194e   :  { %4030 = vrcp.f32 %v2692_v6  ;;  %v3373_v6 = vld [vmem:[%s4889_s7 + $0x1] ss:$0 sm:$0xff] }
0x1951   :  { %v2686_v5 = vpop.xlane.xlu0 %2685  ;;  %v2695_v7 = vpop.xlane.xlu1 %2694 }
0x1952   :  { %4032 = vrcp.f32 %v2695_v7 }
0x1953   :  { %4034 = vrcp.f32 %v2686_v5 }
0x1955   :  { %v2707_v21 = vpop.permute.xlu0 %2706  ;;  %v2689_v8 = vpop.xlane.xlu1 %2688 }
0x1956   :  { %4036 = vrcp.f32 %v2689_v8  ;;  %3759 = vmatpush3.bf16.msra.mxu0 %v2707_v21 }
0x1957   :  { %3770 = vmatprep.subr.bf16.mxu0 %v3886_v0 }
0x1958   :  { %v4031_v53 = vpop.eup %4030 }
0x1959   :  { %v2754_v36 = vpop.permute.xlu1 %2753  ;;  %v2701_v9 = vmul.f32 %v4031_v53, %v4023_v38  ;;  %v3852_v54 = vpop.permute.xlu0 %3851 }
0x195a   :  { %3765 = vmatpush3.bf16.msra.mxu1 %v2754_v36  ;;  %v3854_v16 = vunpack.i.h.bf16 %v3852_v54  ;;  %v3853_v38 = vunpack.i.l.bf16 %v3852_v54 }
0x195c   :  { %v4033_v35 = vpop.eup %4032 }
0x195d   :  { %v4035_v31 = vpop.eup %4034  ;;  %v2703_v37 = vmul.f32 %v4033_v35, %v4027_v3  ;;  %v3842_v28 = vpop.permute.xlu1 %3841 }
0x195e   :  { %v2697_v11 = vmul.f32 %v4035_v31, %v4025_v41  ;;  %v3844_v43 = vunpack.i.h.bf16 %v3842_v28  ;;  %v3843_v51 = vunpack.i.l.bf16 %v3842_v28 }
0x195f   :  { %v2705_v50 = vpack.c.bf16 %v2703_v37, %v2701_v9 }
0x1960   :  { %v4037_v45 = vpop.eup %4036  ;;  %v2849_v58 = vsel %vm226_vm2, %v4648_v18, %v3844_v43  ;;  %v2848_v2 = vsel %vm226_vm2, %v4646_v15, %v3843_v51  ;;  %v3888_v43 = vld [vmem:[%s4890_s10 + $0x10] sm:$0xff]   ;;  %v3889_v51 = vld [vmem:[%s4890_s10 + $0x18] sm:$0xff]  }
0x1961   :  { %v2699_v12 = vmul.f32 %v4037_v45, %v4029_v48  ;;  %3767 = vmatmul.mubr.msk.bf16.vlgmr.msra.gmra.mrb[80].mxu1 %vm321_vm3, %v2705_v50  ;;  %v3847_v29 = vpop.permute.xlu1 %3846  ;;  %v2852_v4 = vsel %vm321_vm3, %v2848_v2, %v3853_v38  ;;  %v2853_v18 = vsel %vm321_vm3, %v2849_v58, %v3854_v16  ;;  %3778 = vmatprep.subr.bf16.mxu1 %v3888_v43 }
0x1962   :  { %v3849_v33 = vunpack.i.h.bf16 %v3847_v29  ;;  %v3848_v34 = vunpack.i.l.bf16 %v3847_v29  ;;  %3779 = vmatpush3.bf16.msra.mxu1 %v3888_v43 }
0x1963   :  { %v2704_v62 = vpack.c.bf16 %v2699_v12, %v2697_v11  ;;  %3780 = vmatprep.subr.bf16.mxu1 %v3889_v51 }
0x1964   :  { %v2851_v42 = vsel %vm226_vm2, %v4644_v59, %v3849_v33  ;;  %v2850_v57 = vsel %vm226_vm2, %v4642_v1, %v3848_v34 }
0x1965   :  { %3761 = vmatmul.mubr.msk.bf16.vlgmr.msra.gmra.mrb[68].mxu0 %vm321_vm3, %v2704_v62  ;;  %v3857_v30 = vpop.permute.xlu1 %3856 }
0x1966   :  { %3771 = vmatpush3.bf16.msra.mxu0 %v3886_v0  ;;  %v3859_v32 = vunpack.i.h.bf16 %v3857_v30  ;;  %v3858_v52 = vunpack.i.l.bf16 %v3857_v30  ;;  %3781 = vmatpush3.bf16.msra.mxu1 %v3889_v51 }
0x1967   :  { %3772 = vmatprep.subr.bf16.mxu0 %v3887_v14 }
0x1968   :  { %v2854_v61 = vsel %vm321_vm3, %v2850_v57, %v3858_v52  ;;  %v2855_v44 = vsel %vm321_vm3, %v2851_v42, %v3859_v32  ;;  %v3890_v32 = vld [vmem:[%s4891_s12 + $0x20] sm:$0xff]   ;;  %v3891_v52 = vld [vmem:[%s4891_s12 + $0x28] sm:$0xff]  }
0x196a   :  { %3773 = vmatpush3.bf16.msra.mxu0 %v3887_v14 }
0x196b   :  { %3786 = vmatprep.subr.bf16.mxu0 %v3890_v32 }
0x1a34   :  { %v2793_v60 = vpop.f32.mrb[80].mxu1 }
0x1a35   :  { %v3768_v17 = vpop.f32.mrb[81].mxu1 }
0x1a36   :  { %v2796_v19 = vpop.f32.mrb[82].mxu1 }
0x1a37   :  { %v3865_v22 = vpack.i.bf16 %v2796_v19, %v2793_v60  ;;  %v3769_v23 = vpop.f32.mrb[83].mxu1 }
0x1a38   :  { %v2746_v24 = vpop.f32.mrb[68].mxu0 }
0x1a39   :  { %v3762_v25 = vpop.f32.mrb[69].mxu0  ;;  %3866 = vrot.lane.b32.xlu1 %v3865_v22, %s4910_s27 }
0x1a3a   :  { %v2749_v26 = vpop.f32.mrb[70].mxu0 }
0x1a3b   :  { %v3860_v10 = vpack.i.bf16 %v2749_v26, %v2746_v24  ;;  %v3763_v27 = vpop.f32.mrb[71].mxu0 }
0x1a3d   :  { %3861 = vrot.lane.b32.xlu0 %v3860_v10, %s4910_s27 }
0x1aab   :  { %v3867_v13 = vpop.permute.xlu1 %3866 }
0x1aac   :  { %v3869_v55 = vunpack.i.h.bf16 %v3867_v13  ;;  %v3868_v56 = vunpack.i.l.bf16 %v3867_v13 }
0x1aae   :  { %v2858_v63 = vsel %vm1248_vm4, %v2854_v61, %v3868_v56  ;;  %v2859_v59 = vsel %vm1248_vm4, %v2855_v44, %v3869_v55 }
0x1aaf   :  { %v3862_v41 = vpop.permute.xlu0 %3861  ;;  %v2861_v1 = vpack.c.bf16 %v2859_v59, %v2858_v63  ;;  %v3378_v59 = vld [vmem:[%s4892_s8 + $0x1] ss:$0 sm:$0xff] }
0x1ab0   :  { %v3864_v3 = vunpack.i.h.bf16 %v3862_v41  ;;  %v3863_v20 = vunpack.i.l.bf16 %v3862_v41 }
0x1ab2   :  { %v2857_v15 = vsel %vm1248_vm4, %v2853_v18, %v3864_v3  ;;  %v2856_v48 = vsel %vm1248_vm4, %v2852_v4, %v3863_v20  ;;  %v3379_v18 = vld [vmem:[%s4893_s9 + $0x1] ss:$0 sm:$0xff] }
0x1ab3   :  { %v2860_v46 = vpack.c.bf16 %v2857_v15, %v2856_v48 }
0x1ab5   :  { %3774 = vmatprep.mubr.msk.bf16.mxu0 %vm99_vm0, %v2860_v46 }
0x1ab6   :  { %3775 = vmatmul.mubr.msk.bf16.vlgmr.msra.gmra.mrb[72].mxu0 %vm99_vm0, %v2861_v1 }
0x1ab7   :  { %3787 = vmatpush3.bf16.msra.mxu0 %v3890_v32 }
0x1ab8   :  { %3788 = vmatprep.subr.bf16.mxu0 %v3891_v52 }
0x1abb   :  { %3789 = vmatpush3.bf16.msra.mxu0 %v3891_v52 }
0x1b89   :  { %v3776_v5 = vpop.f32.mrb[72].mxu0 }
0x1b8a   :  { %v2920_v7 = vpop.f32.mrb[73].mxu0  ;;  %v2929_v21 = vadd.f32 %v3776_v5, %v3373_v6 }
0x1b8b   :  { %v2921_v8 = vadd.f32 %v3373_v6, %v2920_v7  ;;  %v3777_v36 = vpop.f32.mrb[74].mxu0 }
0x1b8c   :  { %v2923_v53 = vpop.f32.mrb[75].mxu0  ;;  %v2937_v9 = vadd.f32 %v2929_v21, %v4537_v47  ;;  %v2932_v37 = vadd.f32 %v3777_v36, %v3373_v6 }
0x1b8d   :  { %v2935_v35 = vadd.f32 %v2921_v8, %v4530_v39  ;;  %v2924_v31 = vadd.f32 %v3373_v6, %v2923_v53 }
0x1b8e   :  { %v2938_v12 = vadd.f32 %v2932_v37, %v4539_v49  ;;  %v2945_v62 = vsel %vm99_vm0, %v2937_v9, 0.0  ;;  %v3893_v37 = vld [vmem:[%s4891_s12 + $0x38] sm:$0xff]  }
0x1b8f   :  { %v2936_v45 = vadd.f32 %v2924_v31, %v4532_v40  ;;  %v2939_v50 = vsel %vm99_vm0, %v2935_v35, 0.0 }
0x1b90   :  { %2940 = vadd.xlane.f32.xlu0 %v2939_v50  ;;  %v2948_v0 = vsel %vm99_vm0, %v2938_v12, 0.0 }
0x1b91   :  { %v2942_v11 = vsel %vm99_vm0, %v2936_v45, 0.0 }
0x1b92   :  { %2943 = vadd.xlane.f32.xlu1 %v2942_v11 }
0x1b94   :  { %2946 = vadd.xlane.f32.xlu0 %v2945_v62 }
0x1b98   :  { %2949 = vadd.xlane.f32.xlu0 %v2948_v0 }
0x1c1d   :  { %v2941_v39 = vpop.xlane.xlu0 %2940 }
0x1c1e   :  { %v2951_v14 = vmul.f32 0.03125, %v2941_v39 }
0x1c1f   :  { %v2944_v47 = vpop.xlane.xlu1 %2943 }
0x1c20   :  { %v2955_v60 = vsub.f32 %v2935_v35, %v2951_v14  ;;  %v2952_v17 = vmul.f32 0.03125, %v2944_v47 }
0x1c21   :  { %v2947_v40 = vpop.xlane.xlu0 %2946 }
0x1c22   :  { %v2956_v19 = vsub.f32 %v2936_v45, %v2952_v17  ;;  %v2953_v22 = vmul.f32 0.03125, %v2947_v40  ;;  %v2959_v23 = vmul.f32 %v2955_v60, %v2955_v60  ;;  %v3396_v45 = vld [vmem:[%s4894_s11 + $0x1] ss:$0 sm:$0xff] }
0x1c24   :  { %v2957_v24 = vsub.f32 %v2937_v9, %v2953_v22  ;;  %v2963_v25 = vsel %vm99_vm0, %v2959_v23, 0.0  ;;  %v2960_v26 = vmul.f32 %v2956_v19, %v2956_v19  ;;  %v3892_v9 = vld [vmem:[%s4891_s12 + $0x30] sm:$0xff]  }
0x1c25   :  { %2964 = vadd.xlane.f32.xlu0 %v2963_v25  ;;  %v2950_v49 = vpop.xlane.xlu0 %2949  ;;  %3790 = vmatprep.subr.bf16.mxu0 %v3892_v9 }
0x1c26   :  { %v2954_v10 = vmul.f32 0.03125, %v2950_v49  ;;  %v2966_v27 = vsel %vm99_vm0, %v2960_v26, 0.0  ;;  %v2961_v28 = vmul.f32 %v2957_v24, %v2957_v24  ;;  %3791 = vmatpush3.bf16.msra.mxu0 %v3892_v9 }
0x1c27   :  { %2967 = vadd.xlane.f32.xlu1 %v2966_v27  ;;  %3792 = vmatprep.subr.bf16.mxu0 %v3893_v37 }
0x1c28   :  { %v2958_v29 = vsub.f32 %v2938_v12, %v2954_v10  ;;  %v2969_v30 = vsel %vm99_vm0, %v2961_v28, 0.0 }
0x1c29   :  { %2970 = vadd.xlane.f32.xlu0 %v2969_v30 }
0x1c2a   :  { %v2962_v33 = vmul.f32 %v2958_v29, %v2958_v29  ;;  %3793 = vmatpush3.bf16.msra.mxu0 %v3893_v37 }
0x1c2c   :  { %v2972_v34 = vsel %vm99_vm0, %v2962_v33, 0.0 }
0x1c2d   :  { %2973 = vadd.xlane.f32.xlu1 %v2972_v34 }
0x1cb2   :  { %v2965_v54 = vpop.xlane.xlu0 %2964 }
0x1cb3   :  { %v2975_v13 = vmul.f32 0.032258064, %v2965_v54 }
0x1cb4   :  { %v2968_v42 = vpop.xlane.xlu1 %2967 }
0x1cb5   :  { %v2979_v57 = vadd.f32 1e-10, %v2975_v13  ;;  %v2976_v55 = vmul.f32 0.032258064, %v2968_v42 }
0x1cb6   :  { %v2971_v56 = vpop.xlane.xlu0 %2970 }
0x1cb7   :  { %4038 = vrsqrt.f32 %v2979_v57  ;;  %v2980_v58 = vadd.f32 1e-10, %v2976_v55  ;;  %v2977_v2 = vmul.f32 0.032258064, %v2971_v56 }
0x1cb9   :  { %4040 = vrsqrt.f32 %v2980_v58  ;;  %v2981_v61 = vadd.f32 1e-10, %v2977_v2 }
0x1cba   :  { %v2974_v44 = vpop.xlane.xlu1 %2973 }
0x1cbb   :  { %4042 = vrsqrt.f32 %v2981_v61  ;;  %v2978_v16 = vmul.f32 0.032258064, %v2974_v44 }
0x1cbd   :  { %v2982_v38 = vadd.f32 1e-10, %v2978_v16 }
0x1cbf   :  { %4044 = vrsqrt.f32 %v2982_v38 }
0x1cc1   :  { %v4039_v63 = vpop.eup %4038 }
0x1cc2   :  { %v2987_v41 = vmul.f32 %v4039_v63, %v2955_v60 }
0x1cc3   :  { %v4041_v1 = vpop.eup %4040 }
0x1cc4   :  { %v2988_v3 = vmul.f32 %v4041_v1, %v2956_v19  ;;  %v2997_v20 = vmul.f32 %v3378_v59, %v2987_v41 }
0x1cc5   :  { %v4043_v4 = vpop.eup %4042 }
0x1cc6   :  { %v2989_v15 = vmul.f32 %v4043_v4, %v2957_v24  ;;  %v2998_v48 = vmul.f32 %v3378_v59, %v2988_v3  ;;  %v3007_v46 = vadd.f32 %v3379_v18, %v2997_v20  ;;  %v3401_v24 = vld [vmem:[%s4895_s13 + $0x1] ss:$0 sm:$0xff] }
0x1cc8   :  { %v3008_v6 = vadd.f32 %v3379_v18, %v2998_v48  ;;  %v2999_v7 = vmul.f32 %v3378_v59, %v2989_v15 }
0x1cc9   :  { %v4045_v5 = vpop.eup %4044 }
0x1cca   :  { %v2990_v21 = vmul.f32 %v4045_v5, %v2958_v29  ;;  %v3033_v8 = vpack.c.bf16 %v3008_v6, %v3007_v46  ;;  %v3009_v53 = vadd.f32 %v3379_v18, %v2999_v7 }
0x1ccc   :  { %v3000_v36 = vmul.f32 %v3378_v59, %v2990_v21  ;;  %3782 = vmatprep.mubr.msk.bf16.mxu1 %vm99_vm0, %v3033_v8 }
0x1cce   :  { %v3010_v35 = vadd.f32 %v3379_v18, %v3000_v36 }
0x1cd0   :  { %v3034_v31 = vpack.c.bf16 %v3010_v35, %v3009_v53 }
0x1cd2   :  { %3783 = vmatmul.mubr.msk.bf16.vlgmr.msra.gmra.mrb[84].mxu1 %vm99_vm0, %v3034_v31 }
0x1da5   :  { %v3784_v50 = vpop.f32.mrb[84].mxu1 }
0x1da6   :  { %v3102_v11 = vadd.f32 %v3784_v50, %v3396_v45  ;;  %v3093_v12 = vpop.f32.mrb[85].mxu1  ;;  %v3408_v50 = vld [vmem:[%s4896_s14 + $0x1] ss:$0 sm:$0xff] }
0x1da7   :  { %v3094_v62 = vadd.f32 %v3396_v45, %v3093_v12  ;;  %v3785_v0 = vpop.f32.mrb[86].mxu1 }
0x1da8   :  { %v3105_v39 = vadd.f32 %v3785_v0, %v3396_v45  ;;  %v3096_v14 = vpop.f32.mrb[87].mxu1  ;;  %v3110_v60 = vmax.f32 %v3102_v11, 0.0 }
0x1da9   :  { %v3097_v47 = vadd.f32 %v3396_v45, %v3096_v14  ;;  %v3108_v40 = vmax.f32 %v3094_v62, 0.0  ;;  %v3409_v62 = vld [vmem:[%s4897_s15 + $0x1] ss:$0 sm:$0xff] }
0x1daa   :  { %v3111_v17 = vmax.f32 %v3105_v39, 0.0 }
0x1dab   :  { %v3109_v19 = vmax.f32 %v3097_v47, 0.0 }
0x1dac   :  { %v3113_v22 = vpack.c.bf16 %v3111_v17, %v3110_v60 }
0x1dad   :  { %v3112_v23 = vpack.c.bf16 %v3109_v19, %v3108_v40 }
0x1daf   :  { %3794 = vmatprep.mubr.msk.bf16.mxu0 %vm1533_vm5, %v3112_v23 }
0x1db0   :  { %3795 = vmatmul.mubr.msk.bf16.vlgmr.msra.gmra.mrb[76].mxu0 %vm1533_vm5, %v3113_v22 }
0x1e83   :  { %v3796_v25 = vpop.f32.mrb[76].mxu0 }
0x1e84   :  { %v3184_v26 = vpop.f32.mrb[77].mxu0  ;;  %v3193_v49 = vadd.f32 %v3796_v25, %v3401_v24 }
0x1e85   :  { %v3185_v10 = vadd.f32 %v3401_v24, %v3184_v26  ;;  %v3797_v27 = vpop.f32.mrb[78].mxu0 }
0x1e86   :  { %v3187_v28 = vpop.f32.mrb[79].mxu0  ;;  %v3196_v30 = vadd.f32 %v3797_v27, %v3401_v24  ;;  %v3201_v34 = vadd.f32 %v3193_v49, %v3009_v53 }
0x1e87   :  { %v3199_v29 = vadd.f32 %v3185_v10, %v3007_v46  ;;  %v3188_v33 = vadd.f32 %v3401_v24, %v3187_v28 }
0x1e88   :  { %v3202_v32 = vadd.f32 %v3196_v30, %v3010_v35  ;;  %v3209_v54 = vsel %vm99_vm0, %v3201_v34, 0.0 }
0x1e89   :  { %v3200_v43 = vadd.f32 %v3188_v33, %v3008_v6  ;;  %v3203_v51 = vsel %vm99_vm0, %v3199_v29, 0.0 }
0x1e8a   :  { %3204 = vadd.xlane.f32.xlu0 %v3203_v51  ;;  %v3212_v13 = vsel %vm99_vm0, %v3202_v32, 0.0 }
0x1e8b   :  { %v3206_v52 = vsel %vm99_vm0, %v3200_v43, 0.0 }
0x1e8c   :  { %3207 = vadd.xlane.f32.xlu1 %v3206_v52 }
0x1e8e   :  { %3210 = vadd.xlane.f32.xlu0 %v3209_v54 }
0x1e90   :  { %3213 = vadd.xlane.f32.xlu1 %v3212_v13 }
0x1f17   :  { %v3205_v42 = vpop.xlane.xlu0 %3204 }
0x1f18   :  { %v3215_v57 = vmul.f32 0.03125, %v3205_v42 }
0x1f19   :  { %v3208_v55 = vpop.xlane.xlu1 %3207 }
0x1f1a   :  { %v3219_v56 = vsub.f32 %v3199_v29, %v3215_v57  ;;  %v3216_v58 = vmul.f32 0.03125, %v3208_v55 }
0x1f1b   :  { %v3211_v2 = vpop.xlane.xlu0 %3210 }
0x1f1c   :  { %v3220_v61 = vsub.f32 %v3200_v43, %v3216_v58  ;;  %v3217_v44 = vmul.f32 0.03125, %v3211_v2  ;;  %v3223_v16 = vmul.f32 %v3219_v56, %v3219_v56 }
0x1f1d   :  { %v3214_v38 = vpop.xlane.xlu1 %3213 }
0x1f1e   :  { %v3221_v63 = vsub.f32 %v3201_v34, %v3217_v44  ;;  %v3218_v59 = vmul.f32 0.03125, %v3214_v38  ;;  %v3227_v41 = vsel %vm99_vm0, %v3223_v16, 0.0  ;;  %v3224_v1 = vmul.f32 %v3220_v61, %v3220_v61 }
0x1f1f   :  { %3228 = vadd.xlane.f32.xlu0 %v3227_v41 }
0x1f20   :  { %v3222_v3 = vsub.f32 %v3202_v32, %v3218_v59  ;;  %v3230_v20 = vsel %vm99_vm0, %v3224_v1, 0.0  ;;  %v3225_v4 = vmul.f32 %v3221_v63, %v3221_v63 }
0x1f21   :  { %3231 = vadd.xlane.f32.xlu1 %v3230_v20 }
0x1f22   :  { %v3233_v18 = vsel %vm99_vm0, %v3225_v4, 0.0  ;;  %v3226_v15 = vmul.f32 %v3222_v3, %v3222_v3 }
0x1f23   :  { %3234 = vadd.xlane.f32.xlu0 %v3233_v18 }
0x1f24   :  { %v3236_v48 = vsel %vm99_vm0, %v3226_v15, 0.0 }
0x1f25   :  { %3237 = vadd.xlane.f32.xlu1 %v3236_v48 }
0x1fac   :  { %v3229_v46 = vpop.xlane.xlu0 %3228 }
0x1fad   :  { %v3239_v6 = vmul.f32 0.032258064, %v3229_v46 }
0x1fae   :  { %v3232_v5 = vpop.xlane.xlu1 %3231 }
0x1faf   :  { %v3243_v7 = vadd.f32 1e-10, %v3239_v6  ;;  %v3240_v21 = vmul.f32 0.032258064, %v3232_v5 }
0x1fb0   :  { %v3235_v8 = vpop.xlane.xlu0 %3234 }
0x1fb1   :  { %4046 = vrsqrt.f32 %v3243_v7  ;;  %v3244_v36 = vadd.f32 1e-10, %v3240_v21  ;;  %v3241_v53 = vmul.f32 0.032258064, %v3235_v8 }
0x1fb2   :  { %v3238_v35 = vpop.xlane.xlu1 %3237 }
0x1fb3   :  { %4048 = vrsqrt.f32 %v3244_v36  ;;  %v3245_v31 = vadd.f32 1e-10, %v3241_v53  ;;  %v3242_v9 = vmul.f32 0.032258064, %v3238_v35 }
0x1fb5   :  { %4050 = vrsqrt.f32 %v3245_v31  ;;  %v3246_v37 = vadd.f32 1e-10, %v3242_v9 }
0x1fb7   :  { %4052 = vrsqrt.f32 %v3246_v37 }
0x1fbb   :  { %v4047_v45 = vpop.eup %4046 }
0x1fbc   :  { %v3251_v11 = vmul.f32 %v4047_v45, %v3219_v56 }
0x1fbd   :  { %v4049_v12 = vpop.eup %4048 }
0x1fbe   :  { %v3261_v0 = vmul.f32 %v3408_v50, %v3251_v11  ;;  %v3252_v39 = vmul.f32 %v4049_v12, %v3220_v61 }
0x1fbf   :  { %v4051_v14 = vpop.eup %4050 }
0x1fc0   :  { %v3271_v47 = vadd.f32 %v3409_v62, %v3261_v0  ;;  %v3262_v60 = vmul.f32 %v3408_v50, %v3252_v39  ;;  %v3253_v17 = vmul.f32 %v4051_v14, %v3221_v63 }
0x1fc1   :  { %v4053_v40 = vpop.eup %4052 }
0x1fc2   :  { %3275 = vst.msk [vmem:[%s4898_s16] sm:$0xff] %vm99_vm0, %v3271_v47  ;;  %v3272_v19 = vadd.f32 %v3409_v62, %v3262_v60  ;;  %v3263_v22 = vmul.f32 %v3408_v50, %v3253_v17  ;;  %v3254_v23 = vmul.f32 %v4053_v40, %v3222_v3 }
0x1fc4   :  { %3276 = vst.msk [vmem:[%s4898_s16 + $0x8] sm:$0xff] %vm99_vm0, %v3272_v19  ;;  %v3273_v24 = vadd.f32 %v3409_v62, %v3263_v22  ;;  %v3264_v25 = vmul.f32 %v3408_v50, %v3254_v23 }
0x1fc6   :  { %3277 = vst.msk [vmem:[%s4898_s16 + $0x10] sm:$0xff] %vm99_vm0, %v3273_v24  ;;  %v3274_v26 = vadd.f32 %v3409_v62, %v3264_v25 }
0x1fc8   :  { %3278 = vst.msk [vmem:[%s4898_s16 + $0x18] sm:$0xff] %vm99_vm0, %v3274_v26 }

// kernel: _lambda_.3
= control target key start
LH: loop header
LB: loop body
LE: loop exit
PB: predicated region body
PF: predicated region fallthrough
CT: control target
= control target key end

     0   :  { %s7720_s0 = inlined_call_operand.vmem [shape: f32[16,32], index: 0, kind: input, shape index: {}]   ;;  %s7721_s1 = inlined_call_operand.vmem [shape: f32[32,32], index: 1, kind: input, shape index: {}]   ;;  %s7722_s2 = inlined_call_operand.vmem [shape: f32[2,8,8], index: 2, kind: input, shape index: {}]   ;;  %s7723_s3 = inlined_call_operand.vmem [shape: f32[2,8,16], index: 3, kind: input, shape index: {}]   ;;  %s7724_s4 = inlined_call_operand.vmem [shape: bf16[2,32,32], index: 4, kind: input, shape index: {}]   ;;  %s7725_s5 = inlined_call_operand.vmem [shape: f32[2,1,32], index: 5, kind: input, shape index: {}]   ;;  %s7726_s6 = inlined_call_operand.vmem [shape: bf16[2,32,64], index: 6, kind: input, shape index: {}]   ;;  %s7727_s7 = inlined_call_operand.vmem [shape: f32[2,1,64], index: 7, kind: input, shape index: {}]   ;;  %s7728_s8 = inlined_call_operand.vmem [shape: bf16[2,32,32], index: 8, kind: input, shape index: {}]   ;;  %s7729_s9 = inlined_call_operand.vmem [shape: f32[2,1,32], index: 9, kind: input, shape index: {}]   ;;  %s7730_s10 = inlined_call_operand.vmem [shape: f32[2,1,32], index: 10, kind: input, shape index: {}]   ;;  %s7731_s11 = inlined_call_operand.vmem [shape: f32[2,1,32], index: 11, kind: input, shape index: {}]   ;;  %s7732_s12 = inlined_call_operand.vmem [shape: bf16[2,32,32], index: 12, kind: input, shape index: {}]   ;;  %s7733_s13 = inlined_call_operand.vmem [shape: f32[2,1,32], index: 13, kind: input, shape index: {}]   ;;  %s7734_s14 = inlined_call_operand.vmem [shape: bf16[2,32,64], index: 14, kind: input, shape index: {}]   ;;  %s7735_s15 = inlined_call_operand.vmem [shape: f32[2,1,64], index: 15, kind: input, shape index: {}]   ;;  %s7736_s16 = inlined_call_operand.vmem [shape: bf16[2,32,32], index: 16, kind: input, shape index: {}]   ;;  %s7737_s17 = inlined_call_operand.vmem [shape: f32[2,1,32], index: 17, kind: input, shape index: {}]   ;;  %s7738_s18 = inlined_call_operand.vmem [shape: f32[2,1,32], index: 18, kind: input, shape index: {}]   ;;  %s7739_s19 = inlined_call_operand.vmem [shape: f32[2,1,32], index: 19, kind: input, shape index: {}]   ;;  %s7740_s20 = inlined_call_operand.vmem [shape: bf16[2,32,64], index: 20, kind: input, shape index: {}]   ;;  %s7741_s21 = inlined_call_operand.vmem [shape: f32[2,1,64], index: 21, kind: input, shape index: {}]   ;;  %s7742_s22 = inlined_call_operand.vmem [shape: bf16[2,64,32], index: 22, kind: input, shape index: {}]   ;;  %s7743_s23 = inlined_call_operand.vmem [shape: f32[2,1,32], index: 23, kind: input, shape index: {}]   ;;  %s7744_s24 = inlined_call_operand.vmem [shape: f32[2,1,32], index: 24, kind: input, shape index: {}]   ;;  %s7745_s25 = inlined_call_operand.vmem [shape: f32[2,1,32], index: 25, kind: input, shape index: {}]   ;;  %s7746_s26 = inlined_call_operand.vmem [shape: bf16[32,128], index: 26, kind: input, shape index: {}]   ;;  %s7747_s27 = inlined_call_operand.vmem [shape: f32[1,128], index: 27, kind: input, shape index: {}]   ;;  %s7748_s28 = inlined_call_operand.hbm [shape: f32[16,128], index: 28, kind: output, shape index: {}]  }
   0x1   :  { %7793 = sst [smem:[#allocation5_spill]] %s7720_s0 }
   0x2   :  { %7794 = sst [smem:[#allocation6_spill]] %s7721_s1 }
   0x3   :  { %7795 = sst [smem:[#allocation7_spill]] %s7722_s2 }
   0x4   :  { %7796 = sst [smem:[#allocation8_spill]] %s7723_s3 }
   0x5   :  { %7797 = sst [smem:[#allocation9_spill]] %s7724_s4 }
   0x6   :  { %7798 = sst [smem:[#allocation10_spill]] %s7725_s5 }
   0x7   :  { %7799 = sst [smem:[#allocation11_spill]] %s7726_s6 }
   0x8   :  { %7800 = sst [smem:[#allocation12_spill]] %s7727_s7 }
   0x9   :  { %7801 = sst [smem:[#allocation13_spill]] %s7728_s8 }
   0xa   :  { %7802 = sst [smem:[#allocation14_spill]] %s7729_s9 }
   0xb   :  { %7803 = sst [smem:[#allocation15_spill]] %s7730_s10 }
   0xc   :  { %7804 = sst [smem:[#allocation16_spill]] %s7731_s11 }
   0xd   :  { %7805 = sst [smem:[#allocation17_spill]] %s7732_s12 }
   0xe   :  { %7806 = sst [smem:[#allocation18_spill]] %s7733_s13 }
   0xf   :  { %7807 = sst [smem:[#allocation19_spill]] %s7734_s14 }
  0x10   :  { %7808 = sst [smem:[#allocation20_spill]] %s7735_s15 }
  0x11   :  { %7809 = sst [smem:[#allocation21_spill]] %s7736_s16 }
  0x12   :  { %7810 = sst [smem:[#allocation22_spill]] %s7737_s17 }
  0x13   :  { %7811 = sst [smem:[#allocation23_spill]] %s7746_s26 }
  0x14   :  { %7812 = sst [smem:[#allocation24_spill]] %s7747_s27 }
  0x15   :  { %7813 = sst [smem:[#allocation25_spill]] %s7748_s28 }
  0x16   :  { %s7814_s9 = sld [smem:[#allocation11_spill]]  ;;  %v6438_v1 = vmov 0.0   ;;  %s7815_s0 = sld [smem:[#allocation9_spill]]  ;;  %vm6439_vm0 = vmmov 0   ;;  %vm137_vm1 = vcmask 261120  }
  0x17   :  { %5626 = vmatprep.subr.bf16.mxu1 %v6438_v1  ;;  %5618 = vmatprep.subr.bf16.mxu0 %v6438_v1  ;;  %s7816_s2 = sld [smem:[#allocation5_spill]] }
  0x18   :  { %5630 = vmatprep.mubr.msk.bf16.mxu1 %vm6439_vm0, %v6438_v1  ;;  %5622 = vmatprep.mubr.msk.bf16.mxu0 %vm6439_vm0, %v6438_v1 }
  0x1c   :  { %v6220_v0 = vld [vmem:[%s7814_s9] sm:$0xff]   ;;  %v6221_v2 = vld [vmem:[%s7814_s9 + $0x8] sm:$0xff]  }
  0x1d   :  { %5627 = vmatpush3.bf16.msra.mxu1 %v6220_v0  ;;  %v6222_v3 = vld [vmem:[%s7815_s0] sm:$0xff]   ;;  %v6619_v5 = vld [vmem:[%s7816_s2 + $0x8] sm:$0xff] }
  0x1e   :  { %5628 = vmatprep.subr.bf16.mxu1 %v6438_v1  ;;  %v6614_v4 = vld [vmem:[%s7816_s2] sm:$0xff]  ;;  %5619 = vmatpush3.bf16.msra.mxu0 %v6222_v3  ;;  %v6223_v6 = vld [vmem:[%s7815_s0 + $0x8] sm:$0xff]  }
  0x1f   :  { %v118_v7 = vpack.c.bf16 %v6619_v5, %v6614_v4  ;;  %5620 = vmatprep.subr.bf16.mxu0 %v6438_v1 }
  0x21   :  { %5629 = vmatpush3.bf16.msra.mxu1 %v6221_v2 }
  0x22   :  { %5640 = vmatprep.subr.bf16.mxu1 %v6438_v1  ;;  %5621 = vmatpush3.bf16.msra.mxu0 %v6223_v6 }
  0x23   :  { %5634 = vmatprep.subr.bf16.mxu0 %v6438_v1 }
  0x24   :  { %5631 = vmatmul.mubr.msk.bf16.vlgmr.msra.gmra.mrb[0].mxu1 %vm137_vm1, %v118_v7 }
  0x25   :  { %5642 = vmatprep.mubr.msk.bf16.mxu1 %vm6439_vm0, %v6438_v1  ;;  %5623 = vmatmul.mubr.msk.bf16.vlgmr.msra.gmra.mrb[0].mxu0 %vm137_vm1, %v118_v7 }
  0x26   :  { %5636 = vmatprep.mubr.msk.bf16.mxu0 %vm6439_vm0, %v6438_v1 }
  0x27   :  { %33 = vsyncpa [#allocation3], 0  ;;  %s7817_s30 = sld [smem:[#allocation12_spill]]  ;;  %s7818_s10 = sld [smem:[#allocation10_spill]]  ;;  %vm245_vm2 = vcmask 64512   ;;  %vm368_vm3 = vcmask 1043456  }
  0x28   :  { %s7780_s11 = smov 96   ;;  %s7778_s29 = smov 120   ;;  %vm1149_vm4 = vcmask 130048   ;;  %vm1152_vm5 = vcmask 195584   ;;  %vm2532_vm6 = vcmask 523264  }
  0x29   :  { %s7819_s12 = sld [smem:[#allocation7_spill]]  ;;  %s7776_s8 = smov 88  }
  0x2a   :  { %s7774_s5 = smov 112   ;;  %s7770_s3 = smov 80  }
  0x2b   :  { %s7768_s6 = smov 104   ;;  %s7766_s2 = smov 72  }
  0x2c   :  { %s7764_s7 = smov 8   ;;  %s7762_s1 = smov 16  }
  0x2d   :  { %v5237_v8 = vld [vmem:[%s7817_s30] ss:$0 sm:$0xff]  ;;  %s7828_s26 = smov 120   ;;  %s7829_s27 = smov 88  }
  0x2e   :  { %v5233_v13 = vld [vmem:[%s7818_s10] ss:$0 sm:$0xff]  ;;  %s7832_s4 = smov 104   ;;  %s7833_s28 = smov 72  }
  0x2f   :  { %v6674_v30 = vld [vmem:[%s7819_s12] sm:$0xff]  ;;  %v6679_v32 = vld [vmem:[%s7819_s12 + $0x8] sm:$0xff] }
  0xf7   :  { %v234_v9 = vpop.f32.mrb[0].mxu1 }
  0xf8   :  { %v235_v10 = vadd.f32 %v5237_v8, %v234_v9  ;;  %v5632_v11 = vpop.f32.mrb[1].mxu1  ;;  %v175_v14 = vpop.f32.mrb[0].mxu0 }
  0xf9   :  { %v237_v12 = vpop.f32.mrb[2].mxu1  ;;  %v5624_v18 = vpop.f32.mrb[1].mxu0  ;;  %v176_v21 = vadd.f32 %v5233_v13, %v175_v14 }
  0xfa   :  { %v6643_v15 = vpack.c.bf16 %v235_v10, %v235_v10  ;;  %v238_v16 = vadd.f32 %v5237_v8, %v237_v12  ;;  %v5633_v17 = vpop.f32.mrb[3].mxu1  ;;  %v178_v19 = vpop.f32.mrb[2].mxu0 }
  0xfb   :  { %v5625_v23 = vpop.f32.mrb[3].mxu0  ;;  %v6654_v25 = vpack.c.bf16 %v176_v21, %v176_v21  ;;  %v179_v26 = vadd.f32 %v5233_v13, %v178_v19 }
  0xfc   :  { %v6645_v20 = vpack.c.bf16 %v238_v16, %v238_v16  ;;  %v250_v22 = vsel %vm245_vm2, %v6643_v15, 0 }
  0xfd   :  { %5635 = vmatpush3.bf16.xpose.msra.mxu0 %v250_v22  ;;  %v6659_v27 = vpack.c.bf16 %v179_v26, %v179_v26 }
  0xfe   :  { %413 = vrot.lane.b32.xlu1 %v6645_v20, %s7780_s11  ;;  %v296_v24 = vsel %vm245_vm2, %v6645_v20, 0  ;;  %5646 = vmatprep.subr.bf16.mxu0 %v6438_v1 }
  0xff   :  { %5641 = vmatpush3.bf16.xpose.msra.mxu1 %v296_v24 }
 0x100   :  { %5652 = vmatprep.subr.bf16.mxu1 %v6438_v1 }
 0x102   :  { %464 = vrot.lane.b32.xlu1 %v6643_v15, %s7778_s29 }
 0x104   :  { %5637 = vmatmul.mubr.msk.bf16.vlgmr.msra.gmra.mrb[4].mxu0 %vm245_vm2, %v6654_v25 }
 0x105   :  { %5648 = vmatprep.mubr.msk.bf16.mxu0 %vm6439_vm0, %v6438_v1 }
 0x106   :  { %5643 = vmatmul.mubr.msk.bf16.vlgmr.msra.gmra.mrb[4].mxu1 %vm245_vm2, %v6659_v27 }
 0x107   :  { %5654 = vmatprep.mubr.msk.bf16.mxu1 %vm6439_vm0, %v6438_v1 }
 0x170   :  { %v414_v28 = vpop.permute.xlu1 %413 }
 0x171   :  { %v419_v29 = vsel %vm368_vm3, %v414_v28, 0 }
 0x172   :  { %5653 = vmatpush3.bf16.msra.mxu1 %v419_v29 }
 0x173   :  { %5664 = vmatprep.subr.bf16.mxu1 %v6438_v1 }
 0x174   :  { %v465_v56 = vpop.permute.xlu1 %464 }
 0x175   :  { %v470_v63 = vsel %vm245_vm2, %v465_v56, 0 }
 0x1d7   :  { %v286_v31 = vpop.f32.mrb[4].mxu0 }
 0x1d8   :  { %v287_v33 = vadd.f32 %v286_v31, %v6674_v30  ;;  %v5638_v34 = vpop.f32.mrb[5].mxu0 }
 0x1d9   :  { %v289_v35 = vpop.f32.mrb[6].mxu0  ;;  %v332_v36 = vpop.f32.mrb[4].mxu1 }
 0x1da   :  { %v333_v37 = vadd.f32 %v332_v36, %v6679_v32  ;;  %v5639_v38 = vpop.f32.mrb[7].mxu0  ;;  %v5644_v39 = vpop.f32.mrb[5].mxu1  ;;  %v338_v40 = vsel %vm245_vm2, %v287_v33, -inf }
 0x1db   :  { %v335_v41 = vpop.f32.mrb[6].mxu1  ;;  %339 = vmax.xlane.f32.xlu0 %v338_v40 }
 0x1dc   :  { %v5645_v42 = vpop.f32.mrb[7].mxu1  ;;  %v341_v43 = vsel %vm245_vm2, %v333_v37, -inf }
 0x1df   :  { %342 = vmax.xlane.f32.xlu0 %v341_v43 }
 0x1f5   :  { %363 = vrot.lane.b32.xlu0 %v6643_v15, %s7780_s11  ;;  %s7827_s11 = smov 96  }
 0x1f9   :  { %462 = vrot.lane.b32.xlu0 %v6654_v25, %s7778_s29 }
 0x268   :  { %v340_v44 = vpop.xlane.xlu0 %339 }
 0x269   :  { %v344_v45 = vsub.f32 %v287_v33, %v340_v44 }
 0x26b   :  { %v346_v46 = vmul.f32 1.442695, %v344_v45 }
 0x26c   :  { %v343_v47 = vpop.xlane.xlu0 %342 }
 0x26d   :  { %6258 = vpow2.f32 %v346_v46  ;;  %v345_v48 = vsub.f32 %v333_v37, %v343_v47 }
 0x26f   :  { %v348_v49 = vmul.f32 1.442695, %v345_v48 }
 0x270   :  { %v364_v50 = vpop.permute.xlu0 %363 }
 0x271   :  { %6260 = vpow2.f32 %v348_v49  ;;  %v370_v51 = vsel %vm368_vm3, %v364_v50, 0 }
 0x272   :  { %5647 = vmatpush3.bf16.msra.mxu0 %v370_v51 }
 0x273   :  { %5658 = vmatprep.subr.bf16.mxu0 %v6438_v1 }
 0x274   :  { %v463_v7 = vpop.permute.xlu0 %462 }
 0x277   :  { %v6259_v52 = vpop.eup %6258 }
 0x278   :  { %v350_v53 = vsel %vm245_vm2, %v6259_v52, 0.0 }
 0x279   :  { %351 = vadd.xlane.f32.xlu1 %v350_v53 }
 0x27b   :  { %v6261_v54 = vpop.eup %6260 }
 0x27c   :  { %v353_v55 = vsel %vm245_vm2, %v6261_v54, 0.0 }
 0x27d   :  { %354 = vadd.xlane.f32.xlu1 %v353_v55 }
 0x28e   :  { %515 = vrot.lane.b32.xlu1 %v6645_v20, %s7778_s29 }
 0x292   :  { %513 = vrot.lane.b32.xlu1 %v6659_v27, %s7778_s29  ;;  %s7822_s29 = sld [smem:[#allocation6_spill]] }
 0x306   :  { %v352_v57 = vpop.xlane.xlu1 %351 }
 0x307   :  { %6262 = vrcp.f32 %v352_v57 }
 0x30a   :  { %v355_v58 = vpop.xlane.xlu1 %354 }
 0x30b   :  { %6264 = vrcp.f32 %v355_v58 }
 0x30e   :  { %v516_v2 = vpop.permute.xlu1 %515 }
 0x30f   :  { %v521_v6 = vsel %vm245_vm2, %v516_v2, 0 }
 0x311   :  { %v6263_v59 = vpop.eup %6262 }
 0x312   :  { %v357_v60 = vmul.f32 %v6263_v59, %v6259_v52  ;;  %v514_v8 = vpop.permute.xlu1 %513 }
 0x314   :  { %v360_v61 = vpack.c.bf16 %v357_v60, %v357_v60 }
 0x315   :  { %v6265_v62 = vpop.eup %6264 }
 0x316   :  { %5649 = vmatmul.mubr.msk.bf16.vlgmr.msra.gmra.mrb[8].mxu0 %vm245_vm2, %v360_v61  ;;  %v359_v0 = vmul.f32 %v6265_v62, %v6261_v54 }
 0x317   :  { %5659 = vmatpush3.bf16.xpose.msra.mxu0 %v470_v63  ;;  %5660 = vmatprep.mubr.msk.bf16.mxu0 %vm6439_vm0, %v6438_v1 }
 0x318   :  { %v361_v3 = vpack.c.bf16 %v359_v0, %v359_v0  ;;  %5670 = vmatprep.subr.bf16.mxu0 %v6438_v1 }
 0x31a   :  { %5655 = vmatmul.mubr.msk.bf16.vlgmr.msra.gmra.mrb[8].mxu1 %vm245_vm2, %v361_v3 }
 0x31b   :  { %5665 = vmatpush3.bf16.xpose.msra.mxu1 %v521_v6  ;;  %5666 = vmatprep.mubr.msk.bf16.mxu1 %vm6439_vm0, %v6438_v1 }
 0x31c   :  { %5676 = vmatprep.subr.bf16.mxu1 %v6438_v1 }
 0x31e   :  { %5661 = vmatmul.mubr.msk.bf16.vlgmr.msra.gmra.mrb[12].mxu0 %vm245_vm2, %v463_v7 }
 0x31f   :  { %5672 = vmatprep.mubr.msk.bf16.mxu0 %vm6439_vm0, %v6438_v1 }
 0x322   :  { %5667 = vmatmul.mubr.msk.bf16.vlgmr.msra.gmra.mrb[12].mxu1 %vm245_vm2, %v514_v8 }
 0x323   :  { %5678 = vmatprep.mubr.msk.bf16.mxu1 %vm6439_vm0, %v6438_v1 }
 0x3e9   :  { %v6713_v9 = vpop.f32.mrb[8].mxu0 }
 0x3ea   :  { %v5650_v10 = vpop.f32.mrb[9].mxu0 }
 0x3eb   :  { %v409_v11 = vpop.f32.mrb[10].mxu0 }
 0x3ec   :  { %v5651_v12 = vpop.f32.mrb[11].mxu0 }
 0x3ed   :  { %v6715_v13 = vpop.f32.mrb[8].mxu1 }
 0x3ee   :  { %v5656_v14 = vpop.f32.mrb[9].mxu1 }
 0x3ef   :  { %v458_v16 = vpop.f32.mrb[10].mxu1 }
 0x3f0   :  { %v5657_v17 = vpop.f32.mrb[11].mxu1 }
 0x3f1   :  { %v506_v18 = vpop.f32.mrb[12].mxu0 }
 0x3f2   :  { %v507_v19 = vadd.f32 %v506_v18, %v6674_v30  ;;  %v5662_v21 = vpop.f32.mrb[13].mxu0 }
 0x3f3   :  { %v509_v22 = vpop.f32.mrb[14].mxu0 }
 0x3f4   :  { %v5663_v23 = vpop.f32.mrb[15].mxu0  ;;  %v563_v24 = vsel %vm245_vm2, %v507_v19, -inf }
 0x3f5   :  { %v557_v26 = vpop.f32.mrb[12].mxu1  ;;  %564 = vmax.xlane.f32.xlu0 %v563_v24 }
 0x3f6   :  { %v558_v28 = vadd.f32 %v557_v26, %v6679_v32  ;;  %v5668_v29 = vpop.f32.mrb[13].mxu1 }
 0x3f7   :  { %v560_v31 = vpop.f32.mrb[14].mxu1 }
 0x3f8   :  { %v5669_v33 = vpop.f32.mrb[15].mxu1  ;;  %v566_v34 = vsel %vm245_vm2, %v558_v28, -inf }
 0x3f9   :  { %567 = vmax.xlane.f32.xlu1 %v566_v34 }
 0x40a   :  { %635 = vrot.lane.b32.xlu1 %v6645_v20, %s7776_s8 }
 0x40e   :  { %685 = vrot.lane.b32.xlu1 %v6643_v15, %s7774_s5 }
 0x412   :  { %735 = vrot.lane.b32.xlu1 %v6645_v20, %s7774_s5 }
 0x416   :  { %733 = vrot.lane.b32.xlu1 %v6659_v27, %s7774_s5 }
 0x482   :  { %v565_v35 = vpop.xlane.xlu0 %564 }
 0x483   :  { %v569_v36 = vsub.f32 %v507_v19, %v565_v35 }
 0x485   :  { %v571_v37 = vmul.f32 1.442695, %v569_v36 }
 0x486   :  { %v568_v38 = vpop.xlane.xlu1 %567 }
 0x487   :  { %6266 = vpow2.f32 %v571_v37  ;;  %v570_v39 = vsub.f32 %v558_v28, %v568_v38 }
 0x489   :  { %v573_v40 = vmul.f32 1.442695, %v570_v39 }
 0x48a   :  { %v636_v41 = vpop.permute.xlu1 %635 }
 0x48b   :  { %6268 = vpow2.f32 %v573_v40  ;;  %v641_v42 = vsel %vm368_vm3, %v636_v41, 0 }
 0x48c   :  { %5677 = vmatpush3.bf16.msra.mxu1 %v641_v42 }
 0x48d   :  { %5688 = vmatprep.subr.bf16.mxu1 %v6438_v1 }
 0x48e   :  { %v686_v52 = vpop.permute.xlu1 %685 }
 0x48f   :  { %v691_v58 = vsel %vm245_vm2, %v686_v52, 0 }
 0x491   :  { %v6267_v43 = vpop.eup %6266 }
 0x492   :  { %v575_v44 = vsel %vm245_vm2, %v6267_v43, 0.0  ;;  %v736_v57 = vpop.permute.xlu1 %735 }
 0x493   :  { %576 = vadd.xlane.f32.xlu0 %v575_v44  ;;  %v741_v60 = vsel %vm245_vm2, %v736_v57, 0 }
 0x495   :  { %v6269_v45 = vpop.eup %6268 }
 0x496   :  { %v578_v46 = vsel %vm245_vm2, %v6269_v45, 0.0  ;;  %v734_v62 = vpop.permute.xlu1 %733 }
 0x497   :  { %579 = vadd.xlane.f32.xlu0 %v578_v46 }
 0x4ad   :  { %587 = vrot.lane.b32.xlu0 %v6643_v15, %s7776_s8  ;;  %s7823_s8 = sld [smem:[#allocation17_spill]] }
 0x4b1   :  { %683 = vrot.lane.b32.xlu0 %v6654_v25, %s7774_s5  ;;  %s7831_s5 = smov 80  }
 0x520   :  { %v577_v47 = vpop.xlane.xlu0 %576 }
 0x521   :  { %6270 = vrcp.f32 %v577_v47 }
 0x524   :  { %v580_v48 = vpop.xlane.xlu0 %579 }
 0x525   :  { %6272 = vrcp.f32 %v580_v48 }
 0x528   :  { %v588_v49 = vpop.permute.xlu0 %587 }
 0x529   :  { %v593_v50 = vsel %vm368_vm3, %v588_v49, 0 }
 0x52a   :  { %5671 = vmatpush3.bf16.msra.mxu0 %v593_v50 }
 0x52b   :  { %v6271_v51 = vpop.eup %6270  ;;  %5682 = vmatprep.subr.bf16.mxu0 %v6438_v1 }
 0x52c   :  { %v582_v53 = vmul.f32 %v6271_v51, %v6267_v43  ;;  %v684_v61 = vpop.permute.xlu0 %683 }
 0x52e   :  { %v585_v54 = vpack.c.bf16 %v582_v53, %v582_v53 }
 0x52f   :  { %v6273_v55 = vpop.eup %6272 }
 0x530   :  { %5673 = vmatmul.mubr.msk.bf16.vlgmr.msra.gmra.mrb[16].mxu0 %vm245_vm2, %v585_v54  ;;  %v584_v56 = vmul.f32 %v6273_v55, %v6269_v45 }
 0x531   :  { %5684 = vmatprep.mubr.msk.bf16.mxu0 %vm6439_vm0, %v6438_v1 }
 0x532   :  { %v586_v59 = vpack.c.bf16 %v584_v56, %v584_v56 }
 0x533   :  { %5683 = vmatpush3.bf16.xpose.msra.mxu0 %v691_v58 }
 0x534   :  { %5679 = vmatmul.mubr.msk.bf16.vlgmr.msra.gmra.mrb[16].mxu1 %vm245_vm2, %v586_v59  ;;  %5694 = vmatprep.subr.bf16.mxu0 %v6438_v1 }
 0x535   :  { %5689 = vmatpush3.bf16.xpose.msra.mxu1 %v741_v60  ;;  %5690 = vmatprep.mubr.msk.bf16.mxu1 %vm6439_vm0, %v6438_v1 }
 0x536   :  { %5700 = vmatprep.subr.bf16.mxu1 %v6438_v1 }
 0x53a   :  { %5685 = vmatmul.mubr.msk.bf16.vlgmr.msra.gmra.mrb[20].mxu0 %vm245_vm2, %v684_v61 }
 0x53b   :  { %5696 = vmatprep.mubr.msk.bf16.mxu0 %vm6439_vm0, %v6438_v1 }
 0x53c   :  { %5691 = vmatmul.mubr.msk.bf16.vlgmr.msra.gmra.mrb[20].mxu1 %vm245_vm2, %v734_v62 }
 0x53d   :  { %5702 = vmatprep.mubr.msk.bf16.mxu1 %vm6439_vm0, %v6438_v1 }
 0x603   :  { %v6755_v63 = vpop.f32.mrb[16].mxu0 }
 0x604   :  { %v5674_v0 = vpop.f32.mrb[17].mxu0 }
 0x605   :  { %v632_v2 = vpop.f32.mrb[18].mxu0 }
 0x606   :  { %v5675_v3 = vpop.f32.mrb[19].mxu0 }
 0x607   :  { %v6757_v6 = vpop.f32.mrb[16].mxu1 }
 0x608   :  { %v6160_v7 = vpack.i.bf16 %v6757_v6, %v6755_v63  ;;  %v5680_v8 = vpop.f32.mrb[17].mxu1 }
 0x609   :  { %v680_v10 = vpop.f32.mrb[18].mxu1 }
 0x60a   :  { %v5681_v11 = vpop.f32.mrb[19].mxu1 }
 0x60d   :  { %v727_v12 = vpop.f32.mrb[20].mxu0 }
 0x60e   :  { %v728_v14 = vadd.f32 %v727_v12, %v6674_v30  ;;  %v5686_v16 = vpop.f32.mrb[21].mxu0 }
 0x60f   :  { %v730_v17 = vpop.f32.mrb[22].mxu0  ;;  %v777_v18 = vpop.f32.mrb[20].mxu1 }
 0x610   :  { %v778_v19 = vadd.f32 %v777_v18, %v6679_v32  ;;  %v5687_v21 = vpop.f32.mrb[23].mxu0  ;;  %v5692_v22 = vpop.f32.mrb[21].mxu1  ;;  %v783_v23 = vsel %vm245_vm2, %v728_v14, -inf }
 0x611   :  { %v780_v24 = vpop.f32.mrb[22].mxu1  ;;  %784 = vmax.xlane.f32.xlu0 %v783_v23 }
 0x612   :  { %v5693_v26 = vpop.f32.mrb[23].mxu1  ;;  %v786_v28 = vsel %vm245_vm2, %v778_v19, -inf }
 0x613   :  { %787 = vmax.xlane.f32.xlu1 %v786_v28 }
 0x624   :  { %855 = vrot.lane.b32.xlu1 %v6645_v20, %s7770_s3 }
 0x628   :  { %905 = vrot.lane.b32.xlu1 %v6643_v15, %s7768_s6 }
 0x62c   :  { %955 = vrot.lane.b32.xlu1 %v6645_v20, %s7768_s6 }
 0x630   :  { %953 = vrot.lane.b32.xlu1 %v6659_v27, %s7768_s6 }
 0x69e   :  { %v785_v29 = vpop.xlane.xlu0 %784 }
 0x69f   :  { %v789_v31 = vsub.f32 %v728_v14, %v785_v29 }
 0x6a0   :  { %v788_v33 = vpop.xlane.xlu1 %787 }
 0x6a1   :  { %v791_v34 = vmul.f32 1.442695, %v789_v31  ;;  %v790_v35 = vsub.f32 %v778_v19, %v788_v33 }
 0x6a3   :  { %6274 = vpow2.f32 %v791_v34  ;;  %v793_v36 = vmul.f32 1.442695, %v790_v35 }
 0x6a4   :  { %v856_v37 = vpop.permute.xlu1 %855 }
 0x6a5   :  { %6276 = vpow2.f32 %v793_v36  ;;  %v861_v38 = vsel %vm368_vm3, %v856_v37, 0 }
 0x6a6   :  { %5701 = vmatpush3.bf16.msra.mxu1 %v861_v38 }
 0x6a7   :  { %5712 = vmatprep.subr.bf16.mxu1 %v6438_v1 }
 0x6a8   :  { %v906_v47 = vpop.permute.xlu1 %905 }
 0x6ac   :  { %v956_v52 = vpop.permute.xlu1 %955 }
 0x6ad   :  { %v6275_v39 = vpop.eup %6274  ;;  %v961_v54 = vsel %vm245_vm2, %v956_v52, 0 }
 0x6ae   :  { %v795_v40 = vsel %vm245_vm2, %v6275_v39, 0.0 }
 0x6af   :  { %v6277_v41 = vpop.eup %6276  ;;  %796 = vadd.xlane.f32.xlu0 %v795_v40 }
 0x6b0   :  { %v798_v27 = vsel %vm245_vm2, %v6277_v41, 0.0  ;;  %v954_v56 = vpop.permute.xlu1 %953 }
 0x6b3   :  { %799 = vadd.xlane.f32.xlu0 %v798_v27 }
 0x6c9   :  { %807 = vrot.lane.b32.xlu0 %v6643_v15, %s7770_s3  ;;  %s7772_s3 = smov 24  }
 0x6cd   :  { %903 = vrot.lane.b32.xlu0 %v6654_v25, %s7768_s6  ;;  %v911_v25 = vsel %vm245_vm2, %v906_v47, 0  ;;  %s7825_s6 = sld [smem:[#allocation16_spill]] }
 0x73c   :  { %v797_v42 = vpop.xlane.xlu0 %796 }
 0x73d   :  { %6278 = vrcp.f32 %v797_v42 }
 0x740   :  { %v800_v43 = vpop.xlane.xlu0 %799 }
 0x741   :  { %6280 = vrcp.f32 %v800_v43 }
 0x744   :  { %v808_v44 = vpop.permute.xlu0 %807 }
 0x745   :  { %v813_v45 = vsel %vm368_vm3, %v808_v44, 0 }
 0x746   :  { %5695 = vmatpush3.bf16.msra.mxu0 %v813_v45 }
 0x747   :  { %v6279_v46 = vpop.eup %6278  ;;  %5706 = vmatprep.subr.bf16.mxu0 %v6438_v1 }
 0x748   :  { %v802_v48 = vmul.f32 %v6279_v46, %v6275_v39  ;;  %v904_v55 = vpop.permute.xlu0 %903 }
 0x74a   :  { %v805_v49 = vpack.c.bf16 %v802_v48, %v802_v48 }
 0x74b   :  { %v6281_v50 = vpop.eup %6280 }
 0x74c   :  { %5697 = vmatmul.mubr.msk.bf16.vlgmr.msra.gmra.mrb[24].mxu0 %vm245_vm2, %v805_v49  ;;  %v804_v51 = vmul.f32 %v6281_v50, %v6277_v41 }
 0x74d   :  { %5708 = vmatprep.mubr.msk.bf16.mxu0 %vm6439_vm0, %v6438_v1 }
 0x74e   :  { %v806_v53 = vpack.c.bf16 %v804_v51, %v804_v51 }
 0x74f   :  { %5707 = vmatpush3.bf16.xpose.msra.mxu0 %v911_v25 }
 0x750   :  { %5703 = vmatmul.mubr.msk.bf16.vlgmr.msra.gmra.mrb[24].mxu1 %vm245_vm2, %v806_v53  ;;  %5718 = vmatprep.subr.bf16.mxu0 %v6438_v1 }
 0x751   :  { %5713 = vmatpush3.bf16.xpose.msra.mxu1 %v961_v54  ;;  %5714 = vmatprep.mubr.msk.bf16.mxu1 %vm6439_vm0, %v6438_v1 }
 0x752   :  { %5724 = vmatprep.subr.bf16.mxu1 %v6438_v1 }
 0x756   :  { %5709 = vmatmul.mubr.msk.bf16.vlgmr.msra.gmra.mrb[28].mxu0 %vm245_vm2, %v904_v55 }
 0x757   :  { %5720 = vmatprep.mubr.msk.bf16.mxu0 %vm6439_vm0, %v6438_v1 }
 0x758   :  { %5715 = vmatmul.mubr.msk.bf16.vlgmr.msra.gmra.mrb[28].mxu1 %vm245_vm2, %v954_v56 }
 0x759   :  { %5726 = vmatprep.mubr.msk.bf16.mxu1 %vm6439_vm0, %v6438_v1 }
 0x81f   :  { %v849_v57 = vpop.f32.mrb[24].mxu0 }
 0x820   :  { %v5698_v58 = vpop.f32.mrb[25].mxu0 }
 0x821   :  { %v852_v59 = vpop.f32.mrb[26].mxu0 }
 0x822   :  { %v5699_v60 = vpop.f32.mrb[27].mxu0 }
 0x823   :  { %v897_v61 = vpop.f32.mrb[24].mxu1 }
 0x824   :  { %v6165_v62 = vpack.i.bf16 %v897_v61, %v849_v57  ;;  %v5704_v0 = vpop.f32.mrb[25].mxu1 }
 0x825   :  { %v900_v2 = vpop.f32.mrb[26].mxu1 }
 0x826   :  { %v5705_v3 = vpop.f32.mrb[27].mxu1 }
 0x829   :  { %v947_v8 = vpop.f32.mrb[28].mxu0 }
 0x82a   :  { %v948_v10 = vadd.f32 %v947_v8, %v6674_v30  ;;  %v5710_v11 = vpop.f32.mrb[29].mxu0 }
 0x82b   :  { %v950_v12 = vpop.f32.mrb[30].mxu0  ;;  %v997_v14 = vpop.f32.mrb[28].mxu1 }
 0x82c   :  { %v998_v16 = vadd.f32 %v997_v14, %v6679_v32  ;;  %v5711_v17 = vpop.f32.mrb[31].mxu0  ;;  %v5716_v18 = vpop.f32.mrb[29].mxu1  ;;  %v1003_v19 = vsel %vm245_vm2, %v948_v10, -inf }
 0x82d   :  { %v1000_v21 = vpop.f32.mrb[30].mxu1  ;;  %1004 = vmax.xlane.f32.xlu0 %v1003_v19 }
 0x82e   :  { %v5717_v22 = vpop.f32.mrb[31].mxu1  ;;  %v1006_v23 = vsel %vm245_vm2, %v998_v16, -inf }
 0x82f   :  { %1007 = vmax.xlane.f32.xlu1 %v1006_v23 }
 0x840   :  { %1075 = vrot.lane.b32.xlu1 %v6645_v20, %s7766_s2 }
 0x844   :  { %6161 = vrot.lane.b32.xlu1 %v6160_v7, %s7764_s7  ;;  %s7820_s7 = sld [smem:[#allocation13_spill]] }
 0x848   :  { %6166 = vrot.lane.b32.xlu1 %v6165_v62, %s7762_s1  ;;  %s7821_s1 = sld [smem:[#allocation14_spill]] }
 0x84a   :  { %v6224_v42 = vld [vmem:[%s7820_s7] sm:$0xff]   ;;  %v6225_v43 = vld [vmem:[%s7820_s7 + $0x8] sm:$0xff]  }
 0x8ba   :  { %v1005_v30 = vpop.xlane.xlu0 %1004 }
 0x8bb   :  { %v1009_v32 = vsub.f32 %v948_v10, %v1005_v30 }
 0x8bc   :  { %v1008_v24 = vpop.xlane.xlu1 %1007 }
 0x8bd   :  { %v1011_v26 = vmul.f32 1.442695, %v1009_v32  ;;  %v1010_v28 = vsub.f32 %v998_v16, %v1008_v24 }
 0x8bf   :  { %6282 = vpow2.f32 %v1011_v26  ;;  %v1013_v29 = vmul.f32 1.442695, %v1010_v28 }
 0x8c0   :  { %v1076_v31 = vpop.permute.xlu1 %1075 }
 0x8c1   :  { %6284 = vpow2.f32 %v1013_v29  ;;  %v1081_v20 = vsel %vm368_vm3, %v1076_v31, 0 }
 0x8c2   :  { %5725 = vmatpush3.bf16.msra.mxu1 %v1081_v20 }
 0x8c3   :  { %5738 = vmatprep.subr.bf16.mxu1 %v6438_v1 }
 0x8c4   :  { %v6162_v25 = vpop.permute.xlu1 %6161 }
 0x8c5   :  { %v6164_v54 = vunpack.i.h.bf16 %v6162_v25  ;;  %v6163_v55 = vunpack.i.l.bf16 %v6162_v25 }
 0x8c7   :  { %v1148_v59 = vsel %vm245_vm2, %v6715_v13, %v6164_v54  ;;  %v1147_v60 = vsel %vm245_vm2, %v6713_v9, %v6163_v55  ;;  %v5257_v13 = vld [vmem:[%s7821_s1] ss:$0 sm:$0xff]  ;;  %s7840_s1 = sld [smem:[#allocation17_spill]] }
 0x8c8   :  { %v6167_v53 = vpop.permute.xlu1 %6166 }
 0x8c9   :  { %v6283_v33 = vpop.eup %6282  ;;  %v6169_v56 = vunpack.i.h.bf16 %v6167_v53  ;;  %v6168_v57 = vunpack.i.l.bf16 %v6167_v53  ;;  %v5267_v53 = vld [vmem:[%s7735_s15] ss:$0 sm:$0xff]  ;;  %s7836_s15 = smov 24  }
 0x8ca   :  { %v1015_v63 = vsel %vm245_vm2, %v6283_v33, 0.0 }
 0x8cb   :  { %v6285_v6 = vpop.eup %6284  ;;  %1016 = vadd.xlane.f32.xlu0 %v1015_v63  ;;  %v1151_v0 = vsel %vm1149_vm4, %v1148_v59, %v6169_v56  ;;  %v1150_v2 = vsel %vm1149_vm4, %v1147_v60, %v6168_v57  ;;  %v93_v63 = vld [vmem:[%s7822_s29] sm:$0xff] }
 0x8cc   :  { %v1018_v7 = vsel %vm245_vm2, %v6285_v6, 0.0 }
 0x8cf   :  { %1019 = vadd.xlane.f32.xlu0 %v1018_v7 }
 0x8e5   :  { %1027 = vrot.lane.b32.xlu0 %v6643_v15, %s7766_s2  ;;  %s7826_s2 = sld [smem:[#allocation8_spill]] }
 0x958   :  { %v1017_v34 = vpop.xlane.xlu0 %1016 }
 0x959   :  { %6286 = vrcp.f32 %v1017_v34  ;;  %v95_v34 = vld [vmem:[%s7822_s29 + $0x10] sm:$0xff] }
 0x95c   :  { %v1020_v35 = vpop.xlane.xlu0 %1019 }
 0x95d   :  { %6288 = vrcp.f32 %v1020_v35  ;;  %v96_v35 = vld [vmem:[%s7822_s29 + $0x18] sm:$0xff] }
 0x960   :  { %v1028_v36 = vpop.permute.xlu0 %1027 }
 0x961   :  { %v1033_v37 = vsel %vm368_vm3, %v1028_v36, 0  ;;  %v6870_v36 = vpack.c.bf16 %v96_v35, %v95_v34 }
 0x962   :  { %5719 = vmatpush3.bf16.msra.mxu0 %v1033_v37  ;;  %v6228_v37 = vld [vmem:[%s7823_s8] sm:$0xff]  }
 0x963   :  { %v6287_v38 = vpop.eup %6286  ;;  %5730 = vmatprep.subr.bf16.mxu0 %v6438_v1 }
 0x964   :  { %v1022_v39 = vmul.f32 %v6287_v38, %v6283_v33  ;;  %v6227_v33 = vld [vmem:[%s7734_s14 + $0x8] sm:$0xff]  }
 0x965   :  { %v6229_v38 = vld [vmem:[%s7823_s8 + $0x8] sm:$0xff]   ;;  %s7837_s8 = smov 24  }
 0x966   :  { %v1025_v40 = vpack.c.bf16 %v1022_v39, %v1022_v39 }
 0x967   :  { %v6289_v41 = vpop.eup %6288 }
 0x968   :  { %5721 = vmatmul.mubr.msk.bf16.vlgmr.msra.gmra.mrb[32].mxu0 %vm245_vm2, %v1025_v40  ;;  %v1024_v27 = vmul.f32 %v6289_v41, %v6285_v6  ;;  %v94_v6 = vld [vmem:[%s7822_s29 + $0x8] sm:$0xff]  ;;  %s7830_s29 = smov 112  }
 0x969   :  { %5734 = vmatprep.mubr.msk.bf16.mxu0 %vm6439_vm0, %v6438_v1  ;;  %5731 = vmatpush3.bf16.msra.mxu0 %v6224_v42  ;;  %v6862_v7 = vpack.c.bf16 %v94_v6, %v93_v63 }
 0x96a   :  { %v1026_v15 = vpack.c.bf16 %v1024_v27, %v1024_v27  ;;  %5732 = vmatprep.subr.bf16.mxu0 %v6438_v1 }
 0x96c   :  { %5727 = vmatmul.mubr.msk.bf16.vlgmr.msra.gmra.mrb[32].mxu1 %vm245_vm2, %v1026_v15 }
 0x96d   :  { %5742 = vmatprep.mubr.msk.bf16.mxu1 %vm6439_vm0, %v6438_v1  ;;  %5733 = vmatpush3.bf16.msra.mxu0 %v6225_v43 }
 0x96e   :  { %5739 = vmatpush3.bf16.msra.mxu1 %v6228_v37 }
 0x96f   :  { %5740 = vmatprep.subr.bf16.mxu1 %v6438_v1 }
 0x972   :  { %5741 = vmatpush3.bf16.msra.mxu1 %v6229_v38 }
 0x973   :  { %5754 = vmatprep.subr.bf16.mxu1 %v6438_v1 }
 0xa3b   :  { %v1069_v44 = vpop.f32.mrb[32].mxu0 }
 0xa3c   :  { %v5722_v45 = vpop.f32.mrb[33].mxu0 }
 0xa3d   :  { %v1072_v46 = vpop.f32.mrb[34].mxu0 }
 0xa3e   :  { %v5723_v47 = vpop.f32.mrb[35].mxu0 }
 0xa3f   :  { %v1117_v48 = vpop.f32.mrb[32].mxu1 }
 0xa40   :  { %v6170_v49 = vpack.i.bf16 %v1117_v48, %v1069_v44  ;;  %v5728_v50 = vpop.f32.mrb[33].mxu1 }
 0xa41   :  { %v1120_v51 = vpop.f32.mrb[34].mxu1 }
 0xa42   :  { %v5729_v52 = vpop.f32.mrb[35].mxu1  ;;  %6171 = vrot.lane.b32.xlu0 %v6170_v49, %s7772_s3  ;;  %s7824_s3 = sld [smem:[#allocation15_spill]]  ;;  %v5262_v49 = vld [vmem:[%s7825_s6] ss:$0 sm:$0xff] }
 0xa48   :  { %v5261_v45 = vld [vmem:[%s7824_s3] ss:$0 sm:$0xff]  ;;  %s7845_s3 = sld [smem:[#allocation8_spill]] }
 0xab4   :  { %v6172_v58 = vpop.permute.xlu0 %6171 }
 0xab5   :  { %v6174_v61 = vunpack.i.h.bf16 %v6172_v58  ;;  %v6173_v62 = vunpack.i.l.bf16 %v6172_v58 }
 0xab7   :  { %v1154_v3 = vsel %vm1152_vm5, %v1151_v0, %v6174_v61  ;;  %v1153_v8 = vsel %vm1152_vm5, %v1150_v2, %v6173_v62 }
 0xab8   :  { %v1155_v10 = vpack.c.bf16 %v1154_v3, %v1153_v8  ;;  %v5263_v8 = vld [vmem:[%s7733_s13] ss:$0 sm:$0xff]  ;;  %s7835_s13 = smov 16  }
 0xaba   :  { %5735 = vmatmul.mubr.msk.bf16.vlgmr.msra.gmra.mrb[36].mxu0 %vm137_vm1, %v1155_v10 }
 0xabb   :  { %5750 = vmatprep.mubr.msk.bf16.mxu0 %vm137_vm1, %v6862_v7 }
 0xb8d   :  { %v1211_v11 = vpop.f32.mrb[36].mxu0 }
 0xb8e   :  { %v1212_v12 = vadd.f32 %v5257_v13, %v1211_v11  ;;  %v5736_v9 = vpop.f32.mrb[37].mxu0 }
 0xb8f   :  { %v1214_v14 = vpop.f32.mrb[38].mxu0 }
 0xb90   :  { %v1215_v16 = vadd.f32 %v5257_v13, %v1214_v14  ;;  %v5737_v17 = vpop.f32.mrb[39].mxu0  ;;  %v1218_v18 = vadd.f32 %v1212_v12, %v6614_v4 }
 0xb92   :  { %v1220_v19 = vsel %vm137_vm1, %v1218_v18, 0.0  ;;  %v1219_v21 = vadd.f32 %v1215_v16, %v6619_v5  ;;  %v6226_v5 = vld [vmem:[%s7734_s14] sm:$0xff]   ;;  %s7838_s14 = sld [smem:[#allocation14_spill]] }
 0xb93   :  { %1221 = vadd.xlane.f32.xlu1 %v1220_v19  ;;  %5746 = vmatprep.subr.bf16.mxu0 %v6226_v5 }
 0xb94   :  { %v1223_v22 = vsel %vm137_vm1, %v1219_v21, 0.0  ;;  %5747 = vmatpush3.bf16.msra.mxu0 %v6226_v5 }
 0xb95   :  { %1224 = vadd.xlane.f32.xlu0 %v1223_v22  ;;  %5748 = vmatprep.subr.bf16.mxu0 %v6227_v33 }
 0xb98   :  { %5749 = vmatpush3.bf16.msra.mxu0 %v6227_v33 }
 0xb99   :  { %5760 = vmatprep.subr.bf16.mxu0 %v6438_v1 }
 0xb9b   :  { %5751 = vmatmul.mubr.msk.bf16.vlgmr.msra.gmra.mrb[40].mxu0 %vm137_vm1, %v6870_v36 }
 0xb9c   :  { %5762 = vmatprep.mubr.msk.bf16.mxu0 %vm6439_vm0, %v6438_v1 }
 0xc20   :  { %v1222_v23 = vpop.xlane.xlu1 %1221 }
 0xc21   :  { %v1227_v30 = vmul.f32 0.03125, %v1222_v23 }
 0xc22   :  { %v1225_v32 = vpop.xlane.xlu0 %1224 }
 0xc23   :  { %v1229_v24 = vsub.f32 %v1218_v18, %v1227_v30  ;;  %v1228_v26 = vmul.f32 0.03125, %v1225_v32  ;;  %v6933_v18 = vld [vmem:[%s7826_s2] sm:$0xff] }
 0xc25   :  { %v1230_v28 = vsub.f32 %v1219_v21, %v1228_v26  ;;  %v1231_v29 = vmul.f32 %v1229_v24, %v1229_v24  ;;  %v6938_v21 = vld [vmem:[%s7826_s2 + $0x8] sm:$0xff]  ;;  %s7834_s2 = smov 8  }
 0xc27   :  { %v1233_v31 = vsel %vm137_vm1, %v1231_v29, 0.0  ;;  %v1232_v20 = vmul.f32 %v1230_v28, %v1230_v28 }
 0xc28   :  { %1234 = vadd.xlane.f32.xlu0 %v1233_v31 }
 0xc29   :  { %v1236_v4 = vsel %vm137_vm1, %v1232_v20, 0.0 }
 0xc2c   :  { %1237 = vadd.xlane.f32.xlu0 %v1236_v4 }
 0xc6e   :  { %v5752_v54 = vpop.f32.mrb[40].mxu0 }
 0xc6f   :  { %v1413_v55 = vadd.f32 %v5752_v54, %v5267_v53  ;;  %v1404_v56 = vpop.f32.mrb[41].mxu0 }
 0xc70   :  { %v1405_v57 = vadd.f32 %v5267_v53, %v1404_v56  ;;  %v5753_v58 = vpop.f32.mrb[42].mxu0 }
 0xc71   :  { %v1416_v59 = vadd.f32 %v5753_v58, %v5267_v53  ;;  %v1407_v60 = vpop.f32.mrb[43].mxu0 }
 0xc72   :  { %v1408_v61 = vadd.f32 %v5267_v53, %v1407_v60 }
 0xc73   :  { %v6905_v62 = vpack.c.bf16 %v1416_v59, %v1413_v55 }
 0xc74   :  { %v6907_v0 = vpack.c.bf16 %v1408_v61, %v1405_v57 }
 0xc75   :  { %v1473_v2 = vsel %vm245_vm2, %v6905_v62, 0 }
 0xc76   :  { %v1427_v3 = vsel %vm245_vm2, %v6907_v0, 0  ;;  %5761 = vmatpush3.bf16.xpose.msra.mxu0 %v1473_v2 }
 0xc77   :  { %5772 = vmatprep.subr.bf16.mxu0 %v6438_v1 }
 0xcb5   :  { %v1235_v39 = vpop.xlane.xlu0 %1234 }
 0xcb6   :  { %v1240_v40 = vmul.f32 0.032258064, %v1235_v39 }
 0xcb8   :  { %v1242_v41 = vadd.f32 1e-10, %v1240_v40 }
 0xcb9   :  { %v1238_v27 = vpop.xlane.xlu0 %1237 }
 0xcba   :  { %6290 = vrsqrt.f32 %v1242_v41  ;;  %v1241_v15 = vmul.f32 0.032258064, %v1238_v27 }
 0xcbc   :  { %v1243_v42 = vadd.f32 1e-10, %v1241_v15 }
 0xcbe   :  { %6292 = vrsqrt.f32 %v1243_v42 }
 0xcc4   :  { %v6291_v43 = vpop.eup %6290 }
 0xcc5   :  { %v1246_v44 = vmul.f32 %v6291_v43, %v1229_v24 }
 0xcc7   :  { %v1254_v47 = vmul.f32 %v5261_v45, %v1246_v44 }
 0xcc8   :  { %v6293_v46 = vpop.eup %6292 }
 0xcc9   :  { %v1247_v48 = vmul.f32 %v6293_v46, %v1230_v28  ;;  %v6893_v51 = vadd.f32 %v5262_v49, %v1254_v47 }
 0xccb   :  { %v1255_v50 = vmul.f32 %v5261_v45, %v1247_v48 }
 0xccd   :  { %v6895_v52 = vadd.f32 %v5262_v49, %v1255_v50 }
 0xccf   :  { %v1281_v25 = vpack.c.bf16 %v6895_v52, %v6893_v51 }
 0xcd1   :  { %5743 = vmatmul.mubr.msk.bf16.vlgmr.msra.gmra.mrb[36].mxu1 %vm137_vm1, %v1281_v25 }
 0xcd2   :  { %5756 = vmatprep.mubr.msk.bf16.mxu1 %vm6439_vm0, %v6438_v1  ;;  %5755 = vmatpush3.bf16.xpose.msra.mxu1 %v1427_v3 }
 0xcd3   :  { %5766 = vmatprep.subr.bf16.mxu1 %v6438_v1 }
 0xda4   :  { %v1337_v10 = vpop.f32.mrb[36].mxu1 }
 0xda5   :  { %v1338_v13 = vadd.f32 %v5263_v8, %v1337_v10  ;;  %v5744_v11 = vpop.f32.mrb[37].mxu1 }
 0xda6   :  { %v1340_v12 = vpop.f32.mrb[38].mxu1 }
 0xda7   :  { %v6918_v9 = vpack.c.bf16 %v1338_v13, %v1338_v13  ;;  %v1341_v14 = vadd.f32 %v5263_v8, %v1340_v12  ;;  %v5745_v16 = vpop.f32.mrb[39].mxu1 }
 0xda9   :  { %v6920_v17 = vpack.c.bf16 %v1341_v14, %v1341_v14  ;;  %5757 = vmatmul.mubr.msk.bf16.vlgmr.msra.gmra.mrb[40].mxu1 %vm245_vm2, %v6918_v9 }
 0xdaa   :  { %5768 = vmatprep.mubr.msk.bf16.mxu1 %vm6439_vm0, %v6438_v1 }
 0xdab   :  { %5763 = vmatmul.mubr.msk.bf16.vlgmr.msra.gmra.mrb[44].mxu0 %vm245_vm2, %v6920_v17 }
 0xdac   :  { %5774 = vmatprep.mubr.msk.bf16.mxu0 %vm6439_vm0, %v6438_v1 }
 0xe7c   :  { %v1463_v19 = vpop.f32.mrb[40].mxu1 }
 0xe7d   :  { %v1464_v22 = vadd.f32 %v1463_v19, %v6933_v18  ;;  %v5758_v23 = vpop.f32.mrb[41].mxu1 }
 0xe7e   :  { %v1466_v30 = vpop.f32.mrb[42].mxu1  ;;  %v1509_v32 = vpop.f32.mrb[44].mxu0 }
 0xe7f   :  { %v1510_v24 = vadd.f32 %v1509_v32, %v6938_v21  ;;  %v5759_v26 = vpop.f32.mrb[43].mxu1  ;;  %v5764_v28 = vpop.f32.mrb[45].mxu0  ;;  %v1515_v29 = vsel %vm1149_vm4, %v1464_v22, -inf }
 0xe80   :  { %v1512_v31 = vpop.f32.mrb[46].mxu0  ;;  %1516 = vmax.xlane.f32.xlu1 %v1515_v29 }
 0xe81   :  { %v5765_v20 = vpop.f32.mrb[47].mxu0  ;;  %v1518_v4 = vsel %vm1149_vm4, %v1510_v24, -inf }
 0xe82   :  { %1519 = vmax.xlane.f32.xlu0 %v1518_v4 }
 0xe91   :  { %1540 = vrot.lane.b32.xlu1 %v6907_v0, %s7827_s11 }
 0xf0d   :  { %v1517_v5 = vpop.xlane.xlu1 %1516 }
 0xf0e   :  { %v1521_v33 = vsub.f32 %v1464_v22, %v1517_v5 }
 0xf0f   :  { %v1520_v63 = vpop.xlane.xlu0 %1519 }
 0xf10   :  { %v1523_v6 = vmul.f32 1.442695, %v1521_v33  ;;  %v1522_v34 = vsub.f32 %v1510_v24, %v1520_v63 }
 0xf11   :  { %v1541_v35 = vpop.permute.xlu1 %1540 }
 0xf12   :  { %6294 = vpow2.f32 %v1523_v6  ;;  %v1525_v37 = vmul.f32 1.442695, %v1522_v34  ;;  %5767 = vmatpush3.bf16.msra.mxu1 %v1541_v35 }
 0xf13   :  { %5778 = vmatprep.subr.bf16.mxu1 %v6438_v1 }
 0xf14   :  { %6296 = vpow2.f32 %v1525_v37 }
 0xf1c   :  { %v6295_v38 = vpop.eup %6294 }
 0xf1d   :  { %v1527_v39 = vsel %vm1149_vm4, %v6295_v38, 0.0 }
 0xf1e   :  { %v6297_v40 = vpop.eup %6296  ;;  %1528 = vadd.xlane.f32.xlu1 %v1527_v39 }
 0xf1f   :  { %v1530_v41 = vsel %vm1149_vm4, %v6297_v40, 0.0 }
 0xf20   :  { %1531 = vadd.xlane.f32.xlu0 %v1530_v41 }
 0xf2f   :  { %1636 = vrot.lane.b32.xlu1 %v6907_v0, %s7828_s26 }
 0xf33   :  { %1687 = vrot.lane.b32.xlu1 %v6905_v62, %s7828_s26 }
 0xf36   :  { %1587 = vrot.lane.b32.xlu0 %v6905_v62, %s7827_s11 }
 0xf37   :  { %1634 = vrot.lane.b32.xlu1 %v6918_v9, %s7828_s26 }
 0xf3a   :  { %1685 = vrot.lane.b32.xlu0 %v6920_v17, %s7828_s26 }
 0xfab   :  { %v1529_v27 = vpop.xlane.xlu1 %1528 }
 0xfac   :  { %6298 = vrcp.f32 %v1529_v27 }
 0xfad   :  { %v1532_v15 = vpop.xlane.xlu0 %1531 }
 0xfae   :  { %6300 = vrcp.f32 %v1532_v15 }
 0xfaf   :  { %v1637_v43 = vpop.permute.xlu1 %1636 }
 0xfb0   :  { %v1642_v50 = vsel %vm245_vm2, %v1637_v43, 0 }
 0xfb1   :  { %v1588_v42 = vpop.permute.xlu0 %1587 }
 0xfb2   :  { %5773 = vmatpush3.bf16.msra.mxu0 %v1588_v42 }
 0xfb3   :  { %5784 = vmatprep.subr.bf16.mxu0 %v6438_v1  ;;  %v1688_v49 = vpop.permute.xlu1 %1687 }
 0xfb4   :  { %v1693_v53 = vsel %vm245_vm2, %v1688_v49, 0 }
 0xfb5   :  { %v1686_v55 = vpop.permute.xlu0 %1685 }
 0xfb6   :  { %v6299_v44 = vpop.eup %6298 }
 0xfb7   :  { %v1534_v45 = vmul.f32 %v6299_v44, %v6295_v38  ;;  %v1635_v54 = vpop.permute.xlu1 %1634 }
 0xfb8   :  { %v6301_v46 = vpop.eup %6300 }
 0xfb9   :  { %v1537_v47 = vpack.c.bf16 %v1534_v45, %v1534_v45  ;;  %v1536_v48 = vmul.f32 %v6301_v46, %v6297_v40 }
 0xfbb   :  { %5769 = vmatmul.mubr.msk.bf16.vlgmr.msra.gmra.mrb[44].mxu1 %vm1149_vm4, %v1537_v47  ;;  %v1538_v25 = vpack.c.bf16 %v1536_v48, %v1536_v48 }
 0xfbc   :  { %5779 = vmatpush3.bf16.xpose.msra.mxu1 %v1642_v50  ;;  %5780 = vmatprep.mubr.msk.bf16.mxu1 %vm6439_vm0, %v6438_v1 }
 0xfbd   :  { %5775 = vmatmul.mubr.msk.bf16.vlgmr.msra.gmra.mrb[48].mxu0 %vm1149_vm4, %v1538_v25  ;;  %5790 = vmatprep.subr.bf16.mxu1 %v6438_v1 }
 0xfbe   :  { %5785 = vmatpush3.bf16.xpose.msra.mxu0 %v1693_v53  ;;  %5786 = vmatprep.mubr.msk.bf16.mxu0 %vm6439_vm0, %v6438_v1 }
 0xfbf   :  { %5796 = vmatprep.subr.bf16.mxu0 %v6438_v1 }
 0xfc3   :  { %5781 = vmatmul.mubr.msk.bf16.vlgmr.msra.gmra.mrb[48].mxu1 %vm245_vm2, %v1635_v54 }
 0xfc4   :  { %5792 = vmatprep.mubr.msk.bf16.mxu1 %vm6439_vm0, %v6438_v1 }
 0xfc5   :  { %5787 = vmatmul.mubr.msk.bf16.vlgmr.msra.gmra.mrb[52].mxu0 %vm245_vm2, %v1686_v55 }
 0xfc6   :  { %5798 = vmatprep.mubr.msk.bf16.mxu0 %vm6439_vm0, %v6438_v1 }
0x108e   :  { %v6976_v56 = vpop.f32.mrb[44].mxu1 }
0x108f   :  { %v5770_v57 = vpop.f32.mrb[45].mxu1 }
0x1090   :  { %v1583_v58 = vpop.f32.mrb[46].mxu1  ;;  %v6978_v59 = vpop.f32.mrb[48].mxu0 }
0x1091   :  { %v5771_v60 = vpop.f32.mrb[47].mxu1  ;;  %v5776_v61 = vpop.f32.mrb[49].mxu0 }
0x1092   :  { %v1630_v2 = vpop.f32.mrb[50].mxu0 }
0x1093   :  { %v5777_v3 = vpop.f32.mrb[51].mxu0 }
0x1096   :  { %v1678_v8 = vpop.f32.mrb[48].mxu1 }
0x1097   :  { %v1679_v10 = vadd.f32 %v1678_v8, %v6933_v18  ;;  %v5782_v13 = vpop.f32.mrb[49].mxu1 }
0x1098   :  { %v1681_v11 = vpop.f32.mrb[50].mxu1  ;;  %v1729_v12 = vpop.f32.mrb[52].mxu0 }
0x1099   :  { %v1730_v14 = vadd.f32 %v1729_v12, %v6938_v21  ;;  %v5783_v16 = vpop.f32.mrb[51].mxu1  ;;  %v5788_v19 = vpop.f32.mrb[53].mxu0  ;;  %v1735_v22 = vsel %vm1149_vm4, %v1679_v10, -inf }
0x109a   :  { %v1732_v23 = vpop.f32.mrb[54].mxu0  ;;  %1736 = vmax.xlane.f32.xlu1 %v1735_v22 }
0x109b   :  { %v5789_v30 = vpop.f32.mrb[55].mxu0  ;;  %v1738_v32 = vsel %vm1149_vm4, %v1730_v14, -inf }
0x109c   :  { %1739 = vmax.xlane.f32.xlu0 %v1738_v32 }
0x10ab   :  { %1759 = vrot.lane.b32.xlu1 %v6907_v0, %s7829_s27 }
0x10af   :  { %1853 = vrot.lane.b32.xlu1 %v6907_v0, %s7830_s29 }
0x10b3   :  { %1903 = vrot.lane.b32.xlu1 %v6905_v62, %s7830_s29 }
0x10b7   :  { %1851 = vrot.lane.b32.xlu1 %v6918_v9, %s7830_s29 }
0x1127   :  { %v1737_v24 = vpop.xlane.xlu1 %1736 }
0x1128   :  { %v1741_v26 = vsub.f32 %v1679_v10, %v1737_v24 }
0x1129   :  { %v1740_v28 = vpop.xlane.xlu0 %1739 }
0x112a   :  { %v1743_v29 = vmul.f32 1.442695, %v1741_v26  ;;  %v1742_v31 = vsub.f32 %v1730_v14, %v1740_v28 }
0x112b   :  { %v1760_v20 = vpop.permute.xlu1 %1759 }
0x112c   :  { %6302 = vpow2.f32 %v1743_v29  ;;  %v1745_v4 = vmul.f32 1.442695, %v1742_v31  ;;  %5791 = vmatpush3.bf16.msra.mxu1 %v1760_v20 }
0x112d   :  { %5802 = vmatprep.subr.bf16.mxu1 %v6438_v1 }
0x112e   :  { %6304 = vpow2.f32 %v1745_v4 }
0x112f   :  { %v1854_v39 = vpop.permute.xlu1 %1853 }
0x1130   :  { %v1859_v15 = vsel %vm245_vm2, %v1854_v39, 0 }
0x1133   :  { %v1904_v43 = vpop.permute.xlu1 %1903 }
0x1134   :  { %v1909_v45 = vsel %vm245_vm2, %v1904_v43, 0 }
0x1136   :  { %v6303_v5 = vpop.eup %6302 }
0x1137   :  { %v1747_v33 = vsel %vm1149_vm4, %v6303_v5, 0.0  ;;  %v1852_v46 = vpop.permute.xlu1 %1851 }
0x1138   :  { %v6305_v63 = vpop.eup %6304  ;;  %1748 = vadd.xlane.f32.xlu0 %v1747_v33 }
0x1139   :  { %v1750_v6 = vsel %vm1149_vm4, %v6305_v63, 0.0 }
0x113c   :  { %1751 = vadd.xlane.f32.xlu0 %v1750_v6 }
0x1152   :  { %1805 = vrot.lane.b32.xlu0 %v6905_v62, %s7829_s27 }
0x1156   :  { %1901 = vrot.lane.b32.xlu0 %v6920_v17, %s7830_s29 }
0x11c5   :  { %v1749_v34 = vpop.xlane.xlu0 %1748 }
0x11c6   :  { %6306 = vrcp.f32 %v1749_v34 }
0x11c9   :  { %v1752_v35 = vpop.xlane.xlu0 %1751 }
0x11ca   :  { %6308 = vrcp.f32 %v1752_v35 }
0x11cd   :  { %v1806_v37 = vpop.permute.xlu0 %1805 }
0x11ce   :  { %5797 = vmatpush3.bf16.msra.mxu0 %v1806_v37 }
0x11cf   :  { %5808 = vmatprep.subr.bf16.mxu0 %v6438_v1 }
0x11d0   :  { %v6307_v38 = vpop.eup %6306 }
0x11d1   :  { %v1754_v40 = vmul.f32 %v6307_v38, %v6303_v5  ;;  %v1902_v47 = vpop.permute.xlu0 %1901 }
0x11d3   :  { %v1757_v41 = vpack.c.bf16 %v1754_v40, %v1754_v40 }
0x11d4   :  { %v6309_v27 = vpop.eup %6308 }
0x11d5   :  { %5793 = vmatmul.mubr.msk.bf16.vlgmr.msra.gmra.mrb[52].mxu1 %vm1149_vm4, %v1757_v41  ;;  %v1756_v42 = vmul.f32 %v6309_v27, %v6305_v63 }
0x11d6   :  { %5803 = vmatpush3.bf16.xpose.msra.mxu1 %v1859_v15  ;;  %5804 = vmatprep.mubr.msk.bf16.mxu1 %vm6439_vm0, %v6438_v1 }
0x11d7   :  { %v1758_v44 = vpack.c.bf16 %v1756_v42, %v1756_v42  ;;  %5814 = vmatprep.subr.bf16.mxu1 %v6438_v1 }
0x11d9   :  { %5799 = vmatmul.mubr.msk.bf16.vlgmr.msra.gmra.mrb[56].mxu0 %vm1149_vm4, %v1758_v44 }
0x11da   :  { %5809 = vmatpush3.bf16.xpose.msra.mxu0 %v1909_v45  ;;  %5810 = vmatprep.mubr.msk.bf16.mxu0 %vm6439_vm0, %v6438_v1 }
0x11db   :  { %5820 = vmatprep.subr.bf16.mxu0 %v6438_v1 }
0x11dd   :  { %5805 = vmatmul.mubr.msk.bf16.vlgmr.msra.gmra.mrb[56].mxu1 %vm245_vm2, %v1852_v46 }
0x11de   :  { %5816 = vmatprep.mubr.msk.bf16.mxu1 %vm6439_vm0, %v6438_v1 }
0x11e1   :  { %5811 = vmatmul.mubr.msk.bf16.vlgmr.msra.gmra.mrb[60].mxu0 %vm245_vm2, %v1902_v47 }
0x11e2   :  { %5822 = vmatprep.mubr.msk.bf16.mxu0 %vm6439_vm0, %v6438_v1 }
0x12a8   :  { %v7016_v48 = vpop.f32.mrb[52].mxu1 }
0x12a9   :  { %v5794_v49 = vpop.f32.mrb[53].mxu1 }
0x12aa   :  { %v1802_v50 = vpop.f32.mrb[54].mxu1 }
0x12ab   :  { %v5795_v25 = vpop.f32.mrb[55].mxu1 }
0x12ac   :  { %v7018_v53 = vpop.f32.mrb[56].mxu0 }
0x12ad   :  { %v6175_v54 = vpack.i.bf16 %v7018_v53, %v7016_v48  ;;  %v5800_v55 = vpop.f32.mrb[57].mxu0 }
0x12ae   :  { %v1848_v57 = vpop.f32.mrb[58].mxu0 }
0x12af   :  { %v5801_v58 = vpop.f32.mrb[59].mxu0 }
0x12b0   :  { %v1895_v60 = vpop.f32.mrb[56].mxu1 }
0x12b1   :  { %v1896_v61 = vadd.f32 %v1895_v60, %v6933_v18  ;;  %v5806_v2 = vpop.f32.mrb[57].mxu1 }
0x12b2   :  { %v1898_v3 = vpop.f32.mrb[58].mxu1 }
0x12b3   :  { %v5807_v8 = vpop.f32.mrb[59].mxu1  ;;  %v1951_v10 = vsel %vm1149_vm4, %v1896_v61, -inf }
0x12b4   :  { %v1945_v13 = vpop.f32.mrb[60].mxu0  ;;  %1952 = vmax.xlane.f32.xlu1 %v1951_v10 }
0x12b5   :  { %v1946_v11 = vadd.f32 %v1945_v13, %v6938_v21  ;;  %v5812_v12 = vpop.f32.mrb[61].mxu0 }
0x12b6   :  { %v1948_v14 = vpop.f32.mrb[62].mxu0 }
0x12b7   :  { %v5813_v16 = vpop.f32.mrb[63].mxu0  ;;  %v1954_v19 = vsel %vm1149_vm4, %v1946_v11, -inf }
0x12b8   :  { %1955 = vmax.xlane.f32.xlu0 %v1954_v19 }
0x12c5   :  { %1975 = vrot.lane.b32.xlu1 %v6907_v0, %s7831_s5 }
0x12c9   :  { %2069 = vrot.lane.b32.xlu1 %v6907_v0, %s7832_s4 }
0x12cd   :  { %2119 = vrot.lane.b32.xlu1 %v6905_v62, %s7832_s4 }
0x12d1   :  { %2067 = vrot.lane.b32.xlu1 %v6918_v9, %s7832_s4 }
0x1341   :  { %v1953_v22 = vpop.xlane.xlu1 %1952 }
0x1342   :  { %v1957_v23 = vsub.f32 %v1896_v61, %v1953_v22 }
0x1344   :  { %v1959_v30 = vmul.f32 1.442695, %v1957_v23 }
0x1345   :  { %v1956_v32 = vpop.xlane.xlu0 %1955  ;;  %v1976_v24 = vpop.permute.xlu1 %1975 }
0x1346   :  { %6310 = vpow2.f32 %v1959_v30  ;;  %v1958_v26 = vsub.f32 %v1946_v11, %v1956_v32  ;;  %5815 = vmatpush3.bf16.msra.mxu1 %v1976_v24 }
0x1347   :  { %5826 = vmatprep.subr.bf16.mxu1 %v6438_v1 }
0x1348   :  { %v1961_v28 = vmul.f32 1.442695, %v1958_v26 }
0x1349   :  { %v2070_v6 = vpop.permute.xlu1 %2069 }
0x134a   :  { %6312 = vpow2.f32 %v1961_v28  ;;  %v2075_v38 = vsel %vm245_vm2, %v2070_v6, 0 }
0x134d   :  { %v2120_v40 = vpop.permute.xlu1 %2119 }
0x134e   :  { %v2125_v41 = vsel %vm245_vm2, %v2120_v40, 0 }
0x1350   :  { %v6311_v29 = vpop.eup %6310 }
0x1351   :  { %v1963_v31 = vsel %vm1149_vm4, %v6311_v29, 0.0  ;;  %v2068_v27 = vpop.permute.xlu1 %2067 }
0x1352   :  { %1964 = vadd.xlane.f32.xlu0 %v1963_v31 }
0x1354   :  { %v6313_v20 = vpop.eup %6312 }
0x1355   :  { %v1966_v4 = vsel %vm1149_vm4, %v6313_v20, 0.0 }
0x1356   :  { %1967 = vadd.xlane.f32.xlu0 %v1966_v4 }
0x136c   :  { %2021 = vrot.lane.b32.xlu0 %v6905_v62, %s7831_s5 }
0x1370   :  { %2117 = vrot.lane.b32.xlu0 %v6920_v17, %s7832_s4 }
0x13df   :  { %v1965_v9 = vpop.xlane.xlu0 %1964 }
0x13e0   :  { %6314 = vrcp.f32 %v1965_v9  ;;  %v6231_v9 = vld [vmem:[%s7736_s16 + $0x8] sm:$0xff]  }
0x13e3   :  { %v1968_v5 = vpop.xlane.xlu0 %1967 }
0x13e4   :  { %6316 = vrcp.f32 %v1968_v5 }
0x13e7   :  { %v2022_v33 = vpop.permute.xlu0 %2021 }
0x13e8   :  { %5821 = vmatpush3.bf16.msra.mxu0 %v2022_v33 }
0x13e9   :  { %5832 = vmatprep.subr.bf16.mxu0 %v6438_v1 }
0x13ea   :  { %v6315_v63 = vpop.eup %6314 }
0x13eb   :  { %v1970_v34 = vmul.f32 %v6315_v63, %v6311_v29  ;;  %v2118_v15 = vpop.permute.xlu0 %2117 }
0x13ed   :  { %v1973_v35 = vpack.c.bf16 %v1970_v34, %v1970_v34 }
0x13ee   :  { %v6317_v37 = vpop.eup %6316 }
0x13ef   :  { %5817 = vmatmul.mubr.msk.bf16.vlgmr.msra.gmra.mrb[60].mxu1 %vm1149_vm4, %v1973_v35  ;;  %v1972_v39 = vmul.f32 %v6317_v37, %v6313_v20 }
0x13f0   :  { %5827 = vmatpush3.bf16.xpose.msra.mxu1 %v2075_v38  ;;  %5828 = vmatprep.mubr.msk.bf16.mxu1 %vm6439_vm0, %v6438_v1 }
0x13f1   :  { %v1974_v17 = vpack.c.bf16 %v1972_v39, %v1972_v39  ;;  %5838 = vmatprep.subr.bf16.mxu1 %v6438_v1 }
0x13f3   :  { %5823 = vmatmul.mubr.msk.bf16.vlgmr.msra.gmra.mrb[64].mxu0 %vm1149_vm4, %v1974_v17 }
0x13f4   :  { %5833 = vmatpush3.bf16.xpose.msra.mxu0 %v2125_v41  ;;  %5834 = vmatprep.mubr.msk.bf16.mxu0 %vm6439_vm0, %v6438_v1 }
0x13f5   :  { %5844 = vmatprep.subr.bf16.mxu0 %v6438_v1 }
0x13f7   :  { %5829 = vmatmul.mubr.msk.bf16.vlgmr.msra.gmra.mrb[64].mxu1 %vm245_vm2, %v2068_v27 }
0x13f8   :  { %5840 = vmatprep.mubr.msk.bf16.mxu1 %vm6439_vm0, %v6438_v1 }
0x13fb   :  { %5835 = vmatmul.mubr.msk.bf16.vlgmr.msra.gmra.mrb[68].mxu0 %vm245_vm2, %v2118_v15 }
0x13fc   :  { %5846 = vmatprep.mubr.msk.bf16.mxu0 %vm6439_vm0, %v6438_v1 }
0x14c2   :  { %v2015_v42 = vpop.f32.mrb[60].mxu1 }
0x14c3   :  { %v5818_v43 = vpop.f32.mrb[61].mxu1 }
0x14c4   :  { %v2018_v44 = vpop.f32.mrb[62].mxu1 }
0x14c5   :  { %v5819_v45 = vpop.f32.mrb[63].mxu1 }
0x14c6   :  { %v2061_v46 = vpop.f32.mrb[64].mxu0 }
0x14c7   :  { %v6180_v47 = vpack.i.bf16 %v2061_v46, %v2015_v42  ;;  %v5824_v49 = vpop.f32.mrb[65].mxu0 }
0x14c8   :  { %v2064_v50 = vpop.f32.mrb[66].mxu0 }
0x14c9   :  { %v5825_v25 = vpop.f32.mrb[67].mxu0 }
0x14ca   :  { %v2111_v55 = vpop.f32.mrb[64].mxu1 }
0x14cb   :  { %v2112_v57 = vadd.f32 %v2111_v55, %v6933_v18  ;;  %v5830_v58 = vpop.f32.mrb[65].mxu1 }
0x14cc   :  { %v2114_v60 = vpop.f32.mrb[66].mxu1 }
0x14cd   :  { %v5831_v61 = vpop.f32.mrb[67].mxu1  ;;  %v2167_v2 = vsel %vm1149_vm4, %v2112_v57, -inf }
0x14ce   :  { %v2161_v3 = vpop.f32.mrb[68].mxu0  ;;  %2168 = vmax.xlane.f32.xlu1 %v2167_v2 }
0x14cf   :  { %v2162_v8 = vadd.f32 %v2161_v3, %v6938_v21  ;;  %v5836_v10 = vpop.f32.mrb[69].mxu0 }
0x14d0   :  { %v2164_v13 = vpop.f32.mrb[70].mxu0 }
0x14d1   :  { %v5837_v11 = vpop.f32.mrb[71].mxu0  ;;  %v2170_v12 = vsel %vm1149_vm4, %v2162_v8, -inf }
0x14d2   :  { %2171 = vmax.xlane.f32.xlu0 %v2170_v12 }
0x14df   :  { %2191 = vrot.lane.b32.xlu1 %v6907_v0, %s7833_s28 }
0x14e3   :  { %6176 = vrot.lane.b32.xlu1 %v6175_v54, %s7834_s2 }
0x14e7   :  { %6181 = vrot.lane.b32.xlu1 %v6180_v47, %s7835_s13 }
0x155b   :  { %v2169_v18 = vpop.xlane.xlu1 %2168 }
0x155c   :  { %v2173_v14 = vsub.f32 %v2112_v57, %v2169_v18 }
0x155e   :  { %v2175_v16 = vmul.f32 1.442695, %v2173_v14 }
0x155f   :  { %v2172_v21 = vpop.xlane.xlu0 %2171  ;;  %v2192_v19 = vpop.permute.xlu1 %2191 }
0x1560   :  { %6318 = vpow2.f32 %v2175_v16  ;;  %v2174_v22 = vsub.f32 %v2162_v8, %v2172_v21  ;;  %5839 = vmatpush3.bf16.msra.mxu1 %v2192_v19 }
0x1561   :  { %5850 = vmatprep.subr.bf16.mxu1 %v6438_v1 }
0x1562   :  { %v2177_v23 = vmul.f32 1.442695, %v2174_v22 }
0x1563   :  { %v6177_v40 = vpop.permute.xlu1 %6176 }
0x1564   :  { %6320 = vpow2.f32 %v2177_v23  ;;  %v6179_v41 = vunpack.i.h.bf16 %v6177_v40  ;;  %v6178_v27 = vunpack.i.l.bf16 %v6177_v40 }
0x1566   :  { %v2308_v44 = vsel %vm245_vm2, %v6978_v59, %v6179_v41  ;;  %v2307_v45 = vsel %vm245_vm2, %v6976_v56, %v6178_v27  ;;  %v5288_v56 = vld [vmem:[%s7737_s17] ss:$0 sm:$0xff]  ;;  %s7843_s17 = sld [smem:[#allocation20_spill]] }
0x1567   :  { %v6182_v17 = vpop.permute.xlu1 %6181 }
0x1568   :  { %v6184_v15 = vunpack.i.h.bf16 %v6182_v17  ;;  %v6183_v42 = vunpack.i.l.bf16 %v6182_v17 }
0x156a   :  { %v6319_v0 = vpop.eup %6318  ;;  %v2309_v49 = vsel %vm1149_vm4, %v2307_v45, %v6183_v42  ;;  %v2310_v50 = vsel %vm1149_vm4, %v2308_v44, %v6184_v15 }
0x156b   :  { %v2179_v30 = vsel %vm1149_vm4, %v6319_v0, 0.0 }
0x156c   :  { %2180 = vadd.xlane.f32.xlu0 %v2179_v30  ;;  %v6233_v30 = vld [vmem:[%s7740_s20 + $0x8] sm:$0xff]  }
0x156e   :  { %v6321_v48 = vpop.eup %6320 }
0x156f   :  { %v2182_v53 = vsel %vm1149_vm4, %v6321_v48, 0.0 }
0x1570   :  { %2183 = vadd.xlane.f32.xlu0 %v2182_v53  ;;  %v6235_v53 = vld [vmem:[%s7742_s22 + $0x8] sm:$0xff]  }
0x1586   :  { %2237 = vrot.lane.b32.xlu0 %v6905_v62, %s7833_s28  ;;  %v6230_v62 = vld [vmem:[%s7736_s16] sm:$0xff]  }
0x15f9   :  { %v2181_v54 = vpop.xlane.xlu0 %2180 }
0x15fa   :  { %6322 = vrcp.f32 %v2181_v54 }
0x15fd   :  { %v2184_v32 = vpop.xlane.xlu0 %2183 }
0x15fe   :  { %6324 = vrcp.f32 %v2184_v32 }
0x1601   :  { %v2238_v24 = vpop.permute.xlu0 %2237 }
0x1602   :  { %5845 = vmatpush3.bf16.msra.mxu0 %v2238_v24 }
0x1603   :  { %5858 = vmatprep.subr.bf16.mxu0 %v6438_v1 }
0x1604   :  { %v6323_v26 = vpop.eup %6322 }
0x1605   :  { %v2186_v28 = vmul.f32 %v6323_v26, %v6319_v0 }
0x1607   :  { %v2189_v29 = vpack.c.bf16 %v2186_v28, %v2186_v28 }
0x1608   :  { %v6325_v31 = vpop.eup %6324 }
0x1609   :  { %5841 = vmatmul.mubr.msk.bf16.vlgmr.msra.gmra.mrb[68].mxu1 %vm1149_vm4, %v2189_v29  ;;  %v2188_v20 = vmul.f32 %v6325_v31, %v6321_v48  ;;  %v6234_v48 = vld [vmem:[%s7742_s22] sm:$0xff]  }
0x160a   :  { %5854 = vmatprep.mubr.msk.bf16.mxu1 %vm6439_vm0, %v6438_v1  ;;  %5851 = vmatpush3.bf16.msra.mxu1 %v6230_v62 }
0x160b   :  { %v2190_v4 = vpack.c.bf16 %v2188_v20, %v2188_v20  ;;  %5852 = vmatprep.subr.bf16.mxu1 %v6438_v1 }
0x160d   :  { %5847 = vmatmul.mubr.msk.bf16.vlgmr.msra.gmra.mrb[72].mxu0 %vm1149_vm4, %v2190_v4  ;;  %v5292_v4 = vld [vmem:[%s7738_s18] ss:$0 sm:$0xff] }
0x160e   :  { %5862 = vmatprep.mubr.msk.bf16.mxu0 %vm6439_vm0, %v6438_v1  ;;  %5853 = vmatpush3.bf16.msra.mxu1 %v6231_v9 }
0x160f   :  { %5866 = vmatprep.subr.bf16.mxu1 %v6438_v1 }
0x16dc   :  { %v2231_v5 = vpop.f32.mrb[68].mxu1 }
0x16dd   :  { %v5842_v33 = vpop.f32.mrb[69].mxu1 }
0x16de   :  { %v2234_v63 = vpop.f32.mrb[70].mxu1  ;;  %v5293_v33 = vld [vmem:[%s7739_s19] ss:$0 sm:$0xff] }
0x16df   :  { %v5843_v6 = vpop.f32.mrb[71].mxu1 }
0x16e0   :  { %v2277_v34 = vpop.f32.mrb[72].mxu0 }
0x16e1   :  { %v6185_v35 = vpack.i.bf16 %v2277_v34, %v2231_v5  ;;  %v5848_v37 = vpop.f32.mrb[73].mxu0 }
0x16e2   :  { %v2280_v38 = vpop.f32.mrb[74].mxu0  ;;  %v6236_v37 = vld [vmem:[%s7742_s22 + $0x10] sm:$0xff]  }
0x16e3   :  { %v5849_v39 = vpop.f32.mrb[75].mxu0  ;;  %6186 = vrot.lane.b32.xlu1 %v6185_v35, %s7836_s15  ;;  %v6237_v38 = vld [vmem:[%s7742_s22 + $0x18] sm:$0xff]   ;;  %s7844_s15 = sld [smem:[#allocation18_spill]] }
0x16e4   :  { %v5294_v39 = vld [vmem:[%s7741_s21] ss:$0 sm:$0xff] }
0x1755   :  { %v6187_v43 = vpop.permute.xlu1 %6186 }
0x1756   :  { %v6189_v46 = vunpack.i.h.bf16 %v6187_v43  ;;  %v6188_v47 = vunpack.i.l.bf16 %v6187_v43 }
0x1758   :  { %v2312_v25 = vsel %vm1152_vm5, %v2310_v50, %v6189_v46  ;;  %v2311_v55 = vsel %vm1152_vm5, %v2309_v49, %v6188_v47  ;;  %v5298_v46 = vld [vmem:[%s7743_s23] ss:$0 sm:$0xff] }
0x1759   :  { %v2313_v57 = vpack.c.bf16 %v2312_v25, %v2311_v55 }
0x175b   :  { %5855 = vmatmul.mubr.msk.bf16.vlgmr.msra.gmra.mrb[72].mxu1 %vm137_vm1, %v2313_v57 }
0x175c   :  { %5874 = vmatprep.mubr.msk.bf16.mxu1 %vm6439_vm0, %v6438_v1  ;;  %5867 = vmatpush3.bf16.msra.mxu1 %v6234_v48  ;;  %v5304_v48 = vld [vmem:[%s7744_s24] ss:$0 sm:$0xff] }
0x175d   :  { %5868 = vmatprep.subr.bf16.mxu1 %v6438_v1 }
0x1760   :  { %5869 = vmatpush3.bf16.msra.mxu1 %v6235_v53 }
0x1761   :  { %5870 = vmatprep.subr.bf16.mxu1 %v6438_v1 }
0x1764   :  { %5871 = vmatpush3.bf16.msra.mxu1 %v6236_v37 }
0x1765   :  { %5872 = vmatprep.subr.bf16.mxu1 %v6438_v1 }
0x1768   :  { %5873 = vmatpush3.bf16.msra.mxu1 %v6237_v38 }
0x1769   :  { %5894 = vmatprep.subr.bf16.mxu1 %v6438_v1 }
0x182e   :  { %v2369_v59 = vpop.f32.mrb[72].mxu1 }
0x182f   :  { %v2370_v58 = vadd.f32 %v5288_v56, %v2369_v59  ;;  %v5856_v60 = vpop.f32.mrb[73].mxu1 }
0x1830   :  { %v2372_v61 = vpop.f32.mrb[74].mxu1 }
0x1831   :  { %v2373_v2 = vadd.f32 %v5288_v56, %v2372_v61  ;;  %v5857_v3 = vpop.f32.mrb[75].mxu1  ;;  %v2376_v8 = vadd.f32 %v2370_v58, %v6893_v51 }
0x1833   :  { %v2378_v10 = vsel %vm137_vm1, %v2376_v8, 0.0  ;;  %v2377_v13 = vadd.f32 %v2373_v2, %v6895_v52  ;;  %v6232_v52 = vld [vmem:[%s7740_s20] sm:$0xff]  }
0x1834   :  { %2379 = vadd.xlane.f32.xlu0 %v2378_v10  ;;  %5859 = vmatpush3.bf16.msra.mxu0 %v6232_v52 }
0x1835   :  { %v2381_v11 = vsel %vm137_vm1, %v2377_v13, 0.0  ;;  %5860 = vmatprep.subr.bf16.mxu0 %v6438_v1 }
0x1836   :  { %2382 = vadd.xlane.f32.xlu1 %v2381_v11 }
0x1838   :  { %5861 = vmatpush3.bf16.msra.mxu0 %v6233_v30 }
0x1839   :  { %5878 = vmatprep.subr.bf16.mxu0 %v6438_v1 }
0x18c1   :  { %v2380_v12 = vpop.xlane.xlu0 %2379 }
0x18c2   :  { %v2384_v18 = vmul.f32 0.03125, %v2380_v12 }
0x18c3   :  { %v2383_v14 = vpop.xlane.xlu1 %2382 }
0x18c4   :  { %v2386_v16 = vsub.f32 %v2376_v8, %v2384_v18  ;;  %v2385_v21 = vmul.f32 0.03125, %v2383_v14 }
0x18c6   :  { %v2387_v19 = vsub.f32 %v2377_v13, %v2385_v21  ;;  %v2388_v22 = vmul.f32 %v2386_v16, %v2386_v16  ;;  %v6239_v21 = vld [vmem:[%s7815_s0 + $0x18] sm:$0xff]  }
0x18c8   :  { %v2390_v23 = vsel %vm137_vm1, %v2388_v22, 0.0  ;;  %v2389_v0 = vmul.f32 %v2387_v19, %v2387_v19 }
0x18c9   :  { %2391 = vadd.xlane.f32.xlu0 %v2390_v23 }
0x18ca   :  { %v2393_v51 = vsel %vm137_vm1, %v2389_v0, 0.0 }
0x18cd   :  { %2394 = vadd.xlane.f32.xlu0 %v2393_v51 }
0x1956   :  { %v2392_v54 = vpop.xlane.xlu0 %2391 }
0x1957   :  { %v2396_v32 = vmul.f32 0.032258064, %v2392_v54 }
0x1959   :  { %v2398_v24 = vadd.f32 1e-10, %v2396_v32 }
0x195a   :  { %v2395_v26 = vpop.xlane.xlu0 %2394 }
0x195b   :  { %6326 = vrsqrt.f32 %v2398_v24  ;;  %v2397_v28 = vmul.f32 0.032258064, %v2395_v26  ;;  %v5305_v26 = vld [vmem:[%s7745_s25] ss:$0 sm:$0xff] }
0x195d   :  { %v2399_v29 = vadd.f32 1e-10, %v2397_v28 }
0x195f   :  { %6328 = vrsqrt.f32 %v2399_v29 }
0x1965   :  { %v6327_v31 = vpop.eup %6326 }
0x1966   :  { %v2402_v20 = vmul.f32 %v6327_v31, %v2386_v16  ;;  %v6238_v16 = vld [vmem:[%s7815_s0 + $0x10] sm:$0xff]  }
0x1968   :  { %v2410_v9 = vmul.f32 %v5292_v4, %v2402_v20  ;;  %v6240_v20 = vld [vmem:[%s7814_s9 + $0x10] sm:$0xff]  }
0x1969   :  { %v6329_v62 = vpop.eup %6328 }
0x196a   :  { %v2403_v5 = vmul.f32 %v6329_v62, %v2387_v19  ;;  %v2418_v6 = vadd.f32 %v5293_v33, %v2410_v9  ;;  %v6241_v62 = vld [vmem:[%s7814_s9 + $0x18] sm:$0xff]  }
0x196c   :  { %v2411_v63 = vmul.f32 %v5292_v4, %v2403_v5 }
0x196e   :  { %v2419_v34 = vadd.f32 %v5293_v33, %v2411_v63 }
0x1970   :  { %v2436_v35 = vpack.c.bf16 %v2419_v34, %v2418_v6 }
0x1972   :  { %5863 = vmatmul.mubr.msk.bf16.vlgmr.msra.gmra.mrb[76].mxu0 %vm137_vm1, %v2436_v35 }
0x1973   :  { %5882 = vmatprep.mubr.msk.bf16.mxu0 %vm6439_vm0, %v6438_v1  ;;  %5879 = vmatpush3.bf16.msra.mxu0 %v6238_v16 }
0x1974   :  { %5880 = vmatprep.subr.bf16.mxu0 %v6438_v1 }
0x1977   :  { %5881 = vmatpush3.bf16.msra.mxu0 %v6239_v21 }
0x1978   :  { %5886 = vmatprep.subr.bf16.mxu0 %v6438_v1 }
0x1a45   :  { %v2492_v40 = vpop.f32.mrb[76].mxu0 }
0x1a46   :  { %v2493_v17 = vadd.f32 %v5294_v39, %v2492_v40  ;;  %v5864_v41 = vpop.f32.mrb[77].mxu0 }
0x1a47   :  { %v2495_v27 = vpop.f32.mrb[78].mxu0  ;;  %v5323_v41 = vld [vmem:[%s7818_s10 + $0x1] ss:$0 sm:$0xff]  ;;  %s7849_s10 = sld [smem:[#allocation24_spill]] }
0x1a48   :  { %v2496_v15 = vadd.f32 %v5294_v39, %v2495_v27  ;;  %v5865_v42 = vpop.f32.mrb[79].mxu0  ;;  %v2499_v43 = vmax.f32 %v2493_v17, 0.0 }
0x1a4a   :  { %v2500_v44 = vmax.f32 %v2496_v15, 0.0 }
0x1a4c   :  { %v2501_v45 = vpack.c.bf16 %v2500_v44, %v2499_v43 }
0x1a4e   :  { %5875 = vmatmul.mubr.msk.bf16.vlgmr.msra.gmra.mrb[76].mxu1 %vm2532_vm6, %v2501_v45 }
0x1a4f   :  { %5896 = vmatprep.mubr.msk.bf16.mxu1 %vm6439_vm0, %v6438_v1 }
0x1b21   :  { %v2570_v47 = vpop.f32.mrb[76].mxu1 }
0x1b22   :  { %v2571_v49 = vadd.f32 %v5298_v46, %v2570_v47  ;;  %v5876_v50 = vpop.f32.mrb[77].mxu1 }
0x1b23   :  { %v2573_v25 = vpop.f32.mrb[78].mxu1 }
0x1b24   :  { %v2574_v55 = vadd.f32 %v5298_v46, %v2573_v25  ;;  %v5877_v57 = vpop.f32.mrb[79].mxu1  ;;  %v2577_v56 = vadd.f32 %v2571_v49, %v2418_v6  ;;  %v5327_v6 = vld [vmem:[%s7817_s30 + $0x1] ss:$0 sm:$0xff]  ;;  %s7839_s30 = sld [smem:[#allocation19_spill]] }
0x1b25   :  { %v7221_v49 = vld [vmem:[%s7819_s12] sm:$0xff] }
0x1b26   :  { %v2579_v59 = vsel %vm137_vm1, %v2577_v56, 0.0  ;;  %v2578_v58 = vadd.f32 %v2574_v55, %v2419_v34 }
0x1b27   :  { %2580 = vadd.xlane.f32.xlu0 %v2579_v59 }
0x1b28   :  { %v2582_v60 = vsel %vm137_vm1, %v2578_v58, 0.0 }
0x1b29   :  { %2583 = vadd.xlane.f32.xlu1 %v2582_v60 }
0x1bb4   :  { %v2581_v61 = vpop.xlane.xlu0 %2580 }
0x1bb5   :  { %v2585_v2 = vmul.f32 0.03125, %v2581_v61 }
0x1bb6   :  { %v2584_v3 = vpop.xlane.xlu1 %2583 }
0x1bb7   :  { %v2587_v8 = vsub.f32 %v2577_v56, %v2585_v2  ;;  %v2586_v10 = vmul.f32 0.03125, %v2584_v3  ;;  %v7227_v56 = vld [vmem:[%s7819_s12 + $0x8] sm:$0xff] }
0x1bb9   :  { %v2588_v13 = vsub.f32 %v2578_v58, %v2586_v10  ;;  %v2589_v11 = vmul.f32 %v2587_v8, %v2587_v8 }
0x1bbb   :  { %v2591_v12 = vsel %vm137_vm1, %v2589_v11, 0.0  ;;  %v2590_v18 = vmul.f32 %v2588_v13, %v2588_v13 }
0x1bbc   :  { %2592 = vadd.xlane.f32.xlu0 %v2591_v12 }
0x1bbd   :  { %v2594_v14 = vsel %vm137_vm1, %v2590_v18, 0.0 }
0x1bbe   :  { %2595 = vadd.xlane.f32.xlu1 %v2594_v14 }
0x1c49   :  { %v2593_v19 = vpop.xlane.xlu0 %2592 }
0x1c4a   :  { %v2597_v22 = vmul.f32 0.032258064, %v2593_v19 }
0x1c4b   :  { %v2596_v23 = vpop.xlane.xlu1 %2595 }
0x1c4c   :  { %v2599_v0 = vadd.f32 1e-10, %v2597_v22  ;;  %v2598_v51 = vmul.f32 0.032258064, %v2596_v23 }
0x1c4e   :  { %6330 = vrsqrt.f32 %v2599_v0  ;;  %v2600_v52 = vadd.f32 1e-10, %v2598_v51 }
0x1c50   :  { %6332 = vrsqrt.f32 %v2600_v52 }
0x1c58   :  { %v6331_v30 = vpop.eup %6330 }
0x1c59   :  { %v2603_v53 = vmul.f32 %v6331_v30, %v2587_v8 }
0x1c5a   :  { %v6333_v54 = vpop.eup %6332 }
0x1c5b   :  { %v2611_v32 = vmul.f32 %v5304_v48, %v2603_v53  ;;  %v2604_v24 = vmul.f32 %v6333_v54, %v2588_v13 }
0x1c5d   :  { %v2612_v28 = vmul.f32 %v5304_v48, %v2604_v24  ;;  %v7170_v29 = vadd.f32 %v5305_v26, %v2611_v32 }
0x1c5f   :  { %v7172_v31 = vadd.f32 %v5305_v26, %v2612_v28 }
0x1c61   :  { %v2646_v4 = vpack.c.bf16 %v7172_v31, %v7170_v29 }
0x1c63   :  { %5883 = vmatmul.mubr.msk.bf16.vlgmr.msra.gmra.mrb[80].mxu0 %vm137_vm1, %v2646_v4 }
0x1c64   :  { %5887 = vmatpush3.bf16.msra.mxu0 %v6240_v20  ;;  %5890 = vmatprep.mubr.msk.bf16.mxu0 %vm6439_vm0, %v6438_v1 }
0x1c65   :  { %5888 = vmatprep.subr.bf16.mxu0 %v6438_v1 }
0x1c68   :  { %5889 = vmatpush3.bf16.msra.mxu0 %v6241_v62 }
0x1c69   :  { %5900 = vmatprep.subr.bf16.mxu0 %v6438_v1 }
0x1c6b   :  { %5891 = vmatmul.mubr.msk.bf16.vlgmr.msra.gmra.mrb[84].mxu0 %vm137_vm1, %v2646_v4 }
0x1c6c   :  { %5902 = vmatprep.mubr.msk.bf16.mxu0 %vm6439_vm0, %v6438_v1 }
0x1d36   :  { %v2702_v9 = vpop.f32.mrb[80].mxu0 }
0x1d37   :  { %v5884_v5 = vpop.f32.mrb[81].mxu0  ;;  %v2703_v42 = vadd.f32 %v5323_v41, %v2702_v9 }
0x1d38   :  { %v2705_v33 = vpop.f32.mrb[82].mxu0 }
0x1d39   :  { %v5885_v63 = vpop.f32.mrb[83].mxu0  ;;  %v2706_v44 = vadd.f32 %v5323_v41, %v2705_v33  ;;  %v7206_v45 = vpack.c.bf16 %v2703_v42, %v2703_v42 }
0x1d3b   :  { %v7208_v46 = vpack.c.bf16 %v2706_v44, %v2706_v44 }
0x1d3e   :  { %v2761_v34 = vpop.f32.mrb[84].mxu0 }
0x1d3f   :  { %v2762_v35 = vadd.f32 %v5327_v6, %v2761_v34  ;;  %v5892_v37 = vpop.f32.mrb[85].mxu0 }
0x1d40   :  { %v2764_v38 = vpop.f32.mrb[86].mxu0 }
0x1d41   :  { %v7193_v39 = vpack.c.bf16 %v2762_v35, %v2762_v35  ;;  %v2765_v40 = vadd.f32 %v5327_v6, %v2764_v38  ;;  %v5893_v17 = vpop.f32.mrb[87].mxu0 }
0x1d43   :  { %v7198_v27 = vpack.c.bf16 %v2765_v40, %v2765_v40  ;;  %v2776_v15 = vsel %vm245_vm2, %v7193_v39, 0 }
0x1d44   :  { %5895 = vmatpush3.bf16.xpose.msra.mxu1 %v2776_v15 }
0x1d45   :  { %v2822_v43 = vsel %vm245_vm2, %v7198_v27, 0  ;;  %5906 = vmatprep.subr.bf16.mxu1 %v6438_v1 }
0x1d46   :  { %5901 = vmatpush3.bf16.xpose.msra.mxu0 %v2822_v43 }
0x1d47   :  { %5912 = vmatprep.subr.bf16.mxu0 %v6438_v1 }
0x1d4b   :  { %5897 = vmatmul.mubr.msk.bf16.vlgmr.msra.gmra.mrb[80].mxu1 %vm245_vm2, %v7206_v45 }
0x1d4c   :  { %5908 = vmatprep.mubr.msk.bf16.mxu1 %vm6439_vm0, %v6438_v1 }
0x1d4d   :  { %5903 = vmatmul.mubr.msk.bf16.vlgmr.msra.gmra.mrb[88].mxu0 %vm245_vm2, %v7208_v46 }
0x1d4e   :  { %5914 = vmatprep.mubr.msk.bf16.mxu0 %vm6439_vm0, %v6438_v1 }
0x1e1e   :  { %v2812_v47 = vpop.f32.mrb[80].mxu1 }
0x1e1f   :  { %v2813_v50 = vadd.f32 %v7221_v49, %v2812_v47  ;;  %v5898_v25 = vpop.f32.mrb[81].mxu1 }
0x1e20   :  { %v2815_v55 = vpop.f32.mrb[82].mxu1  ;;  %v2858_v57 = vpop.f32.mrb[88].mxu0 }
0x1e21   :  { %v2859_v59 = vadd.f32 %v7227_v56, %v2858_v57  ;;  %v5899_v58 = vpop.f32.mrb[83].mxu1  ;;  %v5904_v60 = vpop.f32.mrb[89].mxu0  ;;  %v2864_v61 = vsel %vm245_vm2, %v2813_v50, -inf }
0x1e22   :  { %v2861_v2 = vpop.f32.mrb[90].mxu0  ;;  %2865 = vmax.xlane.f32.xlu0 %v2864_v61 }
0x1e23   :  { %v5905_v3 = vpop.f32.mrb[91].mxu0  ;;  %v2867_v8 = vsel %vm245_vm2, %v2859_v59, -inf }
0x1e24   :  { %2868 = vmax.xlane.f32.xlu1 %v2867_v8 }
0x1e35   :  { %2938 = vrot.lane.b32.xlu1 %v7198_v27, %s7827_s11 }
0x1e39   :  { %2989 = vrot.lane.b32.xlu1 %v7193_v39, %s7828_s26 }
0x1eaf   :  { %v2866_v10 = vpop.xlane.xlu0 %2865 }
0x1eb0   :  { %v2870_v13 = vsub.f32 %v2813_v50, %v2866_v10 }
0x1eb1   :  { %v2869_v11 = vpop.xlane.xlu1 %2868 }
0x1eb2   :  { %v2872_v12 = vmul.f32 1.442695, %v2870_v13  ;;  %v2871_v18 = vsub.f32 %v2859_v59, %v2869_v11 }
0x1eb4   :  { %6334 = vpow2.f32 %v2872_v12  ;;  %v2874_v14 = vmul.f32 1.442695, %v2871_v18 }
0x1eb5   :  { %v2939_v16 = vpop.permute.xlu1 %2938 }
0x1eb6   :  { %6336 = vpow2.f32 %v2874_v14  ;;  %v2944_v21 = vsel %vm368_vm3, %v2939_v16, 0 }
0x1eb7   :  { %5913 = vmatpush3.bf16.msra.mxu0 %v2944_v21 }
0x1eb8   :  { %5924 = vmatprep.subr.bf16.mxu0 %v6438_v1 }
0x1eb9   :  { %v2990_v51 = vpop.permute.xlu1 %2989 }
0x1eba   :  { %v2995_v4 = vsel %vm245_vm2, %v2990_v51, 0 }
0x1ebe   :  { %v6335_v19 = vpop.eup %6334 }
0x1ebf   :  { %v2876_v22 = vsel %vm245_vm2, %v6335_v19, 0.0 }
0x1ec0   :  { %v6337_v23 = vpop.eup %6336  ;;  %2877 = vadd.xlane.f32.xlu0 %v2876_v22 }
0x1ec1   :  { %v2879_v0 = vsel %vm245_vm2, %v6337_v23, 0.0 }
0x1ec2   :  { %2880 = vadd.xlane.f32.xlu1 %v2879_v0 }
0x1ed3   :  { %3040 = vrot.lane.b32.xlu1 %v7198_v27, %s7828_s26 }
0x1ed6   :  { %2889 = vrot.lane.b32.xlu0 %v7193_v39, %s7827_s11 }
0x1ed7   :  { %3038 = vrot.lane.b32.xlu1 %v7208_v46, %s7828_s26 }
0x1eda   :  { %2987 = vrot.lane.b32.xlu0 %v7206_v45, %s7828_s26 }
0x1f4d   :  { %v2878_v52 = vpop.xlane.xlu0 %2877 }
0x1f4e   :  { %6338 = vrcp.f32 %v2878_v52 }
0x1f4f   :  { %v2881_v30 = vpop.xlane.xlu1 %2880 }
0x1f50   :  { %6340 = vrcp.f32 %v2881_v30 }
0x1f51   :  { %v2890_v48 = vpop.permute.xlu0 %2889 }
0x1f52   :  { %v2895_v53 = vsel %vm368_vm3, %v2890_v48, 0 }
0x1f53   :  { %5907 = vmatpush3.bf16.msra.mxu1 %v2895_v53  ;;  %v3041_v20 = vpop.permute.xlu1 %3040 }
0x1f54   :  { %5918 = vmatprep.subr.bf16.mxu1 %v6438_v1  ;;  %v3046_v9 = vsel %vm245_vm2, %v3041_v20, 0 }
0x1f55   :  { %v2988_v5 = vpop.permute.xlu0 %2987 }
0x1f57   :  { %v3039_v33 = vpop.permute.xlu1 %3038 }
0x1f58   :  { %v6339_v54 = vpop.eup %6338 }
0x1f59   :  { %v2883_v32 = vmul.f32 %v6339_v54, %v6335_v19 }
0x1f5a   :  { %v6341_v24 = vpop.eup %6340 }
0x1f5b   :  { %v2885_v26 = vmul.f32 %v6341_v24, %v6337_v23  ;;  %v2886_v28 = vpack.c.bf16 %v2883_v32, %v2883_v32 }
0x1f5d   :  { %5909 = vmatmul.mubr.msk.bf16.vlgmr.msra.gmra.mrb[84].mxu1 %vm245_vm2, %v2886_v28  ;;  %v2887_v62 = vpack.c.bf16 %v2885_v26, %v2885_v26 }
0x1f5e   :  { %5919 = vmatpush3.bf16.xpose.msra.mxu1 %v2995_v4  ;;  %5920 = vmatprep.mubr.msk.bf16.mxu1 %vm6439_vm0, %v6438_v1 }
0x1f5f   :  { %5915 = vmatmul.mubr.msk.bf16.vlgmr.msra.gmra.mrb[92].mxu0 %vm245_vm2, %v2887_v62  ;;  %5930 = vmatprep.subr.bf16.mxu1 %v6438_v1 }
0x1f60   :  { %5925 = vmatpush3.bf16.xpose.msra.mxu0 %v3046_v9  ;;  %5926 = vmatprep.mubr.msk.bf16.mxu0 %vm6439_vm0, %v6438_v1 }
0x1f61   :  { %5936 = vmatprep.subr.bf16.mxu0 %v6438_v1 }
0x1f65   :  { %5921 = vmatmul.mubr.msk.bf16.vlgmr.msra.gmra.mrb[88].mxu1 %vm245_vm2, %v2988_v5 }
0x1f66   :  { %5932 = vmatprep.mubr.msk.bf16.mxu1 %vm6439_vm0, %v6438_v1 }
0x1f67   :  { %5927 = vmatmul.mubr.msk.bf16.vlgmr.msra.gmra.mrb[96].mxu0 %vm245_vm2, %v3039_v33 }
0x1f68   :  { %5938 = vmatprep.mubr.msk.bf16.mxu0 %vm6439_vm0, %v6438_v1 }
0x2030   :  { %v7266_v63 = vpop.f32.mrb[84].mxu1 }
0x2031   :  { %v5910_v6 = vpop.f32.mrb[85].mxu1 }
0x2032   :  { %v2934_v34 = vpop.f32.mrb[86].mxu1  ;;  %v7268_v35 = vpop.f32.mrb[92].mxu0 }
0x2033   :  { %v5911_v37 = vpop.f32.mrb[87].mxu1  ;;  %v5916_v38 = vpop.f32.mrb[93].mxu0 }
0x2034   :  { %v2983_v40 = vpop.f32.mrb[94].mxu0 }
0x2035   :  { %v5917_v17 = vpop.f32.mrb[95].mxu0 }
0x2038   :  { %v3031_v41 = vpop.f32.mrb[88].mxu1 }
0x2039   :  { %v3032_v15 = vadd.f32 %v7221_v49, %v3031_v41  ;;  %v5922_v42 = vpop.f32.mrb[89].mxu1 }
0x203a   :  { %v3034_v43 = vpop.f32.mrb[90].mxu1  ;;  %v3082_v44 = vpop.f32.mrb[96].mxu0 }
0x203b   :  { %v3083_v47 = vadd.f32 %v7227_v56, %v3082_v44  ;;  %v5923_v50 = vpop.f32.mrb[91].mxu1  ;;  %v5928_v25 = vpop.f32.mrb[97].mxu0  ;;  %v3088_v55 = vsel %vm245_vm2, %v3032_v15, -inf }
0x203c   :  { %v3085_v57 = vpop.f32.mrb[98].mxu0  ;;  %3089 = vmax.xlane.f32.xlu0 %v3088_v55 }
0x203d   :  { %v5929_v59 = vpop.f32.mrb[99].mxu0  ;;  %v3091_v58 = vsel %vm245_vm2, %v3083_v47, -inf }
0x203e   :  { %3092 = vmax.xlane.f32.xlu1 %v3091_v58 }
0x204f   :  { %3160 = vrot.lane.b32.xlu1 %v7198_v27, %s7829_s27 }
0x2053   :  { %3210 = vrot.lane.b32.xlu1 %v7193_v39, %s7830_s29 }
0x2057   :  { %3260 = vrot.lane.b32.xlu1 %v7198_v27, %s7830_s29 }
0x205b   :  { %3258 = vrot.lane.b32.xlu1 %v7208_v46, %s7830_s29 }
0x20c9   :  { %v3090_v60 = vpop.xlane.xlu0 %3089 }
0x20ca   :  { %v3094_v61 = vsub.f32 %v3032_v15, %v3090_v60 }
0x20cb   :  { %v3093_v2 = vpop.xlane.xlu1 %3092 }
0x20cc   :  { %v3096_v3 = vmul.f32 1.442695, %v3094_v61  ;;  %v3095_v8 = vsub.f32 %v3083_v47, %v3093_v2 }
0x20ce   :  { %6342 = vpow2.f32 %v3096_v3  ;;  %v3098_v10 = vmul.f32 1.442695, %v3095_v8 }
0x20cf   :  { %v3161_v13 = vpop.permute.xlu1 %3160 }
0x20d0   :  { %6344 = vpow2.f32 %v3098_v10  ;;  %v3166_v11 = vsel %vm368_vm3, %v3161_v13, 0 }
0x20d1   :  { %5937 = vmatpush3.bf16.msra.mxu0 %v3166_v11 }
0x20d2   :  { %5948 = vmatprep.subr.bf16.mxu0 %v6438_v1 }
0x20d3   :  { %v3211_v51 = vpop.permute.xlu1 %3210 }
0x20d4   :  { %v3216_v32 = vsel %vm245_vm2, %v3211_v51, 0 }
0x20d7   :  { %v3261_v54 = vpop.permute.xlu1 %3260 }
0x20d8   :  { %v6343_v12 = vpop.eup %6342  ;;  %v3266_v26 = vsel %vm245_vm2, %v3261_v54, 0 }
0x20d9   :  { %v3100_v18 = vsel %vm245_vm2, %v6343_v12, 0.0 }
0x20da   :  { %v6345_v14 = vpop.eup %6344  ;;  %3101 = vadd.xlane.f32.xlu0 %v3100_v18 }
0x20db   :  { %v3103_v16 = vsel %vm245_vm2, %v6345_v14, 0.0  ;;  %v3259_v20 = vpop.permute.xlu1 %3258 }
0x20de   :  { %3104 = vadd.xlane.f32.xlu0 %v3103_v16 }
0x20f4   :  { %3112 = vrot.lane.b32.xlu0 %v7193_v39, %s7829_s27 }
0x20f8   :  { %3208 = vrot.lane.b32.xlu0 %v7206_v45, %s7830_s29 }
0x2167   :  { %v3102_v21 = vpop.xlane.xlu0 %3101 }
0x2168   :  { %6346 = vrcp.f32 %v3102_v21 }
0x216b   :  { %v3105_v19 = vpop.xlane.xlu0 %3104 }
0x216c   :  { %6348 = vrcp.f32 %v3105_v19 }
0x216f   :  { %v3113_v22 = vpop.permute.xlu0 %3112 }
0x2170   :  { %v3118_v23 = vsel %vm368_vm3, %v3113_v22, 0 }
0x2171   :  { %5931 = vmatpush3.bf16.msra.mxu1 %v3118_v23 }
0x2172   :  { %v6347_v0 = vpop.eup %6346  ;;  %5942 = vmatprep.subr.bf16.mxu1 %v6438_v1 }
0x2173   :  { %v3107_v52 = vmul.f32 %v6347_v0, %v6343_v12  ;;  %v3209_v28 = vpop.permute.xlu0 %3208 }
0x2175   :  { %v3110_v30 = vpack.c.bf16 %v3107_v52, %v3107_v52 }
0x2176   :  { %v6349_v48 = vpop.eup %6348 }
0x2177   :  { %v3109_v53 = vmul.f32 %v6349_v48, %v6345_v14  ;;  %5933 = vmatmul.mubr.msk.bf16.vlgmr.msra.gmra.mrb[92].mxu1 %vm245_vm2, %v3110_v30 }
0x2178   :  { %5944 = vmatprep.mubr.msk.bf16.mxu1 %vm6439_vm0, %v6438_v1 }
0x2179   :  { %v3111_v24 = vpack.c.bf16 %v3109_v53, %v3109_v53 }
0x217a   :  { %5943 = vmatpush3.bf16.xpose.msra.mxu1 %v3216_v32 }
0x217b   :  { %5939 = vmatmul.mubr.msk.bf16.vlgmr.msra.gmra.mrb[100].mxu0 %vm245_vm2, %v3111_v24  ;;  %5954 = vmatprep.subr.bf16.mxu1 %v6438_v1 }
0x217c   :  { %5949 = vmatpush3.bf16.xpose.msra.mxu0 %v3266_v26  ;;  %5950 = vmatprep.mubr.msk.bf16.mxu0 %vm6439_vm0, %v6438_v1 }
0x217d   :  { %5960 = vmatprep.subr.bf16.mxu0 %v6438_v1 }
0x2181   :  { %5945 = vmatmul.mubr.msk.bf16.vlgmr.msra.gmra.mrb[96].mxu1 %vm245_vm2, %v3209_v28 }
0x2182   :  { %5956 = vmatprep.mubr.msk.bf16.mxu1 %vm6439_vm0, %v6438_v1 }
0x2183   :  { %5951 = vmatmul.mubr.msk.bf16.vlgmr.msra.gmra.mrb[104].mxu0 %vm245_vm2, %v3259_v20 }
0x2184   :  { %5962 = vmatprep.mubr.msk.bf16.mxu0 %vm6439_vm0, %v6438_v1 }
0x224a   :  { %v7308_v4 = vpop.f32.mrb[92].mxu1 }
0x224b   :  { %v5934_v62 = vpop.f32.mrb[93].mxu1 }
0x224c   :  { %v3157_v9 = vpop.f32.mrb[94].mxu1 }
0x224d   :  { %v5935_v5 = vpop.f32.mrb[95].mxu1 }
0x224e   :  { %v7310_v33 = vpop.f32.mrb[100].mxu0 }
0x224f   :  { %v6190_v6 = vpack.i.bf16 %v7310_v33, %v7308_v4  ;;  %v5940_v34 = vpop.f32.mrb[101].mxu0 }
0x2250   :  { %v3205_v37 = vpop.f32.mrb[102].mxu0 }
0x2251   :  { %v5941_v38 = vpop.f32.mrb[103].mxu0 }
0x2254   :  { %v3252_v40 = vpop.f32.mrb[96].mxu1 }
0x2255   :  { %v3253_v17 = vadd.f32 %v7221_v49, %v3252_v40  ;;  %v5946_v41 = vpop.f32.mrb[97].mxu1 }
0x2256   :  { %v3255_v15 = vpop.f32.mrb[98].mxu1  ;;  %v3302_v42 = vpop.f32.mrb[104].mxu0 }
0x2257   :  { %v3303_v43 = vadd.f32 %v7227_v56, %v3302_v42  ;;  %v5947_v44 = vpop.f32.mrb[99].mxu1  ;;  %v5952_v47 = vpop.f32.mrb[105].mxu0  ;;  %v3308_v50 = vsel %vm245_vm2, %v3253_v17, -inf }
0x2258   :  { %v3305_v25 = vpop.f32.mrb[106].mxu0  ;;  %3309 = vmax.xlane.f32.xlu0 %v3308_v50 }
0x2259   :  { %v5953_v55 = vpop.f32.mrb[107].mxu0  ;;  %v3311_v57 = vsel %vm245_vm2, %v3303_v43, -inf }
0x225a   :  { %3312 = vmax.xlane.f32.xlu1 %v3311_v57 }
0x226b   :  { %3380 = vrot.lane.b32.xlu1 %v7198_v27, %s7831_s5 }
0x226f   :  { %3430 = vrot.lane.b32.xlu1 %v7193_v39, %s7832_s4 }
0x2273   :  { %3480 = vrot.lane.b32.xlu1 %v7198_v27, %s7832_s4 }
0x2277   :  { %3478 = vrot.lane.b32.xlu1 %v7208_v46, %s7832_s4 }
0x22e5   :  { %v3310_v59 = vpop.xlane.xlu0 %3309 }
0x22e6   :  { %v3314_v58 = vsub.f32 %v3253_v17, %v3310_v59 }
0x22e7   :  { %v3313_v60 = vpop.xlane.xlu1 %3312 }
0x22e8   :  { %v3316_v61 = vmul.f32 1.442695, %v3314_v58  ;;  %v3315_v2 = vsub.f32 %v3303_v43, %v3313_v60 }
0x22ea   :  { %6350 = vpow2.f32 %v3316_v61  ;;  %v3318_v3 = vmul.f32 1.442695, %v3315_v2 }
0x22eb   :  { %v3381_v8 = vpop.permute.xlu1 %3380 }
0x22ec   :  { %6352 = vpow2.f32 %v3318_v3  ;;  %v3386_v10 = vsel %vm368_vm3, %v3381_v8, 0 }
0x22ed   :  { %5961 = vmatpush3.bf16.msra.mxu0 %v3386_v10 }
0x22ee   :  { %5972 = vmatprep.subr.bf16.mxu0 %v6438_v1 }
0x22ef   :  { %v3431_v22 = vpop.permute.xlu1 %3430 }
0x22f3   :  { %v3481_v30 = vpop.permute.xlu1 %3480 }
0x22f4   :  { %v6351_v13 = vpop.eup %6350  ;;  %v3486_v53 = vsel %vm245_vm2, %v3481_v30, 0 }
0x22f5   :  { %v3320_v11 = vsel %vm245_vm2, %v6351_v13, 0.0 }
0x22f6   :  { %v6353_v12 = vpop.eup %6352  ;;  %3321 = vadd.xlane.f32.xlu0 %v3320_v11 }
0x22f7   :  { %v3323_v46 = vsel %vm245_vm2, %v6353_v12, 0.0  ;;  %v3479_v32 = vpop.permute.xlu1 %3478 }
0x22fa   :  { %3324 = vadd.xlane.f32.xlu0 %v3323_v46 }
0x2310   :  { %3332 = vrot.lane.b32.xlu0 %v7193_v39, %s7831_s5 }
0x2314   :  { %3428 = vrot.lane.b32.xlu0 %v7206_v45, %s7832_s4  ;;  %v3436_v45 = vsel %vm245_vm2, %v3431_v22, 0 }
0x2383   :  { %v3322_v18 = vpop.xlane.xlu0 %3321 }
0x2384   :  { %6354 = vrcp.f32 %v3322_v18 }
0x2387   :  { %v3325_v14 = vpop.xlane.xlu0 %3324 }
0x2388   :  { %6356 = vrcp.f32 %v3325_v14 }
0x238b   :  { %v3333_v16 = vpop.permute.xlu0 %3332 }
0x238c   :  { %v3338_v21 = vsel %vm368_vm3, %v3333_v16, 0  ;;  %v6242_v16 = vld [vmem:[%s7820_s7 + $0x10] sm:$0xff]  }
0x238d   :  { %5955 = vmatpush3.bf16.msra.mxu1 %v3338_v21  ;;  %v6243_v21 = vld [vmem:[%s7820_s7 + $0x18] sm:$0xff]  }
0x238e   :  { %v6355_v19 = vpop.eup %6354  ;;  %5966 = vmatprep.subr.bf16.mxu1 %v6438_v1 }
0x238f   :  { %v3327_v23 = vmul.f32 %v6355_v19, %v6351_v13  ;;  %v3429_v54 = vpop.permute.xlu0 %3428 }
0x2391   :  { %v3330_v0 = vpack.c.bf16 %v3327_v23, %v3327_v23 }
0x2392   :  { %v6357_v51 = vpop.eup %6356 }
0x2393   :  { %v3329_v52 = vmul.f32 %v6357_v51, %v6353_v12  ;;  %5957 = vmatmul.mubr.msk.bf16.vlgmr.msra.gmra.mrb[100].mxu1 %vm245_vm2, %v3330_v0 }
0x2394   :  { %5968 = vmatprep.mubr.msk.bf16.mxu1 %vm6439_vm0, %v6438_v1 }
0x2395   :  { %v3331_v48 = vpack.c.bf16 %v3329_v52, %v3329_v52 }
0x2396   :  { %5967 = vmatpush3.bf16.xpose.msra.mxu1 %v3436_v45 }
0x2397   :  { %5963 = vmatmul.mubr.msk.bf16.vlgmr.msra.gmra.mrb[108].mxu0 %vm245_vm2, %v3331_v48  ;;  %5978 = vmatprep.subr.bf16.mxu1 %v6438_v1 }
0x2398   :  { %5973 = vmatpush3.bf16.xpose.msra.mxu0 %v3486_v53  ;;  %5974 = vmatprep.mubr.msk.bf16.mxu0 %vm6439_vm0, %v6438_v1 }
0x2399   :  { %5984 = vmatprep.subr.bf16.mxu0 %v6438_v1 }
0x239d   :  { %5969 = vmatmul.mubr.msk.bf16.vlgmr.msra.gmra.mrb[104].mxu1 %vm245_vm2, %v3429_v54 }
0x239e   :  { %5980 = vmatprep.mubr.msk.bf16.mxu1 %vm6439_vm0, %v6438_v1 }
0x239f   :  { %5975 = vmatmul.mubr.msk.bf16.vlgmr.msra.gmra.mrb[112].mxu0 %vm245_vm2, %v3479_v32 }
0x23a0   :  { %5986 = vmatprep.mubr.msk.bf16.mxu0 %vm6439_vm0, %v6438_v1 }
0x2466   :  { %v3374_v24 = vpop.f32.mrb[100].mxu1 }
0x2467   :  { %v5958_v26 = vpop.f32.mrb[101].mxu1 }
0x2468   :  { %v3377_v28 = vpop.f32.mrb[102].mxu1 }
0x2469   :  { %v5959_v20 = vpop.f32.mrb[103].mxu1 }
0x246a   :  { %v3422_v62 = vpop.f32.mrb[108].mxu0 }
0x246b   :  { %v6195_v9 = vpack.i.bf16 %v3422_v62, %v3374_v24  ;;  %v5964_v5 = vpop.f32.mrb[109].mxu0 }
0x246c   :  { %v3425_v34 = vpop.f32.mrb[110].mxu0 }
0x246d   :  { %v5965_v37 = vpop.f32.mrb[111].mxu0 }
0x2470   :  { %v3472_v38 = vpop.f32.mrb[104].mxu1 }
0x2471   :  { %v3473_v40 = vadd.f32 %v7221_v49, %v3472_v38  ;;  %v5970_v17 = vpop.f32.mrb[105].mxu1 }
0x2472   :  { %v3475_v41 = vpop.f32.mrb[106].mxu1  ;;  %v3522_v15 = vpop.f32.mrb[112].mxu0 }
0x2473   :  { %v3523_v42 = vadd.f32 %v7227_v56, %v3522_v15  ;;  %v5971_v43 = vpop.f32.mrb[107].mxu1  ;;  %v5976_v44 = vpop.f32.mrb[113].mxu0  ;;  %v3528_v47 = vsel %vm245_vm2, %v3473_v40, -inf }
0x2474   :  { %v3525_v50 = vpop.f32.mrb[114].mxu0  ;;  %3529 = vmax.xlane.f32.xlu0 %v3528_v47 }
0x2475   :  { %v5977_v25 = vpop.f32.mrb[115].mxu0  ;;  %v3531_v55 = vsel %vm245_vm2, %v3523_v42, -inf }
0x2476   :  { %3532 = vmax.xlane.f32.xlu1 %v3531_v55 }
0x2487   :  { %3600 = vrot.lane.b32.xlu1 %v7198_v27, %s7833_s28 }
0x248b   :  { %6191 = vrot.lane.b32.xlu1 %v6190_v6, %s7834_s2 }
0x248f   :  { %6196 = vrot.lane.b32.xlu1 %v6195_v9, %s7835_s13 }
0x2501   :  { %v3530_v49 = vpop.xlane.xlu0 %3529 }
0x2502   :  { %v3534_v56 = vsub.f32 %v3473_v40, %v3530_v49 }
0x2503   :  { %v3533_v57 = vpop.xlane.xlu1 %3532 }
0x2504   :  { %v3536_v59 = vmul.f32 1.442695, %v3534_v56  ;;  %v3535_v58 = vsub.f32 %v3523_v42, %v3533_v57 }
0x2506   :  { %6358 = vpow2.f32 %v3536_v59  ;;  %v3538_v60 = vmul.f32 1.442695, %v3535_v58 }
0x2507   :  { %v3601_v61 = vpop.permute.xlu1 %3600 }
0x2508   :  { %6360 = vpow2.f32 %v3538_v60  ;;  %v3606_v2 = vsel %vm368_vm3, %v3601_v61, 0 }
0x2509   :  { %5985 = vmatpush3.bf16.msra.mxu0 %v3606_v2 }
0x250a   :  { %5998 = vmatprep.subr.bf16.mxu0 %v6438_v1 }
0x250b   :  { %v6192_v53 = vpop.permute.xlu1 %6191 }
0x250c   :  { %v6194_v32 = vunpack.i.h.bf16 %v6192_v53  ;;  %v6193_v24 = vunpack.i.l.bf16 %v6192_v53 }
0x250e   :  { %v3673_v62 = vsel %vm245_vm2, %v7268_v35, %v6194_v32  ;;  %v3672_v9 = vsel %vm245_vm2, %v7266_v63, %v6193_v24  ;;  %v5347_v63 = vld [vmem:[%s7838_s14 + $0x1] ss:$0 sm:$0xff]  ;;  %s7841_s14 = sld [smem:[#allocation15_spill]] }
0x250f   :  { %v6197_v54 = vpop.permute.xlu1 %6196 }
0x2510   :  { %v6359_v27 = vpop.eup %6358  ;;  %v6199_v26 = vunpack.i.h.bf16 %v6197_v54  ;;  %v6198_v28 = vunpack.i.l.bf16 %v6197_v54 }
0x2511   :  { %v3540_v4 = vsel %vm245_vm2, %v6359_v27, 0.0 }
0x2512   :  { %v6361_v33 = vpop.eup %6360  ;;  %3541 = vadd.xlane.f32.xlu0 %v3540_v4  ;;  %v3675_v37 = vsel %vm1149_vm4, %v3673_v62, %v6199_v26  ;;  %v3674_v38 = vsel %vm1149_vm4, %v3672_v9, %v6198_v28  ;;  %v6245_v4 = vld [vmem:[%s7839_s30 + $0x18] sm:$0xff]   ;;  %v5370_v9 = vld [vmem:[%s7844_s15 + $0x1] ss:$0 sm:$0xff] }
0x2513   :  { %v3543_v6 = vsel %vm245_vm2, %v6361_v33, 0.0 }
0x2516   :  { %3544 = vadd.xlane.f32.xlu0 %v3543_v6  ;;  %v6247_v6 = vld [vmem:[%s7840_s1 + $0x18] sm:$0xff]  }
0x252c   :  { %3552 = vrot.lane.b32.xlu0 %v7193_v39, %s7833_s28 }
0x259f   :  { %v3542_v3 = vpop.xlane.xlu0 %3541 }
0x25a0   :  { %6362 = vrcp.f32 %v3542_v3 }
0x25a3   :  { %v3545_v8 = vpop.xlane.xlu0 %3544 }
0x25a4   :  { %6364 = vrcp.f32 %v3545_v8 }
0x25a7   :  { %v3553_v10 = vpop.permute.xlu0 %3552 }
0x25a8   :  { %v3558_v13 = vsel %vm368_vm3, %v3553_v10, 0 }
0x25a9   :  { %5979 = vmatpush3.bf16.msra.mxu1 %v3558_v13 }
0x25aa   :  { %v6363_v11 = vpop.eup %6362  ;;  %5990 = vmatprep.subr.bf16.mxu1 %v6438_v1 }
0x25ab   :  { %v3547_v12 = vmul.f32 %v6363_v11, %v6359_v27 }
0x25ad   :  { %v3550_v46 = vpack.c.bf16 %v3547_v12, %v3547_v12 }
0x25ae   :  { %v6365_v18 = vpop.eup %6364 }
0x25af   :  { %v3549_v14 = vmul.f32 %v6365_v18, %v6361_v33  ;;  %5981 = vmatmul.mubr.msk.bf16.vlgmr.msra.gmra.mrb[108].mxu1 %vm245_vm2, %v3550_v46  ;;  %v6246_v33 = vld [vmem:[%s7840_s1 + $0x10] sm:$0xff]   ;;  %v5351_v18 = vld [vmem:[%s7841_s14 + $0x1] ss:$0 sm:$0xff] }
0x25b0   :  { %5994 = vmatprep.mubr.msk.bf16.mxu1 %vm6439_vm0, %v6438_v1  ;;  %5991 = vmatpush3.bf16.msra.mxu1 %v6242_v16 }
0x25b1   :  { %v3551_v39 = vpack.c.bf16 %v3549_v14, %v3549_v14  ;;  %5992 = vmatprep.subr.bf16.mxu1 %v6438_v1 }
0x25b3   :  { %5987 = vmatmul.mubr.msk.bf16.vlgmr.msra.gmra.mrb[116].mxu0 %vm245_vm2, %v3551_v39 }
0x25b4   :  { %6002 = vmatprep.mubr.msk.bf16.mxu0 %vm6439_vm0, %v6438_v1  ;;  %5993 = vmatpush3.bf16.msra.mxu1 %v6243_v21 }
0x25b5   :  { %5999 = vmatpush3.bf16.msra.mxu0 %v6246_v33 }
0x25b6   :  { %6000 = vmatprep.subr.bf16.mxu0 %v6438_v1 }
0x25b9   :  { %6001 = vmatpush3.bf16.msra.mxu0 %v6247_v6 }
0x25ba   :  { %6014 = vmatprep.subr.bf16.mxu0 %v6438_v1 }
0x2682   :  { %v3594_v19 = vpop.f32.mrb[108].mxu1 }
0x2683   :  { %v5982_v22 = vpop.f32.mrb[109].mxu1 }
0x2684   :  { %v3597_v23 = vpop.f32.mrb[110].mxu1 }
0x2685   :  { %v5983_v0 = vpop.f32.mrb[111].mxu1 }
0x2686   :  { %v3642_v51 = vpop.f32.mrb[116].mxu0 }
0x2687   :  { %v6200_v52 = vpack.i.bf16 %v3642_v51, %v3594_v19  ;;  %v5988_v30 = vpop.f32.mrb[117].mxu0  ;;  %v5374_v51 = vld [vmem:[%s7843_s17 + $0x1] ss:$0 sm:$0xff] }
0x2688   :  { %v3645_v45 = vpop.f32.mrb[118].mxu0 }
0x2689   :  { %v5989_v48 = vpop.f32.mrb[119].mxu0  ;;  %6201 = vrot.lane.b32.xlu0 %v6200_v52, %s7837_s8 }
0x26fb   :  { %v6202_v20 = vpop.permute.xlu0 %6201 }
0x26fc   :  { %v6204_v5 = vunpack.i.h.bf16 %v6202_v20  ;;  %v6203_v34 = vunpack.i.l.bf16 %v6202_v20 }
0x26fe   :  { %v3677_v40 = vsel %vm1152_vm5, %v3675_v37, %v6204_v5  ;;  %v3676_v17 = vsel %vm1152_vm5, %v3674_v38, %v6203_v34 }
0x26ff   :  { %v3678_v41 = vpack.c.bf16 %v3677_v40, %v3676_v17 }
0x2701   :  { %5995 = vmatmul.mubr.msk.bf16.vlgmr.msra.gmra.mrb[112].mxu1 %vm137_vm1, %v3678_v41 }
0x2702   :  { %6010 = vmatprep.mubr.msk.bf16.mxu1 %vm137_vm1, %v6862_v7 }
0x27d4   :  { %v3734_v35 = vpop.f32.mrb[112].mxu1 }
0x27d5   :  { %v3735_v15 = vadd.f32 %v5347_v63, %v3734_v35  ;;  %v5996_v42 = vpop.f32.mrb[113].mxu1 }
0x27d6   :  { %v3737_v43 = vpop.f32.mrb[114].mxu1 }
0x27d7   :  { %v3741_v44 = vadd.f32 %v3735_v15, %v7170_v29  ;;  %v3738_v47 = vadd.f32 %v5347_v63, %v3737_v43  ;;  %v5997_v50 = vpop.f32.mrb[115].mxu1  ;;  %v7470_v15 = vld [vmem:[%s7845_s3] sm:$0xff] }
0x27d8   :  { %v7476_v50 = vld [vmem:[%s7845_s3 + $0x8] sm:$0xff] }
0x27d9   :  { %v3742_v25 = vadd.f32 %v3738_v47, %v7172_v31  ;;  %v3743_v55 = vsel %vm137_vm1, %v3741_v44, 0.0  ;;  %v6244_v31 = vld [vmem:[%s7839_s30 + $0x10] sm:$0xff]   ;;  %s7842_s30 = sld [smem:[#allocation16_spill]] }
0x27da   :  { %3744 = vadd.xlane.f32.xlu1 %v3743_v55  ;;  %6006 = vmatprep.subr.bf16.mxu1 %v6244_v31 }
0x27db   :  { %v3746_v49 = vsel %vm137_vm1, %v3742_v25, 0.0  ;;  %6007 = vmatpush3.bf16.msra.mxu1 %v6244_v31 }
0x27dc   :  { %3747 = vadd.xlane.f32.xlu0 %v3746_v49  ;;  %6008 = vmatprep.subr.bf16.mxu1 %v6245_v4 }
0x27df   :  { %6009 = vmatpush3.bf16.msra.mxu1 %v6245_v4  ;;  %v5352_v21 = vld [vmem:[%s7842_s30 + $0x1] ss:$0 sm:$0xff] }
0x27e0   :  { %6020 = vmatprep.subr.bf16.mxu1 %v6438_v1 }
0x27e2   :  { %6011 = vmatmul.mubr.msk.bf16.vlgmr.msra.gmra.mrb[116].mxu1 %vm137_vm1, %v6870_v36 }
0x27e3   :  { %6022 = vmatprep.mubr.msk.bf16.mxu1 %vm6439_vm0, %v6438_v1 }
0x2867   :  { %v3745_v7 = vpop.xlane.xlu1 %3744 }
0x2868   :  { %v3749_v56 = vmul.f32 0.03125, %v3745_v7 }
0x2869   :  { %v3748_v57 = vpop.xlane.xlu0 %3747 }
0x286a   :  { %v3751_v59 = vsub.f32 %v3741_v44, %v3749_v56  ;;  %v3750_v58 = vmul.f32 0.03125, %v3748_v57 }
0x286c   :  { %v3752_v60 = vsub.f32 %v3742_v25, %v3750_v58  ;;  %v3753_v61 = vmul.f32 %v3751_v59, %v3751_v59 }
0x286e   :  { %v3755_v2 = vsel %vm137_vm1, %v3753_v61, 0.0  ;;  %v3754_v29 = vmul.f32 %v3752_v60, %v3752_v60 }
0x286f   :  { %3756 = vadd.xlane.f32.xlu0 %v3755_v2 }
0x2870   :  { %v3758_v27 = vsel %vm137_vm1, %v3754_v29, 0.0 }
0x2873   :  { %3759 = vadd.xlane.f32.xlu0 %v3758_v27 }
0x28b5   :  { %v6012_v52 = vpop.f32.mrb[116].mxu1 }
0x28b6   :  { %v3934_v30 = vadd.f32 %v6012_v52, %v5374_v51  ;;  %v3925_v45 = vpop.f32.mrb[117].mxu1 }
0x28b7   :  { %v3926_v48 = vadd.f32 %v5374_v51, %v3925_v45  ;;  %v6013_v53 = vpop.f32.mrb[118].mxu1 }
0x28b8   :  { %v3937_v54 = vadd.f32 %v6013_v53, %v5374_v51  ;;  %v3928_v32 = vpop.f32.mrb[119].mxu1 }
0x28b9   :  { %v3929_v24 = vadd.f32 %v5374_v51, %v3928_v32 }
0x28ba   :  { %v7442_v26 = vpack.c.bf16 %v3937_v54, %v3934_v30 }
0x28bb   :  { %v7444_v28 = vpack.c.bf16 %v3929_v24, %v3926_v48 }
0x28bc   :  { %v3994_v20 = vsel %vm245_vm2, %v7442_v26, 0 }
0x28bd   :  { %v3948_v62 = vsel %vm245_vm2, %v7444_v28, 0  ;;  %6021 = vmatpush3.bf16.xpose.msra.mxu1 %v3994_v20 }
0x28be   :  { %6032 = vmatprep.subr.bf16.mxu1 %v6438_v1 }
0x28fc   :  { %v3757_v3 = vpop.xlane.xlu0 %3756 }
0x28fd   :  { %v3761_v8 = vmul.f32 0.032258064, %v3757_v3 }
0x28ff   :  { %v3763_v36 = vadd.f32 1e-10, %v3761_v8 }
0x2900   :  { %v3760_v10 = vpop.xlane.xlu0 %3759 }
0x2901   :  { %6366 = vrsqrt.f32 %v3763_v36  ;;  %v3762_v13 = vmul.f32 0.032258064, %v3760_v10 }
0x2903   :  { %v3764_v11 = vadd.f32 1e-10, %v3762_v13 }
0x2905   :  { %6368 = vrsqrt.f32 %v3764_v11 }
0x290b   :  { %v6367_v12 = vpop.eup %6366 }
0x290c   :  { %v3767_v46 = vmul.f32 %v6367_v12, %v3751_v59 }
0x290e   :  { %v3775_v39 = vmul.f32 %v5351_v18, %v3767_v46 }
0x290f   :  { %v6369_v14 = vpop.eup %6368 }
0x2910   :  { %v3768_v16 = vmul.f32 %v6369_v14, %v3752_v60  ;;  %v7430_v22 = vadd.f32 %v5352_v21, %v3775_v39 }
0x2912   :  { %v3776_v19 = vmul.f32 %v5351_v18, %v3768_v16 }
0x2914   :  { %v7432_v23 = vadd.f32 %v5352_v21, %v3776_v19 }
0x2916   :  { %v3810_v0 = vpack.c.bf16 %v7432_v23, %v7430_v22 }
0x2918   :  { %6003 = vmatmul.mubr.msk.bf16.vlgmr.msra.gmra.mrb[120].mxu0 %vm137_vm1, %v3810_v0 }
0x2919   :  { %6016 = vmatprep.mubr.msk.bf16.mxu0 %vm6439_vm0, %v6438_v1  ;;  %6015 = vmatpush3.bf16.xpose.msra.mxu0 %v3948_v62 }
0x291a   :  { %6026 = vmatprep.subr.bf16.mxu0 %v6438_v1 }
0x29eb   :  { %v3866_v5 = vpop.f32.mrb[120].mxu0 }
0x29ec   :  { %v3867_v34 = vadd.f32 %v5370_v9, %v3866_v5  ;;  %v6004_v37 = vpop.f32.mrb[121].mxu0 }
0x29ed   :  { %v3869_v38 = vpop.f32.mrb[122].mxu0 }
0x29ee   :  { %v7455_v40 = vpack.c.bf16 %v3867_v34, %v3867_v34  ;;  %v3870_v17 = vadd.f32 %v5370_v9, %v3869_v38  ;;  %v6005_v41 = vpop.f32.mrb[123].mxu0 }
0x29f0   :  { %v7457_v63 = vpack.c.bf16 %v3870_v17, %v3870_v17  ;;  %6017 = vmatmul.mubr.msk.bf16.vlgmr.msra.gmra.mrb[124].mxu0 %vm245_vm2, %v7455_v40 }
0x29f1   :  { %6028 = vmatprep.mubr.msk.bf16.mxu0 %vm6439_vm0, %v6438_v1 }
0x29f2   :  { %6023 = vmatmul.mubr.msk.bf16.vlgmr.msra.gmra.mrb[120].mxu1 %vm245_vm2, %v7457_v63 }
0x29f3   :  { %6034 = vmatprep.mubr.msk.bf16.mxu1 %vm6439_vm0, %v6438_v1 }
0x2ac3   :  { %v3984_v35 = vpop.f32.mrb[124].mxu0 }
0x2ac4   :  { %v3985_v42 = vadd.f32 %v7470_v15, %v3984_v35  ;;  %v6018_v43 = vpop.f32.mrb[125].mxu0 }
0x2ac5   :  { %v3987_v44 = vpop.f32.mrb[126].mxu0  ;;  %v4030_v47 = vpop.f32.mrb[120].mxu1 }
0x2ac6   :  { %v4031_v25 = vadd.f32 %v7476_v50, %v4030_v47  ;;  %v6019_v55 = vpop.f32.mrb[127].mxu0  ;;  %v6024_v49 = vpop.f32.mrb[121].mxu1  ;;  %v4036_v7 = vsel %vm1149_vm4, %v3985_v42, -inf }
0x2ac7   :  { %v4033_v56 = vpop.f32.mrb[122].mxu1  ;;  %4037 = vmax.xlane.f32.xlu1 %v4036_v7 }
0x2ac8   :  { %v6025_v57 = vpop.f32.mrb[123].mxu1  ;;  %v4039_v59 = vsel %vm1149_vm4, %v4031_v25, -inf }
0x2ac9   :  { %4040 = vmax.xlane.f32.xlu0 %v4039_v59 }
0x2ad8   :  { %4061 = vrot.lane.b32.xlu1 %v7444_v28, %s7827_s11 }
0x2b54   :  { %v4038_v58 = vpop.xlane.xlu1 %4037 }
0x2b55   :  { %v4042_v60 = vsub.f32 %v3985_v42, %v4038_v58 }
0x2b56   :  { %v4041_v61 = vpop.xlane.xlu0 %4040 }
0x2b57   :  { %v4044_v2 = vmul.f32 1.442695, %v4042_v60  ;;  %v4043_v29 = vsub.f32 %v4031_v25, %v4041_v61 }
0x2b58   :  { %v4062_v27 = vpop.permute.xlu1 %4061 }
0x2b59   :  { %6370 = vpow2.f32 %v4044_v2  ;;  %v4046_v31 = vmul.f32 1.442695, %v4043_v29  ;;  %6027 = vmatpush3.bf16.msra.mxu0 %v4062_v27 }
0x2b5a   :  { %6038 = vmatprep.subr.bf16.mxu0 %v6438_v1 }
0x2b5b   :  { %6372 = vpow2.f32 %v4046_v31 }
0x2b63   :  { %v6371_v4 = vpop.eup %6370 }
0x2b64   :  { %v4048_v33 = vsel %vm1149_vm4, %v6371_v4, 0.0 }
0x2b65   :  { %v6373_v6 = vpop.eup %6372  ;;  %4049 = vadd.xlane.f32.xlu1 %v4048_v33 }
0x2b66   :  { %v4051_v3 = vsel %vm1149_vm4, %v6373_v6, 0.0 }
0x2b67   :  { %4052 = vadd.xlane.f32.xlu0 %v4051_v3 }
0x2b76   :  { %4157 = vrot.lane.b32.xlu1 %v7444_v28, %s7828_s26 }
0x2b7a   :  { %4208 = vrot.lane.b32.xlu1 %v7442_v26, %s7828_s26 }
0x2b7d   :  { %4108 = vrot.lane.b32.xlu0 %v7442_v26, %s7827_s11 }
0x2b7e   :  { %4155 = vrot.lane.b32.xlu1 %v7455_v40, %s7828_s26 }
0x2b81   :  { %4206 = vrot.lane.b32.xlu0 %v7457_v63, %s7828_s26  ;;  %s7846_s26 = sld [smem:[#allocation21_spill]] }
0x2bf2   :  { %v4050_v8 = vpop.xlane.xlu1 %4049 }
0x2bf3   :  { %6374 = vrcp.f32 %v4050_v8 }
0x2bf4   :  { %v4053_v36 = vpop.xlane.xlu0 %4052 }
0x2bf5   :  { %6376 = vrcp.f32 %v4053_v36 }
0x2bf6   :  { %v4158_v13 = vpop.permute.xlu1 %4157 }
0x2bf7   :  { %v4163_v16 = vsel %vm245_vm2, %v4158_v13, 0 }
0x2bf8   :  { %v4109_v10 = vpop.permute.xlu0 %4108 }
0x2bf9   :  { %6033 = vmatpush3.bf16.msra.mxu1 %v4109_v10 }
0x2bfa   :  { %6044 = vmatprep.subr.bf16.mxu1 %v6438_v1  ;;  %v4209_v39 = vpop.permute.xlu1 %4208 }
0x2bfb   :  { %v4214_v19 = vsel %vm245_vm2, %v4209_v39, 0 }
0x2bfc   :  { %v4207_v51 = vpop.permute.xlu0 %4206 }
0x2bfd   :  { %v6375_v11 = vpop.eup %6374 }
0x2bfe   :  { %v4055_v12 = vmul.f32 %v6375_v11, %v6371_v4  ;;  %v4156_v0 = vpop.permute.xlu1 %4155 }
0x2bff   :  { %v6377_v46 = vpop.eup %6376 }
0x2c00   :  { %v4057_v18 = vmul.f32 %v6377_v46, %v6373_v6  ;;  %v4058_v14 = vpack.c.bf16 %v4055_v12, %v4055_v12 }
0x2c02   :  { %6029 = vmatmul.mubr.msk.bf16.vlgmr.msra.gmra.mrb[128].mxu0 %vm1149_vm4, %v4058_v14  ;;  %v4059_v21 = vpack.c.bf16 %v4057_v18, %v4057_v18 }
0x2c03   :  { %6039 = vmatpush3.bf16.xpose.msra.mxu0 %v4163_v16  ;;  %6040 = vmatprep.mubr.msk.bf16.mxu0 %vm6439_vm0, %v6438_v1 }
0x2c04   :  { %6035 = vmatmul.mubr.msk.bf16.vlgmr.msra.gmra.mrb[124].mxu1 %vm1149_vm4, %v4059_v21  ;;  %6050 = vmatprep.subr.bf16.mxu0 %v6438_v1 }
0x2c05   :  { %6045 = vmatpush3.bf16.xpose.msra.mxu1 %v4214_v19  ;;  %6046 = vmatprep.mubr.msk.bf16.mxu1 %vm6439_vm0, %v6438_v1 }
0x2c06   :  { %6056 = vmatprep.subr.bf16.mxu1 %v6438_v1 }
0x2c0a   :  { %6041 = vmatmul.mubr.msk.bf16.vlgmr.msra.gmra.mrb[132].mxu0 %vm245_vm2, %v4156_v0 }
0x2c0b   :  { %6052 = vmatprep.mubr.msk.bf16.mxu0 %vm6439_vm0, %v6438_v1 }
0x2c0c   :  { %6047 = vmatmul.mubr.msk.bf16.vlgmr.msra.gmra.mrb[128].mxu1 %vm245_vm2, %v4207_v51 }
0x2c0d   :  { %6058 = vmatprep.mubr.msk.bf16.mxu1 %vm6439_vm0, %v6438_v1 }
0x2cd5   :  { %v7513_v52 = vpop.f32.mrb[128].mxu0 }
0x2cd6   :  { %v6030_v30 = vpop.f32.mrb[129].mxu0 }
0x2cd7   :  { %v4104_v45 = vpop.f32.mrb[130].mxu0  ;;  %v7515_v48 = vpop.f32.mrb[124].mxu1 }
0x2cd8   :  { %v6031_v53 = vpop.f32.mrb[131].mxu0  ;;  %v6036_v54 = vpop.f32.mrb[125].mxu1 }
0x2cd9   :  { %v4151_v32 = vpop.f32.mrb[126].mxu1 }
0x2cda   :  { %v6037_v24 = vpop.f32.mrb[127].mxu1 }
0x2cdd   :  { %v4199_v20 = vpop.f32.mrb[132].mxu0 }
0x2cde   :  { %v4200_v62 = vadd.f32 %v7470_v15, %v4199_v20  ;;  %v6042_v9 = vpop.f32.mrb[133].mxu0 }
0x2cdf   :  { %v4202_v5 = vpop.f32.mrb[134].mxu0  ;;  %v4250_v34 = vpop.f32.mrb[128].mxu1 }
0x2ce0   :  { %v4251_v37 = vadd.f32 %v7476_v50, %v4250_v34  ;;  %v6043_v38 = vpop.f32.mrb[135].mxu0  ;;  %v6048_v17 = vpop.f32.mrb[129].mxu1  ;;  %v4256_v41 = vsel %vm1149_vm4, %v4200_v62, -inf }
0x2ce1   :  { %v4253_v35 = vpop.f32.mrb[130].mxu1  ;;  %4257 = vmax.xlane.f32.xlu1 %v4256_v41 }
0x2ce2   :  { %v6049_v42 = vpop.f32.mrb[131].mxu1  ;;  %v4259_v43 = vsel %vm1149_vm4, %v4251_v37, -inf }
0x2ce3   :  { %4260 = vmax.xlane.f32.xlu0 %v4259_v43 }
0x2cf2   :  { %4280 = vrot.lane.b32.xlu1 %v7444_v28, %s7829_s27 }
0x2cf6   :  { %4374 = vrot.lane.b32.xlu1 %v7444_v28, %s7830_s29 }
0x2cfa   :  { %4424 = vrot.lane.b32.xlu1 %v7442_v26, %s7830_s29 }
0x2cfe   :  { %4372 = vrot.lane.b32.xlu1 %v7455_v40, %s7830_s29 }
0x2d6e   :  { %v4258_v44 = vpop.xlane.xlu1 %4257 }
0x2d6f   :  { %v4262_v47 = vsub.f32 %v4200_v62, %v4258_v44 }
0x2d70   :  { %v4261_v25 = vpop.xlane.xlu0 %4260 }
0x2d71   :  { %v4264_v55 = vmul.f32 1.442695, %v4262_v47  ;;  %v4263_v49 = vsub.f32 %v4251_v37, %v4261_v25 }
0x2d72   :  { %v4281_v7 = vpop.permute.xlu1 %4280 }
0x2d73   :  { %6378 = vpow2.f32 %v4264_v55  ;;  %v4266_v56 = vmul.f32 1.442695, %v4263_v49  ;;  %6051 = vmatpush3.bf16.msra.mxu0 %v4281_v7 }
0x2d74   :  { %6062 = vmatprep.subr.bf16.mxu0 %v6438_v1 }
0x2d75   :  { %6380 = vpow2.f32 %v4266_v56 }
0x2d76   :  { %v4375_v31 = vpop.permute.xlu1 %4374 }
0x2d77   :  { %v4380_v3 = vsel %vm245_vm2, %v4375_v31, 0 }
0x2d7a   :  { %v4425_v36 = vpop.permute.xlu1 %4424 }
0x2d7b   :  { %v4430_v13 = vsel %vm245_vm2, %v4425_v36, 0 }
0x2d7d   :  { %v6379_v57 = vpop.eup %6378 }
0x2d7e   :  { %v4268_v59 = vsel %vm1149_vm4, %v6379_v57, 0.0  ;;  %v4373_v11 = vpop.permute.xlu1 %4372 }
0x2d7f   :  { %v6381_v58 = vpop.eup %6380  ;;  %4269 = vadd.xlane.f32.xlu0 %v4268_v59 }
0x2d80   :  { %v4271_v60 = vsel %vm1149_vm4, %v6381_v58, 0.0 }
0x2d83   :  { %4272 = vadd.xlane.f32.xlu0 %v4271_v60 }
0x2d99   :  { %4326 = vrot.lane.b32.xlu0 %v7442_v26, %s7829_s27 }
0x2d9d   :  { %4422 = vrot.lane.b32.xlu0 %v7457_v63, %s7830_s29 }
0x2e0c   :  { %v4270_v61 = vpop.xlane.xlu0 %4269 }
0x2e0d   :  { %6382 = vrcp.f32 %v4270_v61 }
0x2e10   :  { %v4273_v2 = vpop.xlane.xlu0 %4272 }
0x2e11   :  { %6384 = vrcp.f32 %v4273_v2 }
0x2e14   :  { %v4327_v29 = vpop.permute.xlu0 %4326 }
0x2e15   :  { %6057 = vmatpush3.bf16.msra.mxu1 %v4327_v29 }
0x2e16   :  { %6068 = vmatprep.subr.bf16.mxu1 %v6438_v1 }
0x2e17   :  { %v6383_v27 = vpop.eup %6382 }
0x2e18   :  { %v4275_v4 = vmul.f32 %v6383_v27, %v6379_v57  ;;  %v4423_v12 = vpop.permute.xlu0 %4422 }
0x2e1a   :  { %v4278_v33 = vpack.c.bf16 %v4275_v4, %v4275_v4 }
0x2e1b   :  { %v6385_v6 = vpop.eup %6384 }
0x2e1c   :  { %v4277_v8 = vmul.f32 %v6385_v6, %v6381_v58  ;;  %6053 = vmatmul.mubr.msk.bf16.vlgmr.msra.gmra.mrb[136].mxu0 %vm1149_vm4, %v4278_v33 }
0x2e1d   :  { %6063 = vmatpush3.bf16.xpose.msra.mxu0 %v4380_v3  ;;  %6064 = vmatprep.mubr.msk.bf16.mxu0 %vm6439_vm0, %v6438_v1 }
0x2e1e   :  { %v4279_v10 = vpack.c.bf16 %v4277_v8, %v4277_v8  ;;  %6074 = vmatprep.subr.bf16.mxu0 %v6438_v1 }
0x2e20   :  { %6059 = vmatmul.mubr.msk.bf16.vlgmr.msra.gmra.mrb[132].mxu1 %vm1149_vm4, %v4279_v10 }
0x2e21   :  { %6069 = vmatpush3.bf16.xpose.msra.mxu1 %v4430_v13  ;;  %6070 = vmatprep.mubr.msk.bf16.mxu1 %vm6439_vm0, %v6438_v1 }
0x2e22   :  { %6080 = vmatprep.subr.bf16.mxu1 %v6438_v1 }
0x2e24   :  { %6065 = vmatmul.mubr.msk.bf16.vlgmr.msra.gmra.mrb[140].mxu0 %vm245_vm2, %v4373_v11 }
0x2e25   :  { %6076 = vmatprep.mubr.msk.bf16.mxu0 %vm6439_vm0, %v6438_v1 }
0x2e28   :  { %6071 = vmatmul.mubr.msk.bf16.vlgmr.msra.gmra.mrb[136].mxu1 %vm245_vm2, %v4423_v12 }
0x2e29   :  { %6082 = vmatprep.mubr.msk.bf16.mxu1 %vm6439_vm0, %v6438_v1 }
0x2eef   :  { %v7553_v46 = vpop.f32.mrb[136].mxu0 }
0x2ef0   :  { %v6054_v18 = vpop.f32.mrb[137].mxu0 }
0x2ef1   :  { %v4323_v14 = vpop.f32.mrb[138].mxu0 }
0x2ef2   :  { %v6055_v39 = vpop.f32.mrb[139].mxu0 }
0x2ef3   :  { %v7555_v16 = vpop.f32.mrb[132].mxu1 }
0x2ef4   :  { %v6205_v21 = vpack.i.bf16 %v7555_v16, %v7553_v46  ;;  %v6060_v19 = vpop.f32.mrb[133].mxu1 }
0x2ef5   :  { %v4369_v0 = vpop.f32.mrb[134].mxu1 }
0x2ef6   :  { %v6061_v51 = vpop.f32.mrb[135].mxu1 }
0x2ef7   :  { %v4416_v30 = vpop.f32.mrb[140].mxu0 }
0x2ef8   :  { %v4417_v45 = vadd.f32 %v7470_v15, %v4416_v30  ;;  %v6066_v53 = vpop.f32.mrb[141].mxu0 }
0x2ef9   :  { %v4419_v54 = vpop.f32.mrb[142].mxu0 }
0x2efa   :  { %v6067_v32 = vpop.f32.mrb[143].mxu0  ;;  %v4472_v24 = vsel %vm1149_vm4, %v4417_v45, -inf }
0x2efb   :  { %v4466_v20 = vpop.f32.mrb[136].mxu1  ;;  %4473 = vmax.xlane.f32.xlu1 %v4472_v24 }
0x2efc   :  { %v4467_v62 = vadd.f32 %v7476_v50, %v4466_v20  ;;  %v6072_v9 = vpop.f32.mrb[137].mxu1 }
0x2efd   :  { %v4469_v5 = vpop.f32.mrb[138].mxu1 }
0x2efe   :  { %v6073_v34 = vpop.f32.mrb[139].mxu1  ;;  %v4475_v37 = vsel %vm1149_vm4, %v4467_v62, -inf }
0x2eff   :  { %4476 = vmax.xlane.f32.xlu0 %v4475_v37 }
0x2f0c   :  { %4496 = vrot.lane.b32.xlu1 %v7444_v28, %s7831_s5 }
0x2f10   :  { %4590 = vrot.lane.b32.xlu1 %v7444_v28, %s7832_s4 }
0x2f14   :  { %4640 = vrot.lane.b32.xlu1 %v7442_v26, %s7832_s4 }
0x2f18   :  { %4588 = vrot.lane.b32.xlu1 %v7455_v40, %s7832_s4 }
0x2f88   :  { %v4474_v38 = vpop.xlane.xlu1 %4473 }
0x2f89   :  { %v4478_v17 = vsub.f32 %v4417_v45, %v4474_v38 }
0x2f8b   :  { %v4480_v41 = vmul.f32 1.442695, %v4478_v17 }
0x2f8c   :  { %v4477_v35 = vpop.xlane.xlu0 %4476  ;;  %v4497_v42 = vpop.permute.xlu1 %4496 }
0x2f8d   :  { %6386 = vpow2.f32 %v4480_v41  ;;  %v4479_v43 = vsub.f32 %v4467_v62, %v4477_v35  ;;  %6075 = vmatpush3.bf16.msra.mxu0 %v4497_v42 }
0x2f8e   :  { %6086 = vmatprep.subr.bf16.mxu0 %v6438_v1 }
0x2f8f   :  { %v4482_v44 = vmul.f32 1.442695, %v4479_v43 }
0x2f90   :  { %v4591_v59 = vpop.permute.xlu1 %4590 }
0x2f91   :  { %6388 = vpow2.f32 %v4482_v44  ;;  %v4596_v2 = vsel %vm245_vm2, %v4591_v59, 0 }
0x2f94   :  { %v4641_v27 = vpop.permute.xlu1 %4640 }
0x2f95   :  { %v4646_v31 = vsel %vm245_vm2, %v4641_v27, 0 }
0x2f97   :  { %v6387_v47 = vpop.eup %6386 }
0x2f98   :  { %v4484_v25 = vsel %vm1149_vm4, %v6387_v47, 0.0  ;;  %v4589_v4 = vpop.permute.xlu1 %4588 }
0x2f99   :  { %4485 = vadd.xlane.f32.xlu0 %v4484_v25 }
0x2f9b   :  { %v6389_v55 = vpop.eup %6388 }
0x2f9c   :  { %v4487_v49 = vsel %vm1149_vm4, %v6389_v55, 0.0 }
0x2f9d   :  { %4488 = vadd.xlane.f32.xlu0 %v4487_v49 }
0x2fb3   :  { %4542 = vrot.lane.b32.xlu0 %v7442_v26, %s7831_s5 }
0x2fb7   :  { %4638 = vrot.lane.b32.xlu0 %v7457_v63, %s7832_s4 }
0x3026   :  { %v4486_v40 = vpop.xlane.xlu0 %4485 }
0x3027   :  { %6390 = vrcp.f32 %v4486_v40 }
0x302a   :  { %v4489_v7 = vpop.xlane.xlu0 %4488 }
0x302b   :  { %6392 = vrcp.f32 %v4489_v7 }
0x302e   :  { %v4543_v56 = vpop.permute.xlu0 %4542 }
0x302f   :  { %6081 = vmatpush3.bf16.msra.mxu1 %v4543_v56 }
0x3030   :  { %6092 = vmatprep.subr.bf16.mxu1 %v6438_v1 }
0x3031   :  { %v6391_v57 = vpop.eup %6390 }
0x3032   :  { %v4491_v58 = vmul.f32 %v6391_v57, %v6387_v47  ;;  %v4639_v33 = vpop.permute.xlu0 %4638 }
0x3034   :  { %v4494_v60 = vpack.c.bf16 %v4491_v58, %v4491_v58 }
0x3035   :  { %v6393_v61 = vpop.eup %6392 }
0x3036   :  { %v4493_v29 = vmul.f32 %v6393_v61, %v6389_v55  ;;  %6077 = vmatmul.mubr.msk.bf16.vlgmr.msra.gmra.mrb[144].mxu0 %vm1149_vm4, %v4494_v60  ;;  %v6249_v55 = vld [vmem:[%s7846_s26 + $0x18] sm:$0xff]  }
0x3037   :  { %6087 = vmatpush3.bf16.xpose.msra.mxu0 %v4596_v2  ;;  %6088 = vmatprep.mubr.msk.bf16.mxu0 %vm6439_vm0, %v6438_v1 }
0x3038   :  { %v4495_v63 = vpack.c.bf16 %v4493_v29, %v4493_v29  ;;  %6098 = vmatprep.subr.bf16.mxu0 %v6438_v1 }
0x303a   :  { %6083 = vmatmul.mubr.msk.bf16.vlgmr.msra.gmra.mrb[140].mxu1 %vm1149_vm4, %v4495_v63 }
0x303b   :  { %6093 = vmatpush3.bf16.xpose.msra.mxu1 %v4646_v31  ;;  %6094 = vmatprep.mubr.msk.bf16.mxu1 %vm6439_vm0, %v6438_v1 }
0x303c   :  { %6104 = vmatprep.subr.bf16.mxu1 %v6438_v1 }
0x303e   :  { %6089 = vmatmul.mubr.msk.bf16.vlgmr.msra.gmra.mrb[148].mxu0 %vm245_vm2, %v4589_v4 }
0x303f   :  { %6100 = vmatprep.mubr.msk.bf16.mxu0 %vm6439_vm0, %v6438_v1 }
0x3042   :  { %6095 = vmatmul.mubr.msk.bf16.vlgmr.msra.gmra.mrb[144].mxu1 %vm245_vm2, %v4639_v33 }
0x3043   :  { %6106 = vmatprep.mubr.msk.bf16.mxu1 %vm6439_vm0, %v6438_v1 }
0x3109   :  { %v4536_v6 = vpop.f32.mrb[144].mxu0 }
0x310a   :  { %v6078_v3 = vpop.f32.mrb[145].mxu0 }
0x310b   :  { %v4539_v8 = vpop.f32.mrb[146].mxu0 }
0x310c   :  { %v6079_v36 = vpop.f32.mrb[147].mxu0 }
0x310d   :  { %v4582_v10 = vpop.f32.mrb[140].mxu1 }
0x310e   :  { %v6210_v13 = vpack.i.bf16 %v4582_v10, %v4536_v6  ;;  %v6084_v11 = vpop.f32.mrb[141].mxu1 }
0x310f   :  { %v4585_v12 = vpop.f32.mrb[142].mxu1 }
0x3110   :  { %v6085_v18 = vpop.f32.mrb[143].mxu1 }
0x3111   :  { %v4632_v14 = vpop.f32.mrb[148].mxu0 }
0x3112   :  { %v4633_v39 = vadd.f32 %v7470_v15, %v4632_v14  ;;  %v6090_v19 = vpop.f32.mrb[149].mxu0 }
0x3113   :  { %v4635_v0 = vpop.f32.mrb[150].mxu0 }
0x3114   :  { %v6091_v51 = vpop.f32.mrb[151].mxu0  ;;  %v4688_v30 = vsel %vm1149_vm4, %v4633_v39, -inf }
0x3115   :  { %v4682_v45 = vpop.f32.mrb[144].mxu1  ;;  %4689 = vmax.xlane.f32.xlu1 %v4688_v30 }
0x3116   :  { %v4683_v53 = vadd.f32 %v7476_v50, %v4682_v45  ;;  %v6096_v54 = vpop.f32.mrb[145].mxu1 }
0x3117   :  { %v4685_v32 = vpop.f32.mrb[146].mxu1 }
0x3118   :  { %v6097_v24 = vpop.f32.mrb[147].mxu1  ;;  %v4691_v20 = vsel %vm1149_vm4, %v4683_v53, -inf }
0x3119   :  { %4692 = vmax.xlane.f32.xlu0 %v4691_v20 }
0x3126   :  { %4712 = vrot.lane.b32.xlu1 %v7444_v28, %s7833_s28 }
0x312a   :  { %6206 = vrot.lane.b32.xlu1 %v6205_v21, %s7834_s2 }
0x312e   :  { %6211 = vrot.lane.b32.xlu1 %v6210_v13, %s7835_s13 }
0x31a2   :  { %v4690_v15 = vpop.xlane.xlu1 %4689 }
0x31a3   :  { %v4694_v62 = vsub.f32 %v4633_v39, %v4690_v15 }
0x31a5   :  { %v4696_v9 = vmul.f32 1.442695, %v4694_v62 }
0x31a6   :  { %v4693_v50 = vpop.xlane.xlu0 %4692  ;;  %v4713_v5 = vpop.permute.xlu1 %4712 }
0x31a7   :  { %6394 = vpow2.f32 %v4696_v9  ;;  %v4695_v34 = vsub.f32 %v4683_v53, %v4693_v50  ;;  %6099 = vmatpush3.bf16.msra.mxu0 %v4713_v5 }
0x31a8   :  { %6110 = vmatprep.subr.bf16.mxu0 %v6438_v1 }
0x31a9   :  { %v4698_v37 = vmul.f32 1.442695, %v4695_v34 }
0x31aa   :  { %v6207_v2 = vpop.permute.xlu1 %6206 }
0x31ab   :  { %6396 = vpow2.f32 %v4698_v37  ;;  %v6209_v27 = vunpack.i.h.bf16 %v6207_v2  ;;  %v6208_v63 = vunpack.i.l.bf16 %v6207_v2  ;;  %v6251_v37 = vld [vmem:[%s7740_s20 + $0x18] sm:$0xff]  }
0x31ad   :  { %v4829_v6 = vsel %vm245_vm2, %v7515_v48, %v6209_v27  ;;  %v4828_v3 = vsel %vm245_vm2, %v7513_v52, %v6208_v63 }
0x31ae   :  { %v6212_v29 = vpop.permute.xlu1 %6211 }
0x31af   :  { %v6214_v31 = vunpack.i.h.bf16 %v6212_v29  ;;  %v6213_v4 = vunpack.i.l.bf16 %v6212_v29 }
0x31b1   :  { %v6395_v28 = vpop.eup %6394  ;;  %v4830_v10 = vsel %vm1149_vm4, %v4828_v3, %v6213_v4  ;;  %v4831_v13 = vsel %vm1149_vm4, %v4829_v6, %v6214_v31  ;;  %v5421_v6 = vld [vmem:[%s7743_s23 + $0x1] ss:$0 sm:$0xff]  ;;  %s7848_s23 = sld [smem:[#allocation23_spill]] }
0x31b2   :  { %v4700_v38 = vsel %vm1149_vm4, %v6395_v28, 0.0 }
0x31b3   :  { %4701 = vadd.xlane.f32.xlu0 %v4700_v38  ;;  %v6253_v38 = vld [vmem:[%s7742_s22 + $0x28] sm:$0xff]  }
0x31b5   :  { %v6397_v46 = vpop.eup %6396 }
0x31b6   :  { %v4703_v16 = vsel %vm1149_vm4, %v6397_v46, 0.0 }
0x31b7   :  { %4704 = vadd.xlane.f32.xlu0 %v4703_v16 }
0x31cd   :  { %4758 = vrot.lane.b32.xlu0 %v7442_v26, %s7833_s28  ;;  %v6248_v26 = vld [vmem:[%s7846_s26 + $0x10] sm:$0xff]   ;;  %s7847_s28 = sld [smem:[#allocation22_spill]] }
0x31d3   :  { %v5395_v52 = vld [vmem:[%s7847_s28 + $0x1] ss:$0 sm:$0xff] }
0x3240   :  { %v4702_v21 = vpop.xlane.xlu0 %4701 }
0x3241   :  { %6398 = vrcp.f32 %v4702_v21 }
0x3244   :  { %v4705_v17 = vpop.xlane.xlu0 %4704 }
0x3245   :  { %6400 = vrcp.f32 %v4705_v17 }
0x3248   :  { %v4759_v41 = vpop.permute.xlu0 %4758 }
0x3249   :  { %6105 = vmatpush3.bf16.msra.mxu1 %v4759_v41 }
0x324a   :  { %6118 = vmatprep.subr.bf16.mxu1 %v6438_v1 }
0x324b   :  { %v6399_v35 = vpop.eup %6398 }
0x324c   :  { %v4707_v42 = vmul.f32 %v6399_v35, %v6395_v28  ;;  %v6252_v28 = vld [vmem:[%s7742_s22 + $0x20] sm:$0xff]  }
0x324e   :  { %v4710_v43 = vpack.c.bf16 %v4707_v42, %v4707_v42 }
0x324f   :  { %v6401_v44 = vpop.eup %6400 }
0x3250   :  { %v4709_v47 = vmul.f32 %v6401_v44, %v6397_v46  ;;  %6101 = vmatmul.mubr.msk.bf16.vlgmr.msra.gmra.mrb[152].mxu0 %vm1149_vm4, %v4710_v43  ;;  %v5399_v44 = vld [vmem:[%s7738_s18 + $0x1] ss:$0 sm:$0xff] }
0x3251   :  { %6114 = vmatprep.mubr.msk.bf16.mxu0 %vm6439_vm0, %v6438_v1  ;;  %6111 = vmatpush3.bf16.msra.mxu0 %v6248_v26 }
0x3252   :  { %v4711_v25 = vpack.c.bf16 %v4709_v47, %v4709_v47  ;;  %6112 = vmatprep.subr.bf16.mxu0 %v6438_v1 }
0x3254   :  { %6107 = vmatmul.mubr.msk.bf16.vlgmr.msra.gmra.mrb[148].mxu1 %vm1149_vm4, %v4711_v25 }
0x3255   :  { %6122 = vmatprep.mubr.msk.bf16.mxu1 %vm6439_vm0, %v6438_v1  ;;  %6113 = vmatpush3.bf16.msra.mxu0 %v6249_v55  ;;  %v5400_v55 = vld [vmem:[%s7739_s19 + $0x1] ss:$0 sm:$0xff] }
0x3256   :  { %6126 = vmatprep.subr.bf16.mxu0 %v6438_v1 }
0x3323   :  { %v4752_v49 = vpop.f32.mrb[152].mxu0 }
0x3324   :  { %v6102_v40 = vpop.f32.mrb[153].mxu0 }
0x3325   :  { %v4755_v7 = vpop.f32.mrb[154].mxu0 }
0x3326   :  { %v6103_v56 = vpop.f32.mrb[155].mxu0 }
0x3327   :  { %v4798_v57 = vpop.f32.mrb[148].mxu1 }
0x3328   :  { %v6215_v59 = vpack.i.bf16 %v4798_v57, %v4752_v49  ;;  %v6108_v58 = vpop.f32.mrb[149].mxu1  ;;  %v6254_v57 = vld [vmem:[%s7742_s22 + $0x30] sm:$0xff]  }
0x3329   :  { %v4801_v60 = vpop.f32.mrb[150].mxu1  ;;  %v5417_v58 = vld [vmem:[%s7741_s21 + $0x1] ss:$0 sm:$0xff] }
0x332a   :  { %v6109_v61 = vpop.f32.mrb[151].mxu1  ;;  %6216 = vrot.lane.b32.xlu1 %v6215_v59, %s7837_s8  ;;  %v6255_v59 = vld [vmem:[%s7742_s22 + $0x38] sm:$0xff]  }
0x339c   :  { %v6217_v33 = vpop.permute.xlu1 %6216 }
0x339d   :  { %v6219_v8 = vunpack.i.h.bf16 %v6217_v33  ;;  %v6218_v36 = vunpack.i.l.bf16 %v6217_v33 }
0x339f   :  { %v4833_v11 = vsel %vm1152_vm5, %v4831_v13, %v6219_v8  ;;  %v4832_v12 = vsel %vm1152_vm5, %v4830_v10, %v6218_v36 }
0x33a0   :  { %v4834_v18 = vpack.c.bf16 %v4833_v11, %v4832_v12 }
0x33a2   :  { %6115 = vmatmul.mubr.msk.bf16.vlgmr.msra.gmra.mrb[156].mxu0 %vm137_vm1, %v4834_v18 }
0x33a3   :  { %6134 = vmatprep.mubr.msk.bf16.mxu0 %vm6439_vm0, %v6438_v1  ;;  %6127 = vmatpush3.bf16.msra.mxu0 %v6252_v28 }
0x33a4   :  { %6128 = vmatprep.subr.bf16.mxu0 %v6438_v1 }
0x33a7   :  { %6129 = vmatpush3.bf16.msra.mxu0 %v6253_v38 }
0x33a8   :  { %6130 = vmatprep.subr.bf16.mxu0 %v6438_v1 }
0x33ab   :  { %6131 = vmatpush3.bf16.msra.mxu0 %v6254_v57 }
0x33ac   :  { %6132 = vmatprep.subr.bf16.mxu0 %v6438_v1 }
0x33af   :  { %6133 = vmatpush3.bf16.msra.mxu0 %v6255_v59 }
0x3475   :  { %v4890_v48 = vpop.f32.mrb[156].mxu0 }
0x3476   :  { %v4891_v14 = vadd.f32 %v5395_v52, %v4890_v48  ;;  %v6116_v39 = vpop.f32.mrb[157].mxu0 }
0x3477   :  { %v4893_v19 = vpop.f32.mrb[158].mxu0 }
0x3478   :  { %v4897_v0 = vadd.f32 %v4891_v14, %v7430_v22  ;;  %v4894_v51 = vadd.f32 %v5395_v52, %v4893_v19  ;;  %v6117_v30 = vpop.f32.mrb[159].mxu0 }
0x347a   :  { %v4898_v45 = vadd.f32 %v4894_v51, %v7432_v23  ;;  %v4899_v53 = vsel %vm137_vm1, %v4897_v0, 0.0  ;;  %v6250_v23 = vld [vmem:[%s7740_s20 + $0x10] sm:$0xff]  }
0x347b   :  { %4900 = vadd.xlane.f32.xlu0 %v4899_v53  ;;  %6119 = vmatpush3.bf16.msra.mxu1 %v6250_v23  ;;  %v5427_v23 = vld [vmem:[%s7744_s24 + $0x1] ss:$0 sm:$0xff]  ;;  %s6450_s24 = smov [#allocation2]  }
0x347c   :  { %v4902_v54 = vsel %vm137_vm1, %v4898_v45, 0.0  ;;  %6120 = vmatprep.subr.bf16.mxu1 %v6438_v1  ;;  %s5222_s0 = sshll.u32 %s6450_s24, 4  ;;  %s5223_s0 = int_to_ptr.vmem [resolvable:$true] %s5222_s0 }
0x347d   :  { %4903 = vadd.xlane.f32.xlu1 %v4902_v54  ;;  %p6419_p1 = scmp.lt.s32.totalorder %s5223_s0, %s5223_s0 }
0x347f   :  { %6121 = vmatpush3.bf16.msra.mxu1 %v6251_v37 }
0x3480   :  { %6138 = vmatprep.subr.bf16.mxu1 %v6438_v1 }
0x3508   :  { %v4901_v32 = vpop.xlane.xlu0 %4900 }
0x3509   :  { %v4905_v24 = vmul.f32 0.03125, %v4901_v32 }
0x350a   :  { %v4904_v20 = vpop.xlane.xlu1 %4903 }
0x350b   :  { %v4907_v15 = vsub.f32 %v4897_v0, %v4905_v24  ;;  %v4906_v62 = vmul.f32 0.03125, %v4904_v20  ;;  %v6256_v24 = vld [vmem:[%s7848_s23] sm:$0xff]   ;;  %v6257_v20 = vld [vmem:[%s7848_s23 + $0x8] sm:$0xff]  }
0x350d   :  { %v4908_v9 = vsub.f32 %v4898_v45, %v4906_v62  ;;  %v4909_v50 = vmul.f32 %v4907_v15, %v4907_v15 }
0x350f   :  { %v4911_v5 = vsel %vm137_vm1, %v4909_v50, 0.0  ;;  %v4910_v22 = vmul.f32 %v4908_v9, %v4908_v9 }
0x3510   :  { %4912 = vadd.xlane.f32.xlu0 %v4911_v5 }
0x3511   :  { %v4914_v34 = vsel %vm137_vm1, %v4910_v22, 0.0 }
0x3514   :  { %4915 = vadd.xlane.f32.xlu0 %v4914_v34 }
0x359d   :  { %v4913_v46 = vpop.xlane.xlu0 %4912 }
0x359e   :  { %v4917_v16 = vmul.f32 0.032258064, %v4913_v46 }
0x35a0   :  { %v4919_v21 = vadd.f32 1e-10, %v4917_v16 }
0x35a1   :  { %v4916_v17 = vpop.xlane.xlu0 %4915 }
0x35a2   :  { %6402 = vrsqrt.f32 %v4919_v21  ;;  %v4918_v41 = vmul.f32 0.032258064, %v4916_v17 }
0x35a4   :  { %v4920_v35 = vadd.f32 1e-10, %v4918_v41 }
0x35a6   :  { %6404 = vrsqrt.f32 %v4920_v35  ;;  %v5429_v35 = vld [vmem:[%s7849_s10] ss:$0 sm:$0xff] }
0x35ac   :  { %v6403_v42 = vpop.eup %6402 }
0x35ad   :  { %v4923_v43 = vmul.f32 %v6403_v42, %v4907_v15 }
0x35af   :  { %v4931_v25 = vmul.f32 %v5399_v44, %v4923_v43 }
0x35b0   :  { %v6405_v47 = vpop.eup %6404 }
0x35b1   :  { %v4924_v26 = vmul.f32 %v6405_v47, %v4908_v9  ;;  %v4939_v40 = vadd.f32 %v5400_v55, %v4931_v25 }
0x35b3   :  { %v4932_v49 = vmul.f32 %v5399_v44, %v4924_v26 }
0x35b5   :  { %v4940_v7 = vadd.f32 %v5400_v55, %v4932_v49 }
0x35b7   :  { %v4963_v56 = vpack.c.bf16 %v4940_v7, %v4939_v40 }
0x35b9   :  { %6123 = vmatmul.mubr.msk.bf16.vlgmr.msra.gmra.mrb[152].mxu1 %vm137_vm1, %v4963_v56 }
0x35ba   :  { %6142 = vmatprep.mubr.msk.bf16.mxu1 %vm6439_vm0, %v6438_v1  ;;  %6139 = vmatpush3.bf16.msra.mxu1 %v6256_v24 }
0x35bb   :  { %6140 = vmatprep.subr.bf16.mxu1 %v6438_v1  ;;  %v5428_v1 = vld [vmem:[%s7745_s25 + $0x1] ss:$0 sm:$0xff]  ;;  %s6414_s25 = scalar_lea.vmem %s5223_s0, 256 }
0x35bc   :  { %p6415_p0 = scmp.ne.s32.totalorder %s5223_s0, %s6414_s25  ;;  %p6420_p2 = scmp.lt.s32.totalorder %s6414_s25, %s6414_s25 }
0x35be   :  { %6141 = vmatpush3.bf16.msra.mxu1 %v6257_v20  ;;  %p6421_p3 = por %p6420_p2, %p6419_p1 }
0x35c0   :  { %p6422_p4 = pnand %p6421_p3, %p6415_p0 }
0x368c   :  { %v5019_v60 = vpop.f32.mrb[152].mxu1 }
0x368d   :  { %v5020_v61 = vadd.f32 %v5417_v58, %v5019_v60  ;;  %v6124_v2 = vpop.f32.mrb[153].mxu1 }
0x368e   :  { %v5022_v29 = vpop.f32.mrb[154].mxu1 }
0x368f   :  { %v5023_v27 = vadd.f32 %v5417_v58, %v5022_v29  ;;  %v6125_v63 = vpop.f32.mrb[155].mxu1  ;;  %v5026_v31 = vmax.f32 %v5020_v61, 0.0 }
0x3691   :  { %v5027_v4 = vmax.f32 %v5023_v27, 0.0 }
0x3693   :  { %v5028_v33 = vpack.c.bf16 %v5027_v4, %v5026_v31 }
0x3695   :  { %6135 = vmatmul.mubr.msk.bf16.vlgmr.msra.gmra.mrb[160].mxu0 %vm2532_vm6, %v5028_v33 }
0x3768   :  { %v5096_v3 = vpop.f32.mrb[160].mxu0 }
0x3769   :  { %v5097_v8 = vadd.f32 %v5421_v6, %v5096_v3  ;;  %v6136_v36 = vpop.f32.mrb[161].mxu0 }
0x376a   :  { %v5099_v10 = vpop.f32.mrb[162].mxu0 }
0x376b   :  { %v5103_v13 = vadd.f32 %v5097_v8, %v4939_v40  ;;  %v5100_v11 = vadd.f32 %v5421_v6, %v5099_v10  ;;  %v6137_v12 = vpop.f32.mrb[163].mxu0 }
0x376d   :  { %v5104_v18 = vadd.f32 %v5100_v11, %v4940_v7  ;;  %v5105_v52 = vsel %vm137_vm1, %v5103_v13, 0.0 }
0x376e   :  { %5106 = vadd.xlane.f32.xlu0 %v5105_v52 }
0x376f   :  { %v5108_v48 = vsel %vm137_vm1, %v5104_v18, 0.0 }
0x3770   :  { %5109 = vadd.xlane.f32.xlu1 %v5108_v48 }
0x37fb   :  { %v5107_v14 = vpop.xlane.xlu0 %5106 }
0x37fc   :  { %v5111_v39 = vmul.f32 0.03125, %v5107_v14 }
0x37fd   :  { %v5110_v19 = vpop.xlane.xlu1 %5109 }
0x37fe   :  { %v5113_v0 = vsub.f32 %v5103_v13, %v5111_v39  ;;  %v5112_v51 = vmul.f32 0.03125, %v5110_v19 }
0x3800   :  { %v5114_v30 = vsub.f32 %v5104_v18, %v5112_v51  ;;  %v5115_v45 = vmul.f32 %v5113_v0, %v5113_v0 }
0x3802   :  { %v5117_v53 = vsel %vm137_vm1, %v5115_v45, 0.0  ;;  %v5116_v54 = vmul.f32 %v5114_v30, %v5114_v30 }
0x3803   :  { %5118 = vadd.xlane.f32.xlu0 %v5117_v53 }
0x3804   :  { %v5120_v32 = vsel %vm137_vm1, %v5116_v54, 0.0 }
0x3805   :  { %5121 = vadd.xlane.f32.xlu1 %v5120_v32 }
0x3890   :  { %v5119_v15 = vpop.xlane.xlu0 %5118 }
0x3891   :  { %v5123_v62 = vmul.f32 0.032258064, %v5119_v15 }
0x3892   :  { %v5122_v9 = vpop.xlane.xlu1 %5121 }
0x3893   :  { %v5125_v50 = vadd.f32 1e-10, %v5123_v62  ;;  %v5124_v5 = vmul.f32 0.032258064, %v5122_v9 }
0x3895   :  { %6406 = vrsqrt.f32 %v5125_v50  ;;  %v5126_v22 = vadd.f32 1e-10, %v5124_v5 }
0x3897   :  { %6408 = vrsqrt.f32 %v5126_v22 }
0x389f   :  { %v6407_v34 = vpop.eup %6406 }
0x38a0   :  { %v5129_v37 = vmul.f32 %v6407_v34, %v5113_v0 }
0x38a1   :  { %v6409_v28 = vpop.eup %6408 }
0x38a2   :  { %v5137_v38 = vmul.f32 %v5427_v23, %v5129_v37  ;;  %v5130_v46 = vmul.f32 %v6409_v28, %v5114_v30 }
0x38a4   :  { %v5138_v16 = vmul.f32 %v5427_v23, %v5130_v46  ;;  %v5145_v21 = vadd.f32 %v5428_v1, %v5137_v38 }
0x38a6   :  { %v5146_v17 = vadd.f32 %v5428_v1, %v5138_v16 }
0x38a8   :  { %v5151_v41 = vpack.c.bf16 %v5146_v17, %v5145_v21 }
0x38aa   :  { %6143 = vmatmul.mubr.msk.bf16.vlgmr.msra.gmra.mrb[156].mxu1 %vm137_vm1, %v5151_v41 }
0x397d   :  { %v5208_v42 = vpop.f32.mrb[156].mxu1 }
0x397e   :  { %v5209_v43 = vadd.f32 %v5429_v35, %v5208_v42  ;;  %v6144_v44 = vpop.f32.mrb[157].mxu1 }
0x397f   :  { %v5211_v47 = vpop.f32.mrb[158].mxu1 }
0x3980   :  { %5215 = vst [vmem:[#allocation2] sm:$0xff] %v5209_v43  ;;  %v5212_v25 = vadd.f32 %v5429_v35, %v5211_v47  ;;  %v6145_v26 = vpop.f32.mrb[159].mxu1 }
0x3982   :  { %5216 = vst [vmem:[#allocation2 + $0x8] sm:$0xff] %v5212_v25 }
0x3983   :  { %6425 = shalt.err (!%p6422_p4)
}
0x3984   :  { %s7850_s1 = sld [smem:[#allocation25_spill]] }
0x398a   :  { %s6426_s20 = scalar_lea.hbm %s7850_s1, 256 }
0x398b   :  { %p6427_p5 = scmp.ne.s32.totalorder %s7850_s1, %s6426_s20  ;;  %p6430_p6 = scmp.lt.u32.totalorder %s6426_s20, %s7850_s1 }
0x398d   :  { %p6432_p7 = pnand %p6430_p6, %p6427_p5 }
0x398f   :  { %6435 = shalt.err (!%p6432_p7)
}
0x3990   :  { %s6451_s14 = smov 128  }
0x3991   :  { %5228 = dma.vmem_to_hbm [thread:$0]  %s5223_s0, 256, %s7850_s1, [#allocation3], %s6451_s14, %s6451_s14, %s7834_s2  }
0x3992   :  { %6436 = dma.done.wait [#allocation3], 256  }
0x3993   :  { %6437 = vsyncadd [#allocation3], 4294967040 }
0x3994   :  { %5232 = vsyncpa [#allocation3], 1 }

</bundles_post_ra>
